<compile_context>
chip_gen: v7x
topology: tpu7x:2x2x1
jax: 0.10.0
libtpu: 0.0.40
codegen_flags: <defaults>
</compile_context>

<pallas_src>
import numpy as np
import jax
import jax.numpy as jnp
from jax import lax
from jax.experimental import pallas as pl
from jax.experimental.pallas import tpu as pltpu

# ------------------------------ constants -----------------------------------
KSZ = 11                  # conv kernel size
CIN, COUT = 1, 100
POOL = 6
HIDDEN = 1024
H_IN = W_IN = 64
HO = H_IN - KSZ + 1       # 54
PO = HO // POOL           # 9
M_SPATIAL = HO * HO       # 2916
KPATCH = 128              # 121 patch elems padded to 128 (lane-dense MXU K)
CPAD = 128                # 100 channels padded to 128 (lane-dense MXU N)
KFC = COUT * PO * PO      # 8100
KFC_PAD = 8192            # padded FC reduction dim
TK = 1024                 # head K tile (1 MiB bf16 weight tile -> v5e-safe)
TN = 512                  # head N tile (2 tiles -> both v7x TensorCores)


# ----------------------------- Pallas kernels ------------------------------

def _conv_pool_kernel(p_ref, w_ref, b_ref, m_ref, o_ref):
    # p: (1, 2916, 128) f32 im2col patches for one image (121 real + 7 zero cols)
    # w: (128, 128) f32 conv weight (121x100 zero-padded)
    # b: (1, 128)   f32 conv bias   (100 real + 28 zero)
    # m: (81, 2916) f32 pooling matrix (entries 1/36)
    # o: (1, 81, 100) f32 pooled activations, rows ordered p*9+q, lanes = channels
    act = jax.nn.sigmoid(
        jnp.dot(p_ref[0], w_ref[...], preferred_element_type=jnp.float32)
        + b_ref[...])                                             # (2916, 128)
    pooled = jnp.dot(m_ref[...], act,
                     preferred_element_type=jnp.float32)          # (81, 128)
    o_ref[0] = pooled[:, :COUT]


def _head_kernel(x_ref, w_ref, b_ref, o_ref):
    # Linear(8100->1024) + bias + sigmoid.
    # grid = (N//TN "parallel", K//TK "arbitrary"); accumulate directly into the
    # f32 output block (constant across k) -> no scratch needed.
    k = pl.program_id(1)

    @pl.when(k == 0)
    def _():
        o_ref[...] = jnp.zeros_like(o_ref)

    o_ref[...] += jnp.dot(x_ref[...], w_ref[...],
                          preferred_element_type=jnp.float32)

    @pl.when(k == pl.num_programs(1) - 1)
    def _():
        o_ref[...] = jax.nn.sigmoid(o_ref[...] + b_ref[...])


def _softmax_kernel(x_ref, o_ref):
    # Inputs are sigmoid outputs in (0,1): exp is safe without max-subtraction.
    e = jnp.exp(x_ref[...])
    o_ref[...] = e / jnp.sum(e, axis=-1, keepdims=True)


# ------------------------------ wrappers ------------------------------------

def conv_pool(patches, w_kc, b_row, pool_m):
    B = patches.shape[0]
    return pl.pallas_call(
        _conv_pool_kernel,
        out_shape=jax.ShapeDtypeStruct((B, PO * PO, COUT), jnp.float32),
        grid=(B,),
        in_specs=[pl.BlockSpec((1, M_SPATIAL, KPATCH), lambda b: (b, 0, 0)),
                  pl.BlockSpec((KPATCH, CPAD), lambda b: (0, 0)),
                  pl.BlockSpec((1, CPAD), lambda b: (0, 0)),
                  pl.BlockSpec((PO * PO, M_SPATIAL), lambda b: (0, 0))],
        out_specs=pl.BlockSpec((1, PO * PO, COUT), lambda b: (b, 0, 0)),
        compiler_params=pltpu.CompilerParams(
            dimension_semantics=("parallel",),
            vmem_limit_bytes=32 * 1024 * 1024),
    )(patches, w_kc, b_row, pool_m)


def head(x_pad, w_pad, b_row):
    B, K = x_pad.shape
    _, N = w_pad.shape
    assert K % TK == 0 and N % TN == 0
    return pl.pallas_call(
        _head_kernel,
        out_shape=jax.ShapeDtypeStruct((B, N), jnp.float32),
        grid=(N // TN, K // TK),
        in_specs=[pl.BlockSpec((B, TK), lambda n, k: (0, k)),
                  pl.BlockSpec((TK, TN), lambda n, k: (k, n)),
                  pl.BlockSpec((1, TN), lambda n, k: (0, n))],
        out_specs=pl.BlockSpec((B, TN), lambda n, k: (0, n)),
        compiler_params=pltpu.CompilerParams(
            dimension_semantics=("parallel", "arbitrary")),
    )(x_pad, w_pad, b_row)


def softmax_rows(x):
    B, N = x.shape
    return pl.pallas_call(
        _softmax_kernel,
        out_shape=jax.ShapeDtypeStruct((B, N), jnp.float32),
        grid=(1,),
        in_specs=[pl.BlockSpec((B, N), lambda i: (0, 0))],
        out_specs=pl.BlockSpec((B, N), lambda i: (0, 0)),
    )(x)


# ----------------------- one-time parameter preparation ----------------------
# (hoisted out of the jitted forward: no per-call transpose/pad of the 32 MiB FC weight)

def prepare_params(conv_w, conv_b, fc_w, fc_b):
    # conv weight (100,1,11,11) -> (121,100) -> zero-pad to (128,128)
    w_kc = jnp.asarray(conv_w).reshape(COUT, KSZ * KSZ).T
    w_kc = jnp.pad(w_kc, ((0, KPATCH - KSZ * KSZ), (0, CPAD - COUT)))
    b_row = jnp.pad(jnp.asarray(conv_b).reshape(1, COUT), ((0, 0), (0, CPAD - COUT)))

    # pooling matrix (81, 2916): M[p*9+q, h*54+w] = 1/36 iff h//6==p and w//6==q
    hw = np.arange(HO) // POOL
    pq_of_hw = hw[:, None] * PO + hw[None, :]                       # (54, 54)
    pool_m = (np.arange(PO * PO)[:, None] ==
              pq_of_hw.reshape(1, -1)).astype(np.float32) / (POOL * POOL)
    pool_m = jnp.asarray(pool_m)                                    # (81, 2916)

    # FC weight: PyTorch columns are ordered c*81 + (p*9+q); our flatten is (p*9+q)*100 + c.
    # Permute once, pad K 8100 -> 8192 with zero rows, cast to bf16.
    w_fc = jnp.asarray(fc_w).reshape(HIDDEN, COUT, PO * PO)
    w_fc = w_fc.transpose(2, 1, 0).reshape(KFC, HIDDEN)             # rows = pq*100 + c
    w_fc = jnp.pad(w_fc, ((0, KFC_PAD - KFC), (0, 0))).astype(jnp.bfloat16)
    fc_b_row = jnp.asarray(fc_b).reshape(1, HIDDEN).astype(jnp.float32)
    return w_kc, b_row, pool_m, w_fc, fc_b_row


# --------------------------- full forward pass ------------------------------

@jax.jit
def localnet_forward(x, w_kc, conv_b_row, pool_m, fc_w_p, fc_b_row):
    B = x.shape[0]
    xs = x[:, 0]                                                    # (B, 64, 64)

    # im2col (data-movement glue); pad kernel-position dim 121 -> 128 with zeros.
    cols = [xs[:, kh:kh + HO, kw:kw + HO] for kh in range(KSZ) for kw in range(KSZ)]
    zero = jnp.zeros_like(cols[0])
    cols = cols + [zero] * (KPATCH - len(cols))
    patches = jnp.stack(cols, axis=-1).reshape(B, M_SPATIAL, KPATCH)

    # fused conv + sigmoid + 6x6 average pool (one kernel, one launch)
    pooled = conv_pool(patches, w_kc, conv_b_row, pool_m)           # (B, 81, 100) f32

    # flatten in (p,q,c) order (FC weight rows were permuted to match), cast to bf16,
    # pad K 8100 -> 8192 with zeros (matching zero rows in the prepared weight).
    flat = pooled.reshape(B, KFC).astype(jnp.bfloat16)
    flat = jnp.pad(flat, ((0, 0), (0, KFC_PAD - KFC)))              # (B, 8192) bf16

    logits = head(flat, fc_w_p, fc_b_row)                           # (B, 1024) sigmoid'd
    return softmax_rows(logits)


# ------------------------------ reference -----------------------------------

def reference_forward(x, conv_w, conv_b, fc_w, fc_b):
    B = x.shape[0]
    out = lax.conv_general_dilated(
        x, conv_w, (1, 1), 'VALID',
        dimension_numbers=('NCHW', 'OIHW', 'NCHW'))                 # (B,100,54,54)
    out = jax.nn.sigmoid(out + conv_b[None, :, None, None])
    out = out.reshape(B, COUT, PO, POOL, PO, POOL).mean(axis=(3, 5))  # (B,100,9,9)
    flat = out.reshape(B, KFC)
    logits = jax.nn.sigmoid(flat @ fc_w.T + fc_b)
    return jax.nn.softmax(logits, axis=1)


# --------------------------------- main --------------------------------------

if __name__ == "__main__":
    key = jax.random.PRNGKey(0)
    k1, k2, k3, k4, k5 = jax.random.split(key, 5)

    # PyTorch-style uniform(-1/sqrt(fan_in), 1/sqrt(fan_in)) init, deterministic
    cb = 1.0 / np.sqrt(CIN * KSZ * KSZ)
    conv_w = jax.random.uniform(k1, (COUT, CIN, KSZ, KSZ), jnp.float32, -cb, cb)
    conv_b = jax.random.uniform(k2, (COUT,), jnp.float32, -cb, cb)
    fb = 1.0 / np.sqrt(KFC)
    fc_w = jax.random.uniform(k3, (HIDDEN, KFC), jnp.float32, -fb, fb)
    fc_b = jax.random.uniform(k4, (HIDDEN,), jnp.float32, -fb, fb)

    # input: batch=2, NCHW, 1 channel, 64x64 (required by the .view(-1, 8100))
    x = jax.random.normal(k5, (2, CIN, H_IN, W_IN), jnp.float32)

    # one-time weight prep (outside the jitted forward)
    params = prepare_params(conv_w, conv_b, fc_w, fc_b)

    out = jax.block_until_ready(localnet_forward(x, *params))
    ref = jax.block_until_ready(reference_forward(x, conv_w, conv_b, fc_w, fc_b))

    assert out.shape == (2, HIDDEN)
    np.testing.assert_allclose(np.asarray(out), np.asarray(ref), rtol=5e-2, atol=1e-5)

    print("KERNEL_OK")
</pallas_src>

<mosaic_0001>
module attributes {stable_mosaic.version = 11 : i64} {
  func.func @_conv_pool_kernel(%arg0: i32, %arg1: memref<1x2916x128xf32, #tpu.memory_space<vmem>>, %arg2: memref<128x128xf32, #tpu.memory_space<vmem>>, %arg3: memref<1x128xf32, #tpu.memory_space<vmem>>, %arg4: memref<81x2916xf32, #tpu.memory_space<vmem>>, %arg5: memref<1x81x100xf32, #tpu.memory_space<vmem>>) attributes {dimension_semantics = [#tpu.dimension_semantics<parallel>], iteration_bounds = array<i64: 2>, scalar_prefetch = 0 : i64, scratch_operands = 0 : i64, tpu.core_type = #tpu.core_type<tc>, window_params = [{transform_indices = @transform_0, window_bounds = array<i64: 1, 2916, 128>}, {pipeline_mode = #tpu.pipeline_mode<synchronous>, transform_indices = @transform_1, window_bounds = array<i64: 128, 128>}, {pipeline_mode = #tpu.pipeline_mode<synchronous>, transform_indices = @transform_2, window_bounds = array<i64: 1, 128>}, {pipeline_mode = #tpu.pipeline_mode<synchronous>, transform_indices = @transform_3, window_bounds = array<i64: 81, 2916>}, {transform_indices = @transform_4, window_bounds = array<i64: 1, 81, 100>}]} {
    %c0 = arith.constant 0 : index
    %c0_0 = arith.constant 0 : index
    %c0_1 = arith.constant 0 : index
    %0 = vector.load %arg1[%c0, %c0_0, %c0_1] : memref<1x2916x128xf32, #tpu.memory_space<vmem>>, vector<1x2916x128xf32>
    %1 = vector.shape_cast %0 : vector<1x2916x128xf32> to vector<2916x128xf32>
    %c0_2 = arith.constant 0 : index
    %c0_3 = arith.constant 0 : index
    %2 = vector.load %arg2[%c0_2, %c0_3] : memref<128x128xf32, #tpu.memory_space<vmem>>, vector<128x128xf32>
    %cst = arith.constant dense<0.000000e+00> : vector<2916x128xf32>
    %3 = tpu.matmul %1, %2, %cst {dimension_numbers = #tpu.dot_dimension_numbers<[1], [0], [0], [1], [0, 0, 1, 1], [], []>} : vector<2916x128xf32>, vector<128x128xf32>, vector<2916x128xf32> -> vector<2916x128xf32>
    %c0_4 = arith.constant 0 : index
    %c0_5 = arith.constant 0 : index
    %4 = vector.load %arg3[%c0_4, %c0_5] : memref<1x128xf32, #tpu.memory_space<vmem>>, vector<1x128xf32>
    %5 = vector.broadcast %4 : vector<1x128xf32> to vector<2916x128xf32>
    %6 = arith.addf %3, %5 : vector<2916x128xf32>
    %7 = arith.negf %6 : vector<2916x128xf32>
    %8 = math.exp %7 : vector<2916x128xf32>
    %cst_6 = arith.constant 1.000000e+00 : f32
    %9 = vector.broadcast %cst_6 : f32 to vector<2916x128xf32>
    %10 = arith.addf %9, %8 : vector<2916x128xf32>
    %11 = arith.divf %9, %10 : vector<2916x128xf32>
    %c0_7 = arith.constant 0 : index
    %c0_8 = arith.constant 0 : index
    %12 = vector.load %arg4[%c0_7, %c0_8] : memref<81x2916xf32, #tpu.memory_space<vmem>>, vector<81x2916xf32>
    %cst_9 = arith.constant dense<0.000000e+00> : vector<81x128xf32>
    %13 = tpu.matmul %12, %11, %cst_9 {dimension_numbers = #tpu.dot_dimension_numbers<[1], [0], [0], [1], [0, 0, 1, 1], [], []>} : vector<81x2916xf32>, vector<2916x128xf32>, vector<81x128xf32> -> vector<81x128xf32>
    %14 = vector.extract_strided_slice %13 {offsets = [0, 0], sizes = [81, 100], strides = [1, 1]} : vector<81x128xf32> to vector<81x100xf32>
    %c0_10 = arith.constant 0 : index
    %c0_11 = arith.constant 0 : index
    %c0_12 = arith.constant 0 : index
    %15 = vector.load %arg5[%c0_10, %c0_11, %c0_12] : memref<1x81x100xf32, #tpu.memory_space<vmem>>, vector<1x81x100xf32>
    %16 = vector.shape_cast %15 : vector<1x81x100xf32> to vector<81x100xf32>
    %17 = vector.shape_cast %14 : vector<81x100xf32> to vector<1x81x100xf32>
    tpu.vector_store %arg5[%c0_10, %c0_11, %c0_12], %17 {strides = array<i32>} : memref<1x81x100xf32, #tpu.memory_space<vmem>>, vector<1x81x100xf32>,
    return
  }
  func.func @transform_0(%arg0: i32) -> (i32, i32, i32) {
    %c0_i32 = arith.constant 0 : i32
    %c0_i32_0 = arith.constant 0 : i32
    %c0_i32_1 = arith.constant 0 : i32
    return %arg0, %c0_i32, %c0_i32_0 : i32, i32, i32
  }
  func.func @transform_1(%arg0: i32) -> (i32, i32) {
    %c0_i32 = arith.constant 0 : i32
    %c0_i32_0 = arith.constant 0 : i32
    %c0_i32_1 = arith.constant 0 : i32
    return %c0_i32, %c0_i32_0 : i32, i32
  }
  func.func @transform_2(%arg0: i32) -> (i32, i32) {
    %c0_i32 = arith.constant 0 : i32
    %c0_i32_0 = arith.constant 0 : i32
    %c0_i32_1 = arith.constant 0 : i32
    return %c0_i32, %c0_i32_0 : i32, i32
  }
  func.func @transform_3(%arg0: i32) -> (i32, i32) {
    %c0_i32 = arith.constant 0 : i32
    %c0_i32_0 = arith.constant 0 : i32
    %c0_i32_1 = arith.constant 0 : i32
    return %c0_i32, %c0_i32_0 : i32, i32
  }
  func.func @transform_4(%arg0: i32) -> (i32, i32, i32) {
    %c0_i32 = arith.constant 0 : i32
    %c0_i32_0 = arith.constant 0 : i32
    %c0_i32_1 = arith.constant 0 : i32
    return %arg0, %c0_i32, %c0_i32_0 : i32, i32, i32
  }
}

module attributes {stable_mosaic.version = 11 : i64} {
  func.func @_head_kernel(%arg0: i32, %arg1: i32, %arg2: memref<2x1024xbf16, #tpu.memory_space<vmem>>, %arg3: memref<1024x512xbf16, #tpu.memory_space<vmem>>, %arg4: memref<1x512xf32, #tpu.memory_space<vmem>>, %arg5: memref<2x512xf32, #tpu.memory_space<vmem>>) attributes {dimension_semantics = [#tpu.dimension_semantics<parallel>, #tpu.dimension_semantics<arbitrary>], iteration_bounds = array<i64: 2, 8>, scalar_prefetch = 0 : i64, scratch_operands = 0 : i64, tpu.core_type = #tpu.core_type<tc>, window_params = [{transform_indices = @transform_0, window_bounds = array<i64: 2, 1024>}, {transform_indices = @transform_1, window_bounds = array<i64: 1024, 512>}, {transform_indices = @transform_2, window_bounds = array<i64: 1, 512>}, {transform_indices = @transform_3, window_bounds = array<i64: 2, 512>}]} {
    %c0_i32 = arith.constant 0 : i32
    %0 = arith.cmpi eq, %arg1, %c0_i32 : i32
    %1 = arith.extui %0 : i1 to i32
    %c0_i32_0 = arith.constant 0 : i32
    %2 = arith.cmpi ne, %1, %c0_i32_0 : i32
    scf.if %2 {
      %cst_9 = arith.constant 0.000000e+00 : f32
      %12 = vector.broadcast %cst_9 : f32 to vector<2x512xf32>
      %c0_10 = arith.constant 0 : index
      %c0_11 = arith.constant 0 : index
      %13 = vector.load %arg5[%c0_10, %c0_11] : memref<2x512xf32, #tpu.memory_space<vmem>>, vector<2x512xf32>
      tpu.vector_store %arg5[%c0_10, %c0_11], %12 {strides = array<i32>} : memref<2x512xf32, #tpu.memory_space<vmem>>, vector<2x512xf32>,
    } else {
    }
    %c0 = arith.constant 0 : index
    %c0_1 = arith.constant 0 : index
    %3 = vector.load %arg5[%c0, %c0_1] : memref<2x512xf32, #tpu.memory_space<vmem>>, vector<2x512xf32>
    %c0_2 = arith.constant 0 : index
    %c0_3 = arith.constant 0 : index
    %4 = vector.load %arg2[%c0_2, %c0_3] : memref<2x1024xbf16, #tpu.memory_space<vmem>>, vector<2x1024xbf16>
    %c0_4 = arith.constant 0 : index
    %c0_5 = arith.constant 0 : index
    %5 = vector.load %arg3[%c0_4, %c0_5] : memref<1024x512xbf16, #tpu.memory_space<vmem>>, vector<1024x512xbf16>
    %cst = arith.constant dense<0.000000e+00> : vector<2x512xf32>
    %6 = tpu.matmul %4, %5, %cst {dimension_numbers = #tpu.dot_dimension_numbers<[1], [0], [0], [1], [0, 0, 1, 1], [], []>} : vector<2x1024xbf16>, vector<1024x512xbf16>, vector<2x512xf32> -> vector<2x512xf32>
    %7 = arith.addf %3, %6 : vector<2x512xf32>
    %c0_6 = arith.constant 0 : index
    %c0_7 = arith.constant 0 : index
    %8 = vector.load %arg5[%c0_6, %c0_7] : memref<2x512xf32, #tpu.memory_space<vmem>>, vector<2x512xf32>
    tpu.vector_store %arg5[%c0_6, %c0_7], %7 {strides = array<i32>} : memref<2x512xf32, #tpu.memory_space<vmem>>, vector<2x512xf32>,
    %c7_i32 = arith.constant 7 : i32
    %9 = arith.cmpi eq, %arg1, %c7_i32 : i32
    %10 = arith.extui %9 : i1 to i32
    %c0_i32_8 = arith.constant 0 : i32
    %11 = arith.cmpi ne, %10, %c0_i32_8 : i32
    scf.if %11 {
      %c0_9 = arith.constant 0 : index
      %c0_10 = arith.constant 0 : index
      %12 = vector.load %arg5[%c0_9, %c0_10] : memref<2x512xf32, #tpu.memory_space<vmem>>, vector<2x512xf32>
      %c0_11 = arith.constant 0 : index
      %c0_12 = arith.constant 0 : index
      %13 = vector.load %arg4[%c0_11, %c0_12] : memref<1x512xf32, #tpu.memory_space<vmem>>, vector<1x512xf32>
      %14 = vector.broadcast %13 : vector<1x512xf32> to vector<2x512xf32>
      %15 = arith.addf %12, %14 : vector<2x512xf32>
      %16 = arith.negf %15 : vector<2x512xf32>
      %17 = math.exp %16 : vector<2x512xf32>
      %cst_13 = arith.constant 1.000000e+00 : f32
      %18 = vector.broadcast %cst_13 : f32 to vector<2x512xf32>
      %19 = arith.addf %18, %17 : vector<2x512xf32>
      %20 = arith.divf %18, %19 : vector<2x512xf32>
      %c0_14 = arith.constant 0 : index
      %c0_15 = arith.constant 0 : index
      %21 = vector.load %arg5[%c0_14, %c0_15] : memref<2x512xf32, #tpu.memory_space<vmem>>, vector<2x512xf32>
      tpu.vector_store %arg5[%c0_14, %c0_15], %20 {strides = array<i32>} : memref<2x512xf32, #tpu.memory_space<vmem>>, vector<2x512xf32>,
    } else {
    }
    return
  }
  func.func @transform_0(%arg0: i32, %arg1: i32) -> (i32, i32) {
    %c0_i32 = arith.constant 0 : i32
    %c0_i32_0 = arith.constant 0 : i32
    return %c0_i32, %arg1 : i32, i32
  }
  func.func @transform_1(%arg0: i32, %arg1: i32) -> (i32, i32) {
    %c0_i32 = arith.constant 0 : i32
    return %arg1, %arg0 : i32, i32
  }
  func.func @transform_2(%arg0: i32, %arg1: i32) -> (i32, i32) {
    %c0_i32 = arith.constant 0 : i32
    %c0_i32_0 = arith.constant 0 : i32
    return %c0_i32, %arg0 : i32, i32
  }
  func.func @transform_3(%arg0: i32, %arg1: i32) -> (i32, i32) {
    %c0_i32 = arith.constant 0 : i32
    %c0_i32_0 = arith.constant 0 : i32
    return %c0_i32, %arg0 : i32, i32
  }
}

module attributes {stable_mosaic.version = 11 : i64} {
  func.func @_softmax_kernel(%arg0: i32, %arg1: memref<2x1024xf32, #tpu.memory_space<vmem>>, %arg2: memref<2x1024xf32, #tpu.memory_space<vmem>>) attributes {dimension_semantics = [#tpu.dimension_semantics<arbitrary>], iteration_bounds = array<i64: 1>, scalar_prefetch = 0 : i64, scratch_operands = 0 : i64, tpu.core_type = #tpu.core_type<tc>, window_params = [{pipeline_mode = #tpu.pipeline_mode<synchronous>, transform_indices = @transform_0, window_bounds = array<i64: 2, 1024>}, {pipeline_mode = #tpu.pipeline_mode<synchronous>, transform_indices = @transform_1, window_bounds = array<i64: 2, 1024>}]} {
    %c0 = arith.constant 0 : index
    %c0_0 = arith.constant 0 : index
    %0 = vector.load %arg1[%c0, %c0_0] : memref<2x1024xf32, #tpu.memory_space<vmem>>, vector<2x1024xf32>
    %1 = math.exp %0 : vector<2x1024xf32>
    %cst = arith.constant dense<0.000000e+00> : vector<2xf32>
    %2 = vector.multi_reduction <add>, %1, %cst [1] : vector<2x1024xf32> to vector<2xf32>
    %3 = vector.shape_cast %2 : vector<2xf32> to vector<2x1xf32>
    %4 = vector.broadcast %3 : vector<2x1xf32> to vector<2x1024xf32>
    %5 = arith.divf %1, %4 : vector<2x1024xf32>
    %c0_1 = arith.constant 0 : index
    %c0_2 = arith.constant 0 : index
    %6 = vector.load %arg2[%c0_1, %c0_2] : memref<2x1024xf32, #tpu.memory_space<vmem>>, vector<2x1024xf32>
    tpu.vector_store %arg2[%c0_1, %c0_2], %5 {strides = array<i32>} : memref<2x1024xf32, #tpu.memory_space<vmem>>, vector<2x1024xf32>,
    return
  }
  func.func @transform_0(%arg0: i32) -> (i32, i32) {
    %c0_i32 = arith.constant 0 : i32
    %c0_i32_0 = arith.constant 0 : i32
    %c0_i32_1 = arith.constant 0 : i32
    return %c0_i32, %c0_i32_0 : i32, i32
  }
  func.func @transform_1(%arg0: i32) -> (i32, i32) {
    %c0_i32 = arith.constant 0 : i32
    %c0_i32_0 = arith.constant 0 : i32
    %c0_i32_1 = arith.constant 0 : i32
    return %c0_i32, %c0_i32_0 : i32, i32
  }
}

</mosaic_0001>

<bundles_post_ra>
// kernel: localnet_forward.3
= control target key start
LH: loop header
LB: loop body
LE: loop exit
PB: predicated region body
PF: predicated region fallthrough
CT: control target
= control target key end

     0   :  { %9 = vsyncpa [#allocation3], 0  ;;  %s15392_s0 = inlined_call_operand.hbm [shape: f32[2,2916,128], index: 0, kind: input, shape index: {}]   ;;  %s15393_s1 = inlined_call_operand.vmem [shape: f32[128,128], index: 1, kind: input, shape index: {}]   ;;  %s15394_s2 = inlined_call_operand.vmem [shape: f32[1,128], index: 2, kind: input, shape index: {}]   ;;  %s15395_s3 = inlined_call_operand.vmem [shape: f32[81,2916], index: 3, kind: input, shape index: {}]   ;;  %s15396_s4 = inlined_call_operand.vmem [shape: f32[2,81,100], index: 4, kind: output, shape index: {}]  }
   0x1   :  { %11 = vsyncpa [#allocation3 + $0x1], 0  ;;  %s11212_s15 = smov 0   ;;  %s11214_s16 = smov 0  }
   0x2   :  { %s11216_s17 = smov 0   ;;  %s11218_s18 = smov 0  }
   0x3 LB: > { %s11231_s19 = sadd.s32 4294967295, %s11179_s18   ;;  %s11234_s20 = sadd.s32 1, %s11179_s18   ;;  %s11179_s18 = sphi %s11218_s18, %s15797_s18   ;;  %s11175_s17 = sphi %s11216_s17, %s15796_s17   ;;  %s11171_s16 = sphi %s11214_s16, %s15795_s16   ;;  %s11167_s15 = sphi %s11212_s15, %s15794_s15  }
   0x4   : > { %s21_s21 = ssub.s32 %s11179_s18, %s11234_s20  ;;  %s24_s22 = sadd.s32 1, %s11175_s17 }
   0x5   : > { %p22_p0 = scmp.eq.s32.totalorder %s21_s21, 0  ;;  %p31_p1 = scmp.ne.s32.totalorder %s11175_s17, %s11171_s16 }
   0x6   : > { %p32_p2 = scmp.eq.s32.totalorder %s11179_s18, 0  ;;  %p37_p3 = scmp.ne.s32.totalorder %s11171_s16, %s11167_s15 }
   0x7   : > { %s11244_s23 = scalar_select %p22_p0, %s11175_s17, %s24_s22  }
   0x8   : > { %p33_p4 = por %p32_p2, %p31_p1  ;;  %p38_p5 = scmp.eq.s32.totalorder %s11231_s19, 0 }
   0x9   : > { %p9608_p6 = scmp.lt.s32.totalorder %s11179_s18, 2  ;;  %s159_s25 = sand.u32 1, %s11175_s17  }
   0xa   : > { %p11248_p7 = por %p38_p5, %p37_p3  ;;  %s9598_s26 = smul.u32 2920, %s159_s25 }
   0xb   : > { %s9599_s27 = smul.u32 46720, %s11179_s18  ;;  %p11254_p8 = pnand %p9608_p6, %p33_p4 }
   0xc   : > { %s163_s6 = scalar_lea.vmem [#allocation2], %s9598_s26  ;;  %s11266_s8 = scalar_lea.sflag [#allocation3], %s159_s25 }
   0xd   : > { %s11261_s5 = scalar_lea.hbm %s15392_s0, %s9599_s27  ;;  %s170_s7 = sshll.u32 %s163_s6, 4  ;;  %s11263_s7 = int_to_ptr.vmem [resolvable:$true] %s170_s7 }
   0xe   : > { %s11115_s9 = scalar_lea.hbm %s11261_s5, 46720  ;;  %p11117_p11 = pneg %p11254_p8 }
   0xf   : > { %p11116_p10 = scmp.ne.s32.totalorder %s11261_s5, %s11115_s9  ;;  %s11120_s12 = scalar_lea.hbm %s15392_s0, 93440 }
  0x10   : > { %p11121_p0 = scmp.lt.u32.totalorder %s11261_s5, %s15392_s0  ;;  %p11122_p1 = scmp.lt.u32.totalorder %s11120_s12, %s11115_s9 }
  0x11   : > { %p11118_p12 = pnand %p11117_p11, %p11116_p10  ;;  %p11124_p3 = scmp.lt.u32.totalorder %s11115_s9, %s11261_s5 }
  0x12   : > { %p11123_p2 = por %p11122_p1, %p11121_p0 }
  0x13   : > { %p11119_p13 = pneg %p11118_p12 }
  0x14   : > { %p11125_p4 = por %p11124_p3, %p11123_p2 }
  0x16   : > { %p11126_p5 = pnand %p11125_p4, %p11119_p13 }
  0x18   : > { %11129 = shalt.err (!%p11126_p5)
}
  0x19   : > { %s11130_s15 = scalar_lea.vmem %s11263_s7, 46720  ;;  %s11181_s21 = smov [#allocation2]  }
  0x1a   : > { %p11131_p6 = scmp.ne.s32.totalorder %s11263_s7, %s11130_s15  ;;  %s11135_s22 = sshll.u32 %s11181_s21, 4  ;;  %s11136_s22 = int_to_ptr.vmem [resolvable:$false] %s11135_s22 }
  0x1b   : > { %s11137_s25 = scalar_lea.vmem %s11136_s22, 93440  ;;  %p11138_p9 = scmp.lt.s32.totalorder %s11263_s7, %s11136_s22 }
  0x1c   : > { %p11133_p10 = pnand %p11131_p6, %p11117_p11  ;;  %p11139_p0 = scmp.lt.s32.totalorder %s11137_s25, %s11130_s15 }
  0x1e   : > { %p11134_p12 = pneg %p11133_p10  ;;  %p11140_p1 = por %p11139_p0, %p11138_p9 }
  0x20   : > { %p11141_p2 = pnand %p11140_p1, %p11134_p12 }
  0x22   : > { %11144 = shalt.err (!%p11141_p2)
}
  0x23   : > { %s11182_s26 = smov 128   ;;  %s11183_s27 = smov 8  }
  0x24   : > { %9607 = dma.hbm_to_vmem [thread:$0]  (!%p11254_p8), %s11261_s5, 46720, %s11263_s7, %s11266_s8, %s11182_s26, %s11182_s26, %s11183_s27  }
  0x25   : > { %p178_p11 = scmp.lt.s32.totalorder %s11179_s18, 3  ;;  %p15501_p13 = scmp.ge.s32.totalorder %s11179_s18, 1 }
  0x27   : > { %p179_p3 = pnand %p15501_p13, %p178_p11 }
  0x29   : > { %182 = sbr.rel (%p179_p3) target bundleno = 1795 (0x703), region = 36 }
  0x30   : > { %s184_s29 = sand.u32 1, %s11171_s16  }
  0x31   : > { %s9600_s30 = smul.u32 2920, %s184_s29  ;;  %s185_s6 = scalar_lea.sflag [#allocation3], %s184_s29 }
  0x33   : > { %s11298_s9 = scalar_lea.vmem [#allocation2], %s9600_s30 }
  0x34   : > { %11162 = dma.done.wait (%p11248_p7), %s185_s6, 46720  }
  0x35   : > { %11164 = vsyncadd (%p11248_p7), %s185_s6, 4294920576  ;;  %v15397_v0 = vmov 0.0|0.0   ;;  %vm11185_vm0 = vmmov 0   ;;  %v15399_v1 = vmov 0.0   ;;  %v583_v2 = vld [vmem:[%s15393_s1] sm:$0xff]  ;;  %v584_v3 = vld [vmem:[%s15393_s1 + $0x8] sm:$0xff] }
  0x36   : > { %9188 = vmatprep.subr.bf16.mxu0 %v15397_v0  ;;  %9582 = vmatprep.subr.bf16.mxu1 %v15397_v0  ;;  %v585_v4 = vld [vmem:[%s15393_s1 + $0x10] sm:$0xff]  ;;  %v9189_v5 = vpack.c.bf16 %v584_v3, %v583_v2  ;;  %v586_v6 = vld [vmem:[%s15393_s1 + $0x18] sm:$0xff]  ;;  %v587_v8 = vld [vmem:[%s15393_s1 + $0x20] sm:$0xff]  ;;  %vm4973_vm1 = vcmask 1043456   ;;  %vm4939_vm2 = vcmask 818176   ;;  %p213_p7 = scmp.lt.s32.totalorder %s11231_s19, 1 }
  0x37   : > { %8034 = vmatprep.mubr.msk.f32.mxu0 %vm11185_vm0, %v15399_v1  ;;  %8781 = vmatprep.mubr.msk.f32.mxu1 %vm11185_vm0, %v15399_v1  ;;  %v9192_v7 = vpack.c.bf16 %v586_v6, %v585_v4  ;;  %v588_v9 = vld [vmem:[%s15393_s1 + $0x28] sm:$0xff]  ;;  %v589_v11 = vld [vmem:[%s15393_s1 + $0x30] sm:$0xff]  ;;  %v590_v12 = vld [vmem:[%s15393_s1 + $0x38] sm:$0xff]  ;;  %vm6427_vm3 = vcmask 811008  }
  0x38   : > { %9190 = vmatpush3.bf16.msra.mxu0 %v9189_v5  ;;  %9590 = vmatpush3.bf16.msra.mxu1 %v9189_v5  ;;  %v9195_v10 = vpack.c.bf16 %v588_v9, %v587_v8  ;;  %v9198_v13 = vpack.c.bf16 %v590_v12, %v589_v11  ;;  %v591_v14 = vld [vmem:[%s15393_s1 + $0x40] sm:$0xff]  ;;  %v592_v15 = vld [vmem:[%s15393_s1 + $0x48] sm:$0xff]  ;;  %v593_v17 = vld [vmem:[%s15393_s1 + $0x50] sm:$0xff]  ;;  %s15799_s19 = smov (!%p213_p7, %s11231_s19), 1 }
  0x39   : > { %9191 = vmatprep.subr.bf16.mxu0 %v15397_v0  ;;  %9583 = vmatprep.subr.bf16.mxu1 %v15397_v0  ;;  %v9201_v16 = vpack.c.bf16 %v592_v15, %v591_v14  ;;  %v594_v18 = vld [vmem:[%s15393_s1 + $0x58] sm:$0xff]  ;;  %v595_v20 = vld [vmem:[%s15393_s1 + $0x60] sm:$0xff]  ;;  %v596_v21 = vld [vmem:[%s15393_s1 + $0x68] sm:$0xff]  ;;  %s9601_s7 = smul.u32 88, %s15799_s19 }
  0x3a   : > { %v9204_v19 = vpack.c.bf16 %v594_v18, %v593_v17  ;;  %v9207_v22 = vpack.c.bf16 %v596_v21, %v595_v20  ;;  %v597_v23 = vld [vmem:[%s15393_s1 + $0x70] sm:$0xff]  ;;  %v598_v24 = vld [vmem:[%s15393_s1 + $0x78] sm:$0xff]  ;;  %v468_v29 = vld [vmem:[%s11298_s9 + $0x7d0] sm:$0xff] }
  0x3b   : > { %v9210_v25 = vpack.c.bf16 %v598_v24, %v597_v23  ;;  %v218_v26 = vld [vmem:[%s11298_s9] sm:$0xff]  ;;  %v467_v27 = vld [vmem:[%s11298_s9 + $0x7c8] sm:$0xff]  ;;  %v220_v30 = vld [vmem:[%s11298_s9 + $0x10] sm:$0xff]  ;;  %s15356_s11 = scalar_lea.vmem %s15396_s4, %s9601_s7 }
  0x3c   : > { %9193 = vmatpush3.bf16.msra.mxu0 %v9192_v7  ;;  %9591 = vmatpush3.bf16.msra.mxu1 %v9192_v7  ;;  %v219_v28 = vld [vmem:[%s11298_s9 + $0x8] sm:$0xff]  ;;  %v469_v31 = vld [vmem:[%s11298_s9 + $0x7d8] sm:$0xff]  ;;  %v470_v33 = vld [vmem:[%s11298_s9 + $0x7e0] sm:$0xff] }
  0x3d   : > { %9194 = vmatprep.subr.bf16.mxu0 %v15397_v0  ;;  %9584 = vmatprep.subr.bf16.mxu1 %v15397_v0  ;;  %v221_v32 = vld [vmem:[%s11298_s9 + $0x18] sm:$0xff]  ;;  %v222_v34 = vld [vmem:[%s11298_s9 + $0x20] sm:$0xff]  ;;  %v471_v35 = vld [vmem:[%s11298_s9 + $0x7e8] sm:$0xff] }
  0x3e   : > { %v223_v36 = vld [vmem:[%s11298_s9 + $0x28] sm:$0xff]  ;;  %v472_v37 = vld [vmem:[%s11298_s9 + $0x7f0] sm:$0xff]  ;;  %v473_v39 = vld [vmem:[%s11298_s9 + $0x7f8] sm:$0xff] }
  0x3f   : > { %v224_v38 = vld [vmem:[%s11298_s9 + $0x30] sm:$0xff]  ;;  %v225_v40 = vld [vmem:[%s11298_s9 + $0x38] sm:$0xff]  ;;  %v474_v41 = vld [vmem:[%s11298_s9 + $0x800] sm:$0xff] }
  0x40   : > { %9196 = vmatpush3.bf16.msra.mxu0 %v9195_v10  ;;  %9592 = vmatpush3.bf16.msra.mxu1 %v9195_v10  ;;  %v226_v42 = vld [vmem:[%s11298_s9 + $0x40] sm:$0xff]  ;;  %v475_v43 = vld [vmem:[%s11298_s9 + $0x808] sm:$0xff]  ;;  %v476_v45 = vld [vmem:[%s11298_s9 + $0x810] sm:$0xff] }
  0x41   : > { %9197 = vmatprep.subr.bf16.mxu0 %v15397_v0  ;;  %9585 = vmatprep.subr.bf16.mxu1 %v15397_v0  ;;  %v227_v44 = vld [vmem:[%s11298_s9 + $0x48] sm:$0xff]  ;;  %v228_v46 = vld [vmem:[%s11298_s9 + $0x50] sm:$0xff]  ;;  %v477_v47 = vld [vmem:[%s11298_s9 + $0x818] sm:$0xff] }
  0x42   : > { %v229_v48 = vld [vmem:[%s11298_s9 + $0x58] sm:$0xff]  ;;  %v478_v49 = vld [vmem:[%s11298_s9 + $0x820] sm:$0xff]  ;;  %v479_v51 = vld [vmem:[%s11298_s9 + $0x828] sm:$0xff] }
  0x43   : > { %v230_v50 = vld [vmem:[%s11298_s9 + $0x60] sm:$0xff]  ;;  %v231_v52 = vld [vmem:[%s11298_s9 + $0x68] sm:$0xff]  ;;  %v480_v53 = vld [vmem:[%s11298_s9 + $0x830] sm:$0xff] }
  0x44   : > { %9199 = vmatpush3.bf16.msra.mxu0 %v9198_v13  ;;  %9593 = vmatpush3.bf16.msra.mxu1 %v9198_v13  ;;  %v232_v54 = vld [vmem:[%s11298_s9 + $0x70] sm:$0xff]  ;;  %v481_v55 = vld [vmem:[%s11298_s9 + $0x838] sm:$0xff]  ;;  %v482_v57 = vld [vmem:[%s11298_s9 + $0x840] sm:$0xff] }
  0x45   : > { %9200 = vmatprep.subr.bf16.mxu0 %v15397_v0  ;;  %9586 = vmatprep.subr.bf16.mxu1 %v15397_v0  ;;  %v233_v56 = vld [vmem:[%s11298_s9 + $0x78] sm:$0xff]  ;;  %v234_v58 = vld [vmem:[%s11298_s9 + $0x80] sm:$0xff]  ;;  %v483_v59 = vld [vmem:[%s11298_s9 + $0x848] sm:$0xff] }
  0x46   : > { %v235_v60 = vld [vmem:[%s11298_s9 + $0x88] sm:$0xff]  ;;  %v484_v61 = vld [vmem:[%s11298_s9 + $0x850] sm:$0xff]  ;;  %v485_v63 = vld [vmem:[%s11298_s9 + $0x858] sm:$0xff] }
  0x47   : > { %v236_v62 = vld [vmem:[%s11298_s9 + $0x90] sm:$0xff]  ;;  %v237_v2 = vld [vmem:[%s11298_s9 + $0x98] sm:$0xff]  ;;  %v486_v3 = vld [vmem:[%s11298_s9 + $0x860] sm:$0xff] }
  0x48   : > { %9202 = vmatpush3.bf16.msra.mxu0 %v9201_v16  ;;  %9594 = vmatpush3.bf16.msra.mxu1 %v9201_v16  ;;  %v238_v4 = vld [vmem:[%s11298_s9 + $0xa0] sm:$0xff]  ;;  %v487_v5 = vld [vmem:[%s11298_s9 + $0x868] sm:$0xff]  ;;  %v488_v7 = vld [vmem:[%s11298_s9 + $0x870] sm:$0xff] }
  0x49   : > { %9203 = vmatprep.subr.bf16.mxu0 %v15397_v0  ;;  %9587 = vmatprep.subr.bf16.mxu1 %v15397_v0  ;;  %v239_v6 = vld [vmem:[%s11298_s9 + $0xa8] sm:$0xff]  ;;  %v240_v8 = vld [vmem:[%s11298_s9 + $0xb0] sm:$0xff]  ;;  %v489_v9 = vld [vmem:[%s11298_s9 + $0x878] sm:$0xff] }
  0x4a   : > { %v241_v10 = vld [vmem:[%s11298_s9 + $0xb8] sm:$0xff]  ;;  %v490_v11 = vld [vmem:[%s11298_s9 + $0x880] sm:$0xff]  ;;  %v491_v13 = vld [vmem:[%s11298_s9 + $0x888] sm:$0xff] }
  0x4b   : > { %v242_v12 = vld [vmem:[%s11298_s9 + $0xc0] sm:$0xff]  ;;  %v243_v14 = vld [vmem:[%s11298_s9 + $0xc8] sm:$0xff]  ;;  %v492_v15 = vld [vmem:[%s11298_s9 + $0x890] sm:$0xff] }
  0x4c   : > { %9205 = vmatpush3.bf16.msra.mxu0 %v9204_v19  ;;  %9595 = vmatpush3.bf16.msra.mxu1 %v9204_v19  ;;  %v244_v16 = vld [vmem:[%s11298_s9 + $0xd0] sm:$0xff]  ;;  %v493_v17 = vld [vmem:[%s11298_s9 + $0x898] sm:$0xff]  ;;  %v494_v19 = vld [vmem:[%s11298_s9 + $0x8a0] sm:$0xff] }
  0x4d   : > { %9206 = vmatprep.subr.bf16.mxu0 %v15397_v0  ;;  %9588 = vmatprep.subr.bf16.mxu1 %v15397_v0  ;;  %v245_v18 = vld [vmem:[%s11298_s9 + $0xd8] sm:$0xff]  ;;  %v246_v20 = vld [vmem:[%s11298_s9 + $0xe0] sm:$0xff]  ;;  %v495_v21 = vld [vmem:[%s11298_s9 + $0x8a8] sm:$0xff] }
  0x4e   : > { %v496_v23 = vld [vmem:[%s11298_s9 + $0x8b0] sm:$0xff] }
  0x4f   : > { %v248_v24 = vld [vmem:[%s11298_s9 + $0xf0] sm:$0xff] }
  0x50   : > { %9208 = vmatpush3.bf16.msra.mxu0 %v9207_v22  ;;  %9596 = vmatpush3.bf16.msra.mxu1 %v9207_v22  ;;  %v247_v22 = vld [vmem:[%s11298_s9 + $0xe8] sm:$0xff] }
  0x51   : > { %9209 = vmatprep.subr.bf16.mxu0 %v15397_v0  ;;  %9589 = vmatprep.subr.bf16.mxu1 %v15397_v0 }
  0x54   : > { %9211 = vmatpush3.bf16.msra.mxu0 %v9210_v25  ;;  %9597 = vmatpush3.bf16.msra.mxu1 %v9210_v25  ;;  %v497_v25 = vld [vmem:[%s11298_s9 + $0x8b8] sm:$0xff] }
  0x57   : > { %8035 = vmatmul.mubr.f32.vlgmr.msra.gmra.mrb[0].mxu0 %v218_v26  ;;  %8782 = vmatmul.mubr.f32.vlgmr.msra.gmra.mrb[0].mxu1 %v467_v27  ;;  %v249_v26 = vld [vmem:[%s11298_s9 + $0xf8] sm:$0xff]  ;;  %v498_v27 = vld [vmem:[%s11298_s9 + $0x8c0] sm:$0xff] }
  0x58   : > { %8037 = vmatprep.mubr.msk.f32.mxu0 %vm11185_vm0, %v15399_v1  ;;  %8784 = vmatprep.mubr.msk.f32.mxu1 %vm11185_vm0, %v15399_v1 }
  0x5b   : > { %8038 = vmatmul.mubr.f32.gmra.mrb[2].mxu0 %v219_v28  ;;  %8785 = vmatmul.mubr.f32.gmra.mrb[2].mxu1 %v468_v29  ;;  %v250_v28 = vld [vmem:[%s11298_s9 + $0x100] sm:$0xff]  ;;  %v499_v29 = vld [vmem:[%s11298_s9 + $0x8c8] sm:$0xff] }
  0x5c   : > { %8040 = vmatprep.mubr.msk.f32.mxu0 %vm11185_vm0, %v15399_v1  ;;  %8787 = vmatprep.mubr.msk.f32.mxu1 %vm11185_vm0, %v15399_v1 }
  0x5f   : > { %8041 = vmatmul.mubr.f32.gmra.mrb[4].mxu0 %v220_v30  ;;  %8788 = vmatmul.mubr.f32.gmra.mrb[4].mxu1 %v469_v31  ;;  %v251_v30 = vld [vmem:[%s11298_s9 + $0x108] sm:$0xff]  ;;  %v500_v31 = vld [vmem:[%s11298_s9 + $0x8d0] sm:$0xff] }
  0x60   : > { %8043 = vmatprep.mubr.msk.f32.mxu0 %vm11185_vm0, %v15399_v1  ;;  %8790 = vmatprep.mubr.msk.f32.mxu1 %vm11185_vm0, %v15399_v1 }
  0x63   : > { %8044 = vmatmul.mubr.f32.gmra.mrb[6].mxu0 %v221_v32  ;;  %8791 = vmatmul.mubr.f32.gmra.mrb[6].mxu1 %v470_v33  ;;  %v252_v32 = vld [vmem:[%s11298_s9 + $0x110] sm:$0xff]  ;;  %v501_v33 = vld [vmem:[%s11298_s9 + $0x8d8] sm:$0xff] }
  0x64   : > { %8046 = vmatprep.mubr.msk.f32.mxu0 %vm11185_vm0, %v15399_v1  ;;  %8793 = vmatprep.mubr.msk.f32.mxu1 %vm11185_vm0, %v15399_v1 }
  0x67   : > { %8047 = vmatmul.mubr.f32.gmra.mrb[8].mxu0 %v222_v34  ;;  %8794 = vmatmul.mubr.f32.gmra.mrb[8].mxu1 %v471_v35  ;;  %v253_v34 = vld [vmem:[%s11298_s9 + $0x118] sm:$0xff]  ;;  %v502_v35 = vld [vmem:[%s11298_s9 + $0x8e0] sm:$0xff] }
  0x68   : > { %8049 = vmatprep.mubr.msk.f32.mxu0 %vm11185_vm0, %v15399_v1  ;;  %8796 = vmatprep.mubr.msk.f32.mxu1 %vm11185_vm0, %v15399_v1 }
  0x6b   : > { %8050 = vmatmul.mubr.f32.gmra.mrb[10].mxu0 %v223_v36  ;;  %8797 = vmatmul.mubr.f32.gmra.mrb[10].mxu1 %v472_v37  ;;  %v254_v36 = vld [vmem:[%s11298_s9 + $0x120] sm:$0xff]  ;;  %v503_v37 = vld [vmem:[%s11298_s9 + $0x8e8] sm:$0xff] }
  0x6c   : > { %8052 = vmatprep.mubr.msk.f32.mxu0 %vm11185_vm0, %v15399_v1  ;;  %8799 = vmatprep.mubr.msk.f32.mxu1 %vm11185_vm0, %v15399_v1 }
  0x6f   : > { %8053 = vmatmul.mubr.f32.gmra.mrb[12].mxu0 %v224_v38  ;;  %8800 = vmatmul.mubr.f32.gmra.mrb[12].mxu1 %v473_v39  ;;  %v255_v38 = vld [vmem:[%s11298_s9 + $0x128] sm:$0xff]  ;;  %v504_v39 = vld [vmem:[%s11298_s9 + $0x8f0] sm:$0xff] }
  0x70   : > { %8055 = vmatprep.mubr.msk.f32.mxu0 %vm11185_vm0, %v15399_v1  ;;  %8802 = vmatprep.mubr.msk.f32.mxu1 %vm11185_vm0, %v15399_v1 }
  0x73   : > { %8056 = vmatmul.mubr.f32.gmra.mrb[14].mxu0 %v225_v40  ;;  %8803 = vmatmul.mubr.f32.gmra.mrb[14].mxu1 %v474_v41  ;;  %v256_v40 = vld [vmem:[%s11298_s9 + $0x130] sm:$0xff]  ;;  %v505_v41 = vld [vmem:[%s11298_s9 + $0x8f8] sm:$0xff] }
  0x74   : > { %8058 = vmatprep.mubr.msk.f32.mxu0 %vm11185_vm0, %v15399_v1  ;;  %8805 = vmatprep.mubr.msk.f32.mxu1 %vm11185_vm0, %v15399_v1 }
  0x77   : > { %8059 = vmatmul.mubr.f32.gmra.mrb[16].mxu0 %v226_v42  ;;  %8806 = vmatmul.mubr.f32.gmra.mrb[16].mxu1 %v475_v43  ;;  %v257_v42 = vld [vmem:[%s11298_s9 + $0x138] sm:$0xff]  ;;  %v506_v43 = vld [vmem:[%s11298_s9 + $0x900] sm:$0xff] }
  0x78   : > { %8061 = vmatprep.mubr.msk.f32.mxu0 %vm11185_vm0, %v15399_v1  ;;  %8808 = vmatprep.mubr.msk.f32.mxu1 %vm11185_vm0, %v15399_v1 }
  0x7b   : > { %8062 = vmatmul.mubr.f32.gmra.mrb[18].mxu0 %v227_v44  ;;  %8809 = vmatmul.mubr.f32.gmra.mrb[18].mxu1 %v476_v45  ;;  %v258_v44 = vld [vmem:[%s11298_s9 + $0x140] sm:$0xff]  ;;  %v507_v45 = vld [vmem:[%s11298_s9 + $0x908] sm:$0xff] }
  0x7c   : > { %8064 = vmatprep.mubr.msk.f32.mxu0 %vm11185_vm0, %v15399_v1  ;;  %8811 = vmatprep.mubr.msk.f32.mxu1 %vm11185_vm0, %v15399_v1 }
  0x7f   : > { %8065 = vmatmul.mubr.f32.gmra.mrb[20].mxu0 %v228_v46  ;;  %8812 = vmatmul.mubr.f32.gmra.mrb[20].mxu1 %v477_v47  ;;  %v259_v46 = vld [vmem:[%s11298_s9 + $0x148] sm:$0xff]  ;;  %v508_v47 = vld [vmem:[%s11298_s9 + $0x910] sm:$0xff] }
  0x80   : > { %8067 = vmatprep.mubr.msk.f32.mxu0 %vm11185_vm0, %v15399_v1  ;;  %8814 = vmatprep.mubr.msk.f32.mxu1 %vm11185_vm0, %v15399_v1 }
  0x83   : > { %8068 = vmatmul.mubr.f32.gmra.mrb[22].mxu0 %v229_v48  ;;  %8815 = vmatmul.mubr.f32.gmra.mrb[22].mxu1 %v478_v49  ;;  %v260_v48 = vld [vmem:[%s11298_s9 + $0x150] sm:$0xff]  ;;  %v509_v49 = vld [vmem:[%s11298_s9 + $0x918] sm:$0xff] }
  0x84   : > { %8070 = vmatprep.mubr.msk.f32.mxu0 %vm11185_vm0, %v15399_v1  ;;  %8817 = vmatprep.mubr.msk.f32.mxu1 %vm11185_vm0, %v15399_v1 }
  0x87   : > { %8071 = vmatmul.mubr.f32.gmra.mrb[24].mxu0 %v230_v50  ;;  %8818 = vmatmul.mubr.f32.gmra.mrb[24].mxu1 %v479_v51  ;;  %v261_v50 = vld [vmem:[%s11298_s9 + $0x158] sm:$0xff]  ;;  %v510_v51 = vld [vmem:[%s11298_s9 + $0x920] sm:$0xff] }
  0x88   : > { %8073 = vmatprep.mubr.msk.f32.mxu0 %vm11185_vm0, %v15399_v1  ;;  %8820 = vmatprep.mubr.msk.f32.mxu1 %vm11185_vm0, %v15399_v1 }
  0x8b   : > { %8074 = vmatmul.mubr.f32.gmra.mrb[26].mxu0 %v231_v52  ;;  %8821 = vmatmul.mubr.f32.gmra.mrb[26].mxu1 %v480_v53  ;;  %v262_v52 = vld [vmem:[%s11298_s9 + $0x160] sm:$0xff]  ;;  %v511_v53 = vld [vmem:[%s11298_s9 + $0x928] sm:$0xff] }
  0x8c   : > { %8076 = vmatprep.mubr.msk.f32.mxu0 %vm11185_vm0, %v15399_v1  ;;  %8823 = vmatprep.mubr.msk.f32.mxu1 %vm11185_vm0, %v15399_v1 }
  0x8f   : > { %8077 = vmatmul.mubr.f32.gmra.mrb[28].mxu0 %v232_v54  ;;  %8824 = vmatmul.mubr.f32.gmra.mrb[28].mxu1 %v481_v55  ;;  %v263_v54 = vld [vmem:[%s11298_s9 + $0x168] sm:$0xff]  ;;  %v512_v55 = vld [vmem:[%s11298_s9 + $0x930] sm:$0xff] }
  0x90   : > { %8079 = vmatprep.mubr.msk.f32.mxu0 %vm11185_vm0, %v15399_v1  ;;  %8826 = vmatprep.mubr.msk.f32.mxu1 %vm11185_vm0, %v15399_v1 }
  0x93   : > { %8080 = vmatmul.mubr.f32.gmra.mrb[30].mxu0 %v233_v56  ;;  %8827 = vmatmul.mubr.f32.gmra.mrb[30].mxu1 %v482_v57  ;;  %v264_v56 = vld [vmem:[%s11298_s9 + $0x170] sm:$0xff]  ;;  %v513_v57 = vld [vmem:[%s11298_s9 + $0x938] sm:$0xff] }
  0x94   : > { %8082 = vmatprep.mubr.msk.f32.mxu0 %vm11185_vm0, %v15399_v1  ;;  %8829 = vmatprep.mubr.msk.f32.mxu1 %vm11185_vm0, %v15399_v1 }
  0x97   : > { %8083 = vmatmul.mubr.f32.gmra.mrb[32].mxu0 %v234_v58  ;;  %8830 = vmatmul.mubr.f32.gmra.mrb[32].mxu1 %v483_v59  ;;  %v265_v58 = vld [vmem:[%s11298_s9 + $0x178] sm:$0xff]  ;;  %v514_v59 = vld [vmem:[%s11298_s9 + $0x940] sm:$0xff] }
  0x98   : > { %8085 = vmatprep.mubr.msk.f32.mxu0 %vm11185_vm0, %v15399_v1  ;;  %8832 = vmatprep.mubr.msk.f32.mxu1 %vm11185_vm0, %v15399_v1 }
  0x9b   : > { %8086 = vmatmul.mubr.f32.gmra.mrb[34].mxu0 %v235_v60  ;;  %8833 = vmatmul.mubr.f32.gmra.mrb[34].mxu1 %v484_v61  ;;  %v266_v60 = vld [vmem:[%s11298_s9 + $0x180] sm:$0xff]  ;;  %v515_v61 = vld [vmem:[%s11298_s9 + $0x948] sm:$0xff] }
  0x9c   : > { %8088 = vmatprep.mubr.msk.f32.mxu0 %vm11185_vm0, %v15399_v1  ;;  %8835 = vmatprep.mubr.msk.f32.mxu1 %vm11185_vm0, %v15399_v1 }
  0x9f   : > { %8089 = vmatmul.mubr.f32.gmra.mrb[36].mxu0 %v236_v62  ;;  %8836 = vmatmul.mubr.f32.gmra.mrb[36].mxu1 %v485_v63  ;;  %v267_v62 = vld [vmem:[%s11298_s9 + $0x188] sm:$0xff]  ;;  %v516_v63 = vld [vmem:[%s11298_s9 + $0x950] sm:$0xff] }
  0xa0   : > { %8091 = vmatprep.mubr.msk.f32.mxu0 %vm11185_vm0, %v15399_v1  ;;  %8838 = vmatprep.mubr.msk.f32.mxu1 %vm11185_vm0, %v15399_v1 }
  0xa3   : > { %8092 = vmatmul.mubr.f32.gmra.mrb[38].mxu0 %v237_v2  ;;  %8839 = vmatmul.mubr.f32.gmra.mrb[38].mxu1 %v486_v3  ;;  %v268_v2 = vld [vmem:[%s11298_s9 + $0x190] sm:$0xff]  ;;  %v517_v3 = vld [vmem:[%s11298_s9 + $0x958] sm:$0xff] }
  0xa4   : > { %8094 = vmatprep.mubr.msk.f32.mxu0 %vm11185_vm0, %v15399_v1  ;;  %8841 = vmatprep.mubr.msk.f32.mxu1 %vm11185_vm0, %v15399_v1 }
  0xa7   : > { %8095 = vmatmul.mubr.f32.gmra.mrb[40].mxu0 %v238_v4  ;;  %8842 = vmatmul.mubr.f32.gmra.mrb[40].mxu1 %v487_v5  ;;  %v269_v4 = vld [vmem:[%s11298_s9 + $0x198] sm:$0xff]  ;;  %v518_v5 = vld [vmem:[%s11298_s9 + $0x960] sm:$0xff] }
  0xa8   : > { %8097 = vmatprep.mubr.msk.f32.mxu0 %vm11185_vm0, %v15399_v1  ;;  %8844 = vmatprep.mubr.msk.f32.mxu1 %vm11185_vm0, %v15399_v1 }
  0xab   : > { %8098 = vmatmul.mubr.f32.gmra.mrb[42].mxu0 %v239_v6  ;;  %8845 = vmatmul.mubr.f32.gmra.mrb[42].mxu1 %v488_v7  ;;  %v270_v6 = vld [vmem:[%s11298_s9 + $0x1a0] sm:$0xff]  ;;  %v519_v7 = vld [vmem:[%s11298_s9 + $0x968] sm:$0xff] }
  0xac   : > { %8100 = vmatprep.mubr.msk.f32.mxu0 %vm11185_vm0, %v15399_v1  ;;  %8847 = vmatprep.mubr.msk.f32.mxu1 %vm11185_vm0, %v15399_v1 }
  0xaf   : > { %8101 = vmatmul.mubr.f32.gmra.mrb[44].mxu0 %v240_v8  ;;  %8848 = vmatmul.mubr.f32.gmra.mrb[44].mxu1 %v489_v9  ;;  %v11689_v8 = vld [vmem:[%s15394_s2] ss:$0 sm:$0xff] }
  0xb0   : > { %8103 = vmatprep.mubr.msk.f32.mxu0 %vm11185_vm0, %v15399_v1  ;;  %8850 = vmatprep.mubr.msk.f32.mxu1 %vm11185_vm0, %v15399_v1  ;;  %v271_v9 = vld [vmem:[%s11298_s9 + $0x1a8] sm:$0xff] }
  0xb3   : > { %8104 = vmatmul.mubr.f32.gmra.mrb[46].mxu0 %v241_v10  ;;  %8851 = vmatmul.mubr.f32.gmra.mrb[46].mxu1 %v490_v11  ;;  %v520_v10 = vld [vmem:[%s11298_s9 + $0x970] sm:$0xff] }
  0xb4   : > { %8106 = vmatprep.mubr.msk.f32.mxu0 %vm11185_vm0, %v15399_v1  ;;  %8853 = vmatprep.mubr.msk.f32.mxu1 %vm11185_vm0, %v15399_v1 }
  0xb7   : > { %8107 = vmatmul.mubr.f32.gmra.mrb[48].mxu0 %v242_v12  ;;  %8854 = vmatmul.mubr.f32.gmra.mrb[48].mxu1 %v491_v13 }
  0xb8   : > { %8109 = vmatprep.mubr.msk.f32.mxu0 %vm11185_vm0, %v15399_v1  ;;  %8856 = vmatprep.mubr.msk.f32.mxu1 %vm11185_vm0, %v15399_v1 }
  0xbb   : > { %8110 = vmatmul.mubr.f32.gmra.mrb[50].mxu0 %v243_v14  ;;  %8857 = vmatmul.mubr.f32.gmra.mrb[50].mxu1 %v492_v15  ;;  %v272_v14 = vld [vmem:[%s11298_s9 + $0x1b0] sm:$0xff]  ;;  %v521_v15 = vld [vmem:[%s11298_s9 + $0x978] sm:$0xff] }
  0xbc   : > { %8112 = vmatprep.mubr.msk.f32.mxu0 %vm11185_vm0, %v15399_v1  ;;  %8859 = vmatprep.mubr.msk.f32.mxu1 %vm11185_vm0, %v15399_v1 }
  0xbf   : > { %8113 = vmatmul.mubr.f32.gmra.mrb[52].mxu0 %v244_v16  ;;  %8860 = vmatmul.mubr.f32.gmra.mrb[52].mxu1 %v493_v17 }
  0xc0   : > { %8115 = vmatprep.mubr.msk.f32.mxu0 %vm11185_vm0, %v15399_v1  ;;  %8862 = vmatprep.mubr.msk.f32.mxu1 %vm11185_vm0, %v15399_v1 }
  0xc3   : > { %8116 = vmatmul.mubr.f32.gmra.mrb[54].mxu0 %v245_v18  ;;  %8863 = vmatmul.mubr.f32.gmra.mrb[54].mxu1 %v494_v19 }
  0xc4   : > { %8118 = vmatprep.mubr.msk.f32.mxu0 %vm11185_vm0, %v15399_v1  ;;  %8865 = vmatprep.mubr.msk.f32.mxu1 %vm11185_vm0, %v15399_v1 }
  0xc7   : > { %8119 = vmatmul.mubr.f32.gmra.mrb[56].mxu0 %v246_v20  ;;  %8866 = vmatmul.mubr.f32.gmra.mrb[56].mxu1 %v495_v21  ;;  %v273_v20 = vld [vmem:[%s11298_s9 + $0x1b8] sm:$0xff]  ;;  %v522_v21 = vld [vmem:[%s11298_s9 + $0x980] sm:$0xff] }
  0xc8   : > { %8121 = vmatprep.mubr.msk.f32.mxu0 %vm11185_vm0, %v15399_v1  ;;  %8868 = vmatprep.mubr.msk.f32.mxu1 %vm11185_vm0, %v15399_v1 }
  0xcb   : > { %8122 = vmatmul.mubr.f32.gmra.mrb[58].mxu0 %v247_v22  ;;  %8869 = vmatmul.mubr.f32.gmra.mrb[58].mxu1 %v496_v23 }
  0xcc   : > { %8124 = vmatprep.mubr.msk.f32.mxu0 %vm11185_vm0, %v15399_v1  ;;  %8871 = vmatprep.mubr.msk.f32.mxu1 %vm11185_vm0, %v15399_v1 }
  0xcf   : > { %8125 = vmatmul.mubr.f32.gmra.mrb[60].mxu0 %v248_v24  ;;  %8872 = vmatmul.mubr.f32.gmra.mrb[60].mxu1 %v497_v25 }
  0xd0   : > { %8127 = vmatprep.mubr.msk.f32.mxu0 %vm11185_vm0, %v15399_v1  ;;  %8874 = vmatprep.mubr.msk.f32.mxu1 %vm11185_vm0, %v15399_v1 }
  0xd3   : > { %8128 = vmatmul.mubr.f32.gmra.mrb[62].mxu0 %v249_v26  ;;  %8875 = vmatmul.mubr.f32.gmra.mrb[62].mxu1 %v498_v27  ;;  %v274_v26 = vld [vmem:[%s11298_s9 + $0x1c0] sm:$0xff]  ;;  %v523_v27 = vld [vmem:[%s11298_s9 + $0x988] sm:$0xff] }
  0xd4   : > { %8130 = vmatprep.mubr.msk.f32.mxu0 %vm11185_vm0, %v15399_v1  ;;  %8877 = vmatprep.mubr.msk.f32.mxu1 %vm11185_vm0, %v15399_v1 }
  0xd7   : > { %8131 = vmatmul.mubr.f32.gmra.mrb[64].mxu0 %v250_v28  ;;  %8878 = vmatmul.mubr.f32.gmra.mrb[64].mxu1 %v499_v29 }
  0xd8   : > { %8133 = vmatprep.mubr.msk.f32.mxu0 %vm11185_vm0, %v15399_v1  ;;  %8880 = vmatprep.mubr.msk.f32.mxu1 %vm11185_vm0, %v15399_v1 }
  0xdb   : > { %8134 = vmatmul.mubr.f32.gmra.mrb[66].mxu0 %v251_v30  ;;  %8881 = vmatmul.mubr.f32.gmra.mrb[66].mxu1 %v500_v31 }
  0xdc   : > { %8136 = vmatprep.mubr.msk.f32.mxu0 %vm11185_vm0, %v15399_v1  ;;  %8883 = vmatprep.mubr.msk.f32.mxu1 %vm11185_vm0, %v15399_v1 }
  0xdf   : > { %8137 = vmatmul.mubr.f32.gmra.mrb[68].mxu0 %v252_v32  ;;  %8884 = vmatmul.mubr.f32.gmra.mrb[68].mxu1 %v501_v33  ;;  %v275_v32 = vld [vmem:[%s11298_s9 + $0x1c8] sm:$0xff]  ;;  %v524_v33 = vld [vmem:[%s11298_s9 + $0x990] sm:$0xff] }
  0xe0   : > { %8139 = vmatprep.mubr.msk.f32.mxu0 %vm11185_vm0, %v15399_v1  ;;  %8886 = vmatprep.mubr.msk.f32.mxu1 %vm11185_vm0, %v15399_v1 }
  0xe3   : > { %8140 = vmatmul.mubr.f32.gmra.mrb[70].mxu0 %v253_v34  ;;  %8887 = vmatmul.mubr.f32.gmra.mrb[70].mxu1 %v502_v35 }
  0xe4   : > { %8142 = vmatprep.mubr.msk.f32.mxu0 %vm11185_vm0, %v15399_v1  ;;  %8889 = vmatprep.mubr.msk.f32.mxu1 %vm11185_vm0, %v15399_v1 }
  0xe7   : > { %8143 = vmatmul.mubr.f32.gmra.mrb[72].mxu0 %v254_v36  ;;  %8890 = vmatmul.mubr.f32.gmra.mrb[72].mxu1 %v503_v37 }
  0xe8   : > { %8145 = vmatprep.mubr.msk.f32.mxu0 %vm11185_vm0, %v15399_v1  ;;  %8892 = vmatprep.mubr.msk.f32.mxu1 %vm11185_vm0, %v15399_v1 }
  0xeb   : > { %8146 = vmatmul.mubr.f32.gmra.mrb[74].mxu0 %v255_v38  ;;  %8893 = vmatmul.mubr.f32.gmra.mrb[74].mxu1 %v504_v39 }
  0xec   : > { %8148 = vmatprep.mubr.msk.f32.mxu0 %vm11185_vm0, %v15399_v1  ;;  %8895 = vmatprep.mubr.msk.f32.mxu1 %vm11185_vm0, %v15399_v1 }
  0xef   : > { %8149 = vmatmul.mubr.f32.gmra.mrb[76].mxu0 %v256_v40  ;;  %8896 = vmatmul.mubr.f32.gmra.mrb[76].mxu1 %v505_v41  ;;  %v276_v40 = vld [vmem:[%s11298_s9 + $0x1d0] sm:$0xff]  ;;  %v525_v41 = vld [vmem:[%s11298_s9 + $0x998] sm:$0xff] }
  0xf0   : > { %8151 = vmatprep.mubr.msk.f32.mxu0 %vm11185_vm0, %v15399_v1  ;;  %8898 = vmatprep.mubr.msk.f32.mxu1 %vm11185_vm0, %v15399_v1 }
  0xf3   : > { %8152 = vmatmul.mubr.f32.gmra.mrb[78].mxu0 %v257_v42  ;;  %8899 = vmatmul.mubr.f32.gmra.mrb[78].mxu1 %v506_v43 }
  0xf4   : > { %8154 = vmatprep.mubr.msk.f32.mxu0 %vm11185_vm0, %v15399_v1  ;;  %8901 = vmatprep.mubr.msk.f32.mxu1 %vm11185_vm0, %v15399_v1 }
  0xf7   : > { %8155 = vmatmul.mubr.f32.gmra.mrb[80].mxu0 %v258_v44  ;;  %8902 = vmatmul.mubr.f32.gmra.mrb[80].mxu1 %v507_v45 }
  0xf8   : > { %8157 = vmatprep.mubr.msk.f32.mxu0 %vm11185_vm0, %v15399_v1  ;;  %8904 = vmatprep.mubr.msk.f32.mxu1 %vm11185_vm0, %v15399_v1 }
  0xfb   : > { %8158 = vmatmul.mubr.f32.gmra.mrb[82].mxu0 %v259_v46  ;;  %8905 = vmatmul.mubr.f32.gmra.mrb[82].mxu1 %v508_v47 }
  0xfc   : > { %8160 = vmatprep.mubr.msk.f32.mxu0 %vm11185_vm0, %v15399_v1  ;;  %8907 = vmatprep.mubr.msk.f32.mxu1 %vm11185_vm0, %v15399_v1 }
  0xff   : > { %8161 = vmatmul.mubr.f32.gmra.mrb[84].mxu0 %v260_v48  ;;  %8908 = vmatmul.mubr.f32.gmra.mrb[84].mxu1 %v509_v49  ;;  %v277_v48 = vld [vmem:[%s11298_s9 + $0x1d8] sm:$0xff]  ;;  %v526_v49 = vld [vmem:[%s11298_s9 + $0x9a0] sm:$0xff] }
 0x100   : > { %8163 = vmatprep.mubr.msk.f32.mxu0 %vm11185_vm0, %v15399_v1  ;;  %8910 = vmatprep.mubr.msk.f32.mxu1 %vm11185_vm0, %v15399_v1 }
 0x103   : > { %8164 = vmatmul.mubr.f32.gmra.mrb[86].mxu0 %v261_v50  ;;  %8911 = vmatmul.mubr.f32.gmra.mrb[86].mxu1 %v510_v51 }
 0x104   : > { %8166 = vmatprep.mubr.msk.f32.mxu0 %vm11185_vm0, %v15399_v1  ;;  %8913 = vmatprep.mubr.msk.f32.mxu1 %vm11185_vm0, %v15399_v1 }
 0x107   : > { %8167 = vmatmul.mubr.f32.gmra.mrb[88].mxu0 %v262_v52  ;;  %8914 = vmatmul.mubr.f32.gmra.mrb[88].mxu1 %v511_v53 }
 0x108   : > { %8169 = vmatprep.mubr.msk.f32.mxu0 %vm11185_vm0, %v15399_v1  ;;  %8916 = vmatprep.mubr.msk.f32.mxu1 %vm11185_vm0, %v15399_v1 }
 0x10b   : > { %8170 = vmatmul.mubr.f32.gmra.mrb[90].mxu0 %v263_v54  ;;  %8917 = vmatmul.mubr.f32.gmra.mrb[90].mxu1 %v512_v55 }
 0x10c   : > { %8172 = vmatprep.mubr.msk.f32.mxu0 %vm11185_vm0, %v15399_v1  ;;  %8919 = vmatprep.mubr.msk.f32.mxu1 %vm11185_vm0, %v15399_v1 }
 0x10f   : > { %8173 = vmatmul.mubr.f32.gmra.mrb[92].mxu0 %v264_v56  ;;  %8920 = vmatmul.mubr.f32.gmra.mrb[92].mxu1 %v513_v57  ;;  %v278_v56 = vld [vmem:[%s11298_s9 + $0x1e0] sm:$0xff]  ;;  %v527_v57 = vld [vmem:[%s11298_s9 + $0x9a8] sm:$0xff] }
 0x110   : > { %8175 = vmatprep.mubr.msk.f32.mxu0 %vm11185_vm0, %v15399_v1  ;;  %8922 = vmatprep.mubr.msk.f32.mxu1 %vm11185_vm0, %v15399_v1 }
 0x113   : > { %8176 = vmatmul.mubr.f32.gmra.mrb[94].mxu0 %v265_v58  ;;  %8923 = vmatmul.mubr.f32.gmra.mrb[94].mxu1 %v514_v59 }
 0x114   : > { %8178 = vmatprep.mubr.msk.f32.mxu0 %vm11185_vm0, %v15399_v1  ;;  %8925 = vmatprep.mubr.msk.f32.mxu1 %vm11185_vm0, %v15399_v1 }
 0x117   : > { %8179 = vmatmul.mubr.f32.gmra.mrb[96].mxu0 %v266_v60  ;;  %8926 = vmatmul.mubr.f32.gmra.mrb[96].mxu1 %v515_v61 }
 0x118   : > { %8181 = vmatprep.mubr.msk.f32.mxu0 %vm11185_vm0, %v15399_v1  ;;  %8928 = vmatprep.mubr.msk.f32.mxu1 %vm11185_vm0, %v15399_v1 }
 0x11b   : > { %8182 = vmatmul.mubr.f32.gmra.mrb[98].mxu0 %v267_v62  ;;  %8929 = vmatmul.mubr.f32.gmra.mrb[98].mxu1 %v516_v63 }
 0x11c   : > { %8184 = vmatprep.mubr.msk.f32.mxu0 %vm11185_vm0, %v15399_v1  ;;  %8931 = vmatprep.mubr.msk.f32.mxu1 %vm11185_vm0, %v15399_v1 }
 0x11f   : > { %8185 = vmatmul.mubr.f32.gmra.mrb[100].mxu0 %v268_v2  ;;  %8932 = vmatmul.mubr.f32.gmra.mrb[100].mxu1 %v517_v3  ;;  %v279_v3 = vld [vmem:[%s11298_s9 + $0x1e8] sm:$0xff] }
 0x120   : > { %8187 = vmatprep.mubr.msk.f32.mxu0 %vm11185_vm0, %v15399_v1  ;;  %8934 = vmatprep.mubr.msk.f32.mxu1 %vm11185_vm0, %v15399_v1 }
 0x123   : > { %8188 = vmatmul.mubr.f32.gmra.mrb[102].mxu0 %v269_v4  ;;  %8935 = vmatmul.mubr.f32.gmra.mrb[102].mxu1 %v518_v5  ;;  %v528_v4 = vld [vmem:[%s11298_s9 + $0x9b0] sm:$0xff] }
 0x124   : > { %8190 = vmatprep.mubr.msk.f32.mxu0 %vm11185_vm0, %v15399_v1  ;;  %8937 = vmatprep.mubr.msk.f32.mxu1 %vm11185_vm0, %v15399_v1 }
 0x127   : > { %8191 = vmatmul.mubr.f32.gmra.mrb[104].mxu0 %v270_v6  ;;  %8938 = vmatmul.mubr.f32.gmra.mrb[104].mxu1 %v519_v7 }
 0x128   : > { %8193 = vmatprep.mubr.msk.f32.mxu0 %vm11185_vm0, %v15399_v1  ;;  %8940 = vmatprep.mubr.msk.f32.mxu1 %vm11185_vm0, %v15399_v1 }
 0x12a   : > { %v672_v11 = vpop.f32.mrb[0].mxu0 }
 0x12b   : > { %v673_v12 = vadd.f32 %v11689_v8, %v672_v11  ;;  %v8036_v13 = vpop.f32.mrb[1].mxu0  ;;  %8194 = vmatmul.mubr.f32.gmra.mrb[106].mxu0 %v271_v9  ;;  %8941 = vmatmul.mubr.f32.gmra.mrb[106].mxu1 %v520_v10 }
 0x12c   : > { %8196 = vmatprep.mubr.msk.f32.mxu0 %vm11185_vm0, %v15399_v1  ;;  %8943 = vmatprep.mubr.msk.f32.mxu1 %vm11185_vm0, %v15399_v1 }
 0x12d   : > { %v6503_v16 = vmul.f32 -1.442695, %v673_v12 }
 0x12e   : > { %v677_v17 = vpop.f32.mrb[2].mxu0 }
 0x12f   : > { %9646 = vpow2.f32 %v6503_v16  ;;  %v678_v18 = vadd.f32 %v11689_v8, %v677_v17  ;;  %v8039_v19 = vpop.f32.mrb[3].mxu0  ;;  %8197 = vmatmul.mubr.f32.gmra.mrb[108].mxu0 %v272_v14  ;;  %8944 = vmatmul.mubr.f32.gmra.mrb[108].mxu1 %v521_v15  ;;  %v280_v14 = vld [vmem:[%s11298_s9 + $0x1f0] sm:$0xff]  ;;  %v529_v15 = vld [vmem:[%s11298_s9 + $0x9b8] sm:$0xff] }
 0x130   : > { %8199 = vmatprep.mubr.msk.f32.mxu0 %vm11185_vm0, %v15399_v1  ;;  %8946 = vmatprep.mubr.msk.f32.mxu1 %vm11185_vm0, %v15399_v1 }
 0x131   : > { %v6504_v22 = vmul.f32 -1.442695, %v678_v18 }
 0x132   : > { %v682_v23 = vpop.f32.mrb[4].mxu0 }
 0x133   : > { %9648 = vpow2.f32 %v6504_v22  ;;  %v683_v24 = vadd.f32 %v11689_v8, %v682_v23  ;;  %v8042_v25 = vpop.f32.mrb[5].mxu0  ;;  %8200 = vmatmul.mubr.f32.gmra.mrb[110].mxu0 %v273_v20  ;;  %8947 = vmatmul.mubr.f32.gmra.mrb[110].mxu1 %v522_v21  ;;  %v281_v23 = vld [vmem:[%s11298_s9 + $0x1f8] sm:$0xff] }
 0x134   : > { %8202 = vmatprep.mubr.msk.f32.mxu0 %vm11185_vm0, %v15399_v1  ;;  %8949 = vmatprep.mubr.msk.f32.mxu1 %vm11185_vm0, %v15399_v1 }
 0x135   : > { %v6505_v28 = vmul.f32 -1.442695, %v683_v24  ;;  %v530_v24 = vld [vmem:[%s11298_s9 + $0x9c0] sm:$0xff] }
 0x136   : > { %v687_v29 = vpop.f32.mrb[6].mxu0 }
 0x137   : > { %9650 = vpow2.f32 %v6505_v28  ;;  %v688_v30 = vadd.f32 %v11689_v8, %v687_v29  ;;  %v8045_v31 = vpop.f32.mrb[7].mxu0  ;;  %8203 = vmatmul.mubr.f32.gmra.mrb[112].mxu0 %v274_v26  ;;  %8950 = vmatmul.mubr.f32.gmra.mrb[112].mxu1 %v523_v27 }
 0x138   : > { %8205 = vmatprep.mubr.msk.f32.mxu0 %vm11185_vm0, %v15399_v1  ;;  %8952 = vmatprep.mubr.msk.f32.mxu1 %vm11185_vm0, %v15399_v1 }
 0x139   : > { %v9647_v34 = vpop.eup %9646  ;;  %v6506_v35 = vmul.f32 -1.442695, %v688_v30 }
 0x13a   : > { %v3591_v36 = vadd.f32 1.0, %v9647_v34  ;;  %v692_v37 = vpop.f32.mrb[8].mxu0  ;;  %v531_v34 = vld [vmem:[%s11298_s9 + $0x9c8] sm:$0xff] }
 0x13b   : > { %9652 = vpow2.f32 %v6506_v35  ;;  %v693_v38 = vadd.f32 %v11689_v8, %v692_v37  ;;  %v8048_v39 = vpop.f32.mrb[9].mxu0  ;;  %8206 = vmatmul.mubr.f32.gmra.mrb[114].mxu0 %v275_v32  ;;  %8953 = vmatmul.mubr.f32.gmra.mrb[114].mxu1 %v524_v33  ;;  %v282_v33 = vld [vmem:[%s11298_s9 + $0x200] sm:$0xff] }
 0x13c   : > { %8208 = vmatprep.mubr.msk.f32.mxu0 %vm11185_vm0, %v15399_v1  ;;  %8955 = vmatprep.mubr.msk.f32.mxu1 %vm11185_vm0, %v15399_v1  ;;  %9654 = vrcp.f32 %v3591_v36 }
 0x13d   : > { %v9649_v42 = vpop.eup %9648  ;;  %v6507_v43 = vmul.f32 -1.442695, %v693_v38 }
 0x13e   : > { %v3592_v44 = vadd.f32 1.0, %v9649_v42  ;;  %v697_v45 = vpop.f32.mrb[10].mxu0  ;;  %v283_v42 = vld [vmem:[%s11298_s9 + $0x208] sm:$0xff] }
 0x13f   : > { %9656 = vpow2.f32 %v6507_v43  ;;  %v698_v46 = vadd.f32 %v11689_v8, %v697_v45  ;;  %v8051_v47 = vpop.f32.mrb[11].mxu0  ;;  %8209 = vmatmul.mubr.f32.gmra.mrb[116].mxu0 %v276_v40  ;;  %8956 = vmatmul.mubr.f32.gmra.mrb[116].mxu1 %v525_v41  ;;  %v532_v43 = vld [vmem:[%s11298_s9 + $0x9d0] sm:$0xff] }
 0x140   : > { %9658 = vrcp.f32 %v3592_v44  ;;  %8211 = vmatprep.mubr.msk.f32.mxu0 %vm11185_vm0, %v15399_v1  ;;  %8958 = vmatprep.mubr.msk.f32.mxu1 %vm11185_vm0, %v15399_v1 }
 0x141   : > { %v9651_v50 = vpop.eup %9650  ;;  %v6508_v51 = vmul.f32 -1.442695, %v698_v46 }
 0x142   : > { %v3593_v52 = vadd.f32 1.0, %v9651_v50  ;;  %v702_v53 = vpop.f32.mrb[12].mxu0 }
 0x143   : > { %9660 = vpow2.f32 %v6508_v51  ;;  %v703_v54 = vadd.f32 %v11689_v8, %v702_v53  ;;  %v8054_v55 = vpop.f32.mrb[13].mxu0  ;;  %8212 = vmatmul.mubr.f32.gmra.mrb[118].mxu0 %v277_v48  ;;  %8959 = vmatmul.mubr.f32.gmra.mrb[118].mxu1 %v526_v49  ;;  %v533_v53 = vld [vmem:[%s11298_s9 + $0x9d8] sm:$0xff] }
 0x144   : > { %8214 = vmatprep.mubr.msk.f32.mxu0 %vm11185_vm0, %v15399_v1  ;;  %8961 = vmatprep.mubr.msk.f32.mxu1 %vm11185_vm0, %v15399_v1  ;;  %9662 = vrcp.f32 %v3593_v52  ;;  %v284_v52 = vld [vmem:[%s11298_s9 + $0x210] sm:$0xff] }
 0x145   : > { %v9653_v58 = vpop.eup %9652  ;;  %v6509_v59 = vmul.f32 -1.442695, %v703_v54 }
 0x146   : > { %v3594_v60 = vadd.f32 1.0, %v9653_v58  ;;  %v707_v61 = vpop.f32.mrb[14].mxu0  ;;  %v11747_v2 = vpop.eup %9654 }
 0x147   : > { %9664 = vpow2.f32 %v6509_v59  ;;  %v708_v62 = vadd.f32 %v11689_v8, %v707_v61  ;;  %v8057_v63 = vpop.f32.mrb[15].mxu0  ;;  %8215 = vmatmul.mubr.f32.gmra.mrb[120].mxu0 %v278_v56  ;;  %8962 = vmatmul.mubr.f32.gmra.mrb[120].mxu1 %v527_v57  ;;  %v285_v61 = vld [vmem:[%s11298_s9 + $0x218] sm:$0xff] }
 0x148   : > { %9666 = vrcp.f32 %v3594_v60  ;;  %8217 = vmatprep.mubr.msk.f32.mxu0 %vm11185_vm0, %v15399_v1  ;;  %8964 = vmatprep.mubr.msk.f32.mxu1 %vm11185_vm0, %v15399_v1 }
 0x149   : > { %v9657_v5 = vpop.eup %9656  ;;  %v6510_v6 = vmul.f32 -1.442695, %v708_v62  ;;  %v534_v62 = vld [vmem:[%s11298_s9 + $0x9e0] sm:$0xff] }
 0x14a   : > { %v11755_v7 = vpop.eup %9658  ;;  %v3595_v9 = vadd.f32 1.0, %v9657_v5  ;;  %v712_v10 = vpop.f32.mrb[16].mxu0 }
 0x14b   : > { %9668 = vpow2.f32 %v6510_v6  ;;  %v713_v11 = vadd.f32 %v11689_v8, %v712_v10  ;;  %v8060_v12 = vpop.f32.mrb[17].mxu0  ;;  %8218 = vmatmul.mubr.f32.gmra.mrb[122].mxu0 %v279_v3  ;;  %8965 = vmatmul.mubr.f32.gmra.mrb[122].mxu1 %v528_v4  ;;  %v9214_v13 = vpack.c.bf16 %v11755_v7, %v11747_v2 }
 0x14c   : > { %8220 = vmatprep.mubr.msk.f32.mxu0 %vm11185_vm0, %v15399_v1  ;;  %8967 = vmatprep.mubr.msk.f32.mxu1 %vm11185_vm0, %v15399_v1  ;;  %9670 = vrcp.f32 %v3595_v9  ;;  %v286_v12 = vld [vmem:[%s11298_s9 + $0x220] sm:$0xff] }
 0x14d   : > { %v9661_v16 = vpop.eup %9660  ;;  %v6511_v17 = vmul.f32 -1.442695, %v713_v11 }
 0x14e   : > { %v3596_v18 = vadd.f32 1.0, %v9661_v16  ;;  %v717_v19 = vpop.f32.mrb[18].mxu0  ;;  %v11767_v22 = vpop.eup %9662 }
 0x14f   : > { %9672 = vpow2.f32 %v6511_v17  ;;  %v718_v20 = vadd.f32 %v11689_v8, %v717_v19  ;;  %v8063_v21 = vpop.f32.mrb[19].mxu0  ;;  %8221 = vmatmul.mubr.f32.gmra.mrb[124].mxu0 %v280_v14  ;;  %8968 = vmatmul.mubr.f32.gmra.mrb[124].mxu1 %v529_v15  ;;  %v535_v14 = vld [vmem:[%s11298_s9 + $0x9e8] sm:$0xff] }
 0x150   : > { %9674 = vrcp.f32 %v3596_v18  ;;  %8223 = vmatprep.mubr.msk.f32.mxu0 %vm11185_vm0, %v15399_v1  ;;  %8970 = vmatprep.mubr.msk.f32.mxu1 %vm11185_vm0, %v15399_v1 }
 0x151   : > { %v9665_v25 = vpop.eup %9664  ;;  %v6512_v26 = vmul.f32 -1.442695, %v718_v20 }
 0x152   : > { %v11775_v27 = vpop.eup %9666  ;;  %v3597_v28 = vadd.f32 1.0, %v9665_v25  ;;  %v722_v29 = vpop.f32.mrb[20].mxu0 }
 0x153   : > { %9676 = vpow2.f32 %v6512_v26  ;;  %v723_v30 = vadd.f32 %v11689_v8, %v722_v29  ;;  %v8066_v31 = vpop.f32.mrb[21].mxu0  ;;  %8224 = vmatmul.mubr.f32.gmra.mrb[126].mxu0 %v281_v23  ;;  %8971 = vmatmul.mubr.f32.gmra.mrb[126].mxu1 %v530_v24  ;;  %v9218_v32 = vpack.c.bf16 %v11775_v27, %v11767_v22  ;;  %v287_v23 = vld [vmem:[%s11298_s9 + $0x228] sm:$0xff]  ;;  %v536_v24 = vld [vmem:[%s11298_s9 + $0x9f0] sm:$0xff] }
 0x154   : > { %8226 = vmatprep.mubr.msk.f32.mxu0 %vm11185_vm0, %v15399_v1  ;;  %8973 = vmatprep.mubr.msk.f32.mxu1 %vm11185_vm0, %v15399_v1  ;;  %9678 = vrcp.f32 %v3597_v28 }
 0x155   : > { %v9669_v35 = vpop.eup %9668  ;;  %v6513_v36 = vmul.f32 -1.442695, %v723_v30 }
 0x156   : > { %v3598_v37 = vadd.f32 1.0, %v9669_v35  ;;  %v727_v38 = vpop.f32.mrb[22].mxu0  ;;  %v11787_v41 = vpop.eup %9670  ;;  %v288_v35 = vld [vmem:[%s11298_s9 + $0x230] sm:$0xff] }
 0x157   : > { %9680 = vpow2.f32 %v6513_v36  ;;  %v728_v39 = vadd.f32 %v11689_v8, %v727_v38  ;;  %v8069_v40 = vpop.f32.mrb[23].mxu0  ;;  %8227 = vmatmul.mubr.f32.gmra.mrb[128].mxu0 %v282_v33  ;;  %8974 = vmatmul.mubr.f32.gmra.mrb[128].mxu1 %v531_v34  ;;  %v537_v36 = vld [vmem:[%s11298_s9 + $0x9f8] sm:$0xff] }
 0x158   : > { %9682 = vrcp.f32 %v3598_v37  ;;  %8229 = vmatprep.mubr.msk.f32.mxu0 %vm11185_vm0, %v15399_v1  ;;  %8976 = vmatprep.mubr.msk.f32.mxu1 %vm11185_vm0, %v15399_v1 }
 0x159   : > { %v9673_v44 = vpop.eup %9672  ;;  %v6514_v45 = vmul.f32 -1.442695, %v728_v39 }
 0x15a   : > { %v11795_v46 = vpop.eup %9674  ;;  %v3599_v47 = vadd.f32 1.0, %v9673_v44  ;;  %v732_v48 = vpop.f32.mrb[24].mxu0 }
 0x15b   : > { %9684 = vpow2.f32 %v6514_v45  ;;  %v733_v49 = vadd.f32 %v11689_v8, %v732_v48  ;;  %v8072_v50 = vpop.f32.mrb[25].mxu0  ;;  %8230 = vmatmul.mubr.f32.gmra.mrb[130].mxu0 %v283_v42  ;;  %8977 = vmatmul.mubr.f32.gmra.mrb[130].mxu1 %v532_v43  ;;  %v9222_v51 = vpack.c.bf16 %v11795_v46, %v11787_v41  ;;  %v289_v45 = vld [vmem:[%s11298_s9 + $0x238] sm:$0xff] }
 0x15c   : > { %8232 = vmatprep.mubr.msk.f32.mxu0 %vm11185_vm0, %v15399_v1  ;;  %8979 = vmatprep.mubr.msk.f32.mxu1 %vm11185_vm0, %v15399_v1  ;;  %9686 = vrcp.f32 %v3599_v47  ;;  %v538_v47 = vld [vmem:[%s11298_s9 + $0xa00] sm:$0xff] }
 0x15d   : > { %v9677_v54 = vpop.eup %9676  ;;  %v6515_v55 = vmul.f32 -1.442695, %v733_v49 }
 0x15e   : > { %v3600_v56 = vadd.f32 1.0, %v9677_v54  ;;  %v737_v57 = vpop.f32.mrb[26].mxu0  ;;  %v11807_v60 = vpop.eup %9678 }
 0x15f   : > { %9688 = vpow2.f32 %v6515_v55  ;;  %v738_v58 = vadd.f32 %v11689_v8, %v737_v57  ;;  %v8075_v59 = vpop.f32.mrb[27].mxu0  ;;  %8233 = vmatmul.mubr.f32.gmra.mrb[132].mxu0 %v284_v52  ;;  %8980 = vmatmul.mubr.f32.gmra.mrb[132].mxu1 %v533_v53  ;;  %v290_v57 = vld [vmem:[%s11298_s9 + $0x240] sm:$0xff] }
 0x160   : > { %9690 = vrcp.f32 %v3600_v56  ;;  %8235 = vmatprep.mubr.msk.f32.mxu0 %vm11185_vm0, %v15399_v1  ;;  %8982 = vmatprep.mubr.msk.f32.mxu1 %vm11185_vm0, %v15399_v1 }
 0x161   : > { %v9681_v63 = vpop.eup %9680  ;;  %v6516_v3 = vmul.f32 -1.442695, %v738_v58  ;;  %v539_v58 = vld [vmem:[%s11298_s9 + $0xa08] sm:$0xff] }
 0x162   : > { %v11815_v4 = vpop.eup %9682  ;;  %v3601_v5 = vadd.f32 1.0, %v9681_v63  ;;  %v742_v6 = vpop.f32.mrb[28].mxu0 }
 0x163   : > { %9692 = vpow2.f32 %v6516_v3  ;;  %v743_v9 = vadd.f32 %v11689_v8, %v742_v6  ;;  %v8078_v10 = vpop.f32.mrb[29].mxu0  ;;  %8236 = vmatmul.mubr.f32.gmra.mrb[134].mxu0 %v285_v61  ;;  %8983 = vmatmul.mubr.f32.gmra.mrb[134].mxu1 %v534_v62  ;;  %v9226_v11 = vpack.c.bf16 %v11815_v4, %v11807_v60 }
 0x164   : > { %8238 = vmatprep.mubr.msk.f32.mxu0 %vm11185_vm0, %v15399_v1  ;;  %8985 = vmatprep.mubr.msk.f32.mxu1 %vm11185_vm0, %v15399_v1  ;;  %9694 = vrcp.f32 %v3601_v5  ;;  %v540_v10 = vld [vmem:[%s11298_s9 + $0xa10] sm:$0xff] }
 0x165   : > { %v9685_v15 = vpop.eup %9684  ;;  %v6517_v16 = vmul.f32 -1.442695, %v743_v9  ;;  %v291_v9 = vld [vmem:[%s11298_s9 + $0x248] sm:$0xff] }
 0x166   : > { %v3602_v17 = vadd.f32 1.0, %v9685_v15  ;;  %v747_v18 = vpop.f32.mrb[30].mxu0  ;;  %v11827_v21 = vpop.eup %9686 }
 0x167   : > { %9696 = vpow2.f32 %v6517_v16  ;;  %v748_v19 = vadd.f32 %v11689_v8, %v747_v18  ;;  %v8081_v20 = vpop.f32.mrb[31].mxu0  ;;  %8239 = vmatmul.mubr.f32.gmra.mrb[136].mxu0 %v286_v12  ;;  %8986 = vmatmul.mubr.f32.gmra.mrb[136].mxu1 %v535_v14 }
 0x168   : > { %9698 = vrcp.f32 %v3602_v17  ;;  %8241 = vmatprep.mubr.msk.f32.mxu0 %vm11185_vm0, %v15399_v1  ;;  %8988 = vmatprep.mubr.msk.f32.mxu1 %vm11185_vm0, %v15399_v1 }
 0x169   : > { %v9689_v25 = vpop.eup %9688  ;;  %v6518_v26 = vmul.f32 -1.442695, %v748_v19 }
 0x16a   : > { %v11835_v28 = vpop.eup %9690  ;;  %v3603_v29 = vadd.f32 1.0, %v9689_v25  ;;  %v752_v30 = vpop.f32.mrb[32].mxu0 }
 0x16b   : > { %9700 = vpow2.f32 %v6518_v26  ;;  %v753_v31 = vadd.f32 %v11689_v8, %v752_v30  ;;  %v8084_v33 = vpop.f32.mrb[33].mxu0  ;;  %8242 = vmatmul.mubr.f32.gmra.mrb[138].mxu0 %v287_v23  ;;  %8989 = vmatmul.mubr.f32.gmra.mrb[138].mxu1 %v536_v24  ;;  %v9230_v34 = vpack.c.bf16 %v11835_v28, %v11827_v21  ;;  %v292_v23 = vld [vmem:[%s11298_s9 + $0x250] sm:$0xff]  ;;  %v541_v24 = vld [vmem:[%s11298_s9 + $0xa18] sm:$0xff] }
 0x16c   : > { %8244 = vmatprep.mubr.msk.f32.mxu0 %vm11185_vm0, %v15399_v1  ;;  %8991 = vmatprep.mubr.msk.f32.mxu1 %vm11185_vm0, %v15399_v1  ;;  %9702 = vrcp.f32 %v3603_v29 }
 0x16d   : > { %v9693_v37 = vpop.eup %9692  ;;  %v6519_v38 = vmul.f32 -1.442695, %v753_v31 }
 0x16e   : > { %v3604_v39 = vadd.f32 1.0, %v9693_v37  ;;  %v757_v40 = vpop.f32.mrb[34].mxu0  ;;  %v11847_v44 = vpop.eup %9694  ;;  %v542_v37 = vld [vmem:[%s11298_s9 + $0xa20] sm:$0xff] }
 0x16f   : > { %9704 = vpow2.f32 %v6519_v38  ;;  %v758_v42 = vadd.f32 %v11689_v8, %v757_v40  ;;  %v8087_v43 = vpop.f32.mrb[35].mxu0  ;;  %8245 = vmatmul.mubr.f32.gmra.mrb[140].mxu0 %v288_v35  ;;  %8992 = vmatmul.mubr.f32.gmra.mrb[140].mxu1 %v537_v36  ;;  %v293_v36 = vld [vmem:[%s11298_s9 + $0x258] sm:$0xff] }
 0x170   : > { %9706 = vrcp.f32 %v3604_v39  ;;  %8247 = vmatprep.mubr.msk.f32.mxu0 %vm11185_vm0, %v15399_v1  ;;  %8994 = vmatprep.mubr.msk.f32.mxu1 %vm11185_vm0, %v15399_v1 }
 0x171   : > { %v9697_v48 = vpop.eup %9696  ;;  %v6520_v49 = vmul.f32 -1.442695, %v758_v42 }
 0x172   : > { %v11855_v50 = vpop.eup %9698  ;;  %v3605_v52 = vadd.f32 1.0, %v9697_v48  ;;  %v762_v53 = vpop.f32.mrb[36].mxu0 }
 0x173   : > { %9708 = vpow2.f32 %v6520_v49  ;;  %v763_v54 = vadd.f32 %v11689_v8, %v762_v53  ;;  %v8090_v55 = vpop.f32.mrb[37].mxu0  ;;  %8248 = vmatmul.mubr.f32.gmra.mrb[142].mxu0 %v289_v45  ;;  %8995 = vmatmul.mubr.f32.gmra.mrb[142].mxu1 %v538_v47  ;;  %v9234_v56 = vpack.c.bf16 %v11855_v50, %v11847_v44  ;;  %v294_v49 = vld [vmem:[%s11298_s9 + $0x260] sm:$0xff] }
 0x174   : > { %8250 = vmatprep.mubr.msk.f32.mxu0 %vm11185_vm0, %v15399_v1  ;;  %8997 = vmatprep.mubr.msk.f32.mxu1 %vm11185_vm0, %v15399_v1  ;;  %9710 = vrcp.f32 %v3605_v52  ;;  %v543_v52 = vld [vmem:[%s11298_s9 + $0xa28] sm:$0xff] }
 0x175   : > { %v9701_v59 = vpop.eup %9700  ;;  %v6521_v61 = vmul.f32 -1.442695, %v763_v54 }
 0x176   : > { %v3606_v62 = vadd.f32 1.0, %v9701_v59  ;;  %v767_v63 = vpop.f32.mrb[38].mxu0  ;;  %v11867_v6 = vpop.eup %9702 }
 0x177   : > { %9712 = vpow2.f32 %v6521_v61  ;;  %v768_v3 = vadd.f32 %v11689_v8, %v767_v63  ;;  %v8093_v5 = vpop.f32.mrb[39].mxu0  ;;  %8251 = vmatmul.mubr.f32.gmra.mrb[144].mxu0 %v290_v57  ;;  %8998 = vmatmul.mubr.f32.gmra.mrb[144].mxu1 %v539_v58  ;;  %v544_v63 = vld [vmem:[%s11298_s9 + $0xa30] sm:$0xff] }
 0x178   : > { %9714 = vrcp.f32 %v3606_v62  ;;  %8253 = vmatprep.mubr.msk.f32.mxu0 %vm11185_vm0, %v15399_v1  ;;  %9000 = vmatprep.mubr.msk.f32.mxu1 %vm11185_vm0, %v15399_v1  ;;  %v295_v62 = vld [vmem:[%s11298_s9 + $0x268] sm:$0xff] }
 0x179   : > { %v9705_v12 = vpop.eup %9704  ;;  %v6522_v14 = vmul.f32 -1.442695, %v768_v3 }
 0x17a   : > { %v11875_v15 = vpop.eup %9706  ;;  %v3607_v16 = vadd.f32 1.0, %v9705_v12  ;;  %v772_v17 = vpop.f32.mrb[40].mxu0 }
 0x17b   : > { %9716 = vpow2.f32 %v6522_v14  ;;  %v773_v18 = vadd.f32 %v11689_v8, %v772_v17  ;;  %v8096_v19 = vpop.f32.mrb[41].mxu0  ;;  %8254 = vmatmul.mubr.f32.gmra.mrb[146].mxu0 %v291_v9  ;;  %9001 = vmatmul.mubr.f32.gmra.mrb[146].mxu1 %v540_v10  ;;  %v9238_v20 = vpack.c.bf16 %v11875_v15, %v11867_v6 }
 0x17c   : > { %8256 = vmatprep.mubr.msk.f32.mxu0 %vm11185_vm0, %v15399_v1  ;;  %9003 = vmatprep.mubr.msk.f32.mxu1 %vm11185_vm0, %v15399_v1  ;;  %9718 = vrcp.f32 %v3607_v16  ;;  %v545_v19 = vld [vmem:[%s11298_s9 + $0xa38] sm:$0xff] }
 0x17d   : > { %v9709_v25 = vpop.eup %9708  ;;  %v6523_v26 = vmul.f32 -1.442695, %v773_v18  ;;  %v296_v18 = vld [vmem:[%s11298_s9 + $0x270] sm:$0xff] }
 0x17e   : > { %v3608_v29 = vadd.f32 1.0, %v9709_v25  ;;  %v777_v30 = vpop.f32.mrb[42].mxu0  ;;  %v11887_v35 = vpop.eup %9710 }
 0x17f   : > { %9720 = vpow2.f32 %v6523_v26  ;;  %v778_v31 = vadd.f32 %v11689_v8, %v777_v30  ;;  %v8099_v33 = vpop.f32.mrb[43].mxu0  ;;  %8257 = vmatmul.mubr.f32.gmra.mrb[148].mxu0 %v292_v23  ;;  %9004 = vmatmul.mubr.f32.gmra.mrb[148].mxu1 %v541_v24 }
 0x180   : > { %9722 = vrcp.f32 %v3608_v29  ;;  %8259 = vmatprep.mubr.msk.f32.mxu0 %vm11185_vm0, %v15399_v1  ;;  %9006 = vmatprep.mubr.msk.f32.mxu1 %vm11185_vm0, %v15399_v1  ;;  %v297_v33 = vld [vmem:[%s11298_s9 + $0x278] sm:$0xff] }
 0x181   : > { %v9713_v38 = vpop.eup %9712  ;;  %v6524_v39 = vmul.f32 -1.442695, %v778_v31 }
 0x182   : > { %v11895_v40 = vpop.eup %9714  ;;  %v3609_v42 = vadd.f32 1.0, %v9713_v38  ;;  %v782_v43 = vpop.f32.mrb[44].mxu0 }
 0x183   : > { %9724 = vpow2.f32 %v6524_v39  ;;  %v783_v45 = vadd.f32 %v11689_v8, %v782_v43  ;;  %v8102_v47 = vpop.f32.mrb[45].mxu0  ;;  %8260 = vmatmul.mubr.f32.gmra.mrb[150].mxu0 %v293_v36  ;;  %9007 = vmatmul.mubr.f32.gmra.mrb[150].mxu1 %v542_v37  ;;  %v9242_v48 = vpack.c.bf16 %v11895_v40, %v11887_v35  ;;  %v546_v36 = vld [vmem:[%s11298_s9 + $0xa40] sm:$0xff]  ;;  %v560_v35 = vld [vmem:[%s11298_s9 + $0xab0] sm:$0xff] }
 0x184   : > { %8262 = vmatprep.mubr.msk.f32.mxu0 %vm11185_vm0, %v15399_v1  ;;  %9009 = vmatprep.mubr.msk.f32.mxu1 %vm11185_vm0, %v15399_v1  ;;  %9726 = vrcp.f32 %v3609_v42  ;;  %v547_v47 = vld [vmem:[%s11298_s9 + $0xa48] sm:$0xff] }
 0x185   : > { %v9717_v53 = vpop.eup %9716  ;;  %v6525_v54 = vmul.f32 -1.442695, %v783_v45  ;;  %v298_v45 = vld [vmem:[%s11298_s9 + $0x280] sm:$0xff] }
 0x186   : > { %v3610_v55 = vadd.f32 1.0, %v9717_v53  ;;  %v787_v57 = vpop.f32.mrb[46].mxu0  ;;  %v9719_v61 = vpop.eup %9718 }
 0x187   : > { %9728 = vpow2.f32 %v6525_v54  ;;  %v788_v58 = vadd.f32 %v11689_v8, %v787_v57  ;;  %v8105_v59 = vpop.f32.mrb[47].mxu0  ;;  %8263 = vmatmul.mubr.f32.gmra.mrb[152].mxu0 %v294_v49  ;;  %9010 = vmatmul.mubr.f32.gmra.mrb[152].mxu1 %v543_v52 }
 0x188   : > { %9730 = vrcp.f32 %v3610_v55  ;;  %8265 = vmatprep.mubr.msk.f32.mxu0 %vm11185_vm0, %v15399_v1  ;;  %9012 = vmatprep.mubr.msk.f32.mxu1 %vm11185_vm0, %v15399_v1  ;;  %v299_v59 = vld [vmem:[%s11298_s9 + $0x288] sm:$0xff] }
 0x189   : > { %v9721_v3 = vpop.eup %9720  ;;  %v6526_v5 = vmul.f32 -1.442695, %v788_v58 }
 0x18a   : > { %v9723_v9 = vpop.eup %9722  ;;  %v3611_v10 = vadd.f32 1.0, %v9721_v3  ;;  %v792_v12 = vpop.f32.mrb[48].mxu0 }
 0x18b   : > { %9732 = vpow2.f32 %v6526_v5  ;;  %v793_v14 = vadd.f32 %v11689_v8, %v792_v12  ;;  %v8108_v16 = vpop.f32.mrb[49].mxu0  ;;  %8266 = vmatmul.mubr.f32.gmra.mrb[154].mxu0 %v295_v62  ;;  %9013 = vmatmul.mubr.f32.gmra.mrb[154].mxu1 %v544_v63  ;;  %v9212_v17 = vpack.c.bf16 %v9723_v9, %v9719_v61  ;;  %v548_v61 = vld [vmem:[%s11298_s9 + $0xa50] sm:$0xff]  ;;  %v549_v12 = vld [vmem:[%s11298_s9 + $0xa58] sm:$0xff] }
 0x18c   : > { %8268 = vmatprep.mubr.msk.f32.mxu0 %vm11185_vm0, %v15399_v1  ;;  %9015 = vmatprep.mubr.msk.f32.mxu1 %vm11185_vm0, %v15399_v1  ;;  %9734 = vrcp.f32 %v3611_v10  ;;  %v300_v10 = vld [vmem:[%s11298_s9 + $0x290] sm:$0xff] }
 0x18d   : > { %v9725_v23 = vpop.eup %9724  ;;  %v6527_v24 = vmul.f32 -1.442695, %v793_v14  ;;  %9213 = vmatprep.subr.bf16.mxu1 %v9212_v17 }
 0x18e   : > { %v3612_v25 = vadd.f32 1.0, %v9725_v23  ;;  %v797_v26 = vpop.f32.mrb[50].mxu0  ;;  %9215 = vmatpush3.bf16.msra.mxu1 %v9214_v13  ;;  %v9727_v31 = vpop.eup %9726 }
 0x18f   : > { %9736 = vpow2.f32 %v6527_v24  ;;  %v798_v29 = vadd.f32 %v11689_v8, %v797_v26  ;;  %v8111_v30 = vpop.f32.mrb[51].mxu0  ;;  %8269 = vmatmul.mubr.f32.gmra.mrb[156].mxu0 %v296_v18  ;;  %9016 = vmatmul.mubr.f32.gmra.mrb[156].mxu1 %v545_v19  ;;  %v550_v26 = vld [vmem:[%s11298_s9 + $0xa60] sm:$0xff] }
 0x190   : > { %9738 = vrcp.f32 %v3612_v25  ;;  %8271 = vmatprep.mubr.msk.f32.mxu0 %vm11185_vm0, %v15399_v1  ;;  %9018 = vmatprep.mubr.msk.f32.mxu1 %vm11185_vm0, %v15399_v1  ;;  %v301_v25 = vld [vmem:[%s11298_s9 + $0x298] sm:$0xff] }
 0x191   : > { %v9729_v2 = vpop.eup %9728  ;;  %v6528_v7 = vmul.f32 -1.442695, %v798_v29 }
 0x192   : > { %v9731_v13 = vpop.eup %9730  ;;  %v3613_v37 = vadd.f32 1.0, %v9729_v2  ;;  %v802_v38 = vpop.f32.mrb[52].mxu0  ;;  %v302_v2 = vld [vmem:[%s11298_s9 + $0x2a0] sm:$0xff] }
 0x193   : > { %9740 = vpow2.f32 %v6528_v7  ;;  %v803_v39 = vadd.f32 %v11689_v8, %v802_v38  ;;  %v8114_v42 = vpop.f32.mrb[53].mxu0  ;;  %8272 = vmatmul.mubr.f32.gmra.mrb[158].mxu0 %v297_v33  ;;  %9019 = vmatmul.mubr.f32.gmra.mrb[158].mxu1 %v546_v36  ;;  %v9216_v43 = vpack.c.bf16 %v9731_v13, %v9727_v31  ;;  %v551_v7 = vld [vmem:[%s11298_s9 + $0xa68] sm:$0xff] }
 0x194   : > { %8274 = vmatprep.mubr.msk.f32.mxu0 %vm11185_vm0, %v15399_v1  ;;  %9021 = vmatprep.mubr.msk.f32.mxu1 %vm11185_vm0, %v15399_v1  ;;  %9742 = vrcp.f32 %v3613_v37 }
 0x195   : > { %v9733_v49 = vpop.eup %9732  ;;  %v6529_v52 = vmul.f32 -1.442695, %v803_v39  ;;  %9217 = vmatprep.subr.bf16.mxu1 %v9216_v43 }
 0x196   : > { %v3614_v53 = vadd.f32 1.0, %v9733_v49  ;;  %v807_v54 = vpop.f32.mrb[54].mxu0  ;;  %9219 = vmatpush3.bf16.msra.mxu1 %v9218_v32  ;;  %v9735_v58 = vpop.eup %9734  ;;  %v552_v49 = vld [vmem:[%s11298_s9 + $0xa70] sm:$0xff] }
 0x197   : > { %9744 = vpow2.f32 %v6529_v52  ;;  %v808_v55 = vadd.f32 %v11689_v8, %v807_v54  ;;  %v8117_v57 = vpop.f32.mrb[55].mxu0  ;;  %8275 = vmatmul.mubr.f32.gmra.mrb[160].mxu0 %v298_v45  ;;  %9022 = vmatmul.mubr.f32.gmra.mrb[160].mxu1 %v547_v47  ;;  %v303_v47 = vld [vmem:[%s11298_s9 + $0x2a8] sm:$0xff] }
 0x198   : > { %9746 = vrcp.f32 %v3614_v53  ;;  %8277 = vmatprep.mubr.msk.f32.mxu0 %vm11185_vm0, %v15399_v1  ;;  %9024 = vmatprep.mubr.msk.f32.mxu1 %vm11185_vm0, %v15399_v1 }
 0x199   : > { %v9737_v22 = vpop.eup %9736  ;;  %v6530_v27 = vmul.f32 -1.442695, %v808_v55 }
 0x19a   : > { %v9739_v32 = vpop.eup %9738  ;;  %v3615_v62 = vadd.f32 1.0, %v9737_v22  ;;  %v812_v63 = vpop.f32.mrb[56].mxu0 }
 0x19b   : > { %9748 = vpow2.f32 %v6530_v27  ;;  %v813_v3 = vadd.f32 %v11689_v8, %v812_v63  ;;  %v8120_v5 = vpop.f32.mrb[57].mxu0  ;;  %8278 = vmatmul.mubr.f32.gmra.mrb[162].mxu0 %v299_v59  ;;  %9025 = vmatmul.mubr.f32.gmra.mrb[162].mxu1 %v548_v61  ;;  %v9220_v9 = vpack.c.bf16 %v9739_v32, %v9735_v58  ;;  %v304_v58 = vld [vmem:[%s11298_s9 + $0x2b0] sm:$0xff]  ;;  %v553_v59 = vld [vmem:[%s11298_s9 + $0xa78] sm:$0xff] }
 0x19c   : > { %8280 = vmatprep.mubr.msk.f32.mxu0 %vm11185_vm0, %v15399_v1  ;;  %9027 = vmatprep.mubr.msk.f32.mxu1 %vm11185_vm0, %v15399_v1  ;;  %9750 = vrcp.f32 %v3615_v62  ;;  %v305_v5 = vld [vmem:[%s11298_s9 + $0x2b8] sm:$0xff] }
 0x19d   : > { %v9741_v14 = vpop.eup %9740  ;;  %v6531_v16 = vmul.f32 -1.442695, %v813_v3  ;;  %9221 = vmatprep.subr.bf16.mxu1 %v9220_v9  ;;  %v554_v9 = vld [vmem:[%s11298_s9 + $0xa80] sm:$0xff] }
 0x19e   : > { %v3616_v17 = vadd.f32 1.0, %v9741_v14  ;;  %v817_v18 = vpop.f32.mrb[58].mxu0  ;;  %9223 = vmatpush3.bf16.msra.mxu1 %v9222_v51  ;;  %v9743_v24 = vpop.eup %9742 }
 0x19f   : > { %9752 = vpow2.f32 %v6531_v16  ;;  %v818_v19 = vadd.f32 %v11689_v8, %v817_v18  ;;  %v8123_v23 = vpop.f32.mrb[59].mxu0  ;;  %8281 = vmatmul.mubr.f32.gmra.mrb[164].mxu0 %v300_v10  ;;  %9028 = vmatmul.mubr.f32.gmra.mrb[164].mxu1 %v549_v12  ;;  %v12001_v12 = vld [vmem:[%s15394_s2] ss:$0 sm:$0xff]  ;;  %v306_v18 = vld [vmem:[%s11298_s9 + $0x2c0] sm:$0xff] }
 0x1a0   : > { %9754 = vrcp.f32 %v3616_v17  ;;  %8283 = vmatprep.mubr.msk.f32.mxu0 %vm11185_vm0, %v15399_v1  ;;  %9030 = vmatprep.mubr.msk.f32.mxu1 %vm11185_vm0, %v15399_v1 }
 0x1a1   : > { %v9745_v41 = vpop.eup %9744  ;;  %v6532_v46 = vmul.f32 -1.442695, %v818_v19  ;;  %v555_v19 = vld [vmem:[%s11298_s9 + $0xa88] sm:$0xff] }
 0x1a2   : > { %v9747_v51 = vpop.eup %9746  ;;  %v3617_v29 = vadd.f32 1.0, %v9745_v41  ;;  %v822_v30 = vpop.f32.mrb[60].mxu0 }
 0x1a3   : > { %9756 = vpow2.f32 %v6532_v46  ;;  %v823_v31 = vadd.f32 %v11689_v8, %v822_v30  ;;  %v8126_v33 = vpop.f32.mrb[61].mxu0  ;;  %8284 = vmatmul.mubr.f32.gmra.mrb[166].mxu0 %v301_v25  ;;  %9031 = vmatmul.mubr.f32.gmra.mrb[166].mxu1 %v550_v26  ;;  %v9224_v36 = vpack.c.bf16 %v9747_v51, %v9743_v24  ;;  %v556_v30 = vld [vmem:[%s11298_s9 + $0xa90] sm:$0xff] }
 0x1a4   : > { %8286 = vmatprep.mubr.msk.f32.mxu0 %vm11185_vm0, %v15399_v1  ;;  %9033 = vmatprep.mubr.msk.f32.mxu1 %vm11185_vm0, %v15399_v1  ;;  %9758 = vrcp.f32 %v3617_v29  ;;  %v307_v29 = vld [vmem:[%s11298_s9 + $0x2c8] sm:$0xff] }
 0x1a5   : > { %v9749_v13 = vpop.eup %9748  ;;  %v6533_v37 = vmul.f32 -1.442695, %v823_v31  ;;  %9225 = vmatprep.subr.bf16.mxu1 %v9224_v36 }
 0x1a6   : > { %v3618_v38 = vadd.f32 1.0, %v9749_v13  ;;  %v827_v39 = vpop.f32.mrb[62].mxu0  ;;  %9227 = vmatpush3.bf16.msra.mxu1 %v9226_v11  ;;  %v9751_v45 = vpop.eup %9750  ;;  %v308_v13 = vld [vmem:[%s11298_s9 + $0x2d0] sm:$0xff] }
 0x1a7   : > { %9760 = vpow2.f32 %v6533_v37  ;;  %v828_v42 = vadd.f32 %v11689_v8, %v827_v39  ;;  %v8129_v43 = vpop.f32.mrb[63].mxu0  ;;  %8287 = vmatmul.mubr.f32.gmra.mrb[168].mxu0 %v302_v2  ;;  %9034 = vmatmul.mubr.f32.gmra.mrb[168].mxu1 %v551_v7  ;;  %v557_v37 = vld [vmem:[%s11298_s9 + $0xa98] sm:$0xff] }
 0x1a8   : > { %9762 = vrcp.f32 %v3618_v38  ;;  %8289 = vmatprep.mubr.msk.f32.mxu0 %vm11185_vm0, %v15399_v1  ;;  %9036 = vmatprep.mubr.msk.f32.mxu1 %vm11185_vm0, %v15399_v1 }
 0x1a9   : > { %v9753_v60 = vpop.eup %9752  ;;  %v6534_v4 = vmul.f32 -1.442695, %v828_v42 }
 0x1aa   : > { %v9755_v11 = vpop.eup %9754  ;;  %v3619_v52 = vadd.f32 1.0, %v9753_v60  ;;  %v832_v53 = vpop.f32.mrb[64].mxu0  ;;  %v309_v60 = vld [vmem:[%s11298_s9 + $0x2d8] sm:$0xff] }
 0x1ab   : > { %9764 = vpow2.f32 %v6534_v4  ;;  %v833_v54 = vadd.f32 %v11689_v8, %v832_v53  ;;  %v8132_v55 = vpop.f32.mrb[65].mxu0  ;;  %8290 = vmatmul.mubr.f32.gmra.mrb[170].mxu0 %v303_v47  ;;  %9037 = vmatmul.mubr.f32.gmra.mrb[170].mxu1 %v552_v49  ;;  %v9228_v57 = vpack.c.bf16 %v9755_v11, %v9751_v45  ;;  %v558_v4 = vld [vmem:[%s11298_s9 + $0xaa0] sm:$0xff] }
 0x1ac   : > { %8292 = vmatprep.mubr.msk.f32.mxu0 %vm11185_vm0, %v15399_v1  ;;  %9039 = vmatprep.mubr.msk.f32.mxu1 %vm11185_vm0, %v15399_v1  ;;  %9766 = vrcp.f32 %v3619_v52 }
 0x1ad   : > { %v9757_v61 = vpop.eup %9756  ;;  %v6535_v22 = vmul.f32 -1.442695, %v833_v54  ;;  %9229 = vmatprep.subr.bf16.mxu1 %v9228_v57  ;;  %v310_v57 = vld [vmem:[%s11298_s9 + $0x2e0] sm:$0xff] }
 0x1ae   : > { %v3620_v27 = vadd.f32 1.0, %v9757_v61  ;;  %v837_v32 = vpop.f32.mrb[66].mxu0  ;;  %9231 = vmatpush3.bf16.msra.mxu1 %v9230_v34  ;;  %v9759_v3 = vpop.eup %9758 }
 0x1af   : > { %9768 = vpow2.f32 %v6535_v22  ;;  %v838_v62 = vadd.f32 %v11689_v8, %v837_v32  ;;  %v8135_v63 = vpop.f32.mrb[67].mxu0  ;;  %8293 = vmatmul.mubr.f32.gmra.mrb[172].mxu0 %v304_v58  ;;  %9040 = vmatmul.mubr.f32.gmra.mrb[172].mxu1 %v553_v59  ;;  %v559_v58 = vld [vmem:[%s11298_s9 + $0xaa8] sm:$0xff] }
 0x1b0   : > { %9770 = vrcp.f32 %v3620_v27  ;;  %8295 = vmatprep.mubr.msk.f32.mxu0 %vm11185_vm0, %v15399_v1  ;;  %9042 = vmatprep.mubr.msk.f32.mxu1 %vm11185_vm0, %v15399_v1 }
 0x1b1   : > { %v9761_v21 = vpop.eup %9760  ;;  %v6536_v28 = vmul.f32 -1.442695, %v838_v62 }
 0x1b2   : > { %v9763_v34 = vpop.eup %9762  ;;  %v3621_v10 = vadd.f32 1.0, %v9761_v21  ;;  %v842_v8 = vpop.f32.mrb[68].mxu0 }
 0x1b3   : > { %9772 = vpow2.f32 %v6536_v28  ;;  %v843_v14 = vadd.f32 %v12001_v12, %v842_v8  ;;  %v8138_v16 = vpop.f32.mrb[69].mxu0  ;;  %8296 = vmatmul.mubr.f32.gmra.mrb[174].mxu0 %v305_v5  ;;  %9043 = vmatmul.mubr.f32.gmra.mrb[174].mxu1 %v554_v9  ;;  %v9232_v17 = vpack.c.bf16 %v9763_v34, %v9759_v3  ;;  %v311_v3 = vld [vmem:[%s11298_s9 + $0x2e8] sm:$0xff]  ;;  %v312_v8 = vld [vmem:[%s11298_s9 + $0x2f0] sm:$0xff] }
 0x1b4   : > { %8298 = vmatprep.mubr.msk.f32.mxu0 %vm11185_vm0, %v15399_v1  ;;  %9045 = vmatprep.mubr.msk.f32.mxu1 %vm11185_vm0, %v15399_v1  ;;  %9774 = vrcp.f32 %v3621_v10 }
 0x1b5   : > { %v9765_v23 = vpop.eup %9764  ;;  %v6537_v24 = vmul.f32 -1.442695, %v843_v14  ;;  %9233 = vmatprep.subr.bf16.mxu1 %v9232_v17  ;;  %v561_v14 = vld [vmem:[%s11298_s9 + $0xab8] sm:$0xff] }
 0x1b6   : > { %v3622_v25 = vadd.f32 1.0, %v9765_v23  ;;  %v847_v26 = vpop.f32.mrb[70].mxu0  ;;  %9235 = vmatpush3.bf16.msra.mxu1 %v9234_v56  ;;  %v9767_v51 = vpop.eup %9766 }
 0x1b7   : > { %9776 = vpow2.f32 %v6537_v24  ;;  %v848_v41 = vadd.f32 %v12001_v12, %v847_v26  ;;  %v8141_v46 = vpop.f32.mrb[71].mxu0  ;;  %8299 = vmatmul.mubr.f32.gmra.mrb[176].mxu0 %v306_v18  ;;  %9046 = vmatmul.mubr.f32.gmra.mrb[176].mxu1 %v555_v19  ;;  %v313_v26 = vld [vmem:[%s11298_s9 + $0x2f8] sm:$0xff] }
 0x1b8   : > { %9778 = vrcp.f32 %v3622_v25  ;;  %8301 = vmatprep.mubr.msk.f32.mxu0 %vm11185_vm0, %v15399_v1  ;;  %9048 = vmatprep.mubr.msk.f32.mxu1 %vm11185_vm0, %v15399_v1 }
 0x1b9   : > { %v9769_v44 = vpop.eup %9768  ;;  %v6538_v50 = vmul.f32 -1.442695, %v848_v41  ;;  %v562_v41 = vld [vmem:[%s11298_s9 + $0xac0] sm:$0xff] }
 0x1ba   : > { %v9771_v56 = vpop.eup %9770  ;;  %v3623_v31 = vadd.f32 1.0, %v9769_v44  ;;  %v852_v33 = vpop.f32.mrb[72].mxu0 }
 0x1bb   : > { %9780 = vpow2.f32 %v6538_v50  ;;  %v853_v36 = vadd.f32 %v12001_v12, %v852_v33  ;;  %v8144_v2 = vpop.f32.mrb[73].mxu0  ;;  %8302 = vmatmul.mubr.f32.gmra.mrb[178].mxu0 %v307_v29  ;;  %9049 = vmatmul.mubr.f32.gmra.mrb[178].mxu1 %v556_v30  ;;  %v9236_v7 = vpack.c.bf16 %v9771_v56, %v9767_v51  ;;  %v314_v33 = vld [vmem:[%s11298_s9 + $0x300] sm:$0xff] }
 0x1bc   : > { %8304 = vmatprep.mubr.msk.f32.mxu0 %vm11185_vm0, %v15399_v1  ;;  %9051 = vmatprep.mubr.msk.f32.mxu1 %vm11185_vm0, %v15399_v1  ;;  %9782 = vrcp.f32 %v3623_v31 }
 0x1bd   : > { %v9773_v38 = vpop.eup %9772  ;;  %v6539_v39 = vmul.f32 -1.442695, %v853_v36  ;;  %9237 = vmatprep.subr.bf16.mxu1 %v9236_v7  ;;  %v563_v36 = vld [vmem:[%s11298_s9 + $0xac8] sm:$0xff] }
 0x1be   : > { %v3624_v42 = vadd.f32 1.0, %v9773_v38  ;;  %v857_v43 = vpop.f32.mrb[74].mxu0  ;;  %9239 = vmatpush3.bf16.msra.mxu1 %v9238_v20  ;;  %v9775_v49 = vpop.eup %9774 }
 0x1bf   : > { %9784 = vpow2.f32 %v6539_v39  ;;  %v858_v45 = vadd.f32 %v12001_v12, %v857_v43  ;;  %v8147_v47 = vpop.f32.mrb[75].mxu0  ;;  %8305 = vmatmul.mubr.f32.gmra.mrb[180].mxu0 %v308_v13  ;;  %9052 = vmatmul.mubr.f32.gmra.mrb[180].mxu1 %v557_v37  ;;  %v315_v43 = vld [vmem:[%s11298_s9 + $0x308] sm:$0xff] }
 0x1c0   : > { %9786 = vrcp.f32 %v3624_v42  ;;  %8307 = vmatprep.mubr.msk.f32.mxu0 %vm11185_vm0, %v15399_v1  ;;  %9054 = vmatprep.mubr.msk.f32.mxu1 %vm11185_vm0, %v15399_v1 }
 0x1c1   : > { %v9777_v6 = vpop.eup %9776  ;;  %v6540_v15 = vmul.f32 -1.442695, %v858_v45  ;;  %v564_v45 = vld [vmem:[%s11298_s9 + $0xad0] sm:$0xff] }
 0x1c2   : > { %v9779_v20 = vpop.eup %9778  ;;  %v3625_v11 = vadd.f32 1.0, %v9777_v6  ;;  %v862_v52 = vpop.f32.mrb[76].mxu0 }
 0x1c3   : > { %9788 = vpow2.f32 %v6540_v15  ;;  %v863_v53 = vadd.f32 %v12001_v12, %v862_v52  ;;  %v8150_v54 = vpop.f32.mrb[77].mxu0  ;;  %8308 = vmatmul.mubr.f32.gmra.mrb[182].mxu0 %v309_v60  ;;  %9055 = vmatmul.mubr.f32.gmra.mrb[182].mxu1 %v558_v4  ;;  %v9240_v55 = vpack.c.bf16 %v9779_v20, %v9775_v49  ;;  %v316_v52 = vld [vmem:[%s11298_s9 + $0x310] sm:$0xff] }
 0x1c4   : > { %8310 = vmatprep.mubr.msk.f32.mxu0 %vm11185_vm0, %v15399_v1  ;;  %9057 = vmatprep.mubr.msk.f32.mxu1 %vm11185_vm0, %v15399_v1  ;;  %9790 = vrcp.f32 %v3625_v11 }
 0x1c5   : > { %v9781_v59 = vpop.eup %9780  ;;  %v6541_v61 = vmul.f32 -1.442695, %v863_v53  ;;  %9241 = vmatprep.subr.bf16.mxu1 %v9240_v55  ;;  %v565_v53 = vld [vmem:[%s11298_s9 + $0xad8] sm:$0xff] }
 0x1c6   : > { %v3626_v22 = vadd.f32 1.0, %v9781_v59  ;;  %v867_v27 = vpop.f32.mrb[78].mxu0  ;;  %9243 = vmatpush3.bf16.msra.mxu1 %v9242_v48  ;;  %v12048_v63 = vpop.eup %9782 }
 0x1c7   : > { %9792 = vpow2.f32 %v6541_v61  ;;  %v868_v32 = vadd.f32 %v12001_v12, %v867_v27  ;;  %v8153_v62 = vpop.f32.mrb[79].mxu0  ;;  %8311 = vmatmul.mubr.f32.gmra.mrb[184].mxu0 %v310_v57  ;;  %9058 = vmatmul.mubr.f32.gmra.mrb[184].mxu1 %v559_v58  ;;  %v317_v27 = vld [vmem:[%s11298_s9 + $0x318] sm:$0xff] }
 0x1c8   : > { %9794 = vrcp.f32 %v3626_v22  ;;  %8313 = vmatprep.mubr.msk.f32.mxu0 %vm11185_vm0, %v15399_v1  ;;  %9060 = vmatprep.mubr.msk.f32.mxu1 %vm11185_vm0, %v15399_v1 }
 0x1c9   : > { %v9785_v40 = vpop.eup %9784  ;;  %v6542_v48 = vmul.f32 -1.442695, %v868_v32  ;;  %v566_v32 = vld [vmem:[%s11298_s9 + $0xae0] sm:$0xff] }
 0x1ca   : > { %v12056_v5 = vpop.eup %9786  ;;  %v3627_v9 = vadd.f32 1.0, %v9785_v40  ;;  %v872_v21 = vpop.f32.mrb[80].mxu0 }
 0x1cb   : > { %9796 = vpow2.f32 %v6542_v48  ;;  %v873_v28 = vadd.f32 %v12001_v12, %v872_v21  ;;  %v8156_v34 = vpop.f32.mrb[81].mxu0  ;;  %8314 = vmatmul.mubr.f32.gmra.mrb[186].mxu0 %v311_v3  ;;  %9061 = vmatmul.mubr.f32.gmra.mrb[186].mxu1 %v560_v35  ;;  %v9246_v10 = vpack.c.bf16 %v12056_v5, %v12048_v63  ;;  %v4733_v5 = vld [vmem:[%s15395_s3 + $0x178] sm:$0xff] }
 0x1cc   : > { %8316 = vmatprep.mubr.msk.f32.mxu0 %vm11185_vm0, %v15399_v1  ;;  %9063 = vmatprep.mubr.msk.f32.mxu1 %vm11185_vm0, %v15399_v1  ;;  %9798 = vrcp.f32 %v3627_v9  ;;  %v318_v34 = vld [vmem:[%s11298_s9 + $0x320] sm:$0xff] }
 0x1cd   : > { %v9789_v16 = vpop.eup %9788  ;;  %v6543_v17 = vmul.f32 -1.442695, %v873_v28 }
 0x1ce   : > { %v3628_v18 = vadd.f32 1.0, %v9789_v16  ;;  %v877_v19 = vpop.f32.mrb[82].mxu0  ;;  %v12068_v25 = vpop.eup %9790 }
 0x1cf   : > { %9800 = vpow2.f32 %v6543_v17  ;;  %v878_v23 = vadd.f32 %v12001_v12, %v877_v19  ;;  %v8159_v24 = vpop.f32.mrb[83].mxu0  ;;  %8317 = vmatmul.mubr.f32.gmra.mrb[188].mxu0 %v312_v8  ;;  %9064 = vmatmul.mubr.f32.gmra.mrb[188].mxu1 %v561_v14  ;;  %v567_v8 = vld [vmem:[%s11298_s9 + $0xae8] sm:$0xff] }
 0x1d0   : > { %9802 = vrcp.f32 %v3628_v18  ;;  %8319 = vmatprep.mubr.msk.f32.mxu0 %vm11185_vm0, %v15399_v1  ;;  %9066 = vmatprep.mubr.msk.f32.mxu1 %vm11185_vm0, %v15399_v1 }
 0x1d1   : > { %v9793_v46 = vpop.eup %9792  ;;  %v6544_v51 = vmul.f32 -1.442695, %v878_v23 }
 0x1d2   : > { %v12076_v29 = vpop.eup %9794  ;;  %v3629_v30 = vadd.f32 1.0, %v9793_v46  ;;  %v882_v44 = vpop.f32.mrb[84].mxu0 }
 0x1d3   : > { %9804 = vpow2.f32 %v6544_v51  ;;  %v883_v50 = vadd.f32 %v12001_v12, %v882_v44  ;;  %v8162_v56 = vpop.f32.mrb[85].mxu0  ;;  %8320 = vmatmul.mubr.f32.gmra.mrb[190].mxu0 %v313_v26  ;;  %9067 = vmatmul.mubr.f32.gmra.mrb[190].mxu1 %v562_v41  ;;  %v9250_v31 = vpack.c.bf16 %v12076_v29, %v12068_v25  ;;  %v319_v26 = vld [vmem:[%s11298_s9 + $0x328] sm:$0xff]  ;;  %v568_v41 = vld [vmem:[%s11298_s9 + $0xaf0] sm:$0xff]  ;;  %v4756_v29 = vld [vmem:[%s15395_s3 + $0x230] sm:$0xff] }
 0x1d4   : > { %8322 = vmatprep.mubr.msk.f32.mxu0 %vm11185_vm0, %v15399_v1  ;;  %9069 = vmatprep.mubr.msk.f32.mxu1 %vm11185_vm0, %v15399_v1  ;;  %9806 = vrcp.f32 %v3629_v30 }
 0x1d5   : > { %v9797_v2 = vpop.eup %9796  ;;  %v6545_v7 = vmul.f32 -1.442695, %v883_v50 }
 0x1d6   : > { %v3630_v13 = vadd.f32 1.0, %v9797_v2  ;;  %v887_v37 = vpop.f32.mrb[86].mxu0  ;;  %v12088_v42 = vpop.eup %9798  ;;  %v320_v2 = vld [vmem:[%s11298_s9 + $0x330] sm:$0xff] }
 0x1d7   : > { %9808 = vpow2.f32 %v6545_v7  ;;  %v888_v38 = vadd.f32 %v12001_v12, %v887_v37  ;;  %v8165_v39 = vpop.f32.mrb[87].mxu0  ;;  %8323 = vmatmul.mubr.f32.gmra.mrb[192].mxu0 %v314_v33  ;;  %9070 = vmatmul.mubr.f32.gmra.mrb[192].mxu1 %v563_v36  ;;  %v569_v7 = vld [vmem:[%s11298_s9 + $0xaf8] sm:$0xff] }
 0x1d8   : > { %9810 = vrcp.f32 %v3630_v13  ;;  %8325 = vmatprep.mubr.msk.f32.mxu0 %vm11185_vm0, %v15399_v1  ;;  %9072 = vmatprep.mubr.msk.f32.mxu1 %vm11185_vm0, %v15399_v1 }
 0x1d9   : > { %v9801_v47 = vpop.eup %9800  ;;  %v6546_v49 = vmul.f32 -1.442695, %v888_v38 }
 0x1da   : > { %v12096_v60 = vpop.eup %9802  ;;  %v3631_v4 = vadd.f32 1.0, %v9801_v47  ;;  %v892_v6 = vpop.f32.mrb[88].mxu0 }
 0x1db   : > { %9812 = vpow2.f32 %v6546_v49  ;;  %v893_v15 = vadd.f32 %v12001_v12, %v892_v6  ;;  %v8168_v20 = vpop.f32.mrb[89].mxu0  ;;  %8326 = vmatmul.mubr.f32.gmra.mrb[194].mxu0 %v315_v43  ;;  %9073 = vmatmul.mubr.f32.gmra.mrb[194].mxu1 %v564_v45  ;;  %v9254_v11 = vpack.c.bf16 %v12096_v60, %v12088_v42  ;;  %v321_v49 = vld [vmem:[%s11298_s9 + $0x338] sm:$0xff]  ;;  %v12338_v60 = vld [vmem:[%s15394_s2] ss:$0 sm:$0xff] }
 0x1dc   : > { %8328 = vmatprep.mubr.msk.f32.mxu0 %vm11185_vm0, %v15399_v1  ;;  %9075 = vmatprep.mubr.msk.f32.mxu1 %vm11185_vm0, %v15399_v1  ;;  %9814 = vrcp.f32 %v3631_v4  ;;  %v570_v4 = vld [vmem:[%s11298_s9 + $0xb00] sm:$0xff]  ;;  %v4779_v42 = vld [vmem:[%s15395_s3 + $0x2e8] sm:$0xff] }
 0x1dd   : > { %v9805_v54 = vpop.eup %9804  ;;  %v6547_v55 = vmul.f32 -1.442695, %v893_v15 }
 0x1de   : > { %v3632_v57 = vadd.f32 1.0, %v9805_v54  ;;  %v897_v58 = vpop.f32.mrb[90].mxu0  ;;  %v12108_v22 = vpop.eup %9806 }
 0x1df   : > { %9816 = vpow2.f32 %v6547_v55  ;;  %v898_v59 = vadd.f32 %v12001_v12, %v897_v58  ;;  %v8171_v61 = vpop.f32.mrb[91].mxu0  ;;  %8329 = vmatmul.mubr.f32.gmra.mrb[196].mxu0 %v316_v52  ;;  %9076 = vmatmul.mubr.f32.gmra.mrb[196].mxu1 %v565_v53  ;;  %v322_v58 = vld [vmem:[%s11298_s9 + $0x340] sm:$0xff] }
 0x1e0   : > { %9818 = vrcp.f32 %v3632_v57  ;;  %8331 = vmatprep.mubr.msk.f32.mxu0 %vm11185_vm0, %v15399_v1  ;;  %9078 = vmatprep.mubr.msk.f32.mxu1 %vm11185_vm0, %v15399_v1 }
 0x1e1   : > { %v9809_v62 = vpop.eup %9808  ;;  %v6548_v3 = vmul.f32 -1.442695, %v898_v59  ;;  %v571_v59 = vld [vmem:[%s11298_s9 + $0xb08] sm:$0xff] }
 0x1e2   : > { %v12116_v35 = vpop.eup %9810  ;;  %v3633_v40 = vadd.f32 1.0, %v9809_v62  ;;  %v902_v48 = vpop.f32.mrb[92].mxu0 }
 0x1e3   : > { %9820 = vpow2.f32 %v6548_v3  ;;  %v903_v9 = vadd.f32 %v12001_v12, %v902_v48  ;;  %v8174_v21 = vpop.f32.mrb[93].mxu0  ;;  %8332 = vmatmul.mubr.f32.gmra.mrb[198].mxu0 %v317_v27  ;;  %9079 = vmatmul.mubr.f32.gmra.mrb[198].mxu1 %v566_v32  ;;  %v9258_v28 = vpack.c.bf16 %v12116_v35, %v12108_v22  ;;  %v4802_v22 = vld [vmem:[%s15395_s3 + $0x3a0] sm:$0xff] }
 0x1e4   : > { %8334 = vmatprep.mubr.msk.f32.mxu0 %vm11185_vm0, %v15399_v1  ;;  %9081 = vmatprep.mubr.msk.f32.mxu1 %vm11185_vm0, %v15399_v1  ;;  %9822 = vrcp.f32 %v3633_v40  ;;  %v572_v21 = vld [vmem:[%s11298_s9 + $0xb10] sm:$0xff] }
 0x1e5   : > { %v9813_v14 = vpop.eup %9812  ;;  %v6549_v16 = vmul.f32 -1.442695, %v903_v9  ;;  %v323_v9 = vld [vmem:[%s11298_s9 + $0x348] sm:$0xff] }
 0x1e6   : > { %v3634_v17 = vadd.f32 1.0, %v9813_v14  ;;  %v907_v18 = vpop.f32.mrb[94].mxu0  ;;  %v12128_v24 = vpop.eup %9814 }
 0x1e7   : > { %9824 = vpow2.f32 %v6549_v16  ;;  %v908_v19 = vadd.f32 %v12001_v12, %v907_v18  ;;  %v8177_v23 = vpop.f32.mrb[95].mxu0  ;;  %8335 = vmatmul.mubr.f32.gmra.mrb[200].mxu0 %v318_v34  ;;  %9082 = vmatmul.mubr.f32.gmra.mrb[200].mxu1 %v567_v8 }
 0x1e8   : > { %9826 = vrcp.f32 %v3634_v17  ;;  %8337 = vmatprep.mubr.msk.f32.mxu0 %vm11185_vm0, %v15399_v1  ;;  %9084 = vmatprep.mubr.msk.f32.mxu1 %vm11185_vm0, %v15399_v1 }
 0x1e9   : > { %v9817_v46 = vpop.eup %9816  ;;  %v6550_v51 = vmul.f32 -1.442695, %v908_v19 }
 0x1ea   : > { %v12136_v30 = vpop.eup %9818  ;;  %v3635_v44 = vadd.f32 1.0, %v9817_v46  ;;  %v912_v50 = vpop.f32.mrb[96].mxu0 }
 0x1eb   : > { %9828 = vpow2.f32 %v6550_v51  ;;  %v913_v56 = vadd.f32 %v12001_v12, %v912_v50  ;;  %v8180_v33 = vpop.f32.mrb[97].mxu0  ;;  %8338 = vmatmul.mubr.f32.gmra.mrb[202].mxu0 %v319_v26  ;;  %9085 = vmatmul.mubr.f32.gmra.mrb[202].mxu1 %v568_v41  ;;  %v9262_v36 = vpack.c.bf16 %v12136_v30, %v12128_v24  ;;  %v324_v26 = vld [vmem:[%s11298_s9 + $0x350] sm:$0xff]  ;;  %v573_v41 = vld [vmem:[%s11298_s9 + $0xb18] sm:$0xff]  ;;  %v4825_v24 = vld [vmem:[%s15395_s3 + $0x458] sm:$0xff] }
 0x1ec   : > { %8340 = vmatprep.mubr.msk.f32.mxu0 %vm11185_vm0, %v15399_v1  ;;  %9087 = vmatprep.mubr.msk.f32.mxu1 %vm11185_vm0, %v15399_v1  ;;  %9830 = vrcp.f32 %v3635_v44 }
 0x1ed   : > { %v9821_v13 = vpop.eup %9820  ;;  %v6551_v37 = vmul.f32 -1.442695, %v913_v56 }
 0x1ee   : > { %v3636_v38 = vadd.f32 1.0, %v9821_v13  ;;  %v917_v39 = vpop.f32.mrb[98].mxu0  ;;  %v12148_v47 = vpop.eup %9822  ;;  %v574_v13 = vld [vmem:[%s11298_s9 + $0xb20] sm:$0xff] }
 0x1ef   : > { %9832 = vpow2.f32 %v6551_v37  ;;  %v918_v43 = vadd.f32 %v12001_v12, %v917_v39  ;;  %v8183_v45 = vpop.f32.mrb[99].mxu0  ;;  %8341 = vmatmul.mubr.f32.gmra.mrb[204].mxu0 %v320_v2  ;;  %9088 = vmatmul.mubr.f32.gmra.mrb[204].mxu1 %v569_v7  ;;  %v325_v7 = vld [vmem:[%s11298_s9 + $0x358] sm:$0xff] }
 0x1f0   : > { %9834 = vrcp.f32 %v3636_v38  ;;  %8343 = vmatprep.mubr.msk.f32.mxu0 %vm11185_vm0, %v15399_v1  ;;  %9090 = vmatprep.mubr.msk.f32.mxu1 %vm11185_vm0, %v15399_v1 }
 0x1f1   : > { %v9825_v6 = vpop.eup %9824  ;;  %v6552_v15 = vmul.f32 -1.442695, %v918_v43 }
 0x1f2   : > { %v12156_v20 = vpop.eup %9826  ;;  %v3637_v52 = vadd.f32 1.0, %v9825_v6  ;;  %v922_v53 = vpop.f32.mrb[100].mxu0 }
 0x1f3   : > { %9836 = vpow2.f32 %v6552_v15  ;;  %v923_v54 = vadd.f32 %v12001_v12, %v922_v53  ;;  %v8186_v55 = vpop.f32.mrb[101].mxu0  ;;  %8344 = vmatmul.mubr.f32.gmra.mrb[206].mxu0 %v321_v49  ;;  %9091 = vmatmul.mubr.f32.gmra.mrb[206].mxu1 %v570_v4  ;;  %v9266_v57 = vpack.c.bf16 %v12156_v20, %v12148_v47  ;;  %v326_v15 = vld [vmem:[%s11298_s9 + $0x360] sm:$0xff] }
 0x1f4   : > { %8346 = vmatprep.mubr.msk.f32.mxu0 %vm11185_vm0, %v15399_v1  ;;  %9093 = vmatprep.mubr.msk.f32.mxu1 %vm11185_vm0, %v15399_v1  ;;  %9838 = vrcp.f32 %v3637_v52  ;;  %v575_v52 = vld [vmem:[%s11298_s9 + $0xb28] sm:$0xff]  ;;  %v4848_v47 = vld [vmem:[%s15395_s3 + $0x510] sm:$0xff] }
 0x1f5   : > { %v9829_v61 = vpop.eup %9828  ;;  %v6553_v27 = vmul.f32 -1.442695, %v923_v54 }
 0x1f6   : > { %v3638_v32 = vadd.f32 1.0, %v9829_v61  ;;  %v927_v62 = vpop.f32.mrb[102].mxu0  ;;  %v12168_v48 = vpop.eup %9830 }
 0x1f7   : > { %9840 = vpow2.f32 %v6553_v27  ;;  %v928_v3 = vadd.f32 %v12001_v12, %v927_v62  ;;  %v8189_v40 = vpop.f32.mrb[103].mxu0  ;;  %8347 = vmatmul.mubr.f32.gmra.mrb[208].mxu0 %v322_v58  ;;  %9094 = vmatmul.mubr.f32.gmra.mrb[208].mxu1 %v571_v59  ;;  %v576_v62 = vld [vmem:[%s11298_s9 + $0xb30] sm:$0xff] }
 0x1f8   : > { %9842 = vrcp.f32 %v3638_v32  ;;  %8349 = vmatprep.mubr.msk.f32.mxu0 %vm11185_vm0, %v15399_v1  ;;  %9096 = vmatprep.mubr.msk.f32.mxu1 %vm11185_vm0, %v15399_v1  ;;  %v327_v32 = vld [vmem:[%s11298_s9 + $0x368] sm:$0xff] }
 0x1f9   : > { %v9833_v34 = vpop.eup %9832  ;;  %v6554_v8 = vmul.f32 -1.442695, %v928_v3 }
 0x1fa   : > { %v12176_v14 = vpop.eup %9834  ;;  %v3639_v16 = vadd.f32 1.0, %v9833_v34  ;;  %v932_v17 = vpop.f32.mrb[104].mxu0 }
 0x1fb   : > { %9844 = vpow2.f32 %v6554_v8  ;;  %v933_v18 = vadd.f32 %v12001_v12, %v932_v17  ;;  %v8192_v19 = vpop.f32.mrb[105].mxu0  ;;  %8350 = vmatmul.mubr.f32.gmra.mrb[210].mxu0 %v323_v9  ;;  %9097 = vmatmul.mubr.f32.gmra.mrb[210].mxu1 %v572_v21  ;;  %v9270_v23 = vpack.c.bf16 %v12176_v14, %v12168_v48 }
 0x1fc   : > { %8352 = vmatprep.mubr.msk.f32.mxu0 %vm11185_vm0, %v15399_v1  ;;  %9099 = vmatprep.mubr.msk.f32.mxu1 %vm11185_vm0, %v15399_v1  ;;  %9846 = vrcp.f32 %v3639_v16  ;;  %v577_v19 = vld [vmem:[%s11298_s9 + $0xb38] sm:$0xff] }
 0x1fd   : > { %v9837_v46 = vpop.eup %9836  ;;  %v6555_v51 = vmul.f32 -1.442695, %v933_v18  ;;  %v328_v18 = vld [vmem:[%s11298_s9 + $0x370] sm:$0xff] }
 0x1fe   : > { %v3640_v44 = vadd.f32 1.0, %v9837_v46  ;;  %v937_v50 = vpop.f32.mrb[106].mxu0  ;;  %v12188_v2 = vpop.eup %9838 }
 0x1ff   : > { %9848 = vpow2.f32 %v6555_v51  ;;  %v938_v56 = vadd.f32 %v12001_v12, %v937_v50  ;;  %v8195_v33 = vpop.f32.mrb[107].mxu0  ;;  %8353 = vmatmul.mubr.f32.gmra.mrb[212].mxu0 %v324_v26  ;;  %9100 = vmatmul.mubr.f32.gmra.mrb[212].mxu1 %v573_v41 }
 0x200   : > { %9850 = vrcp.f32 %v3640_v44  ;;  %8355 = vmatprep.mubr.msk.f32.mxu0 %vm11185_vm0, %v15399_v1  ;;  %9102 = vmatprep.mubr.msk.f32.mxu1 %vm11185_vm0, %v15399_v1  ;;  %v329_v33 = vld [vmem:[%s11298_s9 + $0x378] sm:$0xff] }
 0x201   : > { %v9841_v37 = vpop.eup %9840  ;;  %v6556_v38 = vmul.f32 -1.442695, %v938_v56 }
 0x202   : > { %v12196_v39 = vpop.eup %9842  ;;  %v3641_v43 = vadd.f32 1.0, %v9841_v37  ;;  %v942_v45 = vpop.f32.mrb[108].mxu0 }
 0x203   : > { %9852 = vpow2.f32 %v6556_v38  ;;  %v943_v49 = vadd.f32 %v12001_v12, %v942_v45  ;;  %v8198_v4 = vpop.f32.mrb[109].mxu0  ;;  %8356 = vmatmul.mubr.f32.gmra.mrb[214].mxu0 %v325_v7  ;;  %9103 = vmatmul.mubr.f32.gmra.mrb[214].mxu1 %v574_v13  ;;  %v9274_v6 = vpack.c.bf16 %v12196_v39, %v12188_v2  ;;  %v578_v7 = vld [vmem:[%s11298_s9 + $0xb40] sm:$0xff] }
 0x204   : > { %8358 = vmatprep.mubr.msk.f32.mxu0 %vm11185_vm0, %v15399_v1  ;;  %9105 = vmatprep.mubr.msk.f32.mxu1 %vm11185_vm0, %v15399_v1  ;;  %9854 = vrcp.f32 %v3641_v43  ;;  %v4893_v2 = vld [vmem:[%s15395_s3 + $0x678] sm:$0xff] }
 0x205   : > { %v9845_v53 = vpop.eup %9844  ;;  %v6557_v54 = vmul.f32 -1.442695, %v943_v49 }
 0x206   : > { %v3642_v55 = vadd.f32 1.0, %v9845_v53  ;;  %v947_v58 = vpop.f32.mrb[110].mxu0  ;;  %v9847_v27 = vpop.eup %9846  ;;  %v579_v53 = vld [vmem:[%s11298_s9 + $0xb48] sm:$0xff] }
 0x207   : > { %9856 = vpow2.f32 %v6557_v54  ;;  %v948_v59 = vadd.f32 %v12001_v12, %v947_v58  ;;  %v8201_v61 = vpop.f32.mrb[111].mxu0  ;;  %8359 = vmatmul.mubr.f32.gmra.mrb[216].mxu0 %v326_v15  ;;  %9106 = vmatmul.mubr.f32.gmra.mrb[216].mxu1 %v575_v52  ;;  %v330_v52 = vld [vmem:[%s11298_s9 + $0x380] sm:$0xff] }
 0x208   : > { %9858 = vrcp.f32 %v3642_v55  ;;  %8361 = vmatprep.mubr.msk.f32.mxu0 %vm11185_vm0, %v15399_v1  ;;  %9108 = vmatprep.mubr.msk.f32.mxu1 %vm11185_vm0, %v15399_v1 }
 0x209   : > { %v9849_v3 = vpop.eup %9848  ;;  %v6558_v40 = vmul.f32 -1.442695, %v948_v59 }
 0x20a   : > { %v9851_v9 = vpop.eup %9850  ;;  %v3643_v21 = vadd.f32 1.0, %v9849_v3  ;;  %v952_v34 = vpop.f32.mrb[112].mxu0  ;;  %v580_v3 = vld [vmem:[%s11298_s9 + $0xb50] sm:$0xff] }
 0x20b   : > { %9860 = vpow2.f32 %v6558_v40  ;;  %v953_v8 = vadd.f32 %v12001_v12, %v952_v34  ;;  %v8204_v16 = vpop.f32.mrb[113].mxu0  ;;  %8362 = vmatmul.mubr.f32.gmra.mrb[218].mxu0 %v327_v32  ;;  %9109 = vmatmul.mubr.f32.gmra.mrb[218].mxu1 %v576_v62  ;;  %v9244_v17 = vpack.c.bf16 %v9851_v9, %v9847_v27  ;;  %v331_v62 = vld [vmem:[%s11298_s9 + $0x388] sm:$0xff] }
 0x20c   : > { %8364 = vmatprep.mubr.msk.f32.mxu0 %vm11185_vm0, %v15399_v1  ;;  %9111 = vmatprep.mubr.msk.f32.mxu1 %vm11185_vm0, %v15399_v1  ;;  %9862 = vrcp.f32 %v3643_v21 }
 0x20d   : > { %v9853_v26 = vpop.eup %9852  ;;  %v6559_v41 = vmul.f32 -1.442695, %v953_v8  ;;  %9245 = vmatprep.subr.bf16.mxu1 %v9244_v17 }
 0x20e   : > { %v3644_v46 = vadd.f32 1.0, %v9853_v26  ;;  %v957_v51 = vpop.f32.mrb[114].mxu0  ;;  %v12222_v56 = vpop.eup %9854  ;;  %v581_v26 = vld [vmem:[%s11298_s9 + $0xb58] sm:$0xff] }
 0x20f   : > { %9864 = vpow2.f32 %v6559_v41  ;;  %v958_v44 = vadd.f32 %v12001_v12, %v957_v51  ;;  %v8207_v50 = vpop.f32.mrb[115].mxu0  ;;  %8365 = vmatmul.mubr.f32.gmra.mrb[220].mxu0 %v328_v18  ;;  %9112 = vmatmul.mubr.f32.gmra.mrb[220].mxu1 %v577_v19  ;;  %v332_v19 = vld [vmem:[%s11298_s9 + $0x390] sm:$0xff] }
 0x210   : > { %9866 = vrcp.f32 %v3644_v46  ;;  %8367 = vmatprep.mubr.msk.f32.mxu0 %vm11185_vm0, %v15399_v1  ;;  %9114 = vmatprep.mubr.msk.f32.mxu1 %vm11185_vm0, %v15399_v1 }
 0x211   : > { %v9857_v13 = vpop.eup %9856  ;;  %v6560_v37 = vmul.f32 -1.442695, %v958_v44 }
 0x212   : > { %v12230_v38 = vpop.eup %9858  ;;  %v3645_v43 = vadd.f32 1.0, %v9857_v13  ;;  %v962_v45 = vpop.f32.mrb[116].mxu0  ;;  %v333_v13 = vld [vmem:[%s11298_s9 + $0x398] sm:$0xff] }
 0x213   : > { %9868 = vpow2.f32 %v6560_v37  ;;  %v963_v49 = vadd.f32 %v12001_v12, %v962_v45  ;;  %v8210_v4 = vpop.f32.mrb[117].mxu0  ;;  %8368 = vmatmul.mubr.f32.gmra.mrb[222].mxu0 %v329_v33  ;;  %9115 = vmatmul.mubr.f32.gmra.mrb[222].mxu1 %v578_v7  ;;  %v9248_v15 = vpack.c.bf16 %v12230_v38, %v12222_v56  ;;  %v582_v37 = vld [vmem:[%s11298_s9 + $0xb60] sm:$0xf]  ;;  %v336_v56 = vld [vmem:[%s11298_s9 + $0x3b0] sm:$0xff] }
 0x214   : > { %8370 = vmatprep.mubr.msk.f32.mxu0 %vm11185_vm0, %v15399_v1  ;;  %9117 = vmatprep.mubr.msk.f32.mxu1 %vm11185_vm0, %v15399_v1  ;;  %9870 = vrcp.f32 %v3645_v43  ;;  %v4732_v38 = vld [vmem:[%s15395_s3 + $0x170] sm:$0xff] }
 0x215   : > { %v9861_v54 = vpop.eup %9860  ;;  %v6561_v55 = vmul.f32 -1.442695, %v963_v49  ;;  %v4687_v49 = vld [vmem:[%s15395_s3 + $0x8] sm:$0xff] }
 0x216   : > { %v3646_v58 = vadd.f32 1.0, %v9861_v54  ;;  %v967_v59 = vpop.f32.mrb[118].mxu0  ;;  %v12242_v32 = vpop.eup %9862 }
 0x217   : > { %9872 = vpow2.f32 %v6561_v55  ;;  %v968_v61 = vadd.f32 %v12001_v12, %v967_v59  ;;  %v8213_v27 = vpop.f32.mrb[119].mxu0  ;;  %8371 = vmatmul.mubr.f32.gmra.mrb[224].mxu0 %v330_v52  ;;  %9118 = vmatmul.mubr.f32.gmra.mrb[224].mxu1 %v579_v53  ;;  %v334_v59 = vld [vmem:[%s11298_s9 + $0x3a0] sm:$0xff] }
 0x218   : > { %9874 = vrcp.f32 %v3646_v58  ;;  %8373 = vmatprep.mubr.msk.f32.mxu0 %vm11185_vm0, %v15399_v1  ;;  %9120 = vmatprep.mubr.msk.f32.mxu1 %vm11185_vm0, %v15399_v1 }
 0x219   : > { %v9865_v40 = vpop.eup %9864  ;;  %v6562_v9 = vmul.f32 -1.442695, %v968_v61  ;;  %v4686_v61 = vld [vmem:[%s15395_s3] sm:$0xff] }
 0x21a   : > { %v12250_v21 = vpop.eup %9866  ;;  %v3647_v34 = vadd.f32 1.0, %v9865_v40  ;;  %v972_v8 = vpop.f32.mrb[120].mxu0 }
 0x21b   : > { %9876 = vpow2.f32 %v6562_v9  ;;  %v973_v16 = vadd.f32 %v12001_v12, %v972_v8  ;;  %v8216_v17 = vpop.f32.mrb[121].mxu0  ;;  %8374 = vmatmul.mubr.f32.gmra.mrb[226].mxu0 %v331_v62  ;;  %9121 = vmatmul.mubr.f32.gmra.mrb[226].mxu1 %v580_v3  ;;  %v9252_v18 = vpack.c.bf16 %v12250_v21, %v12242_v32  ;;  %v4710_v9 = vld [vmem:[%s15395_s3 + $0xc0] sm:$0xff]  ;;  %v337_v32 = vld [vmem:[%s11298_s9 + $0x3b8] sm:$0xff] }
 0x21c   : > { %8376 = vmatprep.mubr.msk.f32.mxu0 %vm11185_vm0, %v15399_v1  ;;  %9123 = vmatprep.mubr.msk.f32.mxu1 %vm11185_vm0, %v15399_v1  ;;  %9878 = vrcp.f32 %v3647_v34  ;;  %v335_v17 = vld [vmem:[%s11298_s9 + $0x3a8] sm:$0xff]  ;;  %v4755_v21 = vld [vmem:[%s15395_s3 + $0x228] sm:$0xff] }
 0x21d   : > { %v9869_v41 = vpop.eup %9868  ;;  %v6563_v46 = vmul.f32 -1.442695, %v973_v16 }
 0x21e   : > { %v3648_v51 = vadd.f32 1.0, %v9869_v41  ;;  %v977_v44 = vpop.f32.mrb[122].mxu0  ;;  %v12262_v7 = vpop.eup %9870 }
 0x21f   : > { %9880 = vpow2.f32 %v6563_v46  ;;  %v978_v50 = vadd.f32 %v12001_v12, %v977_v44  ;;  %v8219_v33 = vpop.f32.mrb[123].mxu0  ;;  %8377 = vmatmul.mubr.f32.gmra.mrb[228].mxu0 %v332_v19  ;;  %9124 = vmatmul.mubr.f32.gmra.mrb[228].mxu1 %v581_v26  ;;  %v4709_v19 = vld [vmem:[%s15395_s3 + $0xb8] sm:$0xff] }
 0x220   : > { %9882 = vrcp.f32 %v3648_v51  ;;  %8379 = vmatprep.mubr.msk.f32.mxu0 %vm11185_vm0, %v15399_v1  ;;  %9126 = vmatprep.mubr.msk.f32.mxu1 %vm11185_vm0, %v15399_v1 }
 0x221   : > { %v9873_v43 = vpop.eup %9872  ;;  %v6564_v45 = vmul.f32 -1.442695, %v978_v50 }
 0x222   : > { %v12273_v4 = vpop.eup %9874  ;;  %v3649_v52 = vadd.f32 1.0, %v9873_v43  ;;  %v982_v53 = vpop.f32.mrb[124].mxu0 }
 0x223   : > { %9884 = vpow2.f32 %v6564_v45  ;;  %v983_v54 = vadd.f32 %v12001_v12, %v982_v53  ;;  %v8222_v55 = vpop.f32.mrb[125].mxu0  ;;  %8380 = vmatmul.mubr.f32.gmra.mrb[230].mxu0 %v333_v13  ;;  %9127 = vmatmul.mubr.f32.gmra.mrb[230].mxu1 %v582_v37  ;;  %v9256_v58 = vpack.c.bf16 %v12273_v4, %v12262_v7  ;;  %v338_v53 = vld [vmem:[%s11298_s9 + $0x3c0] sm:$0xff] }
 0x224   : > { %8382 = vmatprep.mubr.msk.f32.mxu0 %vm11185_vm0, %v15399_v1  ;;  %5041 = vmatprep.mubr.f32.mxu1 %v4687_v49  ;;  %9886 = vrcp.f32 %v3649_v52 }
 0x225   : > { %v9877_v27 = vpop.eup %9876  ;;  %v6565_v62 = vmul.f32 -1.442695, %v983_v54  ;;  %v4778_v54 = vld [vmem:[%s15395_s3 + $0x2e0] sm:$0xff] }
 0x226   : > { %v3650_v3 = vadd.f32 1.0, %v9877_v27  ;;  %v987_v40 = vpop.f32.mrb[126].mxu0  ;;  %v12288_v16 = vpop.eup %9878 }
 0x227   : > { %9888 = vpow2.f32 %v6565_v62  ;;  %v988_v34 = vadd.f32 %v12001_v12, %v987_v40  ;;  %v8225_v8 = vpop.f32.mrb[127].mxu0  ;;  %8383 = vmatmul.mubr.f32.gmra.mrb[232].mxu0 %v334_v59  ;;  %5042 = vmatmul.mubr.f32.vlgmr.msra.gmra.mrb[232].mxu1 %v4686_v61  ;;  %v339_v62 = vld [vmem:[%s11298_s9 + $0x3c8] sm:$0xff] }
 0x228   : > { %9890 = vrcp.f32 %v3650_v3  ;;  %9247 = vmatpush3.bf16.msra.mxu1 %v9246_v10  ;;  %8385 = vmatprep.mubr.msk.f32.mxu0 %vm11185_vm0, %v15399_v1  ;;  %v4801_v3 = vld [vmem:[%s15395_s3 + $0x398] sm:$0xff] }
 0x229   : > { %v9881_v26 = vpop.eup %9880  ;;  %v6566_v41 = vmul.f32 -1.442695, %v988_v34  ;;  %9249 = vmatprep.subr.bf16.mxu1 %v9248_v15  ;;  %5046 = vmatprep.mubr.f32.mxu1 %v4710_v9 }
 0x22a   : > { %v9883_v46 = vpop.eup %9882  ;;  %v3651_v51 = vadd.f32 1.0, %v9881_v26  ;;  %v992_v63 = vpop.f32.mrb[128].mxu0  ;;  %v4824_v26 = vld [vmem:[%s15395_s3 + $0x450] sm:$0xff] }
 0x22b   : > { %9892 = vpow2.f32 %v6566_v41  ;;  %v993_v10 = vadd.f32 %v12001_v12, %v992_v63  ;;  %v8228_v44 = vpop.f32.mrb[129].mxu0  ;;  %8386 = vmatmul.mubr.f32.gmra.mrb[234].mxu0 %v335_v17  ;;  %v9260_v50 = vpack.c.bf16 %v9883_v46, %v12288_v16  ;;  %5047 = vmatmul.mubr.f32.gmra.mrb[234].mxu1 %v4709_v19  ;;  %v340_v19 = vld [vmem:[%s11298_s9 + $0x3d0] sm:$0xff] }
 0x22c   : > { %9251 = vmatpush3.bf16.msra.mxu1 %v9250_v31  ;;  %8388 = vmatprep.mubr.msk.f32.mxu0 %vm11185_vm0, %v15399_v1  ;;  %9894 = vrcp.f32 %v3651_v51  ;;  %v4847_v44 = vld [vmem:[%s15395_s3 + $0x508] sm:$0xff] }
 0x22d   : > { %v9885_v15 = vpop.eup %9884  ;;  %v6567_v33 = vmul.f32 -1.442695, %v993_v10  ;;  %9253 = vmatprep.subr.bf16.mxu1 %v9252_v18  ;;  %5051 = vmatprep.mubr.f32.mxu1 %v4733_v5  ;;  %v341_v10 = vld [vmem:[%s11298_s9 + $0x3d8] sm:$0xff] }
 0x22e   : > { %v3652_v7 = vadd.f32 1.0, %v9885_v15  ;;  %v997_v25 = vpop.f32.mrb[130].mxu0  ;;  %v9887_v37 = vpop.eup %9886 }
 0x22f   : > { %9896 = vpow2.f32 %v6567_v33  ;;  %v998_v31 = vadd.f32 %v12001_v12, %v997_v25  ;;  %v8231_v13 = vpop.f32.mrb[131].mxu0  ;;  %8389 = vmatmul.mubr.f32.gmra.mrb[236].mxu0 %v336_v56  ;;  %5052 = vmatmul.mubr.f32.gmra.mrb[236].mxu1 %v4732_v38  ;;  %v4871_v38 = vld [vmem:[%s15395_s3 + $0x5c8] sm:$0xff]  ;;  %v342_v25 = vld [vmem:[%s11298_s9 + $0x3e0] sm:$0xff] }
 0x230   : > { %9898 = vrcp.f32 %v3652_v7  ;;  %9255 = vmatpush3.bf16.msra.mxu1 %v9254_v11  ;;  %8391 = vmatprep.mubr.msk.f32.mxu0 %vm11185_vm0, %v15399_v1 }
 0x231   : > { %v9889_v18 = vpop.eup %9888  ;;  %v6568_v43 = vmul.f32 -1.442695, %v998_v31  ;;  %9257 = vmatprep.subr.bf16.mxu1 %v9256_v58  ;;  %5056 = vmatprep.mubr.f32.mxu1 %v4756_v29  ;;  %v4870_v29 = vld [vmem:[%s15395_s3 + $0x5c0] sm:$0xff] }
 0x232   : > { %v9891_v12 = vpop.eup %9890  ;;  %v3653_v45 = vadd.f32 1.0, %v9889_v18  ;;  %v1002_v49 = vpop.f32.mrb[132].mxu0 }
 0x233   : > { %9900 = vpow2.f32 %v6568_v43  ;;  %v1003_v11 = vadd.f32 %v12338_v60, %v1002_v49  ;;  %v8234_v4 = vpop.f32.mrb[133].mxu0  ;;  %8392 = vmatmul.mubr.f32.gmra.mrb[238].mxu0 %v337_v32  ;;  %v9264_v52 = vpack.c.bf16 %v9891_v12, %v9887_v37  ;;  %5057 = vmatmul.mubr.f32.gmra.mrb[238].mxu1 %v4755_v21  ;;  %v4894_v37 = vld [vmem:[%s15395_s3 + $0x680] sm:$0xff]  ;;  %v4917_v49 = vld [vmem:[%s15395_s3 + $0x738] sm:$0x1] }
 0x234   : > { %9259 = vmatpush3.bf16.msra.mxu1 %v9258_v28  ;;  %8394 = vmatprep.mubr.msk.f32.mxu0 %vm11185_vm0, %v15399_v1  ;;  %9902 = vrcp.f32 %v3653_v45  ;;  %v343_v45 = vld [vmem:[%s11298_s9 + $0x3e8] sm:$0xff] }
 0x235   : > { %v9893_v55 = vpop.eup %9892  ;;  %v6569_v58 = vmul.f32 -1.442695, %v1003_v11  ;;  %9261 = vmatprep.subr.bf16.mxu1 %v9260_v50  ;;  %5061 = vmatprep.mubr.f32.mxu1 %v4779_v42 }
 0x236   : > { %v3654_v59 = vadd.f32 1.0, %v9893_v55  ;;  %v1007_v61 = vpop.f32.mrb[134].mxu0  ;;  %v9895_v27 = vpop.eup %9894  ;;  %v344_v55 = vld [vmem:[%s11298_s9 + $0x3f0] sm:$0xff] }
 0x237   : > { %9904 = vpow2.f32 %v6569_v58  ;;  %v1008_v35 = vadd.f32 %v12338_v60, %v1007_v61  ;;  %v8237_v28 = vpop.f32.mrb[135].mxu0  ;;  %8395 = vmatmul.mubr.f32.gmra.mrb[240].mxu0 %v338_v53  ;;  %5062 = vmatmul.mubr.f32.gmra.mrb[240].mxu1 %v4778_v54  ;;  %v4916_v58 = vld [vmem:[%s15395_s3 + $0x730] sm:$0x1] }
 0x238   : > { %9906 = vrcp.f32 %v3654_v59  ;;  %9263 = vmatpush3.bf16.msra.mxu1 %v9262_v36  ;;  %8397 = vmatprep.mubr.msk.f32.mxu0 %vm11185_vm0, %v15399_v1 }
 0x239   : > { %v9897_v40 = vpop.eup %9896  ;;  %v6570_v9 = vmul.f32 -1.442695, %v1008_v35  ;;  %9265 = vmatprep.subr.bf16.mxu1 %v9264_v52  ;;  %5066 = vmatprep.mubr.f32.mxu1 %v4802_v22  ;;  %v4689_v22 = vld [vmem:[%s15395_s3 + $0x18] sm:$0xff] }
 0x23a   : > { %v9899_v34 = vpop.eup %9898  ;;  %v3655_v8 = vadd.f32 1.0, %v9897_v40  ;;  %v1012_v16 = vpop.f32.mrb[136].mxu0  ;;  %v345_v40 = vld [vmem:[%s11298_s9 + $0x3f8] sm:$0xff] }
 0x23b   : > { %9908 = vpow2.f32 %v6570_v9  ;;  %v1013_v30 = vadd.f32 %v12338_v60, %v1012_v16  ;;  %v8240_v36 = vpop.f32.mrb[137].mxu0  ;;  %8398 = vmatmul.mubr.f32.gmra.mrb[242].mxu0 %v339_v62  ;;  %v9268_v17 = vpack.c.bf16 %v9899_v34, %v9895_v27  ;;  %5067 = vmatmul.mubr.f32.gmra.mrb[242].mxu1 %v4801_v3  ;;  %v4688_v9 = vld [vmem:[%s15395_s3 + $0x10] sm:$0xff] }
 0x23c   : > { %9267 = vmatpush3.bf16.msra.mxu1 %v9266_v57  ;;  %8400 = vmatprep.mubr.msk.f32.mxu0 %vm11185_vm0, %v15399_v1  ;;  %9910 = vrcp.f32 %v3655_v8 }
 0x23d   : > { %v9901_v41 = vpop.eup %9900  ;;  %v6571_v46 = vmul.f32 -1.442695, %v1013_v30  ;;  %9269 = vmatprep.subr.bf16.mxu1 %v9268_v17  ;;  %5071 = vmatprep.mubr.f32.mxu1 %v4825_v24 }
 0x23e   : > { %v3656_v51 = vadd.f32 1.0, %v9901_v41  ;;  %v1017_v63 = vpop.f32.mrb[138].mxu0  ;;  %v9903_v5 = vpop.eup %9902 }
 0x23f   : > { %9912 = vpow2.f32 %v6571_v46  ;;  %v1018_v20 = vadd.f32 %v12338_v60, %v1017_v63  ;;  %v8243_v57 = vpop.f32.mrb[139].mxu0  ;;  %8401 = vmatmul.mubr.f32.gmra.mrb[244].mxu0 %v340_v19  ;;  %5072 = vmatmul.mubr.f32.gmra.mrb[244].mxu1 %v4824_v26  ;;  %v346_v26 = vld [vmem:[%s11298_s9 + $0x400] sm:$0xff] }
 0x240   : > { %9914 = vrcp.f32 %v3656_v51  ;;  %9271 = vmatpush3.bf16.msra.mxu1 %v9270_v23  ;;  %8403 = vmatprep.mubr.msk.f32.mxu0 %vm11185_vm0, %v15399_v1 }
 0x241   : > { %v9905_v50 = vpop.eup %9904  ;;  %v6572_v56 = vmul.f32 -1.442695, %v1018_v20  ;;  %5076 = vmatprep.mubr.f32.mxu1 %v4848_v47 }
 0x242   : > { %v9907_v15 = vpop.eup %9906  ;;  %v3657_v33 = vadd.f32 1.0, %v9905_v50  ;;  %v1022_v48 = vpop.f32.mrb[140].mxu0 }
 0x243   : > { %9916 = vpow2.f32 %v6572_v56  ;;  %v1023_v14 = vadd.f32 %v12338_v60, %v1022_v48  ;;  %v8246_v23 = vpop.f32.mrb[141].mxu0  ;;  %8404 = vmatmul.mubr.f32.gmra.mrb[246].mxu0 %v341_v10  ;;  %v9272_v7 = vpack.c.bf16 %v9907_v15, %v9903_v5  ;;  %5077 = vmatmul.mubr.f32.gmra.mrb[246].mxu1 %v4847_v44  ;;  %v347_v5 = vld [vmem:[%s11298_s9 + $0x408] sm:$0xff] }
 0x244   : > { %8406 = vmatprep.mubr.msk.f32.mxu0 %vm11185_vm0, %v15399_v1  ;;  %5081 = vmatprep.mubr.f32.mxu1 %v4871_v38  ;;  %9918 = vrcp.f32 %v3657_v33 }
 0x245   : > { %v9909_v31 = vpop.eup %9908  ;;  %v6573_v13 = vmul.f32 -1.442695, %v1023_v14  ;;  %9273 = vmatprep.subr.bf16.mxu1 %v9272_v7  ;;  %v348_v14 = vld [vmem:[%s11298_s9 + $0x410] sm:$0xff] }
 0x246   : > { %v3658_v32 = vadd.f32 1.0, %v9909_v31  ;;  %v1027_v21 = vpop.f32.mrb[142].mxu0  ;;  %9275 = vmatpush3.bf16.msra.mxu1 %v9274_v6  ;;  %v12406_v12 = vpop.eup %9910 }
 0x247   : > { %9920 = vpow2.f32 %v6573_v13  ;;  %v1028_v18 = vadd.f32 %v12338_v60, %v1027_v21  ;;  %v8249_v43 = vpop.f32.mrb[143].mxu0  ;;  %8407 = vmatmul.mubr.f32.gmra.mrb[248].mxu0 %v342_v25  ;;  %5082 = vmatmul.mubr.f32.gmra.mrb[248].mxu1 %v4870_v29 }
 0x248   : > { %9922 = vrcp.f32 %v3658_v32  ;;  %8409 = vmatprep.mubr.msk.f32.mxu0 %vm11185_vm0, %v15399_v1  ;;  %5086 = vmatprep.mubr.f32.mxu1 %v4894_v37  ;;  %v349_v32 = vld [vmem:[%s11298_s9 + $0x418] sm:$0xff] }
 0x249   : > { %v9913_v39 = vpop.eup %9912  ;;  %v6574_v6 = vmul.f32 -1.442695, %v1028_v18 }
 0x24a   : > { %v12417_v42 = vpop.eup %9914  ;;  %v3659_v11 = vadd.f32 1.0, %v9913_v39  ;;  %v1032_v4 = vpop.f32.mrb[144].mxu0 }
 0x24b   : > { %9924 = vpow2.f32 %v6574_v6  ;;  %v1033_v52 = vadd.f32 %v12338_v60, %v1032_v4  ;;  %v8252_v53 = vpop.f32.mrb[145].mxu0  ;;  %8410 = vmatmul.mubr.f32.gmra.mrb[250].mxu0 %v343_v45  ;;  %5087 = vmatmul.mubr.f32.gmra.mrb[250].mxu1 %v4893_v2  ;;  %v9278_v54 = vpack.c.bf16 %v12417_v42, %v12406_v12 }
 0x24c   : > { %8412 = vmatprep.mubr.msk.f32.mxu0 %vm11185_vm0, %v15399_v1  ;;  %5091 = vmatprep.mubr.f32.mxu1 %v4917_v49  ;;  %9926 = vrcp.f32 %v3659_v11  ;;  %v350_v11 = vld [vmem:[%s11298_s9 + $0x420] sm:$0xff] }
 0x24d   : > { %v9917_v59 = vpop.eup %9916  ;;  %v6575_v61 = vmul.f32 -1.442695, %v1033_v52  ;;  %v4712_v53 = vld [vmem:[%s15395_s3 + $0xd0] sm:$0xff] }
 0x24e   : > { %v3660_v35 = vadd.f32 1.0, %v9917_v59  ;;  %v1037_v28 = vpop.f32.mrb[146].mxu0  ;;  %v12432_v3 = vpop.eup %9918 }
 0x24f   : > { %9928 = vpow2.f32 %v6575_v61  ;;  %v1038_v27 = vadd.f32 %v12338_v60, %v1037_v28  ;;  %v8255_v62 = vpop.f32.mrb[147].mxu0  ;;  %8413 = vmatmul.mubr.f32.gmra.mrb[252].mxu0 %v344_v55  ;;  %5092 = vmatmul.mubr.f32.gmra.mrb[252].mxu1 %v4916_v58  ;;  %v12479_v59 = vpop.f32.mrb[0].mxu1  ;;  %v4711_v61 = vld [vmem:[%s15395_s3 + $0xc8] sm:$0xff] }
 0x250   : > { %9930 = vrcp.f32 %v3660_v35  ;;  %8415 = vmatprep.mubr.msk.f32.mxu0 %vm11185_vm0, %v15399_v1  ;;  %5161 = vmatprep.mubr.f32.mxu1 %v4689_v22  ;;  %v8783_v28 = vpop.f32.mrb[1].mxu1  ;;  %v351_v62 = vld [vmem:[%s11298_s9 + $0x428] sm:$0xff] }
 0x251   : > { %v9921_v34 = vpop.eup %9920  ;;  %v6576_v8 = vmul.f32 -1.442695, %v1038_v27 }
 0x252   : > { %v12440_v16 = vpop.eup %9922  ;;  %v3661_v24 = vadd.f32 1.0, %v9921_v34  ;;  %v1042_v30 = vpop.f32.mrb[148].mxu0  ;;  %v4735_v34 = vld [vmem:[%s15395_s3 + $0x188] sm:$0xff] }
 0x253   : > { %9932 = vpow2.f32 %v6576_v8  ;;  %v1043_v36 = vadd.f32 %v12338_v60, %v1042_v30  ;;  %v8258_v17 = vpop.f32.mrb[149].mxu0  ;;  %8416 = vmatmul.mubr.f32.gmra.mrb[254].mxu0 %v345_v40  ;;  %5162 = vmatmul.mubr.f32.vlgmr.msra.gmra.mrb[254].mxu1 %v4688_v9  ;;  %v9282_v19 = vpack.c.bf16 %v12440_v16, %v12432_v3 }
 0x254   : > { %8418 = vmatprep.mubr.msk.f32.mxu0 %vm11185_vm0, %v15399_v1  ;;  %9934 = vrcp.f32 %v3661_v24  ;;  %5166 = vmatprep.mubr.f32.mxu1 %v4712_v53  ;;  %v4734_v17 = vld [vmem:[%s15395_s3 + $0x180] sm:$0xff] }
 0x255   : > { %v9925_v41 = vpop.eup %9924  ;;  %v6577_v46 = vmul.f32 -1.442695, %v1043_v36  ;;  %v12495_v36 = vpop.f32.mrb[2].mxu1 }
 0x256   : > { %v3662_v51 = vadd.f32 1.0, %v9925_v41  ;;  %v1047_v63 = vpop.f32.mrb[150].mxu0  ;;  %v12449_v57 = vpop.eup %9926 }
 0x257   : > { %9936 = vpow2.f32 %v6577_v46  ;;  %v1048_v47 = vadd.f32 %v12338_v60, %v1047_v63  ;;  %v8261_v20 = vpop.f32.mrb[151].mxu0  ;;  %8419 = vmatmul.mubr.f32.gmra.mrb[0].mxu0 %v346_v26  ;;  %5167 = vmatmul.mubr.f32.gmra.mrb[0].mxu1 %v4711_v61  ;;  %v352_v63 = vld [vmem:[%s11298_s9 + $0x430] sm:$0xff] }
 0x258   : > { %9938 = vrcp.f32 %v3662_v51  ;;  %8421 = vmatprep.mubr.msk.f32.mxu0 %vm11185_vm0, %v15399_v1  ;;  %5171 = vmatprep.mubr.f32.mxu1 %v4735_v34  ;;  %v8786_v51 = vpop.f32.mrb[3].mxu1  ;;  %v355_v34 = vld [vmem:[%s11298_s9 + $0x448] sm:$0xff] }
 0x259   : > { %v9929_v10 = vpop.eup %9928  ;;  %v6578_v44 = vmul.f32 -1.442695, %v1048_v47 }
 0x25a   : > { %v12454_v50 = vpop.eup %9930  ;;  %v3663_v56 = vadd.f32 1.0, %v9929_v10  ;;  %v1052_v38 = vpop.f32.mrb[152].mxu0 }
 0x25b   : > { %9940 = vpow2.f32 %v6578_v44  ;;  %v1053_v15 = vadd.f32 %v12338_v60, %v1052_v38  ;;  %v8264_v33 = vpop.f32.mrb[153].mxu0  ;;  %8422 = vmatmul.mubr.f32.gmra.mrb[2].mxu0 %v347_v5  ;;  %v9286_v48 = vpack.c.bf16 %v12454_v50, %v12449_v57  ;;  %5172 = vmatmul.mubr.f32.gmra.mrb[2].mxu1 %v4734_v17  ;;  %v4758_v5 = vld [vmem:[%s15395_s3 + $0x240] sm:$0xff]  ;;  %v4757_v38 = vld [vmem:[%s15395_s3 + $0x238] sm:$0xff]  ;;  %v4827_v17 = vld [vmem:[%s15395_s3 + $0x468] sm:$0xff] }
 0x25c   : > { %8424 = vmatprep.mubr.msk.f32.mxu0 %vm11185_vm0, %v15399_v1  ;;  %9942 = vrcp.f32 %v3663_v56  ;;  %v12509_v56 = vpop.f32.mrb[4].mxu1  ;;  %5176 = vmatprep.mubr.f32.mxu1 %v4758_v5 }
 0x25d   : > { %v9933_v23 = vpop.eup %9932  ;;  %v6579_v7 = vmul.f32 -1.442695, %v1053_v15 }
 0x25e   : > { %v3664_v25 = vadd.f32 1.0, %v9933_v23  ;;  %v1057_v29 = vpop.f32.mrb[154].mxu0  ;;  %v12463_v37 = vpop.eup %9934 }
 0x25f   : > { %9944 = vpow2.f32 %v6579_v7  ;;  %v1058_v31 = vadd.f32 %v12338_v60, %v1057_v29  ;;  %v8267_v13 = vpop.f32.mrb[155].mxu0  ;;  %8425 = vmatmul.mubr.f32.gmra.mrb[4].mxu0 %v348_v14  ;;  %v8789_v14 = vpop.f32.mrb[5].mxu1  ;;  %5177 = vmatmul.mubr.f32.gmra.mrb[4].mxu1 %v4757_v38  ;;  %v353_v7 = vld [vmem:[%s11298_s9 + $0x438] sm:$0xff]  ;;  %v356_v38 = vld [vmem:[%s11298_s9 + $0x450] sm:$0xff] }
 0x260   : > { %9946 = vrcp.f32 %v3664_v25  ;;  %8427 = vmatprep.mubr.msk.f32.mxu0 %vm11185_vm0, %v15399_v1 }
 0x261   : > { %v9937_v21 = vpop.eup %9936  ;;  %v6580_v18 = vmul.f32 -1.442695, %v1058_v31  ;;  %v4781_v31 = vld [vmem:[%s15395_s3 + $0x2f8] sm:$0xff] }
 0x262   : > { %v12468_v43 = vpop.eup %9938  ;;  %v3665_v45 = vadd.f32 1.0, %v9937_v21  ;;  %v1062_v2 = vpop.f32.mrb[156].mxu0  ;;  %5181 = vmatprep.mubr.f32.mxu1 %v4781_v31 }
 0x263   : > { %9948 = vpow2.f32 %v6580_v18  ;;  %v1063_v39 = vadd.f32 %v12338_v60, %v1062_v2  ;;  %v8270_v6 = vpop.f32.mrb[157].mxu0  ;;  %8428 = vmatmul.mubr.f32.gmra.mrb[6].mxu0 %v349_v32  ;;  %v9290_v49 = vpack.c.bf16 %v12468_v43, %v12463_v37  ;;  %v12525_v18 = vpop.f32.mrb[6].mxu1  ;;  %v367_v37 = vld [vmem:[%s11298_s9 + $0x4a8] sm:$0xff] }
 0x264   : > { %8430 = vmatprep.mubr.msk.f32.mxu0 %vm11185_vm0, %v15399_v1  ;;  %9950 = vrcp.f32 %v3665_v45  ;;  %v4780_v45 = vld [vmem:[%s15395_s3 + $0x2f0] sm:$0xff] }
 0x265   : > { %v9941_v4 = vpop.eup %9940  ;;  %v6581_v52 = vmul.f32 -1.442695, %v1063_v39 }
 0x266   : > { %v3666_v55 = vadd.f32 1.0, %v9941_v4  ;;  %v1067_v58 = vpop.f32.mrb[158].mxu0  ;;  %v12485_v27 = vpop.eup %9942  ;;  %v354_v4 = vld [vmem:[%s11298_s9 + $0x440] sm:$0xff] }
 0x267   : > { %9952 = vpow2.f32 %v6581_v52  ;;  %v1068_v22 = vadd.f32 %v12338_v60, %v1067_v58  ;;  %v8273_v35 = vpop.f32.mrb[159].mxu0  ;;  %8431 = vmatmul.mubr.f32.gmra.mrb[8].mxu0 %v350_v11  ;;  %v8792_v11 = vpop.f32.mrb[7].mxu1  ;;  %5182 = vmatmul.mubr.f32.gmra.mrb[6].mxu1 %v4780_v45 }
 0x268   : > { %9954 = vrcp.f32 %v3666_v55  ;;  %8433 = vmatprep.mubr.msk.f32.mxu0 %vm11185_vm0, %v15399_v1  ;;  %v4804_v55 = vld [vmem:[%s15395_s3 + $0x3b0] sm:$0xff]  ;;  %v4803_v35 = vld [vmem:[%s15395_s3 + $0x3a8] sm:$0xff] }
 0x269   : > { %v9945_v40 = vpop.eup %9944  ;;  %v6582_v9 = vmul.f32 -1.442695, %v1068_v22  ;;  %v12539_v22 = vpop.f32.mrb[8].mxu1  ;;  %5186 = vmatprep.mubr.f32.mxu1 %v4804_v55  ;;  %v4873_v55 = vld [vmem:[%s15395_s3 + $0x5d8] sm:$0xff] }
 0x26a   : > { %v12493_v8 = vpop.eup %9946  ;;  %v3667_v24 = vadd.f32 1.0, %v9945_v40  ;;  %v1072_v30 = vpop.f32.mrb[160].mxu0 }
 0x26b   : > { %9956 = vpow2.f32 %v6582_v9  ;;  %v1073_v26 = vadd.f32 %v12338_v60, %v1072_v30  ;;  %v8276_v41 = vpop.f32.mrb[161].mxu0  ;;  %8434 = vmatmul.mubr.f32.gmra.mrb[10].mxu0 %v351_v62  ;;  %v9294_v46 = vpack.c.bf16 %v12493_v8, %v12485_v27  ;;  %v8795_v40 = vpop.f32.mrb[9].mxu1  ;;  %5187 = vmatmul.mubr.f32.gmra.mrb[8].mxu1 %v4803_v35 }
 0x26c   : > { %8436 = vmatprep.mubr.msk.f32.mxu0 %vm11185_vm0, %v15399_v1  ;;  %9958 = vrcp.f32 %v3667_v24  ;;  %5191 = vmatprep.mubr.f32.mxu1 %v4827_v17  ;;  %v1933_v17 = vadd.f32 %v12338_v60, %v12525_v18 }
 0x26d   : > { %v9949_v47 = vpop.eup %9948  ;;  %v6583_v20 = vmul.f32 -1.442695, %v1073_v26 }
 0x26e   : > { %v3668_v10 = vadd.f32 1.0, %v9949_v47  ;;  %v1077_v44 = vpop.f32.mrb[162].mxu0  ;;  %v12515_v23 = vpop.eup %9950  ;;  %v4826_v47 = vld [vmem:[%s15395_s3 + $0x460] sm:$0xff] }
 0x26f   : > { %9960 = vpow2.f32 %v6583_v20  ;;  %v1078_v15 = vadd.f32 %v12338_v60, %v1077_v44  ;;  %v8279_v33 = vpop.f32.mrb[163].mxu0  ;;  %8437 = vmatmul.mubr.f32.gmra.mrb[12].mxu0 %v352_v63  ;;  %v12555_v63 = vpop.f32.mrb[10].mxu1 }
 0x270   : > { %9962 = vrcp.f32 %v3668_v10  ;;  %8439 = vmatprep.mubr.msk.f32.mxu0 %vm11185_vm0, %v15399_v1  ;;  %v8798_v44 = vpop.f32.mrb[11].mxu1  ;;  %5192 = vmatmul.mubr.f32.gmra.mrb[10].mxu1 %v4826_v47  ;;  %v1943_v42 = vadd.f32 %v12338_v60, %v12555_v63 }
 0x271   : > { %v9953_v25 = vpop.eup %9952  ;;  %v6584_v29 = vmul.f32 -1.442695, %v1078_v15  ;;  %v1923_v15 = vadd.f32 %v12338_v60, %v12495_v36  ;;  %v12571_v31 = vpop.f32.mrb[12].mxu1 }
 0x272   : > { %v12523_v13 = vpop.eup %9954  ;;  %v3669_v32 = vadd.f32 1.0, %v9953_v25  ;;  %v1082_v21 = vpop.f32.mrb[164].mxu0  ;;  %v6757_v63 = vmul.f32 -1.442695, %v1943_v42 }
 0x273   : > { %9964 = vpow2.f32 %v6584_v29  ;;  %v1083_v2 = vadd.f32 %v12338_v60, %v1082_v21  ;;  %v8282_v39 = vpop.f32.mrb[165].mxu0  ;;  %8440 = vmatmul.mubr.f32.gmra.mrb[14].mxu0 %v353_v7  ;;  %v9298_v6 = vpack.c.bf16 %v12523_v13, %v12515_v23  ;;  %v4850_v7 = vld [vmem:[%s15395_s3 + $0x520] sm:$0xff]  ;;  %v8801_v45 = vpop.f32.mrb[13].mxu1  ;;  %v6753_v11 = vmul.f32 -1.442695, %v1923_v15  ;;  %v4895_v15 = vld [vmem:[%s15395_s3 + $0x688] sm:$0xff] }
 0x274   : > { %8442 = vmatprep.mubr.msk.f32.mxu0 %vm11185_vm0, %v15399_v1  ;;  %9966 = vrcp.f32 %v3669_v32  ;;  %5196 = vmatprep.mubr.f32.mxu1 %v4850_v7  ;;  %v4849_v32 = vld [vmem:[%s15395_s3 + $0x518] sm:$0xff]  ;;  %v357_v39 = vld [vmem:[%s11298_s9 + $0x458] sm:$0xff] }
 0x275   : > { %v9957_v52 = vpop.eup %9956  ;;  %v6585_v53 = vmul.f32 -1.442695, %v1083_v2  ;;  %5197 = vmatmul.mubr.f32.gmra.mrb[12].mxu1 %v4849_v32  ;;  %v4919_v45 = vld [vmem:[%s15395_s3 + $0x748] sm:$0x1] }
 0x276   : > { %v3670_v58 = vadd.f32 1.0, %v9957_v52  ;;  %v1087_v61 = vpop.f32.mrb[166].mxu0  ;;  %v12545_v9 = vpop.eup %9958  ;;  %5201 = vmatprep.mubr.f32.mxu1 %v4873_v55 }
 0x277   : > { %9968 = vpow2.f32 %v6585_v53  ;;  %v1088_v28 = vadd.f32 %v12338_v60, %v1087_v61  ;;  %v8285_v62 = vpop.f32.mrb[167].mxu0  ;;  %8443 = vmatmul.mubr.f32.gmra.mrb[16].mxu0 %v354_v4  ;;  %v1928_v53 = vadd.f32 %v12338_v60, %v12509_v56 }
 0x278   : > { %9970 = vrcp.f32 %v3670_v58  ;;  %8445 = vmatprep.mubr.msk.f32.mxu0 %vm11185_vm0, %v15399_v1  ;;  %v4872_v62 = vld [vmem:[%s15395_s3 + $0x5d0] sm:$0xff] }
 0x279   : > { %v9961_v24 = vpop.eup %9960  ;;  %v6586_v30 = vmul.f32 -1.442695, %v1088_v28  ;;  %v12589_v28 = vpop.f32.mrb[14].mxu1  ;;  %v6754_v47 = vmul.f32 -1.442695, %v1928_v53 }
 0x27a   : > { %v12553_v26 = vpop.eup %9962  ;;  %v3671_v41 = vadd.f32 1.0, %v9961_v24  ;;  %v1092_v51 = vpop.f32.mrb[168].mxu0  ;;  %v1953_v3 = vadd.f32 %v12338_v60, %v12589_v28 }
 0x27b   : > { %9972 = vpow2.f32 %v6586_v30  ;;  %v1093_v20 = vadd.f32 %v12338_v60, %v1092_v51  ;;  %v8288_v5 = vpop.f32.mrb[169].mxu0  ;;  %8446 = vmatmul.mubr.f32.gmra.mrb[18].mxu0 %v355_v34  ;;  %v9302_v10 = vpack.c.bf16 %v12553_v26, %v12545_v9  ;;  %v8804_v24 = vpop.f32.mrb[15].mxu1  ;;  %5202 = vmatmul.mubr.f32.gmra.mrb[14].mxu1 %v4872_v62  ;;  %v358_v30 = vld [vmem:[%s11298_s9 + $0x460] sm:$0xff]  ;;  %v360_v62 = vld [vmem:[%s11298_s9 + $0x470] sm:$0xff] }
 0x27c   : > { %8448 = vmatprep.mubr.msk.f32.mxu0 %vm11185_vm0, %v15399_v1  ;;  %9974 = vrcp.f32 %v3671_v41 }
 0x27d   : > { %v9965_v33 = vpop.eup %9964  ;;  %v6587_v14 = vmul.f32 -1.442695, %v1093_v20  ;;  %v4896_v20 = vld [vmem:[%s15395_s3 + $0x690] sm:$0xff] }
 0x27e   : > { %v3672_v25 = vadd.f32 1.0, %v9965_v33  ;;  %v1097_v29 = vpop.f32.mrb[170].mxu0  ;;  %v12577_v2 = vpop.eup %9966  ;;  %5206 = vmatprep.mubr.f32.mxu1 %v4896_v20 }
 0x27f   : > { %9976 = vpow2.f32 %v6587_v14  ;;  %v1098_v36 = vadd.f32 %v12338_v60, %v1097_v29  ;;  %v8291_v21 = vpop.f32.mrb[171].mxu0  ;;  %8449 = vmatmul.mubr.f32.gmra.mrb[20].mxu0 %v356_v38  ;;  %v12605_v38 = vpop.f32.mrb[16].mxu1  ;;  %v6755_v29 = vmul.f32 -1.442695, %v1933_v17 }
 0x280   : > { %9978 = vrcp.f32 %v3672_v25  ;;  %8451 = vmatprep.mubr.msk.f32.mxu0 %vm11185_vm0, %v15399_v1  ;;  %v8807_v14 = vpop.f32.mrb[17].mxu1  ;;  %5207 = vmatmul.mubr.f32.gmra.mrb[16].mxu1 %v4895_v15  ;;  %v359_v25 = vld [vmem:[%s11298_s9 + $0x468] sm:$0xff]  ;;  %v1938_v21 = vadd.f32 %v12338_v60, %v12539_v22 }
 0x281   : > { %v9969_v4 = vpop.eup %9968  ;;  %v6588_v52 = vmul.f32 -1.442695, %v1098_v36  ;;  %5211 = vmatprep.mubr.f32.mxu1 %v4919_v45  ;;  %v4918_v22 = vld [vmem:[%s15395_s3 + $0x740] sm:$0x1]  ;;  %v362_v45 = vld [vmem:[%s11298_s9 + $0x480] sm:$0xff] }
 0x282   : > { %v12587_v58 = vpop.eup %9970  ;;  %v3673_v61 = vadd.f32 1.0, %v9969_v4  ;;  %v1102_v35 = vpop.f32.mrb[172].mxu0  ;;  %v6756_v24 = vmul.f32 -1.442695, %v1938_v21 }
 0x283   : > { %9980 = vpow2.f32 %v6588_v52  ;;  %v1103_v40 = vadd.f32 %v12338_v60, %v1102_v35  ;;  %v8294_v56 = vpop.f32.mrb[173].mxu0  ;;  %8452 = vmatmul.mubr.f32.gmra.mrb[22].mxu0 %v357_v39  ;;  %v9306_v34 = vpack.c.bf16 %v12587_v58, %v12577_v2  ;;  %v12619_v52 = vpop.f32.mrb[18].mxu1  ;;  %v375_v2 = vld [vmem:[%s11298_s9 + $0x4e8] sm:$0xff] }
 0x284   : > { %8454 = vmatprep.mubr.msk.f32.mxu0 %vm11185_vm0, %v15399_v1  ;;  %9982 = vpow2.f32 %v6753_v11  ;;  %v8810_v35 = vpop.f32.mrb[19].mxu1  ;;  %5212 = vmatmul.mubr.f32.gmra.mrb[18].mxu1 %v4918_v22 }
 0x285   : > { %v9973_v41 = vpop.eup %9972  ;;  %v6589_v51 = vmul.f32 -1.442695, %v1103_v40  ;;  %9984 = vrcp.f32 %v3673_v61 }
 0x286   : > { %v3674_v5 = vadd.f32 1.0, %v9973_v41  ;;  %v1107_v44 = vpop.f32.mrb[174].mxu0  ;;  %v9975_v7 = vpop.eup %9974 }
 0x287   : > { %9986 = vpow2.f32 %v6589_v51  ;;  %v1108_v18 = vadd.f32 %v12338_v60, %v1107_v44  ;;  %v8297_v33 = vpop.f32.mrb[175].mxu0  ;;  %8455 = vmatmul.mubr.f32.gmra.mrb[24].mxu0 %v358_v30  ;;  %v4691_v30 = vld [vmem:[%s15395_s3 + $0x28] sm:$0xff] }
 0x288   : > { %9988 = vrcp.f32 %v3674_v5  ;;  %8457 = vmatprep.mubr.msk.f32.mxu0 %vm11185_vm0, %v15399_v1  ;;  %5281 = vmatprep.mubr.f32.mxu1 %v4691_v30 }
 0x289   : > { %v9977_v32 = vpop.eup %9976  ;;  %v6590_v36 = vmul.f32 -1.442695, %v1108_v18  ;;  %9990 = vpow2.f32 %v6754_v47  ;;  %v12634_v47 = vpop.f32.mrb[20].mxu1  ;;  %v361_v18 = vld [vmem:[%s11298_s9 + $0x478] sm:$0xff] }
 0x28a   : > { %v9979_v39 = vpop.eup %9978  ;;  %v3675_v11 = vadd.f32 1.0, %v9977_v32  ;;  %v1112_v4 = vpop.f32.mrb[176].mxu0 }
 0x28b   : > { %9992 = vpow2.f32 %v6590_v36  ;;  %v1113_v53 = vadd.f32 %v12338_v60, %v1112_v4  ;;  %v8300_v55 = vpop.f32.mrb[177].mxu0  ;;  %8458 = vmatmul.mubr.f32.gmra.mrb[26].mxu0 %v359_v25  ;;  %v9276_v61 = vpack.c.bf16 %v9979_v39, %v9975_v7  ;;  %v8813_v44 = vpop.f32.mrb[21].mxu1  ;;  %v1948_v39 = vadd.f32 %v12338_v60, %v12571_v31 }
 0x28c   : > { %8460 = vmatprep.mubr.msk.f32.mxu0 %vm11185_vm0, %v15399_v1  ;;  %9994 = vpow2.f32 %v6755_v29 }
 0x28d   : > { %v9981_v40 = vpop.eup %9980  ;;  %v6591_v56 = vmul.f32 -1.442695, %v1113_v53  ;;  %9277 = vmatprep.subr.bf16.mxu1 %v9276_v61  ;;  %9996 = vrcp.f32 %v3675_v11 }
 0x28e   : > { %v9983_v17 = vpop.eup %9982  ;;  %v3676_v41 = vadd.f32 1.0, %v9981_v40  ;;  %v1117_v51 = vpop.f32.mrb[178].mxu0  ;;  %9279 = vmatpush3.bf16.msra.mxu1 %v9278_v54  ;;  %v363_v40 = vld [vmem:[%s11298_s9 + $0x488] sm:$0xff] }
 0x28f   : > { %9998 = vpow2.f32 %v6591_v56  ;;  %v1118_v20 = vadd.f32 %v12338_v60, %v1117_v51  ;;  %v8303_v5 = vpop.f32.mrb[179].mxu0  ;;  %8461 = vmatmul.mubr.f32.gmra.mrb[28].mxu0 %v360_v62  ;;  %v9985_v15 = vpop.eup %9984  ;;  %v3841_v12 = vadd.f32 1.0, %v9983_v17  ;;  %v6758_v56 = vmul.f32 -1.442695, %v1948_v39 }
 0x290   : > { %10000 = vrcp.f32 %v3676_v41  ;;  %8463 = vmatprep.mubr.msk.f32.mxu0 %vm11185_vm0, %v15399_v1 }
 0x291   : > { %v9987_v33 = vpop.eup %9986  ;;  %v6592_v14 = vmul.f32 -1.442695, %v1118_v20  ;;  %10002 = vpow2.f32 %v6756_v24 }
 0x292   : > { %v9989_v54 = vpop.eup %9988  ;;  %v3677_v7 = vadd.f32 1.0, %v9987_v33  ;;  %v1122_v25 = vpop.f32.mrb[180].mxu0 }
 0x293   : > { %v9991_v29 = vpop.eup %9990  ;;  %10004 = vpow2.f32 %v6592_v14  ;;  %v1123_v32 = vadd.f32 %v12338_v60, %v1122_v25  ;;  %v8306_v36 = vpop.f32.mrb[181].mxu0  ;;  %8464 = vmatmul.mubr.f32.gmra.mrb[30].mxu0 %v361_v18  ;;  %v9280_v21 = vpack.c.bf16 %v9989_v54, %v9985_v15  ;;  %v364_v15 = vld [vmem:[%s11298_s9 + $0x490] sm:$0xff]  ;;  %v1958_v18 = vadd.f32 %v12338_v60, %v12605_v38 }
 0x294   : > { %8466 = vmatprep.mubr.msk.f32.mxu0 %vm11185_vm0, %v15399_v1  ;;  %10006 = vrcp.f32 %v3841_v12  ;;  %v3842_v35 = vadd.f32 1.0, %v9991_v29  ;;  %v6759_v14 = vmul.f32 -1.442695, %v1953_v3  ;;  %v1963_v12 = vadd.f32 %v12338_v60, %v12619_v52  ;;  %v365_v52 = vld [vmem:[%s11298_s9 + $0x498] sm:$0xff] }
 0x295   : > { %v9993_v11 = vpop.eup %9992  ;;  %v6593_v4 = vmul.f32 -1.442695, %v1123_v32  ;;  %9281 = vmatprep.subr.bf16.mxu1 %v9280_v21  ;;  %10008 = vrcp.f32 %v3677_v7  ;;  %v6760_v36 = vmul.f32 -1.442695, %v1958_v18 }
 0x296   : > { %v9995_v53 = vpop.eup %9994  ;;  %v3678_v55 = vadd.f32 1.0, %v9993_v11  ;;  %v1127_v61 = vpop.f32.mrb[182].mxu0  ;;  %9283 = vmatpush3.bf16.msra.mxu1 %v9282_v19  ;;  %v6761_v57 = vmul.f32 -1.442695, %v1963_v12  ;;  %v1968_v11 = vadd.f32 %v12338_v60, %v12634_v47 }
 0x297   : > { %10010 = vpow2.f32 %v6593_v4  ;;  %v1128_v22 = vadd.f32 %v12338_v60, %v1127_v61  ;;  %v8309_v62 = vpop.f32.mrb[183].mxu0  ;;  %8467 = vmatmul.mubr.f32.gmra.mrb[32].mxu0 %v362_v45  ;;  %v9997_v31 = vpop.eup %9996  ;;  %v3843_v17 = vadd.f32 1.0, %v9995_v53 }
 0x298   : > { %10012 = vrcp.f32 %v3678_v55  ;;  %8469 = vmatprep.mubr.msk.f32.mxu0 %vm11185_vm0, %v15399_v1 }
 0x299   : > { %v9999_v24 = vpop.eup %9998  ;;  %v6594_v30 = vmul.f32 -1.442695, %v1128_v22  ;;  %10014 = vpow2.f32 %v6757_v63 }
 0x29a   : > { %v10001_v16 = vpop.eup %10000  ;;  %v3679_v19 = vadd.f32 1.0, %v9999_v24  ;;  %v1132_v41 = vpop.f32.mrb[184].mxu0  ;;  %10016 = vrcp.f32 %v3842_v35  ;;  %v366_v35 = vld [vmem:[%s11298_s9 + $0x4a0] sm:$0xff]  ;;  %v12690_v24 = vld [vmem:[%s15394_s2] ss:$0 sm:$0xff] }
 0x29b   : > { %v10003_v51 = vpop.eup %10002  ;;  %10018 = vpow2.f32 %v6594_v30  ;;  %v1133_v20 = vadd.f32 %v12338_v60, %v1132_v41  ;;  %v8312_v5 = vpop.f32.mrb[185].mxu0  ;;  %8470 = vmatmul.mubr.f32.gmra.mrb[34].mxu0 %v363_v40  ;;  %v9284_v44 = vpack.c.bf16 %v10001_v16, %v9997_v31 }
 0x29c   : > { %8472 = vmatprep.mubr.msk.f32.mxu0 %vm11185_vm0, %v15399_v1  ;;  %10020 = vpow2.f32 %v6758_v56  ;;  %v3844_v7 = vadd.f32 1.0, %v10003_v51 }
 0x29d   : > { %v10005_v28 = vpop.eup %10004  ;;  %v6595_v33 = vmul.f32 -1.442695, %v1133_v20  ;;  %9285 = vmatprep.subr.bf16.mxu1 %v9284_v44  ;;  %10022 = vrcp.f32 %v3843_v17 }
 0x29e   : > { %10024 = vrcp.f32 %v3679_v19  ;;  %v3680_v42 = vadd.f32 1.0, %v10005_v28  ;;  %v1137_v54 = vpop.f32.mrb[186].mxu0  ;;  %9287 = vmatpush3.bf16.msra.mxu1 %v9286_v48  ;;  %v12668_v25 = vpop.eup %10006 }
 0x29f   : > { %10026 = vpow2.f32 %v6595_v33  ;;  %v1138_v38 = vadd.f32 %v12338_v60, %v1137_v54  ;;  %v8315_v29 = vpop.f32.mrb[187].mxu0  ;;  %8473 = vmatmul.mubr.f32.gmra.mrb[36].mxu0 %v364_v15  ;;  %v10009_v32 = vpop.eup %10008 }
 0x2a0   : > { %10028 = vrcp.f32 %v3680_v42  ;;  %8475 = vmatprep.mubr.msk.f32.mxu0 %vm11185_vm0, %v15399_v1 }
 0x2a1   : > { %v10011_v21 = vpop.eup %10010  ;;  %v6596_v45 = vmul.f32 -1.442695, %v1138_v38  ;;  %10030 = vpow2.f32 %v6759_v14  ;;  %v368_v14 = vld [vmem:[%s11298_s9 + $0x4b0] sm:$0xff] }
 0x2a2   : > { %v10013_v50 = vpop.eup %10012  ;;  %v3681_v48 = vadd.f32 1.0, %v10011_v21  ;;  %v1142_v39 = vpop.f32.mrb[188].mxu0  ;;  %10032 = vrcp.f32 %v3844_v7  ;;  %v369_v21 = vld [vmem:[%s11298_s9 + $0x4b8] sm:$0xff] }
 0x2a3   : > { %v10015_v4 = vpop.eup %10014  ;;  %10034 = vpow2.f32 %v6596_v45  ;;  %v1143_v63 = vadd.f32 %v12338_v60, %v1142_v39  ;;  %v8318_v53 = vpop.f32.mrb[189].mxu0  ;;  %8476 = vmatmul.mubr.f32.gmra.mrb[38].mxu0 %v365_v52  ;;  %v9288_v55 = vpack.c.bf16 %v10013_v50, %v10009_v32  ;;  %v6762_v60 = vmul.f32 -1.442695, %v1968_v11 }
 0x2a4   : > { %v12677_v61 = vpop.eup %10016  ;;  %8478 = vmatprep.mubr.msk.f32.mxu0 %vm11185_vm0, %v15399_v1  ;;  %10036 = vpow2.f32 %v6760_v36  ;;  %v3845_v43 = vadd.f32 1.0, %v10015_v4  ;;  %v1972_v53 = vpop.f32.mrb[22].mxu1 }
 0x2a5   : > { %v10019_v22 = vpop.eup %10018  ;;  %v6597_v62 = vmul.f32 -1.442695, %v1143_v63  ;;  %9289 = vmatprep.subr.bf16.mxu1 %v9288_v55  ;;  %10038 = vpow2.f32 %v6761_v57 }
 0x2a6   : > { %v10021_v47 = vpop.eup %10020  ;;  %10040 = vrcp.f32 %v3681_v48  ;;  %v3682_v31 = vadd.f32 1.0, %v10019_v22  ;;  %v1147_v40 = vpop.f32.mrb[190].mxu0  ;;  %9291 = vmatpush3.bf16.msra.mxu1 %v9290_v49 }
 0x2a7   : > { %v12685_v56 = vpop.eup %10022  ;;  %10042 = vpow2.f32 %v6597_v62  ;;  %v1148_v30 = vadd.f32 %v12690_v24, %v1147_v40  ;;  %v8321_v17 = vpop.f32.mrb[191].mxu0  ;;  %8479 = vmatmul.mubr.f32.gmra.mrb[40].mxu0 %v366_v35  ;;  %v3846_v19 = vadd.f32 1.0, %v10021_v47  ;;  %v370_v35 = vld [vmem:[%s11298_s9 + $0x4c0] sm:$0xff] }
 0x2a8   : > { %v10025_v3 = vpop.eup %10024  ;;  %10044 = vrcp.f32 %v3682_v31  ;;  %8481 = vmatprep.mubr.msk.f32.mxu0 %vm11185_vm0, %v15399_v1  ;;  %v8816_v22 = vpop.f32.mrb[23].mxu1 }
 0x2a9   : > { %v10027_v49 = vpop.eup %10026  ;;  %v6598_v16 = vmul.f32 -1.442695, %v1148_v30  ;;  %10046 = vpow2.f32 %v6762_v60  ;;  %v1977_v40 = vpop.f32.mrb[24].mxu1 }
 0x2aa   : > { %v10029_v41 = vpop.eup %10028  ;;  %v3683_v51 = vadd.f32 1.0, %v10027_v49  ;;  %v1152_v20 = vpop.f32.mrb[192].mxu0 }
 0x2ab   : > { %v10031_v44 = vpop.eup %10030  ;;  %10048 = vpow2.f32 %v6598_v16  ;;  %v1153_v15 = vadd.f32 %v12690_v24, %v1152_v20  ;;  %v8324_v18 = vpop.f32.mrb[193].mxu0  ;;  %8482 = vmatmul.mubr.f32.gmra.mrb[42].mxu0 %v367_v37  ;;  %v9292_v28 = vpack.c.bf16 %v10029_v41, %v10025_v3  ;;  %v1973_v3 = vadd.f32 %v12690_v24, %v1972_v53 }
 0x2ac   : > { %v12699_v33 = vpop.eup %10032  ;;  %8484 = vmatprep.mubr.msk.f32.mxu0 %vm11185_vm0, %v15399_v1  ;;  %10050 = vrcp.f32 %v3845_v43  ;;  %v3847_v45 = vadd.f32 1.0, %v10031_v44  ;;  %v1978_v37 = vadd.f32 %v12690_v24, %v1977_v40  ;;  %v8819_v43 = vpop.f32.mrb[25].mxu1 }
 0x2ad   : > { %v10035_v12 = vpop.eup %10034  ;;  %v6599_v42 = vmul.f32 -1.442695, %v1153_v15  ;;  %9293 = vmatprep.subr.bf16.mxu1 %v9292_v28  ;;  %10052 = vrcp.f32 %v3846_v19  ;;  %v6763_v13 = vmul.f32 -1.442695, %v1973_v3 }
 0x2ae   : > { %v10037_v54 = vpop.eup %10036  ;;  %10054 = vrcp.f32 %v3683_v51  ;;  %v3684_v7 = vadd.f32 1.0, %v10035_v12  ;;  %v1157_v38 = vpop.f32.mrb[194].mxu0  ;;  %9295 = vmatpush3.bf16.msra.mxu1 %v9294_v46  ;;  %v371_v51 = vld [vmem:[%s11298_s9 + $0x4c8] sm:$0xff]  ;;  %v6764_v44 = vmul.f32 -1.442695, %v1978_v37  ;;  %v374_v37 = vld [vmem:[%s11298_s9 + $0x4e0] sm:$0xff] }
 0x2af   : > { %v10039_v29 = vpop.eup %10038  ;;  %10056 = vpow2.f32 %v6599_v42  ;;  %v1158_v32 = vadd.f32 %v12690_v24, %v1157_v38  ;;  %v8327_v52 = vpop.f32.mrb[195].mxu0  ;;  %8485 = vmatmul.mubr.f32.gmra.mrb[44].mxu0 %v368_v14  ;;  %v3848_v48 = vadd.f32 1.0, %v10037_v54  ;;  %v372_v38 = vld [vmem:[%s11298_s9 + $0x4d0] sm:$0xff] }
 0x2b0   : > { %v10041_v36 = vpop.eup %10040  ;;  %10058 = vrcp.f32 %v3684_v7  ;;  %8487 = vmatprep.mubr.msk.f32.mxu0 %vm11185_vm0, %v15399_v1  ;;  %v3849_v31 = vadd.f32 1.0, %v10039_v29  ;;  %v1982_v7 = vpop.f32.mrb[26].mxu1 }
 0x2b1   : > { %v10043_v57 = vpop.eup %10042  ;;  %v6600_v50 = vmul.f32 -1.442695, %v1158_v32  ;;  %v8822_v29 = vpop.f32.mrb[27].mxu1 }
 0x2b2   : > { %v10045_v39 = vpop.eup %10044  ;;  %v3685_v27 = vadd.f32 1.0, %v10043_v57  ;;  %v1162_v8 = vpop.f32.mrb[196].mxu0 }
 0x2b3   : > { %10060 = vpow2.f32 %v6600_v50  ;;  %v1163_v11 = vadd.f32 %v12690_v24, %v1162_v8  ;;  %v8330_v4 = vpop.f32.mrb[197].mxu0  ;;  %8488 = vmatmul.mubr.f32.gmra.mrb[46].mxu0 %v369_v21  ;;  %v9296_v63 = vpack.c.bf16 %v10045_v39, %v10041_v36  ;;  %v10047_v55 = vpop.eup %10046  ;;  %v1983_v50 = vadd.f32 %v12690_v24, %v1982_v7 }
 0x2b4   : > { %8490 = vmatprep.mubr.msk.f32.mxu0 %vm11185_vm0, %v15399_v1  ;;  %10062 = vrcp.f32 %v3847_v45  ;;  %v3850_v23 = vadd.f32 1.0, %v10047_v55  ;;  %v1987_v36 = vpop.f32.mrb[28].mxu1 }
 0x2b5   : > { %v10049_v62 = vpop.eup %10048  ;;  %v6601_v47 = vmul.f32 -1.442695, %v1163_v11  ;;  %9297 = vmatprep.subr.bf16.mxu1 %v9296_v63  ;;  %10064 = vrcp.f32 %v3848_v48  ;;  %v1988_v48 = vadd.f32 %v12690_v24, %v1987_v36  ;;  %v8825_v39 = vpop.f32.mrb[29].mxu1  ;;  %v373_v63 = vld [vmem:[%s11298_s9 + $0x4d8] sm:$0xff]  ;;  %v6765_v9 = vmul.f32 -1.442695, %v1983_v50 }
 0x2b6   : > { %v12717_v60 = vpop.eup %10050  ;;  %10066 = vrcp.f32 %v3685_v27  ;;  %v3686_v30 = vadd.f32 1.0, %v10049_v62  ;;  %v1167_v17 = vpop.f32.mrb[198].mxu0  ;;  %9299 = vmatpush3.bf16.msra.mxu1 %v9298_v6 }
 0x2b7   : > { %v12724_v49 = vpop.eup %10052  ;;  %10068 = vpow2.f32 %v6601_v47  ;;  %v1168_v16 = vadd.f32 %v12690_v24, %v1167_v17  ;;  %v8333_v19 = vpop.f32.mrb[199].mxu0  ;;  %8491 = vmatmul.mubr.f32.gmra.mrb[48].mxu0 %v370_v35  ;;  %v6766_v53 = vmul.f32 -1.442695, %v1988_v48 }
 0x2b8   : > { %v10055_v41 = vpop.eup %10054  ;;  %10070 = vrcp.f32 %v3686_v30  ;;  %8493 = vmatprep.mubr.msk.f32.mxu0 %vm11185_vm0, %v15399_v1  ;;  %v1992_v17 = vpop.f32.mrb[30].mxu1 }
 0x2b9   : > { %v10057_v6 = vpop.eup %10056  ;;  %v6602_v20 = vmul.f32 -1.442695, %v1168_v16  ;;  %10072 = vrcp.f32 %v3849_v31  ;;  %v8828_v43 = vpop.f32.mrb[31].mxu1 }
 0x2ba   : > { %v10059_v15 = vpop.eup %10058  ;;  %v3687_v18 = vadd.f32 1.0, %v10057_v6  ;;  %v1172_v28 = vpop.f32.mrb[200].mxu0  ;;  %10074 = vpow2.f32 %v6763_v13 }
 0x2bb   : > { %10076 = vpow2.f32 %v6602_v20  ;;  %v1173_v12 = vadd.f32 %v12690_v24, %v1172_v28  ;;  %v8336_v42 = vpop.f32.mrb[201].mxu0  ;;  %8494 = vmatmul.mubr.f32.gmra.mrb[50].mxu0 %v371_v51  ;;  %v9300_v54 = vpack.c.bf16 %v10059_v15, %v10055_v41  ;;  %v1997_v51 = vpop.f32.mrb[32].mxu1  ;;  %v4690_v20 = vld [vmem:[%s15395_s3 + $0x20] sm:$0xff] }
 0x2bc   : > { %8496 = vmatprep.mubr.msk.f32.mxu0 %vm11185_vm0, %v15399_v1  ;;  %10078 = vrcp.f32 %v3850_v23  ;;  %v1998_v15 = vadd.f32 %v12690_v24, %v1997_v51 }
 0x2bd   : > { %v10061_v32 = vpop.eup %10060  ;;  %v6603_v52 = vmul.f32 -1.442695, %v1173_v12  ;;  %9301 = vmatprep.subr.bf16.mxu1 %v9300_v54  ;;  %10080 = vpow2.f32 %v6764_v44  ;;  %v1993_v44 = vadd.f32 %v12690_v24, %v1992_v17 }
 0x2be   : > { %v12736_v21 = vpop.eup %10062  ;;  %10082 = vrcp.f32 %v3687_v18  ;;  %v3688_v45 = vadd.f32 1.0, %v10061_v32  ;;  %v1177_v57 = vpop.f32.mrb[202].mxu0  ;;  %9303 = vmatpush3.bf16.msra.mxu1 %v9302_v10  ;;  %v6768_v36 = vmul.f32 -1.442695, %v1998_v15 }
 0x2bf   : > { %15502 = vst [vmem:[#allocation5_spill] sm:$0xff] %v12736_v21  ;;  %v12743_v27 = vpop.eup %10064  ;;  %10084 = vpow2.f32 %v6603_v52  ;;  %v1178_v8 = vadd.f32 %v12690_v24, %v1177_v57  ;;  %v8339_v11 = vpop.f32.mrb[203].mxu0  ;;  %8497 = vmatmul.mubr.f32.gmra.mrb[52].mxu0 %v372_v38  ;;  %v6767_v38 = vmul.f32 -1.442695, %v1993_v44 }
 0x2c0   : > { %15503 = vst [vmem:[#allocation6_spill] sm:$0xff] %v12743_v27  ;;  %v10067_v4 = vpop.eup %10066  ;;  %10086 = vrcp.f32 %v3688_v45  ;;  %8499 = vmatprep.mubr.msk.f32.mxu0 %vm11185_vm0, %v15399_v1  ;;  %v8831_v18 = vpop.f32.mrb[33].mxu1  ;;  %v376_v11 = vld [vmem:[%s11298_s9 + $0x4f0] sm:$0xff] }
 0x2c1   : > { %v10069_v26 = vpop.eup %10068  ;;  %v6604_v10 = vmul.f32 -1.442695, %v1178_v8  ;;  %10088 = vpow2.f32 %v6765_v9  ;;  %v2002_v39 = vpop.f32.mrb[34].mxu1 }
 0x2c2   : > { %v10071_v55 = vpop.eup %10070  ;;  %v3689_v35 = vadd.f32 1.0, %v10069_v26  ;;  %v1182_v22 = vpop.f32.mrb[204].mxu0 }
 0x2c3   : > { %v12751_v47 = vpop.eup %10072  ;;  %10090 = vpow2.f32 %v6604_v10  ;;  %v1183_v31 = vadd.f32 %v12690_v24, %v1182_v22  ;;  %v8342_v40 = vpop.f32.mrb[205].mxu0  ;;  %8500 = vmatmul.mubr.f32.gmra.mrb[54].mxu0 %v373_v63  ;;  %v9304_v30 = vpack.c.bf16 %v10071_v55, %v10067_v4 }
 0x2c4   : > { %15504 = vst [vmem:[#allocation7_spill] sm:$0xff] %v12751_v47  ;;  %v10075_v3 = vpop.eup %10074  ;;  %8502 = vmatprep.mubr.msk.f32.mxu0 %vm11185_vm0, %v15399_v1  ;;  %10092 = vpow2.f32 %v6766_v53  ;;  %v8834_v4 = vpop.f32.mrb[35].mxu1  ;;  %v13860_v47 = vld [vmem:[%s15394_s2] ss:$0 sm:$0xff] }
 0x2c5   : > { %v10077_v16 = vpop.eup %10076  ;;  %v6605_v19 = vmul.f32 -1.442695, %v1183_v31  ;;  %9305 = vmatprep.subr.bf16.mxu1 %v9304_v30  ;;  %v3851_v41 = vadd.f32 1.0, %v10075_v3  ;;  %10094 = vrcp.f32 %v3689_v35  ;;  %v2007_v10 = vpop.f32.mrb[36].mxu1  ;;  %v2003_v35 = vadd.f32 %v12690_v24, %v2002_v39 }
 0x2c6   : > { %v12757_v23 = vpop.eup %10078  ;;  %v3690_v13 = vadd.f32 1.0, %v10077_v16  ;;  %v1187_v6 = vpop.f32.mrb[206].mxu0  ;;  %9307 = vmatpush3.bf16.msra.mxu1 %v9306_v34  ;;  %v2008_v22 = vadd.f32 %v12690_v24, %v2007_v10 }
 0x2c7   : > { %15505 = vst [vmem:[#allocation8_spill] sm:$0xff] %v12757_v23  ;;  %v10081_v28 = vpop.eup %10080  ;;  %10096 = vpow2.f32 %v6605_v19  ;;  %v1188_v12 = vadd.f32 %v12690_v24, %v1187_v6  ;;  %v8345_v42 = vpop.f32.mrb[207].mxu0  ;;  %8503 = vmatmul.mubr.f32.gmra.mrb[56].mxu0 %v374_v37  ;;  %v377_v37 = vld [vmem:[%s11298_s9 + $0x4f8] sm:$0xff] }
 0x2c8   : > { %v12768_v54 = vpop.eup %10082  ;;  %10098 = vrcp.f32 %v3690_v13  ;;  %8505 = vmatprep.mubr.msk.f32.mxu0 %vm11185_vm0, %v15399_v1  ;;  %v3852_v58 = vadd.f32 1.0, %v10081_v28  ;;  %v8837_v31 = vpop.f32.mrb[37].mxu1 }
 0x2c9   : > { %v10085_v34 = vpop.eup %10084  ;;  %v6606_v7 = vmul.f32 -1.442695, %v1188_v12  ;;  %5282 = vmatmul.mubr.f32.vlgmr.msra.gmra.mrb[20].mxu1 %v4690_v20  ;;  %10100 = vrcp.f32 %v3851_v41  ;;  %v6769_v41 = vmul.f32 -1.442695, %v2003_v35  ;;  %v6770_v20 = vmul.f32 -1.442695, %v2008_v22 }
 0x2ca   : > { %v12773_v29 = vpop.eup %10086  ;;  %v3691_v32 = vadd.f32 1.0, %v10085_v34  ;;  %v1192_v52 = vpop.f32.mrb[208].mxu0  ;;  %10102 = vrcp.f32 %v3852_v58 }
 0x2cb   : > { %10104 = vpow2.f32 %v6606_v7  ;;  %v1193_v57 = vadd.f32 %v12690_v24, %v1192_v52  ;;  %v8348_v50 = vpop.f32.mrb[209].mxu0  ;;  %8506 = vmatmul.mubr.f32.gmra.mrb[58].mxu0 %v375_v2  ;;  %v9310_v48 = vpack.c.bf16 %v12773_v29, %v12768_v54  ;;  %v10089_v8 = vpop.eup %10088  ;;  %v378_v2 = vld [vmem:[%s11298_s9 + $0x500] sm:$0xff] }
 0x2cc   : > { %10106 = vrcp.f32 %v3691_v32  ;;  %8508 = vmatprep.mubr.msk.f32.mxu0 %vm11185_vm0, %v15399_v1  ;;  %v3853_v26 = vadd.f32 1.0, %v10089_v8  ;;  %v2012_v12 = vpop.f32.mrb[38].mxu1 }
 0x2cd   : > { %v10091_v63 = vpop.eup %10090  ;;  %v6607_v9 = vmul.f32 -1.442695, %v1193_v57  ;;  %10108 = vpow2.f32 %v6767_v38  ;;  %v8840_v58 = vpop.f32.mrb[39].mxu1  ;;  %v2013_v50 = vadd.f32 %v12690_v24, %v2012_v12 }
 0x2ce   : > { %v3692_v53 = vadd.f32 1.0, %v10091_v63  ;;  %v1197_v55 = vpop.f32.mrb[210].mxu0  ;;  %10110 = vpow2.f32 %v6768_v36  ;;  %v10093_v40 = vpop.eup %10092 }
 0x2cf   : > { %10112 = vpow2.f32 %v6607_v9  ;;  %v1198_v30 = vadd.f32 %v12690_v24, %v1197_v55  ;;  %v8351_v17 = vpop.f32.mrb[211].mxu0  ;;  %8509 = vmatmul.mubr.f32.gmra.mrb[60].mxu0 %v376_v11  ;;  %v12786_v3 = vpop.eup %10094  ;;  %v3854_v43 = vadd.f32 1.0, %v10093_v40  ;;  %v379_v9 = vld [vmem:[%s11298_s9 + $0x508] sm:$0xff] }
 0x2d0   : > { %10114 = vrcp.f32 %v3692_v53  ;;  %8511 = vmatprep.mubr.msk.f32.mxu0 %vm11185_vm0, %v15399_v1  ;;  %v2017_v38 = vpop.f32.mrb[40].mxu1 }
 0x2d1   : > { %v10097_v16 = vpop.eup %10096  ;;  %v6608_v19 = vmul.f32 -1.442695, %v1198_v30  ;;  %10116 = vrcp.f32 %v3853_v26  ;;  %v8843_v39 = vpop.f32.mrb[41].mxu1  ;;  %v2018_v35 = vadd.f32 %v12690_v24, %v2017_v38  ;;  %v6771_v30 = vmul.f32 -1.442695, %v2013_v50 }
 0x2d2   : > { %v12791_v51 = vpop.eup %10098  ;;  %v3693_v13 = vadd.f32 1.0, %v10097_v16  ;;  %v1202_v6 = vpop.f32.mrb[212].mxu0  ;;  %10118 = vrcp.f32 %v3854_v43 }
 0x2d3   : > { %v12793_v44 = vpop.eup %10100  ;;  %10120 = vpow2.f32 %v6608_v19  ;;  %v1203_v15 = vadd.f32 %v12690_v24, %v1202_v6  ;;  %v8354_v18 = vpop.f32.mrb[213].mxu0  ;;  %8512 = vmatmul.mubr.f32.gmra.mrb[62].mxu0 %v377_v37 }
 0x2d4   : > { %15506 = vst [vmem:[#allocation9_spill] sm:$0xff] %v12793_v44  ;;  %v12798_v42 = vpop.eup %10102  ;;  %10122 = vrcp.f32 %v3693_v13  ;;  %8514 = vmatprep.mubr.msk.f32.mxu0 %vm11185_vm0, %v15399_v1  ;;  %v2022_v19 = vpop.f32.mrb[42].mxu1  ;;  %v380_v13 = vld [vmem:[%s11298_s9 + $0x510] sm:$0xff]  ;;  %v6772_v18 = vmul.f32 -1.442695, %v2018_v35 }
 0x2d5   : > { %15507 = vst [vmem:[#allocation10_spill] sm:$0xff] %v12798_v42  ;;  %v10105_v34 = vpop.eup %10104  ;;  %v6609_v7 = vmul.f32 -1.442695, %v1203_v15  ;;  %10124 = vpow2.f32 %v6769_v41  ;;  %v8846_v6 = vpop.f32.mrb[43].mxu1  ;;  %v2023_v38 = vadd.f32 %v12690_v24, %v2022_v19 }
 0x2d6   : > { %v12805_v52 = vpop.eup %10106  ;;  %v3694_v36 = vadd.f32 1.0, %v10105_v34  ;;  %v1207_v57 = vpop.f32.mrb[214].mxu0  ;;  %10126 = vpow2.f32 %v6770_v20 }
 0x2d7   : > { %v10109_v8 = vpop.eup %10108  ;;  %10128 = vpow2.f32 %v6609_v7  ;;  %v1208_v11 = vadd.f32 %v12690_v24, %v1207_v57  ;;  %v8357_v4 = vpop.f32.mrb[215].mxu0  ;;  %8515 = vmatmul.mubr.f32.gmra.mrb[64].mxu0 %v378_v2 }
 0x2d8   : > { %v10111_v63 = vpop.eup %10110  ;;  %10130 = vrcp.f32 %v3694_v36  ;;  %8517 = vmatprep.mubr.msk.f32.mxu0 %vm11185_vm0, %v15399_v1  ;;  %v3855_v26 = vadd.f32 1.0, %v10109_v8  ;;  %v2027_v12 = vpop.f32.mrb[44].mxu1 }
 0x2d9   : > { %v10113_v10 = vpop.eup %10112  ;;  %v6610_v53 = vmul.f32 -1.442695, %v1208_v11  ;;  %v3856_v55 = vadd.f32 1.0, %v10111_v63  ;;  %v8849_v36 = vpop.f32.mrb[45].mxu1  ;;  %v381_v11 = vld [vmem:[%s11298_s9 + $0x518] sm:$0xff] }
 0x2da   : > { %v12813_v22 = vpop.eup %10114  ;;  %v3695_v31 = vadd.f32 1.0, %v10113_v10  ;;  %v1212_v40 = vpop.f32.mrb[216].mxu0  ;;  %10132 = vrcp.f32 %v3855_v26  ;;  %v2028_v10 = vadd.f32 %v12690_v24, %v2027_v12  ;;  %v4714_v12 = vld [vmem:[%s15395_s3 + $0xe0] sm:$0xff] }
 0x2db   : > { %v12815_v17 = vpop.eup %10116  ;;  %10134 = vpow2.f32 %v6610_v53  ;;  %v1213_v37 = vadd.f32 %v12690_v24, %v1212_v40  ;;  %v8360_v43 = vpop.f32.mrb[217].mxu0  ;;  %8518 = vmatmul.mubr.f32.gmra.mrb[66].mxu0 %v379_v9  ;;  %5286 = vmatprep.mubr.f32.mxu1 %v4714_v12 }
 0x2dc   : > { %15508 = vst [vmem:[#allocation11_spill] sm:$0xff] %v12815_v17  ;;  %v12820_v41 = vpop.eup %10118  ;;  %10136 = vrcp.f32 %v3695_v31  ;;  %8520 = vmatprep.mubr.msk.f32.mxu0 %vm11185_vm0, %v15399_v1  ;;  %v6773_v31 = vmul.f32 -1.442695, %v2023_v38  ;;  %v2032_v43 = vpop.f32.mrb[46].mxu1 }
 0x2dd   : > { %15509 = vst [vmem:[#allocation12_spill] sm:$0xff] %v12820_v41  ;;  %v10121_v20 = vpop.eup %10120  ;;  %v6611_v15 = vmul.f32 -1.442695, %v1213_v37  ;;  %10138 = vrcp.f32 %v3856_v55  ;;  %v8852_v6 = vpop.f32.mrb[47].mxu1 }
 0x2de   : > { %v12827_v58 = vpop.eup %10122  ;;  %v3696_v34 = vadd.f32 1.0, %v10121_v20  ;;  %v1217_v7 = vpop.f32.mrb[218].mxu0  ;;  %10140 = vpow2.f32 %v6771_v30 }
 0x2df   : > { %v10125_v57 = vpop.eup %10124  ;;  %10142 = vpow2.f32 %v6611_v15  ;;  %v1218_v50 = vadd.f32 %v12690_v24, %v1217_v7  ;;  %v8363_v39 = vpop.f32.mrb[219].mxu0  ;;  %8521 = vmatmul.mubr.f32.gmra.mrb[68].mxu0 %v380_v13  ;;  %v382_v13 = vld [vmem:[%s11298_s9 + $0x520] sm:$0xff] }
 0x2e0   : > { %v10127_v8 = vpop.eup %10126  ;;  %10144 = vrcp.f32 %v3696_v34  ;;  %8523 = vmatprep.mubr.msk.f32.mxu0 %vm11185_vm0, %v15399_v1  ;;  %v3857_v4 = vadd.f32 1.0, %v10125_v57  ;;  %v2037_v34 = vpop.f32.mrb[48].mxu1  ;;  %v4713_v57 = vld [vmem:[%s15395_s3 + $0xd8] sm:$0xff] }
 0x2e1   : > { %v10129_v63 = vpop.eup %10128  ;;  %v6612_v9 = vmul.f32 -1.442695, %v1218_v50  ;;  %v3858_v26 = vadd.f32 1.0, %v10127_v8  ;;  %10146 = vpow2.f32 %v6772_v18  ;;  %v6774_v18 = vmul.f32 -1.442695, %v2028_v10  ;;  %v8855_v39 = vpop.f32.mrb[49].mxu1  ;;  %5287 = vmatmul.mubr.f32.gmra.mrb[22].mxu1 %v4713_v57 }
 0x2e2   : > { %v12835_v53 = vpop.eup %10130  ;;  %v3697_v55 = vadd.f32 1.0, %v10129_v63  ;;  %v1222_v35 = vpop.f32.mrb[220].mxu0  ;;  %10148 = vrcp.f32 %v3857_v4  ;;  %v2033_v50 = vadd.f32 %v12690_v24, %v2032_v43  ;;  %v384_v57 = vld [vmem:[%s11298_s9 + $0x530] sm:$0xff] }
 0x2e3   : > { %10150 = vpow2.f32 %v6612_v9  ;;  %v1223_v40 = vadd.f32 %v12690_v24, %v1222_v35  ;;  %v8366_v30 = vpop.f32.mrb[221].mxu0  ;;  %8524 = vmatmul.mubr.f32.gmra.mrb[70].mxu0 %v381_v11  ;;  %v383_v9 = vld [vmem:[%s11298_s9 + $0x528] sm:$0xff] }
 0x2e4   : > { %v12840_v19 = vpop.eup %10132  ;;  %10152 = vrcp.f32 %v3697_v55  ;;  %8526 = vmatprep.mubr.msk.f32.mxu0 %vm11185_vm0, %v15399_v1  ;;  %v2038_v30 = vadd.f32 %v12690_v24, %v2037_v34 }
 0x2e5   : > { %15510 = vst [vmem:[#allocation13_spill] sm:$0xff] %v12840_v19  ;;  %v10135_v20 = vpop.eup %10134  ;;  %v6613_v15 = vmul.f32 -1.442695, %v1223_v40  ;;  %10154 = vrcp.f32 %v3858_v26  ;;  %v6775_v26 = vmul.f32 -1.442695, %v2033_v50  ;;  %v4737_v40 = vld [vmem:[%s15395_s3 + $0x198] sm:$0xff] }
 0x2e6   : > { %v12848_v7 = vpop.eup %10136  ;;  %v3698_v38 = vadd.f32 1.0, %v10135_v20  ;;  %v1227_v36 = vpop.f32.mrb[222].mxu0  ;;  %10156 = vpow2.f32 %v6773_v31  ;;  %5291 = vmatprep.mubr.f32.mxu1 %v4737_v40  ;;  %v4736_v20 = vld [vmem:[%s15395_s3 + $0x190] sm:$0xff] }
 0x2e7   : > { %v12854_v8 = vpop.eup %10138  ;;  %10158 = vpow2.f32 %v6613_v15  ;;  %v1228_v11 = vadd.f32 %v12690_v24, %v1227_v36  ;;  %v8369_v4 = vpop.f32.mrb[223].mxu0  ;;  %8527 = vmatmul.mubr.f32.gmra.mrb[72].mxu0 %v382_v13  ;;  %5292 = vmatmul.mubr.f32.gmra.mrb[24].mxu1 %v4736_v20 }
 0x2e8   : > { %15511 = vst [vmem:[#allocation14_spill] sm:$0xff] %v12854_v8  ;;  %v10141_v63 = vpop.eup %10140  ;;  %10160 = vrcp.f32 %v3698_v38  ;;  %8529 = vmatprep.mubr.msk.f32.mxu0 %vm11185_vm0, %v15399_v1  ;;  %v2042_v38 = vpop.f32.mrb[50].mxu1 }
 0x2e9   : > { %v10143_v55 = vpop.eup %10142  ;;  %v6614_v35 = vmul.f32 -1.442695, %v1228_v11  ;;  %v3859_v31 = vadd.f32 1.0, %v10141_v63  ;;  %10162 = vpow2.f32 %v6774_v18  ;;  %v8858_v39 = vpop.f32.mrb[51].mxu1  ;;  %v6776_v63 = vmul.f32 -1.442695, %v2038_v30 }
 0x2ea   : > { %v12866_v43 = vpop.eup %10144  ;;  %v3699_v13 = vadd.f32 1.0, %v10143_v55  ;;  %v1232_v6 = vpop.f32.mrb[224].mxu0  ;;  %10164 = vpow2.f32 %v6775_v26 }
 0x2eb   : > { %v10147_v15 = vpop.eup %10146  ;;  %10166 = vpow2.f32 %v6614_v35  ;;  %v1233_v18 = vadd.f32 %v12690_v24, %v1232_v6  ;;  %v8372_v12 = vpop.f32.mrb[225].mxu0  ;;  %8530 = vmatmul.mubr.f32.gmra.mrb[74].mxu0 %v383_v9  ;;  %v4760_v9 = vld [vmem:[%s15395_s3 + $0x250] sm:$0xff]  ;;  %v2043_v6 = vadd.f32 %v12690_v24, %v2042_v38 }
 0x2ec   : > { %v12874_v36 = vpop.eup %10148  ;;  %10168 = vrcp.f32 %v3699_v13  ;;  %8532 = vmatprep.mubr.msk.f32.mxu0 %vm11185_vm0, %v15399_v1  ;;  %v3860_v50 = vadd.f32 1.0, %v10147_v15  ;;  %v2047_v26 = vpop.f32.mrb[52].mxu1  ;;  %5296 = vmatprep.mubr.f32.mxu1 %v4760_v9  ;;  %v4759_v13 = vld [vmem:[%s15395_s3 + $0x248] sm:$0xff] }
 0x2ed   : > { %15512 = vst [vmem:[#allocation15_spill] sm:$0xff] %v12874_v36  ;;  %v10151_v11 = vpop.eup %10150  ;;  %v6615_v4 = vmul.f32 -1.442695, %v1233_v18  ;;  %10170 = vrcp.f32 %v3859_v31  ;;  %v8861_v31 = vpop.f32.mrb[53].mxu1  ;;  %5297 = vmatmul.mubr.f32.gmra.mrb[26].mxu1 %v4759_v13  ;;  %v385_v12 = vld [vmem:[%s11298_s9 + $0x538] sm:$0xff]  ;;  %v4782_v13 = vld [vmem:[%s15395_s3 + $0x300] sm:$0xff] }
 0x2ee   : > { %v12882_v55 = vpop.eup %10152  ;;  %v3700_v35 = vadd.f32 1.0, %v10151_v11  ;;  %v1237_v40 = vpop.f32.mrb[226].mxu0  ;;  %10172 = vrcp.f32 %v3860_v50  ;;  %v6777_v50 = vmul.f32 -1.442695, %v2043_v6  ;;  %v2048_v6 = vadd.f32 %v12690_v24, %v2047_v26 }
 0x2ef   : > { %v12888_v30 = vpop.eup %10154  ;;  %10174 = vpow2.f32 %v6615_v4  ;;  %v1238_v20 = vadd.f32 %v12690_v24, %v1237_v40  ;;  %v8375_v15 = vpop.f32.mrb[227].mxu0  ;;  %8533 = vmatmul.mubr.f32.gmra.mrb[76].mxu0 %v384_v57  ;;  %v4783_v4 = vld [vmem:[%s15395_s3 + $0x308] sm:$0xff] }
 0x2f0   : > { %15513 = vst [vmem:[#allocation16_spill] sm:$0xff] %v12888_v30  ;;  %v10157_v18 = vpop.eup %10156  ;;  %10176 = vrcp.f32 %v3700_v35  ;;  %8535 = vmatprep.mubr.msk.f32.mxu0 %vm11185_vm0, %v15399_v1  ;;  %5301 = vmatprep.mubr.f32.mxu1 %v4783_v4 }
 0x2f1   : > { %v10159_v38 = vpop.eup %10158  ;;  %v6616_v11 = vmul.f32 -1.442695, %v1238_v20  ;;  %v3861_v9 = vadd.f32 1.0, %v10157_v18  ;;  %10178 = vpow2.f32 %v6776_v63  ;;  %5302 = vmatmul.mubr.f32.gmra.mrb[28].mxu1 %v4782_v13  ;;  %v2052_v18 = vpop.f32.mrb[54].mxu1 }
 0x2f2   : > { %v12899_v57 = vpop.eup %10160  ;;  %v3701_v40 = vadd.f32 1.0, %v10159_v38  ;;  %v1242_v35 = vpop.f32.mrb[228].mxu0  ;;  %10180 = vpow2.f32 %v6777_v50  ;;  %v386_v50 = vld [vmem:[%s11298_s9 + $0x540] sm:$0xff] }
 0x2f3   : > { %v10163_v31 = vpop.eup %10162  ;;  %10182 = vpow2.f32 %v6616_v11  ;;  %v1243_v63 = vadd.f32 %v12690_v24, %v1242_v35  ;;  %v8378_v20 = vpop.f32.mrb[229].mxu0  ;;  %8536 = vmatmul.mubr.f32.gmra.mrb[78].mxu0 %v385_v12  ;;  %v4806_v12 = vld [vmem:[%s15395_s3 + $0x3c0] sm:$0xff] }
 0x2f4   : > { %v10165_v38 = vpop.eup %10164  ;;  %10184 = vrcp.f32 %v3701_v40  ;;  %8538 = vmatprep.mubr.msk.f32.mxu0 %vm11185_vm0, %v15399_v1  ;;  %v3862_v4 = vadd.f32 1.0, %v10163_v31  ;;  %v8864_v0 = vpop.f32.mrb[55].mxu1  ;;  %v6778_v40 = vmul.f32 -1.442695, %v2048_v6  ;;  %5306 = vmatprep.mubr.f32.mxu1 %v4806_v12  ;;  %v387_v6 = vld [vmem:[%s11298_s9 + $0x548] sm:$0xff] }
 0x2f5   : > { %v10167_v26 = vpop.eup %10166  ;;  %v6617_v39 = vmul.f32 -1.442695, %v1243_v63  ;;  %10186 = vrcp.f32 %v3861_v9  ;;  %v3863_v11 = vadd.f32 1.0, %v10165_v38  ;;  %v2057_v35 = vpop.f32.mrb[56].mxu1  ;;  %v4805_v0 = vld [vmem:[%s15395_s3 + $0x3b8] sm:$0xff]  ;;  %v2053_v9 = vadd.f32 %v12690_v24, %v2052_v18 }
 0x2f6   : > { %v12914_v20 = vpop.eup %10168  ;;  %v3702_v13 = vadd.f32 1.0, %v10167_v26  ;;  %v1247_v10 = vpop.f32.mrb[230].mxu0  ;;  %10188 = vrcp.f32 %v3862_v4  ;;  %5307 = vmatmul.mubr.f32.gmra.mrb[30].mxu1 %v4805_v0  ;;  %v2058_v4 = vadd.f32 %v12690_v24, %v2057_v35  ;;  %v4828_v35 = vld [vmem:[%s15395_s3 + $0x470] sm:$0xff] }
 0x2f7   : > { %v8867_v31 = vpop.f32.mrb[57].mxu1  ;;  %v12920_v63 = vpop.eup %10170  ;;  %10190 = vpow2.f32 %v6617_v39  ;;  %v1248_v38 = vadd.f32 %v12690_v24, %v1247_v10  ;;  %8539 = vmatmul.mubr.f32.gmra.mrb[80].mxu0 %v386_v50  ;;  %v4829_v39 = vld [vmem:[%s15395_s3 + $0x478] sm:$0xff]  ;;  %v6779_v10 = vmul.f32 -1.442695, %v2053_v9 }
 0x2f8   : > { %15514 = vst [vmem:[#allocation17_spill] sm:$0xff] %v12920_v63  ;;  %v8381_v2 = vpop.f32.mrb[231].mxu0  ;;  %v12923_v26 = vpop.eup %10172  ;;  %10192 = vrcp.f32 %v3702_v13  ;;  %8541 = vmatprep.mubr.msk.f32.mxu0 %vm11185_vm0, %v15399_v1  ;;  %5311 = vmatprep.mubr.f32.mxu1 %v4829_v39  ;;  %v6780_v32 = vmul.f32 -1.442695, %v2058_v4 }
 0x2f9   : > { %15515 = vst [vmem:[#allocation18_spill] sm:$0xff] %v12923_v26  ;;  %v10175_v12 = vpop.eup %10174  ;;  %v6618_v18 = vmul.f32 -1.442695, %v1248_v38  ;;  %10194 = vrcp.f32 %v3863_v11  ;;  %v2062_v2 = vpop.f32.mrb[58].mxu1 }
 0x2fa   : > { %v12934_v50 = vpop.eup %10176  ;;  %v3703_v13 = vadd.f32 1.0, %v10175_v12  ;;  %v1252_v0 = vpop.f32.mrb[232].mxu0  ;;  %10196 = vpow2.f32 %v6778_v40  ;;  %5312 = vmatmul.mubr.f32.gmra.mrb[32].mxu1 %v4828_v35  ;;  %v388_v40 = vld [vmem:[%s11298_s9 + $0x550] sm:$0xff]  ;;  %v2063_v4 = vadd.f32 %v12690_v24, %v2062_v2 }
 0x2fb   : > { %v10179_v11 = vpop.eup %10178  ;;  %10198 = vpow2.f32 %v6618_v18  ;;  %v1253_v31 = vadd.f32 %v12690_v24, %v1252_v0  ;;  %v8384_v38 = vpop.f32.mrb[233].mxu0  ;;  %8542 = vmatmul.mubr.f32.gmra.mrb[82].mxu0 %v387_v6  ;;  %v4852_v6 = vld [vmem:[%s15395_s3 + $0x530] sm:$0xff] }
 0x2fc   : > { %v10181_v12 = vpop.eup %10180  ;;  %10200 = vrcp.f32 %v3703_v13  ;;  %8544 = vmatprep.mubr.msk.f32.mxu0 %vm11185_vm0, %v15399_v1  ;;  %v3864_v39 = vadd.f32 1.0, %v10179_v11  ;;  %v8870_v45 = vpop.f32.mrb[59].mxu1  ;;  %5316 = vmatprep.mubr.f32.mxu1 %v4852_v6 }
 0x2fd   : > { %v10183_v62 = vpop.eup %10182  ;;  %v6619_v18 = vmul.f32 -1.442695, %v1253_v31  ;;  %v3865_v14 = vadd.f32 1.0, %v10181_v12  ;;  %10202 = vpow2.f32 %v6779_v10  ;;  %v2067_v0 = vpop.f32.mrb[60].mxu1  ;;  %v4851_v45 = vld [vmem:[%s15395_s3 + $0x528] sm:$0xff] }
 0x2fe   : > { %v12948_v35 = vpop.eup %10184  ;;  %v3704_v38 = vadd.f32 1.0, %v10183_v62  ;;  %v1257_v13 = vpop.f32.mrb[234].mxu0  ;;  %10204 = vrcp.f32 %v3864_v39  ;;  %v2068_v10 = vadd.f32 %v12690_v24, %v2067_v0  ;;  %5317 = vmatmul.mubr.f32.gmra.mrb[34].mxu1 %v4851_v45  ;;  %v389_v39 = vld [vmem:[%s11298_s9 + $0x558] sm:$0xff] }
 0x2ff   : > { %v8873_v11 = vpop.f32.mrb[61].mxu1  ;;  %v12955_v31 = vpop.eup %10186  ;;  %10206 = vpow2.f32 %v6619_v18  ;;  %v1258_v12 = vadd.f32 %v12690_v24, %v1257_v13  ;;  %8545 = vmatmul.mubr.f32.gmra.mrb[84].mxu0 %v388_v40  ;;  %v4875_v0 = vld [vmem:[%s15395_s3 + $0x5e8] sm:$0xff]  ;;  %v6781_v18 = vmul.f32 -1.442695, %v2063_v4  ;;  %v12978_v4 = vld [vmem:[%s15394_s2] ss:$0 sm:$0xff] }
 0x300   : > { %15516 = vst [vmem:[#allocation19_spill] sm:$0xff] %v12955_v31  ;;  %v8387_v46 = vpop.f32.mrb[235].mxu0  ;;  %v12958_v62 = vpop.eup %10188  ;;  %10208 = vrcp.f32 %v3704_v38  ;;  %8547 = vmatprep.mubr.msk.f32.mxu0 %vm11185_vm0, %v15399_v1  ;;  %5321 = vmatprep.mubr.f32.mxu1 %v4875_v0  ;;  %v4874_v38 = vld [vmem:[%s15395_s3 + $0x5e0] sm:$0xff] }
 0x301   : > { %15517 = vst [vmem:[#allocation20_spill] sm:$0xff] %v12958_v62  ;;  %v10191_v6 = vpop.eup %10190  ;;  %v6620_v2 = vmul.f32 -1.442695, %v1258_v12  ;;  %10210 = vrcp.f32 %v3865_v14  ;;  %v6782_v14 = vmul.f32 -1.442695, %v2068_v10  ;;  %v390_v10 = vld [vmem:[%s11298_s9 + $0x560] sm:$0xff] }
 0x302   : > { %v12968_v46 = vpop.eup %10192  ;;  %v3705_v40 = vadd.f32 1.0, %v10191_v6  ;;  %v1262_v13 = vpop.f32.mrb[236].mxu0  ;;  %10212 = vpow2.f32 %v6780_v32  ;;  %5322 = vmatmul.mubr.f32.gmra.mrb[36].mxu1 %v4874_v38 }
 0x303   : > { %v12973_v45 = vpop.eup %10194  ;;  %10214 = vpow2.f32 %v6620_v2  ;;  %v1263_v11 = vadd.f32 %v12978_v4, %v1262_v13  ;;  %v8390_v12 = vpop.f32.mrb[237].mxu0  ;;  %8548 = vmatmul.mubr.f32.gmra.mrb[86].mxu0 %v389_v39  ;;  %v4898_v39 = vld [vmem:[%s15395_s3 + $0x6a0] sm:$0xff] }
 0x304   : > { %15518 = vst [vmem:[#allocation21_spill] sm:$0xff] %v12973_v45  ;;  %v2072_v6 = vpop.f32.mrb[62].mxu1  ;;  %v10197_v0 = vpop.eup %10196  ;;  %10216 = vrcp.f32 %v3705_v40  ;;  %8550 = vmatprep.mubr.msk.f32.mxu0 %vm11185_vm0, %v15399_v1  ;;  %5326 = vmatprep.mubr.f32.mxu1 %v4898_v39  ;;  %v4897_v40 = vld [vmem:[%s15395_s3 + $0x698] sm:$0xff] }
 0x305   : > { %v8876_v2 = vpop.f32.mrb[63].mxu1  ;;  %v10199_v24 = vpop.eup %10198  ;;  %v6621_v5 = vmul.f32 -1.442695, %v1263_v11  ;;  %v3866_v9 = vadd.f32 1.0, %v10197_v0  ;;  %10218 = vpow2.f32 %v6781_v18 }
 0x306   : > { %v2077_v13 = vpop.f32.mrb[64].mxu1  ;;  %v10201_v12 = vpop.eup %10200  ;;  %v3706_v32 = vadd.f32 1.0, %v10199_v24  ;;  %10220 = vpow2.f32 %v6782_v14  ;;  %v2073_v2 = vadd.f32 %v12978_v4, %v2072_v6  ;;  %5327 = vmatmul.mubr.f32.gmra.mrb[38].mxu1 %v4897_v40  ;;  %v391_v14 = vld [vmem:[%s11298_s9 + $0x568] sm:$0xff] }
 0x307   : > { %v1267_v38 = vpop.f32.mrb[238].mxu0  ;;  %v2078_v11 = vadd.f32 %v12978_v4, %v2077_v13  ;;  %v8879_v18 = vpop.f32.mrb[65].mxu1  ;;  %10222 = vpow2.f32 %v6621_v5  ;;  %8551 = vmatmul.mubr.f32.gmra.mrb[88].mxu0 %v390_v10  ;;  %v4921_v5 = vld [vmem:[%s15395_s3 + $0x758] sm:$0x1] }
 0x308   : > { %v10203_v0 = vpop.eup %10202  ;;  %v1268_v15 = vadd.f32 %v12978_v4, %v1267_v38  ;;  %v8393_v34 = vpop.f32.mrb[239].mxu0  ;;  %10224 = vrcp.f32 %v3706_v32  ;;  %8553 = vmatprep.mubr.msk.f32.mxu0 %vm11185_vm0, %v15399_v1  ;;  %v6783_v13 = vmul.f32 -1.442695, %v2073_v2  ;;  %5331 = vmatprep.mubr.f32.mxu1 %v4921_v5  ;;  %v4920_v32 = vld [vmem:[%s15395_s3 + $0x750] sm:$0x1] }
 0x309   : > { %v12995_v24 = vpop.eup %10204  ;;  %v3867_v39 = vadd.f32 1.0, %v10203_v0  ;;  %10226 = vrcp.f32 %v3866_v9  ;;  %v2082_v34 = vpop.f32.mrb[66].mxu1 }
 0x30a   : > { %15519 = vst [vmem:[#allocation22_spill] sm:$0xff] %v12995_v24  ;;  %v10207_v37 = vpop.eup %10206  ;;  %v6622_v6 = vmul.f32 -1.442695, %v1268_v15  ;;  %v1272_v40 = vpop.f32.mrb[240].mxu0  ;;  %v6784_v15 = vmul.f32 -1.442695, %v2078_v11  ;;  %5332 = vmatmul.mubr.f32.gmra.mrb[40].mxu1 %v4920_v32 }
 0x30b   : > { %v10209_v10 = vpop.eup %10208  ;;  %v3707_v38 = vadd.f32 1.0, %v10207_v37  ;;  %10228 = vrcp.f32 %v3867_v39  ;;  %v1273_v18 = vadd.f32 %v12978_v4, %v1272_v40  ;;  %v8396_v2 = vpop.f32.mrb[241].mxu0  ;;  %8554 = vmatmul.mubr.f32.gmra.mrb[90].mxu0 %v391_v14  ;;  %v392_v39 = vld [vmem:[%s11298_s9 + $0x570] sm:$0xff] }
 0x30c   : > { %v13008_v9 = vpop.eup %10210  ;;  %10230 = vpow2.f32 %v6622_v6  ;;  %v9308_v0 = vpack.c.bf16 %v10209_v10, %v10201_v12  ;;  %8556 = vmatprep.mubr.msk.f32.mxu0 %vm11185_vm0, %v15399_v1  ;;  %v8882_v5 = vpop.f32.mrb[67].mxu1  ;;  %v4693_v6 = vld [vmem:[%s15395_s3 + $0x38] sm:$0xff] }
 0x30d   : > { %15520 = vst [vmem:[#allocation23_spill] sm:$0xff] %v13008_v9  ;;  %v10213_v37 = vpop.eup %10212  ;;  %10232 = vrcp.f32 %v3707_v38  ;;  %v6623_v28 = vmul.f32 -1.442695, %v1273_v18  ;;  %v2087_v14 = vpop.f32.mrb[68].mxu1  ;;  %5401 = vmatprep.mubr.f32.mxu1 %v4693_v6  ;;  %v2083_v38 = vadd.f32 %v12978_v4, %v2082_v34 }
 0x30e   : > { %v10215_v16 = vpop.eup %10214  ;;  %9309 = vmatprep.subr.bf16.mxu1 %v9308_v0  ;;  %v3868_v11 = vadd.f32 1.0, %v10213_v37  ;;  %10234 = vpow2.f32 %v6783_v13  ;;  %v1277_v40 = vpop.f32.mrb[242].mxu0  ;;  %v2088_v34 = vadd.f32 %v12978_v4, %v2087_v14 }
 0x30f   : > { %v10217_v12 = vpop.eup %10216  ;;  %v3708_v10 = vadd.f32 1.0, %v10215_v16  ;;  %9311 = vmatpush3.bf16.msra.mxu1 %v9310_v48  ;;  %10236 = vpow2.f32 %v6784_v15  ;;  %v8885_v32 = vpop.f32.mrb[69].mxu1  ;;  %v1278_v13 = vadd.f32 %v12978_v4, %v1277_v40  ;;  %8557 = vmatmul.mubr.f32.gmra.mrb[92].mxu0 %v392_v39  ;;  %v393_v16 = vld [vmem:[%s11298_s9 + $0x578] sm:$0xff]  ;;  %v6785_v6 = vmul.f32 -1.442695, %v2083_v38 }
 0x310   : > { %v10219_v18 = vpop.eup %10218  ;;  %10238 = vpow2.f32 %v6623_v28  ;;  %v8399_v2 = vpop.f32.mrb[243].mxu0  ;;  %8559 = vmatprep.mubr.msk.f32.mxu0 %vm11185_vm0, %v15399_v1 }
 0x311   : > { %v10221_v0 = vpop.eup %10220  ;;  %10240 = vrcp.f32 %v3708_v10  ;;  %v3869_v37 = vadd.f32 1.0, %v10219_v18  ;;  %v6624_v29 = vmul.f32 -1.442695, %v1278_v13  ;;  %v2092_v18 = vpop.f32.mrb[70].mxu1 }
 0x312   : > { %v10223_v54 = vpop.eup %10222  ;;  %10242 = vrcp.f32 %v3868_v11  ;;  %v3870_v48 = vadd.f32 1.0, %v10221_v0  ;;  %v1282_v5 = vpop.f32.mrb[244].mxu0  ;;  %v394_v11 = vld [vmem:[%s11298_s9 + $0x580] sm:$0xff] }
 0x313   : > { %v10225_v15 = vpop.eup %10224  ;;  %v3709_v28 = vadd.f32 1.0, %v10223_v54  ;;  %10244 = vrcp.f32 %v3869_v37  ;;  %v1283_v10 = vadd.f32 %v12978_v4, %v1282_v5  ;;  %v8402_v40 = vpop.f32.mrb[245].mxu0  ;;  %8560 = vmatmul.mubr.f32.gmra.mrb[94].mxu0 %v393_v16  ;;  %v6786_v37 = vmul.f32 -1.442695, %v2088_v34  ;;  %v395_v34 = vld [vmem:[%s11298_s9 + $0x588] sm:$0xff] }
 0x314   : > { %v13026_v39 = vpop.eup %10226  ;;  %10246 = vpow2.f32 %v6624_v29  ;;  %v9312_v32 = vpack.c.bf16 %v10225_v15, %v10217_v12  ;;  %8562 = vmatprep.mubr.msk.f32.mxu0 %vm11185_vm0, %v15399_v1  ;;  %v8888_v14 = vpop.f32.mrb[71].mxu1  ;;  %v15523_v15 = vpack.c.bf16 %v12791_v51, %v12786_v3 }
 0x315   : > { %15521 = vst [vmem:[#allocation24_spill] sm:$0xff] %v13026_v39  ;;  %v13029_v13 = vpop.eup %10228  ;;  %10248 = vrcp.f32 %v3709_v28  ;;  %v6625_v0 = vmul.f32 -1.442695, %v1283_v10  ;;  %v2097_v54 = vpop.f32.mrb[72].mxu1  ;;  %v2093_v28 = vadd.f32 %v12978_v4, %v2092_v18 }
 0x316   : > { %15522 = vst [vmem:[#allocation25_spill] sm:$0xff] %v13029_v13  ;;  %v10231_v2 = vpop.eup %10230  ;;  %9313 = vmatprep.subr.bf16.mxu1 %v9312_v32  ;;  %10250 = vrcp.f32 %v3870_v48  ;;  %v1287_v29 = vpop.f32.mrb[246].mxu0 }
 0x317   : > { %v10233_v12 = vpop.eup %10232  ;;  %v3710_v16 = vadd.f32 1.0, %v10231_v2  ;;  %9315 = vmatpush3.bf16.msra.mxu1 %v15523_v15  ;;  %10252 = vpow2.f32 %v6785_v6  ;;  %v8891_v5 = vpop.f32.mrb[73].mxu1  ;;  %v1288_v10 = vadd.f32 %v12978_v4, %v1287_v29  ;;  %8563 = vmatmul.mubr.f32.gmra.mrb[96].mxu0 %v394_v11  ;;  %v2098_v6 = vadd.f32 %v12978_v4, %v2097_v54 }
 0x318   : > { %v10235_v40 = vpop.eup %10234  ;;  %10254 = vpow2.f32 %v6625_v0  ;;  %v8405_v32 = vpop.f32.mrb[247].mxu0  ;;  %8565 = vmatprep.mubr.msk.f32.mxu0 %vm11185_vm0, %v15399_v1  ;;  %v6787_v29 = vmul.f32 -1.442695, %v2093_v28 }
 0x319   : > { %v10237_v48 = vpop.eup %10236  ;;  %10256 = vrcp.f32 %v3710_v16  ;;  %v3871_v14 = vadd.f32 1.0, %v10235_v40  ;;  %v6626_v3 = vmul.f32 -1.442695, %v1288_v10  ;;  %v2102_v32 = vpop.f32.mrb[74].mxu1 }
 0x31a   : > { %v10239_v2 = vpop.eup %10238  ;;  %v3872_v51 = vadd.f32 1.0, %v10237_v48  ;;  %10258 = vpow2.f32 %v6786_v37  ;;  %v1292_v15 = vpop.f32.mrb[248].mxu0  ;;  %v396_v37 = vld [vmem:[%s11298_s9 + $0x590] sm:$0xff] }
 0x31b   : > { %v10241_v18 = vpop.eup %10240  ;;  %v3711_v0 = vadd.f32 1.0, %v10239_v2  ;;  %10260 = vrcp.f32 %v3871_v14  ;;  %v1293_v16 = vadd.f32 %v12978_v4, %v1292_v15  ;;  %v8408_v5 = vpop.f32.mrb[249].mxu0  ;;  %8566 = vmatmul.mubr.f32.gmra.mrb[98].mxu0 %v395_v34  ;;  %v6788_v2 = vmul.f32 -1.442695, %v2098_v6 }
 0x31c   : > { %v13045_v11 = vpop.eup %10242  ;;  %10262 = vpow2.f32 %v6626_v3  ;;  %v9316_v40 = vpack.c.bf16 %v10241_v18, %v10233_v12  ;;  %8568 = vmatprep.mubr.msk.f32.mxu0 %vm11185_vm0, %v15399_v1  ;;  %v8894_v54 = vpop.f32.mrb[75].mxu1  ;;  %v2103_v15 = vadd.f32 %v12978_v4, %v2102_v32 }
 0x31d   : > { %15524 = vst [vmem:[#allocation26_spill] sm:$0xff] %v13045_v11  ;;  %v13048_v10 = vpop.eup %10244  ;;  %10264 = vrcp.f32 %v3711_v0  ;;  %v6627_v14 = vmul.f32 -1.442695, %v1293_v16  ;;  %v2107_v3 = vpop.f32.mrb[76].mxu1  ;;  %v15526_v0 = vpack.c.bf16 %v12813_v22, %v12805_v52 }
 0x31e   : > { %15525 = vst [vmem:[#allocation27_spill] sm:$0xff] %v13048_v10  ;;  %v10247_v48 = vpop.eup %10246  ;;  %9317 = vmatprep.subr.bf16.mxu1 %v9316_v40  ;;  %10266 = vrcp.f32 %v3872_v51  ;;  %v1297_v18 = vpop.f32.mrb[250].mxu0  ;;  %v397_v40 = vld [vmem:[%s11298_s9 + $0x598] sm:$0xff] }
 0x31f   : > { %v10249_v12 = vpop.eup %10248  ;;  %v3712_v34 = vadd.f32 1.0, %v10247_v48  ;;  %9319 = vmatpush3.bf16.msra.mxu1 %v15526_v0  ;;  %10268 = vpow2.f32 %v6787_v29  ;;  %v8897_v5 = vpop.f32.mrb[77].mxu1  ;;  %v1298_v16 = vadd.f32 %v12978_v4, %v1297_v18  ;;  %8569 = vmatmul.mubr.f32.gmra.mrb[100].mxu0 %v396_v37  ;;  %v6789_v48 = vmul.f32 -1.442695, %v2103_v15 }
 0x320   : > { %v13059_v54 = vpop.eup %10250  ;;  %10270 = vpow2.f32 %v6627_v14  ;;  %v8411_v51 = vpop.f32.mrb[251].mxu0  ;;  %8571 = vmatprep.mubr.msk.f32.mxu0 %vm11185_vm0, %v15399_v1  ;;  %v2108_v14 = vadd.f32 %v12978_v4, %v2107_v3 }
 0x321   : > { %15527 = vst [vmem:[#allocation28_spill] sm:$0xff] %v13059_v54  ;;  %v10253_v6 = vpop.eup %10252  ;;  %10272 = vrcp.f32 %v3712_v34  ;;  %v6628_v29 = vmul.f32 -1.442695, %v1298_v16  ;;  %v2112_v28 = vpop.f32.mrb[78].mxu1 }
 0x322   : > { %v10255_v22 = vpop.eup %10254  ;;  %v3873_v32 = vadd.f32 1.0, %v10253_v6  ;;  %10274 = vpow2.f32 %v6788_v2  ;;  %v1302_v37 = vpop.f32.mrb[252].mxu0  ;;  %v398_v2 = vld [vmem:[%s11298_s9 + $0x5a0] sm:$0xff] }
 0x323   : > { %v10257_v18 = vpop.eup %10256  ;;  %v3713_v0 = vadd.f32 1.0, %v10255_v22  ;;  %10276 = vpow2.f32 %v6789_v48  ;;  %v1303_v5 = vadd.f32 %v12978_v4, %v1302_v37  ;;  %v8414_v51 = vpop.f32.mrb[253].mxu0  ;;  %8572 = vmatmul.mubr.f32.gmra.mrb[102].mxu0 %v397_v40  ;;  %v6790_v48 = vmul.f32 -1.442695, %v2108_v14 }
 0x324   : > { %v10259_v34 = vpop.eup %10258  ;;  %10278 = vpow2.f32 %v6628_v29  ;;  %v9320_v15 = vpack.c.bf16 %v10257_v18, %v10249_v12  ;;  %8574 = vmatprep.mubr.msk.f32.mxu0 %vm11185_vm0, %v15399_v1  ;;  %v8900_v16 = vpop.f32.mrb[79].mxu1  ;;  %v15529_v18 = vpack.c.bf16 %v12835_v53, %v12827_v58 }
 0x325   : > { %v13069_v52 = vpop.eup %10260  ;;  %10280 = vrcp.f32 %v3713_v0  ;;  %v3874_v3 = vadd.f32 1.0, %v10259_v34  ;;  %v6629_v22 = vmul.f32 -1.442695, %v1303_v5  ;;  %v2117_v29 = vpop.f32.mrb[80].mxu1  ;;  %v2113_v0 = vadd.f32 %v12978_v4, %v2112_v28 }
 0x326   : > { %15528 = vst [vmem:[#allocation29_spill] sm:$0xff] %v13069_v52  ;;  %v10263_v6 = vpop.eup %10262  ;;  %9321 = vmatprep.subr.bf16.mxu1 %v9320_v15  ;;  %10282 = vrcp.f32 %v3873_v32  ;;  %v1307_v12 = vpop.f32.mrb[254].mxu0  ;;  %v399_v15 = vld [vmem:[%s11298_s9 + $0x5a8] sm:$0xff] }
 0x327   : > { %v10265_v37 = vpop.eup %10264  ;;  %v3714_v40 = vadd.f32 1.0, %v10263_v6  ;;  %9323 = vmatpush3.bf16.msra.mxu1 %v15529_v18  ;;  %10284 = vrcp.f32 %v3874_v3  ;;  %v8903_v51 = vpop.f32.mrb[81].mxu1  ;;  %v1308_v5 = vadd.f32 %v12978_v4, %v1307_v12  ;;  %8575 = vmatmul.mubr.f32.gmra.mrb[104].mxu0 %v398_v2  ;;  %v6791_v16 = vmul.f32 -1.442695, %v2113_v0 }
 0x328   : > { %v13078_v34 = vpop.eup %10266  ;;  %10286 = vpow2.f32 %v6629_v22  ;;  %v8417_v32 = vpop.f32.mrb[255].mxu0  ;;  %8577 = vmatprep.mubr.msk.f32.mxu0 %vm11185_vm0, %v15399_v1  ;;  %v2118_v2 = vadd.f32 %v12978_v4, %v2117_v29 }
 0x329   : > { %15530 = vst [vmem:[#allocation30_spill] sm:$0xff] %v13078_v34  ;;  %v10269_v14 = vpop.eup %10268  ;;  %10288 = vrcp.f32 %v3714_v40  ;;  %v6630_v28 = vmul.f32 -1.442695, %v1308_v5  ;;  %v2122_v32 = vpop.f32.mrb[82].mxu1 }
 0x32a   : > { %v10271_v53 = vpop.eup %10270  ;;  %v3875_v3 = vadd.f32 1.0, %v10269_v14  ;;  %10290 = vpow2.f32 %v6790_v48  ;;  %v1312_v12 = vpop.f32.mrb[0].mxu0  ;;  %v400_v48 = vld [vmem:[%s11298_s9 + $0x5b0] sm:$0xff] }
 0x32b   : > { %v10273_v6 = vpop.eup %10272  ;;  %v3715_v22 = vadd.f32 1.0, %v10271_v53  ;;  %10292 = vpow2.f32 %v6791_v16  ;;  %v1313_v18 = vadd.f32 %v12978_v4, %v1312_v12  ;;  %v8420_v51 = vpop.f32.mrb[1].mxu0  ;;  %8578 = vmatmul.mubr.f32.gmra.mrb[106].mxu0 %v399_v15 }
 0x32c   : > { %v10275_v40 = vpop.eup %10274  ;;  %10294 = vpow2.f32 %v6630_v28  ;;  %v9324_v0 = vpack.c.bf16 %v10273_v6, %v10265_v37  ;;  %8580 = vmatprep.mubr.msk.f32.mxu0 %vm11185_vm0, %v15399_v1  ;;  %v8906_v14 = vpop.f32.mrb[83].mxu1  ;;  %v15531_v37 = vpack.c.bf16 %v12866_v43, %v12848_v7  ;;  %v6792_v6 = vmul.f32 -1.442695, %v2118_v2  ;;  %v401_v7 = vld [vmem:[%s11298_s9 + $0x5b8] sm:$0xff] }
 0x32d   : > { %v10277_v58 = vpop.eup %10276  ;;  %10296 = vrcp.f32 %v3715_v22  ;;  %v3876_v5 = vadd.f32 1.0, %v10275_v40  ;;  %v6631_v16 = vmul.f32 -1.442695, %v1313_v18  ;;  %v2127_v28 = vpop.f32.mrb[84].mxu1  ;;  %v2123_v22 = vadd.f32 %v12978_v4, %v2122_v32 }
 0x32e   : > { %v10279_v53 = vpop.eup %10278  ;;  %9325 = vmatprep.subr.bf16.mxu1 %v9324_v0  ;;  %10298 = vrcp.f32 %v3875_v3  ;;  %v3877_v29 = vadd.f32 1.0, %v10277_v58  ;;  %v1317_v15 = vpop.f32.mrb[2].mxu0  ;;  %v2128_v43 = vadd.f32 %v12978_v4, %v2127_v28 }
 0x32f   : > { %v10281_v38 = vpop.eup %10280  ;;  %v3716_v12 = vadd.f32 1.0, %v10279_v53  ;;  %9327 = vmatpush3.bf16.msra.mxu1 %v15531_v37  ;;  %10300 = vrcp.f32 %v3876_v5  ;;  %v8909_v40 = vpop.f32.mrb[85].mxu1  ;;  %v1318_v3 = vadd.f32 %v12978_v4, %v1317_v15  ;;  %8581 = vmatmul.mubr.f32.gmra.mrb[108].mxu0 %v400_v48  ;;  %v6793_v32 = vmul.f32 -1.442695, %v2123_v22 }
 0x330   : > { %v13095_v51 = vpop.eup %10282  ;;  %10302 = vpow2.f32 %v6631_v16  ;;  %v8423_v58 = vpop.f32.mrb[3].mxu0  ;;  %8583 = vmatprep.mubr.msk.f32.mxu0 %vm11185_vm0, %v15399_v1 }
 0x331   : > { %15532 = vst [vmem:[#allocation31_spill] sm:$0xff] %v13095_v51  ;;  %v13098_v18 = vpop.eup %10284  ;;  %10304 = vrcp.f32 %v3716_v12  ;;  %v6632_v0 = vmul.f32 -1.442695, %v1318_v3  ;;  %v2132_v28 = vpop.f32.mrb[86].mxu1 }
 0x332   : > { %15533 = vst [vmem:[#allocation32_spill] sm:$0xff] %v13098_v18  ;;  %v10287_v2 = vpop.eup %10286  ;;  %10306 = vrcp.f32 %v3877_v29  ;;  %v1322_v48 = vpop.f32.mrb[4].mxu0  ;;  %v402_v29 = vld [vmem:[%s11298_s9 + $0x5c0] sm:$0xff] }
 0x333   : > { %v10289_v14 = vpop.eup %10288  ;;  %v3717_v53 = vadd.f32 1.0, %v10287_v2  ;;  %10308 = vpow2.f32 %v6792_v6  ;;  %v1323_v12 = vadd.f32 %v12978_v4, %v1322_v48  ;;  %v8426_v15 = vpop.f32.mrb[5].mxu0  ;;  %8584 = vmatmul.mubr.f32.gmra.mrb[110].mxu0 %v401_v7 }
 0x334   : > { %v10291_v16 = vpop.eup %10290  ;;  %10310 = vpow2.f32 %v6632_v0  ;;  %v9328_v37 = vpack.c.bf16 %v10289_v14, %v10281_v38  ;;  %8586 = vmatprep.mubr.msk.f32.mxu0 %vm11185_vm0, %v15399_v1  ;;  %v8912_v3 = vpop.f32.mrb[87].mxu1  ;;  %v6794_v0 = vmul.f32 -1.442695, %v2128_v43  ;;  %v15534_v14 = vpack.c.bf16 %v12899_v57, %v12882_v55  ;;  %v403_v55 = vld [vmem:[%s11298_s9 + $0x5c8] sm:$0xff] }
 0x335   : > { %v10293_v40 = vpop.eup %10292  ;;  %10312 = vrcp.f32 %v3717_v53  ;;  %v3878_v22 = vadd.f32 1.0, %v10291_v16  ;;  %v6633_v2 = vmul.f32 -1.442695, %v1323_v12  ;;  %v2137_v5 = vpop.f32.mrb[88].mxu1  ;;  %v2133_v53 = vadd.f32 %v12978_v4, %v2132_v28 }
 0x336   : > { %v10295_v58 = vpop.eup %10294  ;;  %9329 = vmatprep.subr.bf16.mxu1 %v9328_v37  ;;  %v3879_v6 = vadd.f32 1.0, %v10293_v40  ;;  %10314 = vpow2.f32 %v6793_v32  ;;  %v1327_v38 = vpop.f32.mrb[6].mxu0  ;;  %v2138_v16 = vadd.f32 %v12978_v4, %v2137_v5 }
 0x337   : > { %v10297_v48 = vpop.eup %10296  ;;  %v3718_v7 = vadd.f32 1.0, %v10295_v58  ;;  %9331 = vmatpush3.bf16.msra.mxu1 %v15534_v14  ;;  %10316 = vrcp.f32 %v3878_v22  ;;  %v8915_v15 = vpop.f32.mrb[89].mxu1  ;;  %v1328_v43 = vadd.f32 %v12978_v4, %v1327_v38  ;;  %8587 = vmatmul.mubr.f32.gmra.mrb[112].mxu0 %v402_v29  ;;  %v6795_v28 = vmul.f32 -1.442695, %v2133_v53  ;;  %v404_v53 = vld [vmem:[%s11298_s9 + $0x5d0] sm:$0xff] }
 0x338   : > { %v13115_v12 = vpop.eup %10298  ;;  %10318 = vpow2.f32 %v6633_v2  ;;  %v8429_v32 = vpop.f32.mrb[7].mxu0  ;;  %8589 = vmatprep.mubr.msk.f32.mxu0 %vm11185_vm0, %v15399_v1  ;;  %v6796_v29 = vmul.f32 -1.442695, %v2138_v16 }
 0x339   : > { %15535 = vst [vmem:[#allocation33_spill] sm:$0xff] %v13115_v12  ;;  %v13118_v37 = vpop.eup %10300  ;;  %10320 = vrcp.f32 %v3718_v7  ;;  %v6634_v40 = vmul.f32 -1.442695, %v1328_v43  ;;  %v2142_v15 = vpop.f32.mrb[90].mxu1 }
 0x33a   : > { %15536 = vst [vmem:[#allocation34_spill] sm:$0xff] %v13118_v37  ;;  %v10303_v57 = vpop.eup %10302  ;;  %10322 = vrcp.f32 %v3879_v6  ;;  %v1332_v58 = vpop.f32.mrb[8].mxu0 }
 0x33b   : > { %v10305_v22 = vpop.eup %10304  ;;  %v3719_v3 = vadd.f32 1.0, %v10303_v57  ;;  %10324 = vpow2.f32 %v6794_v0  ;;  %v1333_v7 = vadd.f32 %v12978_v4, %v1332_v58  ;;  %v8432_v38 = vpop.f32.mrb[9].mxu0  ;;  %8590 = vmatmul.mubr.f32.gmra.mrb[114].mxu0 %v403_v55  ;;  %v2143_v55 = vadd.f32 %v12978_v4, %v2142_v15 }
 0x33c   : > { %v13125_v2 = vpop.eup %10306  ;;  %10326 = vpow2.f32 %v6634_v40  ;;  %v9332_v14 = vpack.c.bf16 %v10305_v22, %v10297_v48  ;;  %8592 = vmatprep.mubr.msk.f32.mxu0 %vm11185_vm0, %v15399_v1  ;;  %v8918_v43 = vpop.f32.mrb[91].mxu1  ;;  %v15538_v48 = vpack.c.bf16 %v12934_v50, %v12914_v20  ;;  %v405_v20 = vld [vmem:[%s11298_s9 + $0x5d8] sm:$0xff] }
 0x33d   : > { %15537 = vst [vmem:[#allocation35_spill] sm:$0xff] %v13125_v2  ;;  %v10309_v6 = vpop.eup %10308  ;;  %10328 = vrcp.f32 %v3719_v3  ;;  %v6635_v57 = vmul.f32 -1.442695, %v1333_v7  ;;  %v2147_v16 = vpop.f32.mrb[92].mxu1  ;;  %v6797_v15 = vmul.f32 -1.442695, %v2143_v55 }
 0x33e   : > { %v10311_v32 = vpop.eup %10310  ;;  %9333 = vmatprep.subr.bf16.mxu1 %v9332_v14  ;;  %v3880_v0 = vadd.f32 1.0, %v10309_v6  ;;  %10330 = vpow2.f32 %v6795_v28  ;;  %v1337_v38 = vpop.f32.mrb[10].mxu0  ;;  %v2148_v22 = vadd.f32 %v12978_v4, %v2147_v16  ;;  %v406_v55 = vld [vmem:[%s11298_s9 + $0x5e0] sm:$0xff] }
 0x33f   : > { %v10313_v40 = vpop.eup %10312  ;;  %v3720_v58 = vadd.f32 1.0, %v10311_v32  ;;  %9335 = vmatpush3.bf16.msra.mxu1 %v15538_v48  ;;  %10332 = vpow2.f32 %v6796_v29  ;;  %v8921_v3 = vpop.f32.mrb[93].mxu1  ;;  %v1338_v7 = vadd.f32 %v12978_v4, %v1337_v38  ;;  %8593 = vmatmul.mubr.f32.gmra.mrb[116].mxu0 %v404_v53 }
 0x340   : > { %v10315_v43 = vpop.eup %10314  ;;  %10334 = vpow2.f32 %v6635_v57  ;;  %v8435_v28 = vpop.f32.mrb[11].mxu0  ;;  %8595 = vmatprep.mubr.msk.f32.mxu0 %vm11185_vm0, %v15399_v1  ;;  %v6798_v53 = vmul.f32 -1.442695, %v2148_v22 }
 0x341   : > { %v13137_v14 = vpop.eup %10316  ;;  %10336 = vrcp.f32 %v3720_v58  ;;  %v3881_v50 = vadd.f32 1.0, %v10315_v43  ;;  %v6636_v6 = vmul.f32 -1.442695, %v1338_v7  ;;  %v2152_v7 = vpop.f32.mrb[94].mxu1 }
 0x342   : > { %15539 = vst [vmem:[#allocation36_spill] sm:$0xff] %v13137_v14  ;;  %v10319_v29 = vpop.eup %10318  ;;  %10338 = vrcp.f32 %v3880_v0  ;;  %v1342_v38 = vpop.f32.mrb[12].mxu0 }
 0x343   : > { %v10321_v57 = vpop.eup %10320  ;;  %v3721_v16 = vadd.f32 1.0, %v10319_v29  ;;  %10340 = vrcp.f32 %v3881_v50  ;;  %v1343_v58 = vadd.f32 %v12978_v4, %v1342_v38  ;;  %v8438_v3 = vpop.f32.mrb[13].mxu0  ;;  %8596 = vmatmul.mubr.f32.gmra.mrb[118].mxu0 %v405_v20 }
 0x344   : > { %v13144_v48 = vpop.eup %10322  ;;  %10342 = vpow2.f32 %v6636_v6  ;;  %v9336_v43 = vpack.c.bf16 %v10321_v57, %v10313_v40  ;;  %8598 = vmatprep.mubr.msk.f32.mxu0 %vm11185_vm0, %v15399_v1  ;;  %v8924_v28 = vpop.f32.mrb[95].mxu1  ;;  %v15541_v40 = vpack.c.bf16 %v12968_v46, %v12948_v35  ;;  %v4692_v57 = vld [vmem:[%s15395_s3 + $0x30] sm:$0xff]  ;;  %v407_v35 = vld [vmem:[%s11298_s9 + $0x5e8] sm:$0xff] }
 0x345   : > { %15540 = vst [vmem:[#allocation37_spill] sm:$0xff] %v13144_v48  ;;  %v10325_v0 = vpop.eup %10324  ;;  %10344 = vrcp.f32 %v3721_v16  ;;  %v6637_v32 = vmul.f32 -1.442695, %v1343_v58  ;;  %v2157_v50 = vpop.f32.mrb[96].mxu1  ;;  %v2153_v16 = vadd.f32 %v12978_v4, %v2152_v7 }
 0x346   : > { %v10327_v29 = vpop.eup %10326  ;;  %9337 = vmatprep.subr.bf16.mxu1 %v9336_v43  ;;  %v3882_v22 = vadd.f32 1.0, %v10325_v0  ;;  %10346 = vpow2.f32 %v6797_v15  ;;  %v1347_v20 = vpop.f32.mrb[14].mxu0  ;;  %v2158_v7 = vadd.f32 %v12978_v4, %v2157_v50  ;;  %v408_v50 = vld [vmem:[%s11298_s9 + $0x5f0] sm:$0xff] }
 0x347   : > { %v13150_v6 = vpop.eup %10328  ;;  %v3722_v38 = vadd.f32 1.0, %v10327_v29  ;;  %9339 = vmatpush3.bf16.msra.mxu1 %v15541_v40  ;;  %10348 = vpow2.f32 %v6798_v53  ;;  %v8927_v58 = vpop.f32.mrb[97].mxu1  ;;  %v1348_v15 = vadd.f32 %v12978_v4, %v1347_v20  ;;  %8599 = vmatmul.mubr.f32.gmra.mrb[120].mxu0 %v406_v55  ;;  %v6799_v55 = vmul.f32 -1.442695, %v2153_v16 }
 0x348   : > { %v10331_v3 = vpop.eup %10330  ;;  %10350 = vpow2.f32 %v6637_v32  ;;  %v8441_v43 = vpop.f32.mrb[15].mxu0  ;;  %8601 = vmatprep.mubr.msk.f32.mxu0 %vm11185_vm0, %v15399_v1 }
 0x349   : > { %v10333_v0 = vpop.eup %10332  ;;  %10352 = vrcp.f32 %v3722_v38  ;;  %v3883_v46 = vadd.f32 1.0, %v10331_v3  ;;  %v6638_v29 = vmul.f32 -1.442695, %v1348_v15 }
 0x34a   : > { %v10335_v28 = vpop.eup %10334  ;;  %5402 = vmatmul.mubr.f32.vlgmr.msra.gmra.mrb[42].mxu1 %v4692_v57  ;;  %10354 = vrcp.f32 %v3882_v22  ;;  %v3884_v53 = vadd.f32 1.0, %v10333_v0  ;;  %v1352_v40 = vpop.f32.mrb[16].mxu0 }
 0x34b   : > { %v13164_v32 = vpop.eup %10336  ;;  %v3723_v20 = vadd.f32 1.0, %v10335_v28  ;;  %10356 = vrcp.f32 %v3883_v46  ;;  %v1353_v58 = vadd.f32 %v12978_v4, %v1352_v40  ;;  %v8444_v3 = vpop.f32.mrb[17].mxu0  ;;  %8602 = vmatmul.mubr.f32.gmra.mrb[122].mxu0 %v407_v35  ;;  %v6800_v28 = vmul.f32 -1.442695, %v2158_v7  ;;  %v409_v7 = vld [vmem:[%s11298_s9 + $0x5f8] sm:$0xff] }
 0x34c   : > { %v13166_v38 = vpop.eup %10338  ;;  %10358 = vpow2.f32 %v6638_v29  ;;  %v2162_v57 = vpop.f32.mrb[98].mxu1  ;;  %8604 = vmatprep.mubr.msk.f32.mxu0 %vm11185_vm0, %v15399_v1 }
 0x34d   : > { %15542 = vst [vmem:[#allocation38_spill] sm:$0xff] %v13166_v38  ;;  %v13171_v15 = vpop.eup %10340  ;;  %10360 = vrcp.f32 %v3723_v20  ;;  %v8930_v43 = vpop.f32.mrb[99].mxu1  ;;  %v6639_v46 = vmul.f32 -1.442695, %v1353_v58  ;;  %v2163_v20 = vadd.f32 %v12978_v4, %v2162_v57 }
 0x34e   : > { %15543 = vst [vmem:[#allocation39_spill] sm:$0xff] %v13171_v15  ;;  %v10343_v0 = vpop.eup %10342  ;;  %10362 = vrcp.f32 %v3884_v53  ;;  %v2167_v35 = vpop.f32.mrb[100].mxu1  ;;  %v15544_v53 = vmov 0.0  }
 0x34f   : > { %v13178_v29 = vpop.eup %10344  ;;  %v3724_v40 = vadd.f32 1.0, %v10343_v0  ;;  %v1357_v3 = vpop.f32.mrb[18].mxu0  ;;  %10364 = vpow2.f32 %v6799_v55  ;;  %8605 = vmatmul.mubr.f32.gmra.mrb[124].mxu0 %v408_v50  ;;  %v2168_v55 = vadd.f32 %v12978_v4, %v2167_v35 }
 0x350   : > { %v8933_v5 = vpop.f32.mrb[101].mxu1  ;;  %v10347_v22 = vpop.eup %10346  ;;  %10366 = vpow2.f32 %v6639_v46  ;;  %v1358_v43 = vadd.f32 %v12978_v4, %v1357_v3  ;;  %8607 = vmatprep.mubr.msk.f32.mxu0 %vm11185_vm0, %v15544_v53 }
 0x351   : > { %v8447_v1 = vpop.f32.mrb[19].mxu0  ;;  %v10349_v16 = vpop.eup %10348  ;;  %10368 = vrcp.f32 %v3724_v40  ;;  %v3885_v58 = vadd.f32 1.0, %v10347_v22 }
 0x352   : > { %v10351_v48 = vpop.eup %10350  ;;  %v6640_v0 = vmul.f32 -1.442695, %v1358_v43  ;;  %v3886_v38 = vadd.f32 1.0, %v10349_v16  ;;  %10370 = vpow2.f32 %v6800_v28  ;;  %v1362_v46 = vpop.f32.mrb[20].mxu0  ;;  %v6801_v1 = vmul.f32 -1.442695, %v2163_v20 }
 0x353   : > { %v13186_v5 = vpop.eup %10352  ;;  %v3725_v57 = vadd.f32 1.0, %v10351_v48  ;;  %10372 = vrcp.f32 %v3885_v58  ;;  %v1363_v40 = vadd.f32 %v12978_v4, %v1362_v46  ;;  %v8450_v3 = vpop.f32.mrb[21].mxu0  ;;  %8608 = vmatmul.mubr.f32.gmra.mrb[126].mxu0 %v409_v7  ;;  %v410_v48 = vld [vmem:[%s11298_s9 + $0x600] sm:$0xff] }
 0x354   : > { %v13188_v50 = vpop.eup %10354  ;;  %10374 = vpow2.f32 %v6640_v0  ;;  %v2172_v16 = vpop.f32.mrb[102].mxu1  ;;  %8610 = vmatprep.mubr.msk.f32.mxu0 %vm11185_vm0, %v15544_v53  ;;  %v6802_v0 = vmul.f32 -1.442695, %v2168_v55 }
 0x355   : > { %15545 = vst [vmem:[#allocation40_spill] sm:$0xff] %v13188_v50  ;;  %v13193_v28 = vpop.eup %10356  ;;  %10376 = vrcp.f32 %v3725_v57  ;;  %v8936_v35 = vpop.f32.mrb[103].mxu1  ;;  %v6641_v58 = vmul.f32 -1.442695, %v1363_v40  ;;  %v2173_v57 = vadd.f32 %v12978_v4, %v2172_v16 }
 0x356   : > { %15546 = vst [vmem:[#allocation41_spill] sm:$0xff] %v13193_v28  ;;  %v10359_v43 = vpop.eup %10358  ;;  %10378 = vrcp.f32 %v3886_v38  ;;  %v2177_v7 = vpop.f32.mrb[104].mxu1  ;;  %v411_v38 = vld [vmem:[%s11298_s9 + $0x608] sm:$0xff] }
 0x357   : > { %v13200_v46 = vpop.eup %10360  ;;  %v3726_v3 = vadd.f32 1.0, %v10359_v43  ;;  %v1367_v22 = vpop.f32.mrb[22].mxu0  ;;  %10380 = vpow2.f32 %v6801_v1  ;;  %8611 = vmatmul.mubr.f32.gmra.mrb[128].mxu0 %v410_v48  ;;  %v6803_v55 = vmul.f32 -1.442695, %v2173_v57  ;;  %v13217_v57 = vld [vmem:[%s15394_s2] ss:$0 sm:$0xff] }
 0x358   : > { %v8939_v31 = vpop.f32.mrb[105].mxu1  ;;  %v13203_v62 = vpop.eup %10362  ;;  %10382 = vpow2.f32 %v6641_v58  ;;  %v1368_v35 = vadd.f32 %v12978_v4, %v1367_v22  ;;  %8613 = vmatprep.mubr.msk.f32.mxu0 %vm11185_vm0, %v15544_v53  ;;  %v2178_v58 = vadd.f32 %v12978_v4, %v2177_v7 }
 0x359   : > { %15547 = vst [vmem:[#allocation42_spill] sm:$0xff] %v13203_v62  ;;  %v8453_v20 = vpop.f32.mrb[23].mxu0  ;;  %v10365_v40 = vpop.eup %10364  ;;  %10384 = vrcp.f32 %v3726_v3 }
 0x35a   : > { %v10367_v43 = vpop.eup %10366  ;;  %v6642_v16 = vmul.f32 -1.442695, %v1368_v35  ;;  %v3887_v31 = vadd.f32 1.0, %v10365_v40  ;;  %10386 = vpow2.f32 %v6802_v0  ;;  %v1372_v20 = vpop.f32.mrb[24].mxu0  ;;  %v412_v40 = vld [vmem:[%s11298_s9 + $0x610] sm:$0xff] }
 0x35b   : > { %v13212_v22 = vpop.eup %10368  ;;  %v3727_v48 = vadd.f32 1.0, %v10367_v43  ;;  %10388 = vpow2.f32 %v6803_v55  ;;  %v1373_v1 = vadd.f32 %v13217_v57, %v1372_v20  ;;  %v8456_v35 = vpop.f32.mrb[25].mxu0  ;;  %8614 = vmatmul.mubr.f32.gmra.mrb[130].mxu0 %v411_v38  ;;  %v6804_v62 = vmul.f32 -1.442695, %v2178_v58 }
 0x35c   : > { %v10371_v3 = vpop.eup %10370  ;;  %10390 = vpow2.f32 %v6642_v16  ;;  %v2182_v0 = vpop.f32.mrb[106].mxu1  ;;  %8616 = vmatprep.mubr.msk.f32.mxu0 %vm11185_vm0, %v15544_v53 }
 0x35d   : > { %v13222_v7 = vpop.eup %10372  ;;  %10392 = vrcp.f32 %v3727_v48  ;;  %v3888_v55 = vadd.f32 1.0, %v10371_v3  ;;  %v8942_v43 = vpop.f32.mrb[107].mxu1  ;;  %v6643_v28 = vmul.f32 -1.442695, %v1373_v1  ;;  %v2183_v15 = vadd.f32 %v13217_v57, %v2182_v0 }
 0x35e   : > { %15548 = vst [vmem:[#allocation43_spill] sm:$0xff] %v13222_v7  ;;  %v10375_v16 = vpop.eup %10374  ;;  %10394 = vrcp.f32 %v3887_v31  ;;  %v2187_v20 = vpop.f32.mrb[108].mxu1  ;;  %v413_v31 = vld [vmem:[%s11298_s9 + $0x618] sm:$0xff] }
 0x35f   : > { %v13227_v38 = vpop.eup %10376  ;;  %v3728_v35 = vadd.f32 1.0, %v10375_v16  ;;  %v1377_v4 = vpop.f32.mrb[26].mxu0  ;;  %10396 = vrcp.f32 %v3888_v55  ;;  %8617 = vmatmul.mubr.f32.gmra.mrb[132].mxu0 %v412_v40  ;;  %v6805_v58 = vmul.f32 -1.442695, %v2183_v15  ;;  %v4715_v15 = vld [vmem:[%s15395_s3 + $0xe8] sm:$0xff] }
 0x360   : > { %v8945_v48 = vpop.f32.mrb[109].mxu1  ;;  %v13230_v50 = vpop.eup %10378  ;;  %10398 = vpow2.f32 %v6643_v28  ;;  %v1378_v3 = vadd.f32 %v13217_v57, %v1377_v4  ;;  %8619 = vmatprep.mubr.msk.f32.mxu0 %vm11185_vm0, %v15544_v53  ;;  %v4716_v28 = vld [vmem:[%s15395_s3 + $0xf0] sm:$0xff] }
 0x361   : > { %15549 = vst [vmem:[#allocation44_spill] sm:$0xff] %v13230_v50  ;;  %v8459_v43 = vpop.f32.mrb[27].mxu0  ;;  %v10381_v1 = vpop.eup %10380  ;;  %10400 = vrcp.f32 %v3728_v35  ;;  %5406 = vmatprep.mubr.f32.mxu1 %v4716_v28 }
 0x362   : > { %v10383_v16 = vpop.eup %10382  ;;  %v6644_v0 = vmul.f32 -1.442695, %v1378_v3  ;;  %v3889_v48 = vadd.f32 1.0, %v10381_v1  ;;  %10402 = vpow2.f32 %v6804_v62  ;;  %v1382_v35 = vpop.f32.mrb[28].mxu0  ;;  %v2188_v43 = vadd.f32 %v13217_v57, %v2187_v20  ;;  %5407 = vmatmul.mubr.f32.gmra.mrb[44].mxu1 %v4715_v15  ;;  %v414_v20 = vld [vmem:[%s11298_s9 + $0x620] sm:$0xff] }
 0x363   : > { %v13241_v4 = vpop.eup %10384  ;;  %v3729_v40 = vadd.f32 1.0, %v10383_v16  ;;  %10404 = vpow2.f32 %v6805_v58  ;;  %v1383_v62 = vadd.f32 %v13217_v57, %v1382_v35  ;;  %v8462_v1 = vpop.f32.mrb[29].mxu0  ;;  %8620 = vmatmul.mubr.f32.gmra.mrb[134].mxu0 %v413_v31  ;;  %v4739_v31 = vld [vmem:[%s15395_s3 + $0x1a8] sm:$0xff] }
 0x364   : > { %v10387_v3 = vpop.eup %10386  ;;  %10406 = vpow2.f32 %v6644_v0  ;;  %v2192_v16 = vpop.f32.mrb[110].mxu1  ;;  %8622 = vmatprep.mubr.msk.f32.mxu0 %vm11185_vm0, %v15544_v53  ;;  %5411 = vmatprep.mubr.f32.mxu1 %v4739_v31 }
 0x365   : > { %v10389_v7 = vpop.eup %10388  ;;  %10408 = vrcp.f32 %v3729_v40  ;;  %v3890_v58 = vadd.f32 1.0, %v10387_v3  ;;  %v8948_v28 = vpop.f32.mrb[111].mxu1  ;;  %v6645_v2 = vmul.f32 -1.442695, %v1383_v62  ;;  %v6806_v40 = vmul.f32 -1.442695, %v2188_v43 }
 0x366   : > { %v10391_v50 = vpop.eup %10390  ;;  %10410 = vrcp.f32 %v3889_v48  ;;  %v3891_v0 = vadd.f32 1.0, %v10389_v7  ;;  %v2197_v35 = vpop.f32.mrb[112].mxu1  ;;  %v2193_v3 = vadd.f32 %v13217_v57, %v2192_v16  ;;  %v4738_v48 = vld [vmem:[%s15395_s3 + $0x1a0] sm:$0xff] }
 0x367   : > { %v13256_v1 = vpop.eup %10392  ;;  %v3730_v15 = vadd.f32 1.0, %v10391_v50  ;;  %v1387_v55 = vpop.f32.mrb[30].mxu0  ;;  %10412 = vrcp.f32 %v3890_v58  ;;  %8623 = vmatmul.mubr.f32.gmra.mrb[136].mxu0 %v414_v20  ;;  %5412 = vmatmul.mubr.f32.gmra.mrb[46].mxu1 %v4738_v48  ;;  %v415_v43 = vld [vmem:[%s11298_s9 + $0x628] sm:$0xff]  ;;  %v2198_v16 = vadd.f32 %v13217_v57, %v2197_v35 }
 0x368   : > { %v8951_v7 = vpop.f32.mrb[113].mxu1  ;;  %v13262_v62 = vpop.eup %10394  ;;  %10414 = vpow2.f32 %v6645_v2  ;;  %v1388_v28 = vadd.f32 %v13217_v57, %v1387_v55  ;;  %8625 = vmatprep.mubr.msk.f32.mxu0 %vm11185_vm0, %v15544_v53  ;;  %v4762_v2 = vld [vmem:[%s15395_s3 + $0x260] sm:$0xff]  ;;  %v4761_v35 = vld [vmem:[%s15395_s3 + $0x258] sm:$0xff] }
 0x369   : > { %15550 = vst [vmem:[#allocation45_spill] sm:$0xff] %v13262_v62  ;;  %v8465_v14 = vpop.f32.mrb[31].mxu0  ;;  %v13265_v50 = vpop.eup %10396  ;;  %10416 = vrcp.f32 %v3730_v15  ;;  %v6807_v7 = vmul.f32 -1.442695, %v2193_v3  ;;  %5416 = vmatprep.mubr.f32.mxu1 %v4762_v2  ;;  %v6808_v62 = vmul.f32 -1.442695, %v2198_v16 }
 0x36a   : > { %15551 = vst [vmem:[#allocation46_spill] sm:$0xff] %v13265_v50  ;;  %v10399_v58 = vpop.eup %10398  ;;  %v6646_v31 = vmul.f32 -1.442695, %v1388_v28  ;;  %10418 = vrcp.f32 %v3891_v0  ;;  %v1392_v15 = vpop.f32.mrb[32].mxu0 }
 0x36b   : > { %v13276_v55 = vpop.eup %10400  ;;  %v3731_v20 = vadd.f32 1.0, %v10399_v58  ;;  %10420 = vpow2.f32 %v6806_v40  ;;  %v1393_v3 = vadd.f32 %v13217_v57, %v1392_v15  ;;  %v8468_v48 = vpop.f32.mrb[33].mxu0  ;;  %8626 = vmatmul.mubr.f32.gmra.mrb[138].mxu0 %v415_v43  ;;  %5417 = vmatmul.mubr.f32.gmra.mrb[48].mxu1 %v4761_v35  ;;  %v416_v40 = vld [vmem:[%s11298_s9 + $0x630] sm:$0xff]  ;;  %v4785_v43 = vld [vmem:[%s15395_s3 + $0x318] sm:$0xff] }
 0x36c   : > { %v10403_v0 = vpop.eup %10402  ;;  %10422 = vpow2.f32 %v6646_v31  ;;  %v2202_v14 = vpop.f32.mrb[114].mxu1  ;;  %8628 = vmatprep.mubr.msk.f32.mxu0 %vm11185_vm0, %v15544_v53  ;;  %5421 = vmatprep.mubr.f32.mxu1 %v4785_v43 }
 0x36d   : > { %v10405_v58 = vpop.eup %10404  ;;  %10424 = vrcp.f32 %v3731_v20  ;;  %v3892_v2 = vadd.f32 1.0, %v10403_v0  ;;  %v8954_v50 = vpop.f32.mrb[115].mxu1  ;;  %v6647_v31 = vmul.f32 -1.442695, %v1393_v3  ;;  %v2203_v0 = vadd.f32 %v13217_v57, %v2202_v14  ;;  %v417_v14 = vld [vmem:[%s11298_s9 + $0x638] sm:$0xff] }
 0x36e   : > { %v10407_v63 = vpop.eup %10406  ;;  %v3893_v26 = vadd.f32 1.0, %v10405_v58  ;;  %10426 = vpow2.f32 %v6807_v7  ;;  %v2207_v15 = vpop.f32.mrb[116].mxu1  ;;  %v4784_v50 = vld [vmem:[%s15395_s3 + $0x310] sm:$0xff] }
 0x36f   : > { %v13290_v35 = vpop.eup %10408  ;;  %v3732_v48 = vadd.f32 1.0, %v10407_v63  ;;  %v1397_v20 = vpop.f32.mrb[34].mxu0  ;;  %10428 = vrcp.f32 %v3892_v2  ;;  %v2208_v16 = vadd.f32 %v13217_v57, %v2207_v15  ;;  %8629 = vmatmul.mubr.f32.gmra.mrb[140].mxu0 %v416_v40  ;;  %5422 = vmatmul.mubr.f32.gmra.mrb[50].mxu1 %v4784_v50  ;;  %v6809_v15 = vmul.f32 -1.442695, %v2203_v0 }
 0x370   : > { %v8957_v7 = vpop.f32.mrb[117].mxu1  ;;  %v13297_v3 = vpop.eup %10410  ;;  %10430 = vpow2.f32 %v6647_v31  ;;  %v1398_v58 = vadd.f32 %v13217_v57, %v1397_v20  ;;  %8631 = vmatprep.mubr.msk.f32.mxu0 %vm11185_vm0, %v15544_v53  ;;  %v4808_v31 = vld [vmem:[%s15395_s3 + $0x3d0] sm:$0xff] }
 0x371   : > { %15552 = vst [vmem:[#allocation47_spill] sm:$0xff] %v13297_v3  ;;  %v8471_v28 = vpop.f32.mrb[35].mxu0  ;;  %v13300_v63 = vpop.eup %10412  ;;  %10432 = vrcp.f32 %v3732_v48  ;;  %v6810_v48 = vmul.f32 -1.442695, %v2208_v16  ;;  %5426 = vmatprep.mubr.f32.mxu1 %v4808_v31 }
 0x372   : > { %15553 = vst [vmem:[#allocation48_spill] sm:$0xff] %v13300_v63  ;;  %v10415_v2 = vpop.eup %10414  ;;  %v6648_v43 = vmul.f32 -1.442695, %v1398_v58  ;;  %10434 = vrcp.f32 %v3893_v26  ;;  %v1402_v50 = vpop.f32.mrb[36].mxu0  ;;  %v4807_v26 = vld [vmem:[%s15395_s3 + $0x3c8] sm:$0xff] }
 0x373   : > { %v13310_v40 = vpop.eup %10416  ;;  %v3733_v20 = vadd.f32 1.0, %v10415_v2  ;;  %10436 = vpow2.f32 %v6808_v62  ;;  %v1403_v7 = vadd.f32 %v13217_v57, %v1402_v50  ;;  %v8474_v58 = vpop.f32.mrb[37].mxu0  ;;  %8632 = vmatmul.mubr.f32.gmra.mrb[142].mxu0 %v417_v14  ;;  %5427 = vmatmul.mubr.f32.gmra.mrb[52].mxu1 %v4807_v26  ;;  %v418_v62 = vld [vmem:[%s11298_s9 + $0x640] sm:$0xff]  ;;  %v4831_v14 = vld [vmem:[%s15395_s3 + $0x488] sm:$0xff] }
 0x374   : > { %v13315_v0 = vpop.eup %10418  ;;  %10438 = vpow2.f32 %v6648_v43  ;;  %v2212_v2 = vpop.f32.mrb[118].mxu1  ;;  %8634 = vmatprep.mubr.msk.f32.mxu0 %vm11185_vm0, %v15544_v53  ;;  %5431 = vmatprep.mubr.f32.mxu1 %v4831_v14 }
 0x375   : > { %15554 = vst [vmem:[#allocation49_spill] sm:$0xff] %v13315_v0  ;;  %v10421_v3 = vpop.eup %10420  ;;  %10440 = vrcp.f32 %v3733_v20  ;;  %v8960_v16 = vpop.f32.mrb[119].mxu1  ;;  %v6649_v63 = vmul.f32 -1.442695, %v1403_v7  ;;  %v2213_v20 = vadd.f32 %v13217_v57, %v2212_v2  ;;  %v4830_v7 = vld [vmem:[%s15395_s3 + $0x480] sm:$0xff] }
 0x376   : > { %v10423_v31 = vpop.eup %10422  ;;  %v3894_v12 = vadd.f32 1.0, %v10421_v3  ;;  %10442 = vpow2.f32 %v6809_v15  ;;  %v2217_v43 = vpop.f32.mrb[120].mxu1 }
 0x377   : > { %v13326_v50 = vpop.eup %10424  ;;  %v3734_v26 = vadd.f32 1.0, %v10423_v31  ;;  %v1407_v58 = vpop.f32.mrb[38].mxu0  ;;  %10444 = vpow2.f32 %v6810_v48  ;;  %v2218_v3 = vadd.f32 %v13217_v57, %v2217_v43  ;;  %8635 = vmatmul.mubr.f32.gmra.mrb[144].mxu0 %v418_v62  ;;  %5432 = vmatmul.mubr.f32.gmra.mrb[54].mxu1 %v4830_v7  ;;  %v419_v48 = vld [vmem:[%s11298_s9 + $0x648] sm:$0xff]  ;;  %v6811_v43 = vmul.f32 -1.442695, %v2213_v20 }
 0x378   : > { %v8963_v15 = vpop.f32.mrb[121].mxu1  ;;  %v10427_v16 = vpop.eup %10426  ;;  %10446 = vpow2.f32 %v6649_v63  ;;  %v1408_v28 = vadd.f32 %v13217_v57, %v1407_v58  ;;  %8637 = vmatprep.mubr.msk.f32.mxu0 %vm11185_vm0, %v15544_v53  ;;  %v4854_v63 = vld [vmem:[%s15395_s3 + $0x540] sm:$0xff] }
 0x379   : > { %v8477_v37 = vpop.f32.mrb[39].mxu0  ;;  %v13334_v31 = vpop.eup %10428  ;;  %10448 = vrcp.f32 %v3734_v26  ;;  %v3895_v2 = vadd.f32 1.0, %v10427_v16  ;;  %v6812_v7 = vmul.f32 -1.442695, %v2218_v3  ;;  %5436 = vmatprep.mubr.f32.mxu1 %v4854_v63  ;;  %v420_v3 = vld [vmem:[%s11298_s9 + $0x650] sm:$0xff] }
 0x37a   : > { %15555 = vst [vmem:[#allocation50_spill] sm:$0xff] %v13334_v31  ;;  %v10431_v14 = vpop.eup %10430  ;;  %v6650_v36 = vmul.f32 -1.442695, %v1408_v28  ;;  %10450 = vrcp.f32 %v3894_v12  ;;  %v1412_v26 = vpop.f32.mrb[40].mxu0  ;;  %v4853_v12 = vld [vmem:[%s15395_s3 + $0x538] sm:$0xff] }
 0x37b   : > { %v13344_v62 = vpop.eup %10432  ;;  %v3735_v58 = vadd.f32 1.0, %v10431_v14  ;;  %10452 = vrcp.f32 %v3895_v2  ;;  %v1413_v20 = vadd.f32 %v13217_v57, %v1412_v26  ;;  %v8480_v15 = vpop.f32.mrb[41].mxu0  ;;  %8638 = vmatmul.mubr.f32.gmra.mrb[146].mxu0 %v419_v48  ;;  %5437 = vmatmul.mubr.f32.gmra.mrb[56].mxu1 %v4853_v12 }
 0x37c   : > { %v13349_v28 = vpop.eup %10434  ;;  %10454 = vpow2.f32 %v6650_v36  ;;  %v2222_v14 = vpop.f32.mrb[122].mxu1  ;;  %8640 = vmatprep.mubr.msk.f32.mxu0 %vm11185_vm0, %v15544_v53  ;;  %v4877_v36 = vld [vmem:[%s15395_s3 + $0x5f8] sm:$0xff] }
 0x37d   : > { %15556 = vst [vmem:[#allocation51_spill] sm:$0xff] %v13349_v28  ;;  %v10437_v37 = vpop.eup %10436  ;;  %10456 = vrcp.f32 %v3735_v58  ;;  %v8966_v2 = vpop.f32.mrb[123].mxu1  ;;  %v6651_v0 = vmul.f32 -1.442695, %v1413_v20  ;;  %5441 = vmatprep.mubr.f32.mxu1 %v4877_v36  ;;  %v2223_v58 = vadd.f32 %v13217_v57, %v2222_v14  ;;  %v4876_v20 = vld [vmem:[%s15395_s3 + $0x5f0] sm:$0xff] }
 0x37e   : > { %v10439_v63 = vpop.eup %10438  ;;  %v3896_v31 = vadd.f32 1.0, %v10437_v37  ;;  %10458 = vpow2.f32 %v6811_v43  ;;  %v2227_v48 = vpop.f32.mrb[124].mxu1 }
 0x37f   : > { %v13360_v26 = vpop.eup %10440  ;;  %v3736_v12 = vadd.f32 1.0, %v10439_v63  ;;  %v1417_v15 = vpop.f32.mrb[42].mxu0  ;;  %10460 = vpow2.f32 %v6812_v7  ;;  %8641 = vmatmul.mubr.f32.gmra.mrb[148].mxu0 %v420_v3  ;;  %5442 = vmatmul.mubr.f32.gmra.mrb[58].mxu1 %v4876_v20  ;;  %v421_v7 = vld [vmem:[%s11298_s9 + $0x658] sm:$0xff]  ;;  %v2228_v14 = vadd.f32 %v13217_v57, %v2227_v48 }
 0x380   : > { %v8969_v37 = vpop.f32.mrb[125].mxu1  ;;  %v10443_v43 = vpop.eup %10442  ;;  %10462 = vpow2.f32 %v6651_v0  ;;  %v1418_v2 = vadd.f32 %v13217_v57, %v1417_v15  ;;  %8643 = vmatprep.mubr.msk.f32.mxu0 %vm11185_vm0, %v15544_v53  ;;  %v4900_v0 = vld [vmem:[%s15395_s3 + $0x6b0] sm:$0xff]  ;;  %v4899_v48 = vld [vmem:[%s15395_s3 + $0x6a8] sm:$0xff] }
 0x381   : > { %v8483_v16 = vpop.f32.mrb[43].mxu0  ;;  %v10445_v30 = vpop.eup %10444  ;;  %10464 = vrcp.f32 %v3736_v12  ;;  %v3897_v63 = vadd.f32 1.0, %v10443_v43  ;;  %v6813_v12 = vmul.f32 -1.442695, %v2223_v58  ;;  %5446 = vmatprep.mubr.f32.mxu1 %v4900_v0  ;;  %v422_v58 = vld [vmem:[%s11298_s9 + $0x660] sm:$0xff] }
 0x382   : > { %v10447_v36 = vpop.eup %10446  ;;  %v6652_v51 = vmul.f32 -1.442695, %v1418_v2  ;;  %10466 = vrcp.f32 %v3896_v31  ;;  %v3898_v37 = vadd.f32 1.0, %v10445_v30  ;;  %v1422_v15 = vpop.f32.mrb[44].mxu0 }
 0x383   : > { %v13374_v16 = vpop.eup %10448  ;;  %v3737_v3 = vadd.f32 1.0, %v10447_v36  ;;  %10468 = vrcp.f32 %v3897_v63  ;;  %v1423_v30 = vadd.f32 %v13217_v57, %v1422_v15  ;;  %v8486_v31 = vpop.f32.mrb[45].mxu0  ;;  %8644 = vmatmul.mubr.f32.gmra.mrb[150].mxu0 %v421_v7  ;;  %5447 = vmatmul.mubr.f32.gmra.mrb[60].mxu1 %v4899_v48  ;;  %v6814_v63 = vmul.f32 -1.442695, %v2228_v14  ;;  %v4923_v7 = vld [vmem:[%s15395_s3 + $0x768] sm:$0x1] }
 0x384   : > { %v13379_v20 = vpop.eup %10450  ;;  %10470 = vpow2.f32 %v6652_v51  ;;  %v2232_v2 = vpop.f32.mrb[126].mxu1  ;;  %8646 = vmatprep.mubr.msk.f32.mxu0 %vm11185_vm0, %v15544_v53  ;;  %5451 = vmatprep.mubr.f32.mxu1 %v4923_v7 }
 0x385   : > { %15557 = vst [vmem:[#allocation52_spill] sm:$0xff] %v13379_v20  ;;  %v13384_v36 = vpop.eup %10452  ;;  %10472 = vrcp.f32 %v3737_v3  ;;  %v8972_v0 = vpop.f32.mrb[127].mxu1  ;;  %v6653_v31 = vmul.f32 -1.442695, %v1423_v30  ;;  %v2233_v14 = vadd.f32 %v13217_v57, %v2232_v2 }
 0x386   : > { %15558 = vst [vmem:[#allocation53_spill] sm:$0xff] %v13384_v36  ;;  %v10455_v15 = vpop.eup %10454  ;;  %10474 = vrcp.f32 %v3898_v37  ;;  %v2237_v48 = vpop.f32.mrb[128].mxu1  ;;  %v4922_v0 = vld [vmem:[%s15395_s3 + $0x760] sm:$0x1] }
 0x387   : > { %v10457_v43 = vpop.eup %10456  ;;  %v3738_v18 = vadd.f32 1.0, %v10455_v15  ;;  %v1427_v3 = vpop.f32.mrb[46].mxu0  ;;  %10476 = vpow2.f32 %v6813_v12  ;;  %8647 = vmatmul.mubr.f32.gmra.mrb[152].mxu0 %v422_v58  ;;  %5452 = vmatmul.mubr.f32.gmra.mrb[62].mxu1 %v4922_v0  ;;  %v423_v12 = vld [vmem:[%s11298_s9 + $0x668] sm:$0xff] }
 0x388   : > { %v8975_v51 = vpop.f32.mrb[129].mxu1  ;;  %v10459_v30 = vpop.eup %10458  ;;  %10478 = vpow2.f32 %v6653_v31  ;;  %v1428_v37 = vadd.f32 %v13217_v57, %v1427_v3  ;;  %8649 = vmatprep.mubr.msk.f32.mxu0 %vm11185_vm0, %v15544_v53  ;;  %v4695_v31 = vld [vmem:[%s15395_s3 + $0x48] sm:$0xff] }
 0x389   : > { %v8489_v28 = vpop.f32.mrb[47].mxu0  ;;  %v10461_v20 = vpop.eup %10460  ;;  %10480 = vrcp.f32 %v3738_v18  ;;  %v3899_v15 = vadd.f32 1.0, %v10459_v30  ;;  %v2238_v51 = vadd.f32 %v13217_v57, %v2237_v48  ;;  %v6815_v18 = vmul.f32 -1.442695, %v2233_v14  ;;  %5521 = vmatprep.mubr.f32.mxu1 %v4695_v31 }
 0x38a   : > { %v10463_v2 = vpop.eup %10462  ;;  %v6654_v7 = vmul.f32 -1.442695, %v1428_v37  ;;  %v3900_v19 = vadd.f32 1.0, %v10461_v20  ;;  %10482 = vpow2.f32 %v6814_v63  ;;  %v1432_v3 = vpop.f32.mrb[48].mxu0 }
 0x38b   : > { %v10465_v28 = vpop.eup %10464  ;;  %v3739_v58 = vadd.f32 1.0, %v10463_v2  ;;  %10484 = vrcp.f32 %v3899_v15  ;;  %v1433_v30 = vadd.f32 %v13217_v57, %v1432_v3  ;;  %v8492_v20 = vpop.f32.mrb[49].mxu0  ;;  %8650 = vmatmul.mubr.f32.gmra.mrb[154].mxu0 %v423_v12  ;;  %v424_v2 = vld [vmem:[%s11298_s9 + $0x670] sm:$0xff] }
 0x38c   : > { %v13406_v0 = vpop.eup %10466  ;;  %10486 = vpow2.f32 %v6654_v7  ;;  %v9340_v63 = vpack.c.bf16 %v10465_v28, %v10457_v43  ;;  %v2242_v48 = vpop.f32.mrb[130].mxu1  ;;  %8652 = vmatprep.mubr.msk.f32.mxu0 %vm11185_vm0, %v15544_v53  ;;  %v6816_v7 = vmul.f32 -1.442695, %v2238_v51 }
 0x38d   : > { %15559 = vst [vmem:[#allocation54_spill] sm:$0xff] %v13406_v0  ;;  %v13409_v37 = vpop.eup %10468  ;;  %10488 = vrcp.f32 %v3739_v58  ;;  %v8978_v8 = vpop.f32.mrb[131].mxu1  ;;  %v6655_v31 = vmul.f32 -1.442695, %v1433_v30  ;;  %v15561_v58 = vpack.c.bf16 %v13164_v32, %v13150_v6 }
 0x38e   : > { %15560 = vst [vmem:[#allocation55_spill] sm:$0xff] %v13409_v37  ;;  %v10471_v15 = vpop.eup %10470  ;;  %9341 = vmatprep.subr.bf16.mxu1 %v9340_v63  ;;  %10490 = vrcp.f32 %v3900_v19  ;;  %v2247_v3 = vpop.f32.mrb[132].mxu1  ;;  %v2243_v8 = vadd.f32 %v13217_v57, %v2242_v48  ;;  %v425_v63 = vld [vmem:[%s11298_s9 + $0x678] sm:$0xff] }
 0x38f   : > { %v10473_v43 = vpop.eup %10472  ;;  %v3740_v12 = vadd.f32 1.0, %v10471_v15  ;;  %v1437_v28 = vpop.f32.mrb[50].mxu0  ;;  %9343 = vmatpush3.bf16.msra.mxu1 %v15561_v58  ;;  %10492 = vpow2.f32 %v6815_v18  ;;  %8653 = vmatmul.mubr.f32.gmra.mrb[156].mxu0 %v424_v2 }
 0x390   : > { %v8981_v20 = vpop.f32.mrb[133].mxu1  ;;  %v13420_v52 = vpop.eup %10474  ;;  %10494 = vpow2.f32 %v6655_v31  ;;  %v1438_v30 = vadd.f32 %v13217_v57, %v1437_v28  ;;  %8655 = vmatprep.mubr.msk.f32.mxu0 %vm11185_vm0, %v15544_v53  ;;  %v6817_v15 = vmul.f32 -1.442695, %v2243_v8  ;;  %v2248_v31 = vadd.f32 %v13217_v57, %v2247_v3 }
 0x391   : > { %15562 = vst [vmem:[#allocation56_spill] sm:$0xff] %v13420_v52  ;;  %v8495_v19 = vpop.f32.mrb[51].mxu0  ;;  %v10477_v51 = vpop.eup %10476  ;;  %10496 = vrcp.f32 %v3740_v12 }
 0x392   : > { %v10479_v32 = vpop.eup %10478  ;;  %v6656_v18 = vmul.f32 -1.442695, %v1438_v30  ;;  %v3901_v48 = vadd.f32 1.0, %v10477_v51  ;;  %10498 = vpow2.f32 %v6816_v7  ;;  %v1442_v2 = vpop.f32.mrb[52].mxu0  ;;  %v426_v7 = vld [vmem:[%s11298_s9 + $0x680] sm:$0xff] }
 0x393   : > { %v10481_v28 = vpop.eup %10480  ;;  %v3741_v58 = vadd.f32 1.0, %v10479_v32  ;;  %10500 = vpow2.f32 %v6817_v15  ;;  %v1443_v20 = vadd.f32 %v13217_v57, %v1442_v2  ;;  %v8498_v19 = vpop.f32.mrb[53].mxu0  ;;  %8656 = vmatmul.mubr.f32.gmra.mrb[158].mxu0 %v425_v63  ;;  %v6818_v15 = vmul.f32 -1.442695, %v2248_v31 }
 0x394   : > { %v10483_v12 = vpop.eup %10482  ;;  %10502 = vpow2.f32 %v6656_v18  ;;  %v9344_v8 = vpack.c.bf16 %v10481_v28, %v10473_v43  ;;  %v2252_v14 = vpop.f32.mrb[134].mxu1  ;;  %8658 = vmatprep.mubr.msk.f32.mxu0 %vm11185_vm0, %v15544_v53  ;;  %v15564_v28 = vpack.c.bf16 %v13186_v5, %v13178_v29 }
 0x395   : > { %v13430_v6 = vpop.eup %10484  ;;  %10504 = vrcp.f32 %v3741_v58  ;;  %v3902_v3 = vadd.f32 1.0, %v10483_v12  ;;  %v8984_v30 = vpop.f32.mrb[135].mxu1  ;;  %v6657_v32 = vmul.f32 -1.442695, %v1443_v20  ;;  %v2253_v58 = vadd.f32 %v13217_v57, %v2252_v14 }
 0x396   : > { %15563 = vst [vmem:[#allocation57_spill] sm:$0xff] %v13430_v6  ;;  %v10487_v51 = vpop.eup %10486  ;;  %9345 = vmatprep.subr.bf16.mxu1 %v9344_v8  ;;  %10506 = vrcp.f32 %v3901_v48  ;;  %v2257_v18 = vpop.f32.mrb[136].mxu1  ;;  %v427_v8 = vld [vmem:[%s11298_s9 + $0x688] sm:$0xff] }
 0x397   : > { %v10489_v2 = vpop.eup %10488  ;;  %v3742_v63 = vadd.f32 1.0, %v10487_v51  ;;  %v1447_v43 = vpop.f32.mrb[54].mxu0  ;;  %9347 = vmatpush3.bf16.msra.mxu1 %v15564_v28  ;;  %10508 = vrcp.f32 %v3902_v3  ;;  %8659 = vmatmul.mubr.f32.gmra.mrb[160].mxu0 %v426_v7  ;;  %v6819_v30 = vmul.f32 -1.442695, %v2253_v58  ;;  %v2258_v7 = vadd.f32 %v13217_v57, %v2257_v18 }
 0x398   : > { %v8987_v19 = vpop.f32.mrb[137].mxu1  ;;  %v13439_v12 = vpop.eup %10490  ;;  %10510 = vpow2.f32 %v6657_v32  ;;  %v1448_v20 = vadd.f32 %v13217_v57, %v1447_v43  ;;  %8661 = vmatprep.mubr.msk.f32.mxu0 %vm11185_vm0, %v15544_v53 }
 0x399   : > { %15565 = vst [vmem:[#allocation58_spill] sm:$0xff] %v13439_v12  ;;  %v8501_v48 = vpop.f32.mrb[55].mxu0  ;;  %v10493_v31 = vpop.eup %10492  ;;  %10512 = vrcp.f32 %v3742_v63 }
 0x39a   : > { %v10495_v5 = vpop.eup %10494  ;;  %v6658_v14 = vmul.f32 -1.442695, %v1448_v20  ;;  %v3903_v3 = vadd.f32 1.0, %v10493_v31  ;;  %10514 = vpow2.f32 %v6818_v15  ;;  %v1452_v43 = vpop.f32.mrb[56].mxu0  ;;  %v428_v15 = vld [vmem:[%s11298_s9 + $0x690] sm:$0xff] }
 0x39b   : > { %v10497_v51 = vpop.eup %10496  ;;  %v3743_v32 = vadd.f32 1.0, %v10495_v5  ;;  %10516 = vpow2.f32 %v6819_v30  ;;  %v1453_v28 = vadd.f32 %v13217_v57, %v1452_v43  ;;  %v8504_v19 = vpop.f32.mrb[57].mxu0  ;;  %8662 = vmatmul.mubr.f32.gmra.mrb[162].mxu0 %v427_v8 }
 0x39c   : > { %v10499_v63 = vpop.eup %10498  ;;  %10518 = vpow2.f32 %v6658_v14  ;;  %v9348_v58 = vpack.c.bf16 %v10497_v51, %v10489_v2  ;;  %v2262_v48 = vpop.f32.mrb[138].mxu1  ;;  %8664 = vmatprep.mubr.msk.f32.mxu0 %vm11185_vm0, %v15544_v53  ;;  %v15566_v2 = vpack.c.bf16 %v13212_v22, %v13200_v46  ;;  %v6820_v51 = vmul.f32 -1.442695, %v2258_v7  ;;  %v429_v46 = vld [vmem:[%s11298_s9 + $0x698] sm:$0xff] }
 0x39d   : > { %v10501_v29 = vpop.eup %10500  ;;  %10520 = vrcp.f32 %v3743_v32  ;;  %v3904_v20 = vadd.f32 1.0, %v10499_v63  ;;  %v8990_v31 = vpop.f32.mrb[139].mxu1  ;;  %v6659_v30 = vmul.f32 -1.442695, %v1453_v28  ;;  %v2263_v32 = vadd.f32 %v13217_v57, %v2262_v48 }
 0x39e   : > { %v10503_v5 = vpop.eup %10502  ;;  %9349 = vmatprep.subr.bf16.mxu1 %v9348_v58  ;;  %10522 = vrcp.f32 %v3903_v3  ;;  %v3905_v18 = vadd.f32 1.0, %v10501_v29  ;;  %v2267_v14 = vpop.f32.mrb[140].mxu1 }
 0x39f   : > { %v10505_v6 = vpop.eup %10504  ;;  %v3744_v43 = vadd.f32 1.0, %v10503_v5  ;;  %v1457_v8 = vpop.f32.mrb[58].mxu0  ;;  %9351 = vmatpush3.bf16.msra.mxu1 %v15566_v2  ;;  %10524 = vrcp.f32 %v3904_v20  ;;  %8665 = vmatmul.mubr.f32.gmra.mrb[164].mxu0 %v428_v15  ;;  %v2268_v22 = vadd.f32 %v13217_v57, %v2267_v14  ;;  %v6821_v48 = vmul.f32 -1.442695, %v2263_v32 }
 0x3a0   : > { %v8993_v63 = vpop.f32.mrb[141].mxu1  ;;  %v13456_v19 = vpop.eup %10506  ;;  %10526 = vpow2.f32 %v6659_v30  ;;  %v1458_v3 = vadd.f32 %v13217_v57, %v1457_v8  ;;  %8667 = vmatprep.mubr.msk.f32.mxu0 %vm11185_vm0, %v15544_v53 }
 0x3a1   : > { %15567 = vst [vmem:[#allocation59_spill] sm:$0xff] %v13456_v19  ;;  %v8507_v29 = vpop.f32.mrb[59].mxu0  ;;  %v13459_v28 = vpop.eup %10508  ;;  %10528 = vrcp.f32 %v3744_v43 }
 0x3a2   : > { %15568 = vst [vmem:[#allocation60_spill] sm:$0xff] %v13459_v28  ;;  %v10511_v7 = vpop.eup %10510  ;;  %v6660_v58 = vmul.f32 -1.442695, %v1458_v3  ;;  %10530 = vrcp.f32 %v3905_v18  ;;  %v1462_v15 = vpop.f32.mrb[60].mxu0  ;;  %v430_v18 = vld [vmem:[%s11298_s9 + $0x6a0] sm:$0xff] }
 0x3a3   : > { %v10513_v31 = vpop.eup %10512  ;;  %v3745_v5 = vadd.f32 1.0, %v10511_v7  ;;  %10532 = vpow2.f32 %v6820_v51  ;;  %v1463_v43 = vadd.f32 %v13217_v57, %v1462_v15  ;;  %v8510_v8 = vpop.f32.mrb[61].mxu0  ;;  %8668 = vmatmul.mubr.f32.gmra.mrb[166].mxu0 %v429_v46 }
 0x3a4   : > { %v10515_v30 = vpop.eup %10514  ;;  %10534 = vpow2.f32 %v6660_v58  ;;  %v9352_v2 = vpack.c.bf16 %v10513_v31, %v10505_v6  ;;  %v2272_v14 = vpop.f32.mrb[142].mxu1  ;;  %8670 = vmatprep.mubr.msk.f32.mxu0 %vm11185_vm0, %v15544_v53  ;;  %v6822_v58 = vmul.f32 -1.442695, %v2268_v22  ;;  %v15569_v31 = vpack.c.bf16 %v13241_v4, %v13227_v38  ;;  %v431_v38 = vld [vmem:[%s11298_s9 + $0x6a8] sm:$0xff] }
 0x3a5   : > { %v10517_v63 = vpop.eup %10516  ;;  %10536 = vrcp.f32 %v3745_v5  ;;  %v3906_v32 = vadd.f32 1.0, %v10515_v30  ;;  %v8996_v3 = vpop.f32.mrb[143].mxu1  ;;  %v6661_v7 = vmul.f32 -1.442695, %v1463_v43  ;;  %v2273_v5 = vadd.f32 %v13217_v57, %v2272_v14 }
 0x3a6   : > { %v10519_v29 = vpop.eup %10518  ;;  %9353 = vmatprep.subr.bf16.mxu1 %v9352_v2  ;;  %v3907_v51 = vadd.f32 1.0, %v10517_v63  ;;  %10538 = vpow2.f32 %v6821_v48  ;;  %v2277_v20 = vpop.f32.mrb[144].mxu1 }
 0x3a7   : > { %v10521_v15 = vpop.eup %10520  ;;  %v3746_v46 = vadd.f32 1.0, %v10519_v29  ;;  %v1467_v6 = vpop.f32.mrb[62].mxu0  ;;  %9355 = vmatpush3.bf16.msra.mxu1 %v15569_v31  ;;  %10540 = vrcp.f32 %v3906_v32  ;;  %v2278_v30 = vadd.f32 %v13217_v57, %v2277_v20  ;;  %8671 = vmatmul.mubr.f32.gmra.mrb[168].mxu0 %v430_v18  ;;  %v6823_v14 = vmul.f32 -1.442695, %v2273_v5  ;;  %v432_v5 = vld [vmem:[%s11298_s9 + $0x6b0] sm:$0xff] }
 0x3a8   : > { %v8999_v8 = vpop.f32.mrb[145].mxu1  ;;  %v13476_v43 = vpop.eup %10522  ;;  %10542 = vpow2.f32 %v6661_v7  ;;  %v1468_v22 = vadd.f32 %v13217_v57, %v1467_v6  ;;  %8673 = vmatprep.mubr.msk.f32.mxu0 %vm11185_vm0, %v15544_v53 }
 0x3a9   : > { %15570 = vst [vmem:[#allocation61_spill] sm:$0xff] %v13476_v43  ;;  %v8513_v48 = vpop.f32.mrb[63].mxu0  ;;  %v13479_v2 = vpop.eup %10524  ;;  %10544 = vrcp.f32 %v3746_v46  ;;  %v6824_v18 = vmul.f32 -1.442695, %v2278_v30 }
 0x3aa   : > { %15571 = vst [vmem:[#allocation62_spill] sm:$0xff] %v13479_v2  ;;  %v10527_v4 = vpop.eup %10526  ;;  %v6662_v63 = vmul.f32 -1.442695, %v1468_v22  ;;  %10546 = vrcp.f32 %v3907_v51  ;;  %v1472_v29 = vpop.f32.mrb[64].mxu0 }
 0x3ab   : > { %v10529_v32 = vpop.eup %10528  ;;  %v3747_v3 = vadd.f32 1.0, %v10527_v4  ;;  %10548 = vpow2.f32 %v6822_v58  ;;  %v1473_v46 = vadd.f32 %v13217_v57, %v1472_v29  ;;  %v8516_v6 = vpop.f32.mrb[65].mxu0  ;;  %8674 = vmatmul.mubr.f32.gmra.mrb[170].mxu0 %v431_v38  ;;  %v13498_v38 = vld [vmem:[%s15394_s2] ss:$0 sm:$0xff] }
 0x3ac   : > { %v13486_v7 = vpop.eup %10530  ;;  %10550 = vpow2.f32 %v6662_v63  ;;  %v9356_v31 = vpack.c.bf16 %v10529_v32, %v10521_v15  ;;  %v2282_v8 = vpop.f32.mrb[146].mxu1  ;;  %8676 = vmatprep.mubr.msk.f32.mxu0 %vm11185_vm0, %v15544_v53  ;;  %v15573_v15 = vpack.c.bf16 %v13276_v55, %v13256_v1  ;;  %v433_v1 = vld [vmem:[%s11298_s9 + $0x6b8] sm:$0xff] }
 0x3ad   : > { %15572 = vst [vmem:[#allocation63_spill] sm:$0xff] %v13486_v7  ;;  %v10533_v51 = vpop.eup %10532  ;;  %10552 = vrcp.f32 %v3747_v3  ;;  %v9002_v22 = vpop.f32.mrb[147].mxu1  ;;  %v6663_v4 = vmul.f32 -1.442695, %v1473_v46  ;;  %v2283_v32 = vadd.f32 %v13498_v38, %v2282_v8 }
 0x3ae   : > { %v10535_v48 = vpop.eup %10534  ;;  %9357 = vmatprep.subr.bf16.mxu1 %v9356_v31  ;;  %v3908_v58 = vadd.f32 1.0, %v10533_v51  ;;  %10554 = vpow2.f32 %v6823_v14  ;;  %v2287_v30 = vpop.f32.mrb[148].mxu1 }
 0x3af   : > { %v10537_v63 = vpop.eup %10536  ;;  %v3748_v20 = vadd.f32 1.0, %v10535_v48  ;;  %v1477_v57 = vpop.f32.mrb[66].mxu0  ;;  %9359 = vmatpush3.bf16.msra.mxu1 %v15573_v15  ;;  %10556 = vpow2.f32 %v6824_v18  ;;  %v2288_v3 = vadd.f32 %v13498_v38, %v2287_v30  ;;  %8677 = vmatmul.mubr.f32.gmra.mrb[172].mxu0 %v432_v5  ;;  %v6825_v8 = vmul.f32 -1.442695, %v2283_v32  ;;  %v434_v32 = vld [vmem:[%s11298_s9 + $0x6c0] sm:$0xff] }
 0x3b0   : > { %v9005_v14 = vpop.f32.mrb[149].mxu1  ;;  %v10539_v29 = vpop.eup %10538  ;;  %10558 = vpow2.f32 %v6663_v4  ;;  %v1478_v46 = vadd.f32 %v13498_v38, %v1477_v57  ;;  %8679 = vmatprep.mubr.msk.f32.mxu0 %vm11185_vm0, %v15544_v53 }
 0x3b1   : > { %v8519_v6 = vpop.f32.mrb[67].mxu0  ;;  %v13503_v31 = vpop.eup %10540  ;;  %10560 = vrcp.f32 %v3748_v20  ;;  %v3909_v55 = vadd.f32 1.0, %v10539_v29  ;;  %v6826_v5 = vmul.f32 -1.442695, %v2288_v3 }
 0x3b2   : > { %15574 = vst [vmem:[#allocation64_spill] sm:$0xff] %v13503_v31  ;;  %v10543_v18 = vpop.eup %10542  ;;  %v6664_v51 = vmul.f32 -1.442695, %v1478_v46  ;;  %10562 = vrcp.f32 %v3908_v58  ;;  %v1482_v30 = vpop.f32.mrb[68].mxu0 }
 0x3b3   : > { %v10545_v48 = vpop.eup %10544  ;;  %v3749_v4 = vadd.f32 1.0, %v10543_v18  ;;  %10564 = vrcp.f32 %v3909_v55  ;;  %v1483_v20 = vadd.f32 %v13498_v38, %v1482_v30  ;;  %v8522_v15 = vpop.f32.mrb[69].mxu0  ;;  %8680 = vmatmul.mubr.f32.gmra.mrb[174].mxu0 %v433_v1 }
 0x3b4   : > { %v13510_v57 = vpop.eup %10546  ;;  %10566 = vpow2.f32 %v6664_v51  ;;  %v9360_v14 = vpack.c.bf16 %v10545_v48, %v10537_v63  ;;  %v2292_v29 = vpop.f32.mrb[150].mxu1  ;;  %8682 = vmatprep.mubr.msk.f32.mxu0 %vm11185_vm0, %v15544_v53  ;;  %v15576_v63 = vpack.c.bf16 %v13310_v40, %v13290_v35 }
 0x3b5   : > { %15575 = vst [vmem:[#allocation65_spill] sm:$0xff] %v13510_v57  ;;  %v10549_v58 = vpop.eup %10548  ;;  %10568 = vrcp.f32 %v3749_v4  ;;  %v9008_v46 = vpop.f32.mrb[151].mxu1  ;;  %v6665_v18 = vmul.f32 -1.442695, %v1483_v20  ;;  %v2293_v1 = vadd.f32 %v13498_v38, %v2292_v29 }
 0x3b6   : > { %v10551_v6 = vpop.eup %10550  ;;  %9361 = vmatprep.subr.bf16.mxu1 %v9360_v14  ;;  %v3910_v3 = vadd.f32 1.0, %v10549_v58  ;;  %10570 = vpow2.f32 %v6825_v8  ;;  %v2297_v55 = vpop.f32.mrb[152].mxu1  ;;  %v435_v58 = vld [vmem:[%s11298_s9 + $0x6c8] sm:$0xff] }
 0x3b7   : > { %v10553_v51 = vpop.eup %10552  ;;  %v3750_v30 = vadd.f32 1.0, %v10551_v6  ;;  %v1487_v15 = vpop.f32.mrb[70].mxu0  ;;  %9363 = vmatpush3.bf16.msra.mxu1 %v15576_v63  ;;  %10572 = vpow2.f32 %v6826_v5  ;;  %8683 = vmatmul.mubr.f32.gmra.mrb[176].mxu0 %v434_v32  ;;  %v2298_v29 = vadd.f32 %v13498_v38, %v2297_v55  ;;  %v6827_v32 = vmul.f32 -1.442695, %v2293_v1  ;;  %v436_v55 = vld [vmem:[%s11298_s9 + $0x6d0] sm:$0xff] }
 0x3b8   : > { %v9011_v48 = vpop.f32.mrb[153].mxu1  ;;  %v10555_v4 = vpop.eup %10554  ;;  %10574 = vpow2.f32 %v6665_v18  ;;  %v1488_v20 = vadd.f32 %v13498_v38, %v1487_v15  ;;  %8685 = vmatprep.mubr.msk.f32.mxu0 %vm11185_vm0, %v15544_v53 }
 0x3b9   : > { %v8525_v14 = vpop.f32.mrb[71].mxu0  ;;  %v10557_v8 = vpop.eup %10556  ;;  %10576 = vrcp.f32 %v3750_v30  ;;  %v3911_v46 = vadd.f32 1.0, %v10555_v4 }
 0x3ba   : > { %v2302_v6 = vpop.f32.mrb[154].mxu1  ;;  %v10559_v35 = vpop.eup %10558  ;;  %v6666_v40 = vmul.f32 -1.442695, %v1488_v20  ;;  %10578 = vrcp.f32 %v3910_v3  ;;  %v3912_v5 = vadd.f32 1.0, %v10557_v8 }
 0x3bb   : > { %v9014_v63 = vpop.f32.mrb[155].mxu1  ;;  %v10561_v18 = vpop.eup %10560  ;;  %v3751_v15 = vadd.f32 1.0, %v10559_v35  ;;  %10580 = vrcp.f32 %v3911_v46  ;;  %8686 = vmatmul.mubr.f32.gmra.mrb[178].mxu0 %v435_v58 }
 0x3bc   : > { %v1492_v48 = vpop.f32.mrb[72].mxu0  ;;  %v2307_v30 = vpop.f32.mrb[156].mxu1  ;;  %10582 = vpow2.f32 %v6666_v40  ;;  %v9364_v20 = vpack.c.bf16 %v10561_v18, %v10553_v51  ;;  %8688 = vmatprep.mubr.msk.f32.mxu0 %vm11185_vm0, %v15544_v53 }
 0x3bd   : > { %v13525_v14 = vpop.eup %10562  ;;  %v1493_v4 = vadd.f32 %v13498_v38, %v1492_v48  ;;  %v8528_v22 = vpop.f32.mrb[73].mxu0  ;;  %10584 = vrcp.f32 %v3751_v15  ;;  %v15579_v15 = vpack.c.bf16 %v13344_v62, %v13326_v50  ;;  %v2303_v48 = vadd.f32 %v13498_v38, %v2302_v6 }
 0x3be   : > { %15577 = vst [vmem:[#allocation66_spill] sm:$0xff] %v13525_v14  ;;  %v9017_v3 = vpop.f32.mrb[157].mxu1  ;;  %v13528_v8 = vpop.eup %10564  ;;  %9365 = vmatprep.subr.bf16.mxu1 %v9364_v20  ;;  %10586 = vrcp.f32 %v3912_v5  ;;  %v6828_v22 = vmul.f32 -1.442695, %v2298_v29 }
 0x3bf   : > { %15578 = vst [vmem:[#allocation67_spill] sm:$0xff] %v13528_v8  ;;  %v13533_v35 = vpop.f32.mrb[158].mxu1  ;;  %v10567_v46 = vpop.eup %10566  ;;  %v6667_v40 = vmul.f32 -1.442695, %v1493_v4  ;;  %9367 = vmatpush3.bf16.msra.mxu1 %v15579_v15  ;;  %10588 = vpow2.f32 %v6827_v32  ;;  %8689 = vmatmul.mubr.f32.gmra.mrb[180].mxu0 %v436_v55 }
 0x3c0   : > { %v9020_v58 = vpop.f32.mrb[159].mxu1  ;;  %v10569_v51 = vpop.eup %10568  ;;  %v3752_v63 = vadd.f32 1.0, %v10567_v46  ;;  %8691 = vmatprep.mubr.msk.f32.mxu0 %vm11185_vm0, %v15544_v53  ;;  %v437_v46 = vld [vmem:[%s11298_s9 + $0x6d8] sm:$0xff] }
 0x3c1   : > { %v1497_v18 = vpop.f32.mrb[74].mxu0  ;;  %v13541_v3 = vpop.f32.mrb[160].mxu1  ;;  %10590 = vpow2.f32 %v6667_v40  ;;  %v2308_v40 = vadd.f32 %v13498_v38, %v2307_v30  ;;  %v438_v30 = vld [vmem:[%s11298_s9 + $0x6e0] sm:$0xff] }
 0x3c2   : > { %v10571_v1 = vpop.eup %10570  ;;  %v1498_v4 = vadd.f32 %v13498_v38, %v1497_v18  ;;  %v8531_v5 = vpop.f32.mrb[75].mxu0  ;;  %10592 = vrcp.f32 %v3752_v63  ;;  %v6829_v63 = vmul.f32 -1.442695, %v2303_v48 }
 0x3c3   : > { %v9023_v29 = vpop.f32.mrb[161].mxu1  ;;  %v10573_v20 = vpop.eup %10572  ;;  %v3913_v50 = vadd.f32 1.0, %v10571_v1  ;;  %10594 = vpow2.f32 %v6828_v22  ;;  %8692 = vmatmul.mubr.f32.gmra.mrb[182].mxu0 %v437_v46 }
 0x3c4   : > { %v13547_v62 = vpop.f32.mrb[162].mxu1  ;;  %v10575_v32 = vpop.eup %10574  ;;  %v6668_v6 = vmul.f32 -1.442695, %v1498_v4  ;;  %v3914_v58 = vadd.f32 1.0, %v10573_v20  ;;  %8694 = vmatprep.mubr.msk.f32.mxu0 %vm11185_vm0, %v15544_v53 }
 0x3c5   : > { %v9026_v15 = vpop.f32.mrb[163].mxu1  ;;  %v10577_v18 = vpop.eup %10576  ;;  %v3753_v55 = vadd.f32 1.0, %v10575_v32  ;;  %10596 = vrcp.f32 %v3913_v50 }
 0x3c6   : > { %v1502_v5 = vpop.f32.mrb[76].mxu0  ;;  %v13550_v29 = vpop.f32.mrb[164].mxu1  ;;  %10598 = vpow2.f32 %v6668_v6  ;;  %v9368_v4 = vpack.c.bf16 %v10577_v18, %v10569_v51 }
 0x3c7   : > { %v13552_v57 = vpop.eup %10578  ;;  %v1503_v1 = vadd.f32 %v13498_v38, %v1502_v5  ;;  %v8534_v14 = vpop.f32.mrb[77].mxu0  ;;  %10600 = vrcp.f32 %v3753_v55  ;;  %v15582_v55 = vpack.c.bf16 %v13374_v16, %v13360_v26  ;;  %v4694_v5 = vld [vmem:[%s15395_s3 + $0x40] sm:$0xff]  ;;  %8695 = vmatmul.mubr.f32.gmra.mrb[184].mxu0 %v438_v30 }
 0x3c8   : > { %15580 = vst [vmem:[#allocation68_spill] sm:$0xff] %v13552_v57  ;;  %v9029_v22 = vpop.f32.mrb[165].mxu1  ;;  %v13555_v20 = vpop.eup %10580  ;;  %9369 = vmatprep.subr.bf16.mxu1 %v9368_v4  ;;  %10602 = vrcp.f32 %v3914_v58  ;;  %v6830_v14 = vmul.f32 -1.442695, %v2308_v40  ;;  %v4718_v26 = vld [vmem:[%s15395_s3 + $0x100] sm:$0xff]  ;;  %8697 = vmatprep.mubr.msk.f32.mxu0 %vm11185_vm0, %v15544_v53 }
 0x3c9   : > { %15581 = vst [vmem:[#allocation69_spill] sm:$0xff] %v13555_v20  ;;  %v13560_v50 = vpop.f32.mrb[166].mxu1  ;;  %v10583_v32 = vpop.eup %10582  ;;  %v6669_v6 = vmul.f32 -1.442695, %v1503_v1  ;;  %9371 = vmatpush3.bf16.msra.mxu1 %v15582_v55  ;;  %10604 = vpow2.f32 %v6829_v63  ;;  %v2313_v1 = vadd.f32 %v13498_v38, %v13533_v35  ;;  %v439_v35 = vld [vmem:[%s11298_s9 + $0x6e8] sm:$0xff] }
 0x3ca   : > { %v9032_v46 = vpop.f32.mrb[167].mxu1  ;;  %v13564_v51 = vpop.eup %10584  ;;  %v3754_v15 = vadd.f32 1.0, %v10583_v32 }
 0x3cb   : > { %v1507_v18 = vpop.f32.mrb[78].mxu0  ;;  %v13574_v58 = vpop.f32.mrb[168].mxu1  ;;  %10606 = vpow2.f32 %v6669_v6  ;;  %v6831_v63 = vmul.f32 -1.442695, %v2313_v1  ;;  %v4717_v1 = vld [vmem:[%s15395_s3 + $0xf8] sm:$0xff]  ;;  %8698 = vmatmul.mubr.f32.gmra.mrb[186].mxu0 %v439_v35 }
 0x3cc   : > { %v13576_v40 = vpop.eup %10586  ;;  %v1508_v4 = vadd.f32 %v13498_v38, %v1507_v18  ;;  %v8537_v22 = vpop.f32.mrb[79].mxu0  ;;  %10608 = vrcp.f32 %v3754_v15  ;;  %5522 = vmatmul.mubr.f32.vlgmr.msra.gmra.mrb[64].mxu1 %v4694_v5  ;;  %8700 = vmatprep.mubr.msk.f32.mxu0 %vm11185_vm0, %v15544_v53 }
 0x3cd   : > { %15583 = vst [vmem:[#allocation70_spill] sm:$0xff] %v13576_v40  ;;  %v9035_v16 = vpop.f32.mrb[169].mxu1  ;;  %v10589_v32 = vpop.eup %10588  ;;  %10610 = vpow2.f32 %v6830_v14  ;;  %v2318_v22 = vadd.f32 %v13498_v38, %v13541_v3  ;;  %5526 = vmatprep.mubr.f32.mxu1 %v4718_v26  ;;  %v4741_v26 = vld [vmem:[%s15395_s3 + $0x1b8] sm:$0xff] }
 0x3ce   : > { %v13585_v46 = vpop.f32.mrb[170].mxu1  ;;  %v10591_v18 = vpop.eup %10590  ;;  %v6670_v55 = vmul.f32 -1.442695, %v1508_v4  ;;  %v3915_v30 = vadd.f32 1.0, %v10589_v32  ;;  %10612 = vpow2.f32 %v6831_v63  ;;  %v440_v63 = vld [vmem:[%s11298_s9 + $0x6f0] sm:$0xff] }
 0x3cf   : > { %v9038_v16 = vpop.f32.mrb[171].mxu1  ;;  %v13591_v15 = vpop.eup %10592  ;;  %v3755_v48 = vadd.f32 1.0, %v10591_v18  ;;  %8701 = vmatmul.mubr.f32.gmra.mrb[188].mxu0 %v440_v63 }
 0x3d0   : > { %v1512_v8 = vpop.f32.mrb[80].mxu0  ;;  %v13596_v6 = vpop.f32.mrb[172].mxu1  ;;  %10614 = vpow2.f32 %v6670_v55  ;;  %5527 = vmatmul.mubr.f32.gmra.mrb[66].mxu1 %v4717_v1  ;;  %8703 = vmatprep.mubr.msk.f32.mxu0 %vm11185_vm0, %v15544_v53 }
 0x3d1   : > { %v10595_v5 = vpop.eup %10594  ;;  %v1513_v14 = vadd.f32 %v13498_v38, %v1512_v8  ;;  %v8540_v4 = vpop.f32.mrb[81].mxu0  ;;  %10616 = vrcp.f32 %v3755_v48  ;;  %5531 = vmatprep.mubr.f32.mxu1 %v4741_v26  ;;  %v4740_v48 = vld [vmem:[%s15395_s3 + $0x1b0] sm:$0xff] }
 0x3d2   : > { %v9041_v32 = vpop.f32.mrb[173].mxu1  ;;  %v13604_v18 = vpop.eup %10596  ;;  %v3916_v55 = vadd.f32 1.0, %v10595_v5  ;;  %10618 = vrcp.f32 %v3915_v30  ;;  %v6832_v4 = vmul.f32 -1.442695, %v2318_v22  ;;  %v2323_v5 = vadd.f32 %v13498_v38, %v13547_v62  ;;  %v441_v62 = vld [vmem:[%s11298_s9 + $0x6f8] sm:$0xff] }
 0x3d3   : > { %15584 = vst [vmem:[#allocation71_spill] sm:$0xff] %v13604_v18  ;;  %v13609_v16 = vpop.f32.mrb[174].mxu1  ;;  %v10599_v8 = vpop.eup %10598  ;;  %v6671_v35 = vmul.f32 -1.442695, %v1513_v14  ;;  %v4764_v14 = vld [vmem:[%s15395_s3 + $0x270] sm:$0xff]  ;;  %8704 = vmatmul.mubr.f32.gmra.mrb[190].mxu0 %v441_v62 }
 0x3d4   : > { %v9044_v3 = vpop.f32.mrb[175].mxu1  ;;  %v13611_v20 = vpop.eup %10600  ;;  %v3756_v40 = vadd.f32 1.0, %v10599_v8  ;;  %10620 = vrcp.f32 %v3916_v55  ;;  %v6833_v55 = vmul.f32 -1.442695, %v2323_v5  ;;  %5532 = vmatmul.mubr.f32.gmra.mrb[68].mxu1 %v4740_v48  ;;  %v4763_v5 = vld [vmem:[%s15395_s3 + $0x268] sm:$0xff]  ;;  %8706 = vmatprep.mubr.msk.f32.mxu0 %vm11185_vm0, %v15544_v53 }
 0x3d5   : > { %v1517_v32 = vpop.f32.mrb[82].mxu0  ;;  %v13618_v57 = vpop.f32.mrb[176].mxu1  ;;  %10622 = vpow2.f32 %v6671_v35  ;;  %5536 = vmatprep.mubr.f32.mxu1 %v4764_v14  ;;  %v2328_v35 = vadd.f32 %v13498_v38, %v13550_v29  ;;  %v4787_v14 = vld [vmem:[%s15395_s3 + $0x328] sm:$0xff]  ;;  %v442_v29 = vld [vmem:[%s11298_s9 + $0x700] sm:$0xff] }
 0x3d6   : > { %v13620_v1 = vpop.eup %10602  ;;  %v1518_v30 = vadd.f32 %v13498_v38, %v1517_v32  ;;  %v8543_v22 = vpop.f32.mrb[83].mxu0  ;;  %10624 = vrcp.f32 %v3756_v40 }
 0x3d7   : > { %15585 = vst [vmem:[#allocation72_spill] sm:$0xff] %v13620_v1  ;;  %v9047_v3 = vpop.f32.mrb[177].mxu1  ;;  %v10605_v26 = vpop.eup %10604  ;;  %10626 = vpow2.f32 %v6832_v4  ;;  %8707 = vmatmul.mubr.f32.gmra.mrb[192].mxu0 %v442_v29 }
 0x3d8   : > { %v13629_v8 = vpop.f32.mrb[178].mxu1  ;;  %v10607_v32 = vpop.eup %10606  ;;  %v6672_v22 = vmul.f32 -1.442695, %v1518_v30  ;;  %v3917_v63 = vadd.f32 1.0, %v10605_v26  ;;  %10628 = vpow2.f32 %v6833_v55  ;;  %5537 = vmatmul.mubr.f32.gmra.mrb[70].mxu1 %v4763_v5  ;;  %8709 = vmatprep.mubr.msk.f32.mxu0 %vm11185_vm0, %v15544_v53 }
 0x3d9   : > { %v9050_v7 = vpop.f32.mrb[179].mxu1  ;;  %v13633_v31 = vpop.eup %10608  ;;  %v3757_v3 = vadd.f32 1.0, %v10607_v32  ;;  %5541 = vmatprep.mubr.f32.mxu1 %v4787_v14  ;;  %v4810_v14 = vld [vmem:[%s15395_s3 + $0x3e0] sm:$0xff] }
 0x3da   : > { %v1522_v40 = vpop.f32.mrb[84].mxu0  ;;  %v13640_v18 = vpop.f32.mrb[180].mxu1  ;;  %10630 = vpow2.f32 %v6672_v22 }
 0x3db   : > { %v10611_v48 = vpop.eup %10610  ;;  %v1523_v7 = vadd.f32 %v13498_v38, %v1522_v40  ;;  %v8546_v4 = vpop.f32.mrb[85].mxu0  ;;  %10632 = vrcp.f32 %v3757_v3  ;;  %v4786_v3 = vld [vmem:[%s15395_s3 + $0x320] sm:$0xff] }
 0x3dc   : > { %v9053_v26 = vpop.f32.mrb[181].mxu1  ;;  %v10613_v55 = vpop.eup %10612  ;;  %v3918_v32 = vadd.f32 1.0, %v10611_v48  ;;  %10634 = vrcp.f32 %v3917_v63  ;;  %v6834_v48 = vmul.f32 -1.442695, %v2328_v35  ;;  %v2338_v35 = vadd.f32 %v13498_v38, %v13574_v58  ;;  %5542 = vmatmul.mubr.f32.gmra.mrb[72].mxu1 %v4786_v3  ;;  %v4809_v58 = vld [vmem:[%s15395_s3 + $0x3d8] sm:$0xff] }
 0x3dd   : > { %v13651_v22 = vpop.f32.mrb[182].mxu1  ;;  %v10615_v40 = vpop.eup %10614  ;;  %v6673_v4 = vmul.f32 -1.442695, %v1523_v7  ;;  %v3919_v62 = vadd.f32 1.0, %v10613_v55  ;;  %v2333_v26 = vadd.f32 %v13498_v38, %v13560_v50  ;;  %v443_v50 = vld [vmem:[%s11298_s9 + $0x708] sm:$0xff]  ;;  %5546 = vmatprep.mubr.f32.mxu1 %v4810_v14 }
 0x3de   : > { %v9056_v30 = vpop.f32.mrb[183].mxu1  ;;  %v13653_v1 = vpop.eup %10616  ;;  %v3758_v43 = vadd.f32 1.0, %v10615_v40  ;;  %10636 = vrcp.f32 %v3918_v32  ;;  %8710 = vmatmul.mubr.f32.gmra.mrb[194].mxu0 %v443_v50  ;;  %v4833_v14 = vld [vmem:[%s15395_s3 + $0x498] sm:$0xff] }
 0x3df   : > { %v1527_v2 = vpop.f32.mrb[86].mxu0  ;;  %v13660_v7 = vpop.f32.mrb[184].mxu1  ;;  %10638 = vpow2.f32 %v6673_v4  ;;  %v6835_v29 = vmul.f32 -1.442695, %v2333_v26  ;;  %8712 = vmatprep.mubr.msk.f32.mxu0 %vm11185_vm0, %v15544_v53 }
 0x3e0   : > { %v13662_v63 = vpop.eup %10618  ;;  %v1528_v5 = vadd.f32 %v13498_v38, %v1527_v2  ;;  %v8549_v30 = vpop.f32.mrb[87].mxu0  ;;  %10640 = vrcp.f32 %v3758_v43  ;;  %5547 = vmatmul.mubr.f32.gmra.mrb[74].mxu1 %v4809_v58  ;;  %v2348_v58 = vadd.f32 %v13498_v38, %v13596_v6 }
 0x3e1   : > { %15586 = vst [vmem:[#allocation73_spill] sm:$0xff] %v13662_v63  ;;  %v9059_v55 = vpop.f32.mrb[185].mxu1  ;;  %v13668_v40 = vpop.eup %10620  ;;  %10642 = vrcp.f32 %v3919_v62  ;;  %5551 = vmatprep.mubr.f32.mxu1 %v4833_v14  ;;  %v4856_v14 = vld [vmem:[%s15395_s3 + $0x550] sm:$0xff] }
 0x3e2   : > { %15587 = vst [vmem:[#allocation74_spill] sm:$0xff] %v13668_v40  ;;  %v13675_v32 = vpop.f32.mrb[186].mxu1  ;;  %v10623_v2 = vpop.eup %10622  ;;  %v6674_v4 = vmul.f32 -1.442695, %v1528_v5  ;;  %10644 = vpow2.f32 %v6834_v48  ;;  %v444_v48 = vld [vmem:[%s11298_s9 + $0x710] sm:$0xff] }
 0x3e3   : > { %v9062_v30 = vpop.f32.mrb[187].mxu1  ;;  %v13679_v19 = vpop.eup %10624  ;;  %v3759_v43 = vadd.f32 1.0, %v10623_v2  ;;  %v6836_v5 = vmul.f32 -1.442695, %v2338_v35  ;;  %8713 = vmatmul.mubr.f32.gmra.mrb[196].mxu0 %v444_v48  ;;  %v6838_v0 = vmul.f32 -1.442695, %v2348_v58 }
 0x3e4   : > { %v1532_v28 = vpop.f32.mrb[88].mxu0  ;;  %v13684_v12 = vpop.f32.mrb[188].mxu1  ;;  %10646 = vpow2.f32 %v6674_v4  ;;  %8715 = vmatprep.mubr.msk.f32.mxu0 %vm11185_vm0, %v15544_v53 }
 0x3e5   : > { %v10627_v3 = vpop.eup %10626  ;;  %v1533_v62 = vadd.f32 %v13498_v38, %v1532_v28  ;;  %v8552_v26 = vpop.f32.mrb[89].mxu0  ;;  %10648 = vrcp.f32 %v3759_v43  ;;  %v4832_v43 = vld [vmem:[%s15395_s3 + $0x490] sm:$0xff] }
 0x3e6   : > { %v9065_v2 = vpop.f32.mrb[189].mxu1  ;;  %v10629_v30 = vpop.eup %10628  ;;  %v3920_v55 = vadd.f32 1.0, %v10627_v3  ;;  %10650 = vpow2.f32 %v6835_v29  ;;  %v2343_v3 = vadd.f32 %v13498_v38, %v13585_v46  ;;  %v445_v46 = vld [vmem:[%s11298_s9 + $0x718] sm:$0xff]  ;;  %5552 = vmatmul.mubr.f32.gmra.mrb[76].mxu1 %v4832_v43 }
 0x3e7   : > { %v13695_v4 = vpop.f32.mrb[190].mxu1  ;;  %v10631_v28 = vpop.eup %10630  ;;  %v6675_v26 = vmul.f32 -1.442695, %v1533_v62  ;;  %v3921_v50 = vadd.f32 1.0, %v10629_v30  ;;  %5556 = vmatprep.mubr.f32.mxu1 %v4856_v14  ;;  %8716 = vmatmul.mubr.f32.gmra.mrb[198].mxu0 %v445_v46  ;;  %v4879_v14 = vld [vmem:[%s15395_s3 + $0x608] sm:$0xff] }
 0x3e8   : > { %v9068_v63 = vpop.f32.mrb[191].mxu1  ;;  %v13697_v40 = vpop.eup %10632  ;;  %v3760_v37 = vadd.f32 1.0, %v10631_v28  ;;  %10652 = vrcp.f32 %v3920_v55  ;;  %8718 = vmatprep.mubr.msk.f32.mxu0 %vm11185_vm0, %v15544_v53 }
 0x3e9   : > { %v1537_v2 = vpop.f32.mrb[90].mxu0  ;;  %v13706_v29 = vpop.f32.mrb[192].mxu1  ;;  %10654 = vpow2.f32 %v6675_v26 }
 0x3ea   : > { %v13708_v63 = vpop.eup %10634  ;;  %v1538_v35 = vadd.f32 %v13498_v38, %v1537_v2  ;;  %v8555_v62 = vpop.f32.mrb[91].mxu0  ;;  %10656 = vrcp.f32 %v3760_v37  ;;  %v6837_v2 = vmul.f32 -1.442695, %v2343_v3  ;;  %v4855_v37 = vld [vmem:[%s15395_s3 + $0x548] sm:$0xff] }
 0x3eb   : > { %15588 = vst [vmem:[#allocation75_spill] sm:$0xff] %v13708_v63  ;;  %v9071_v55 = vpop.f32.mrb[193].mxu1  ;;  %v13714_v30 = vpop.eup %10636  ;;  %10658 = vrcp.f32 %v3921_v50  ;;  %5557 = vmatmul.mubr.f32.gmra.mrb[78].mxu1 %v4855_v37  ;;  %v2358_v37 = vadd.f32 %v13498_v38, %v13618_v57 }
 0x3ec   : > { %15589 = vst [vmem:[#allocation76_spill] sm:$0xff] %v13714_v30  ;;  %v13719_v6 = vpop.f32.mrb[194].mxu1  ;;  %v10639_v28 = vpop.eup %10638  ;;  %v6676_v26 = vmul.f32 -1.442695, %v1538_v35  ;;  %10660 = vpow2.f32 %v6836_v5  ;;  %v446_v5 = vld [vmem:[%s11298_s9 + $0x720] sm:$0xff]  ;;  %5561 = vmatprep.mubr.f32.mxu1 %v4879_v14  ;;  %v4878_v30 = vld [vmem:[%s15395_s3 + $0x600] sm:$0xff] }
 0x3ed   : > { %v9074_v48 = vpop.f32.mrb[195].mxu1  ;;  %v13723_v52 = vpop.eup %10640  ;;  %v3761_v55 = vadd.f32 1.0, %v10639_v28  ;;  %8719 = vmatmul.mubr.f32.gmra.mrb[200].mxu0 %v446_v5 }
 0x3ee   : > { %v1542_v36 = vpop.f32.mrb[92].mxu0  ;;  %v13728_v35 = vpop.f32.mrb[196].mxu1  ;;  %10662 = vpow2.f32 %v6676_v26  ;;  %8721 = vmatprep.mubr.msk.f32.mxu0 %vm11185_vm0, %v15544_v53 }
 0x3ef   : > { %v13730_v50 = vpop.eup %10642  ;;  %v1543_v43 = vadd.f32 %v13498_v38, %v1542_v36  ;;  %v8558_v3 = vpop.f32.mrb[93].mxu0  ;;  %10664 = vrcp.f32 %v3761_v55  ;;  %5562 = vmatmul.mubr.f32.gmra.mrb[80].mxu1 %v4878_v30 }
 0x3f0   : > { %15590 = vst [vmem:[#allocation77_spill] sm:$0xff] %v13730_v50  ;;  %v9077_v48 = vpop.f32.mrb[197].mxu1  ;;  %v10645_v62 = vpop.eup %10644  ;;  %10666 = vpow2.f32 %v6837_v2  ;;  %v2353_v3 = vadd.f32 %v13498_v38, %v13609_v16 }
 0x3f1   : > { %v13741_v58 = vpop.f32.mrb[198].mxu1  ;;  %v10647_v26 = vpop.eup %10646  ;;  %v6677_v36 = vmul.f32 -1.442695, %v1543_v43  ;;  %v3922_v46 = vadd.f32 1.0, %v10645_v62  ;;  %10668 = vpow2.f32 %v6838_v0  ;;  %v4902_v43 = vld [vmem:[%s15395_s3 + $0x6c0] sm:$0xff] }
 0x3f2   : > { %v9080_v28 = vpop.f32.mrb[199].mxu1  ;;  %v13745_v63 = vpop.eup %10648  ;;  %v3762_v48 = vadd.f32 1.0, %v10647_v26  ;;  %v447_v0 = vld [vmem:[%s11298_s9 + $0x728] sm:$0xff]  ;;  %v6839_v5 = vmul.f32 -1.442695, %v2353_v3  ;;  %5566 = vmatprep.mubr.f32.mxu1 %v4902_v43 }
 0x3f3   : > { %v1547_v55 = vpop.f32.mrb[94].mxu0  ;;  %v10651_v62 = vpop.eup %10650  ;;  %10670 = vpow2.f32 %v6677_v36  ;;  %8722 = vmatmul.mubr.f32.gmra.mrb[202].mxu0 %v447_v0  ;;  %v4925_v43 = vld [vmem:[%s15395_s3 + $0x778] sm:$0x1] }
 0x3f4   : > { %v1548_v2 = vadd.f32 %v13498_v38, %v1547_v55  ;;  %v8561_v16 = vpop.f32.mrb[95].mxu0  ;;  %v13756_v28 = vpop.f32.mrb[200].mxu1  ;;  %10672 = vrcp.f32 %v3762_v48  ;;  %v3923_v57 = vadd.f32 1.0, %v10651_v62  ;;  %v4901_v62 = vld [vmem:[%s15395_s3 + $0x6b8] sm:$0xff]  ;;  %8724 = vmatprep.mubr.msk.f32.mxu0 %vm11185_vm0, %v15544_v53 }
 0x3f5   : > { %v13758_v14 = vpop.eup %10652  ;;  %v9083_v26 = vpop.f32.mrb[201].mxu1  ;;  %10674 = vrcp.f32 %v3922_v46  ;;  %5567 = vmatmul.mubr.f32.gmra.mrb[82].mxu1 %v4901_v62  ;;  %v4697_v62 = vld [vmem:[%s15395_s3 + $0x58] sm:$0xff] }
 0x3f6   : > { %15591 = vst [vmem:[#allocation78_spill] sm:$0xff] %v13758_v14  ;;  %v10655_v36 = vpop.eup %10654  ;;  %v6678_v34 = vmul.f32 -1.442695, %v1548_v2  ;;  %v13763_v55 = vpop.f32.mrb[202].mxu1  ;;  %10676 = vrcp.f32 %v3923_v57  ;;  %v6840_v2 = vmul.f32 -1.442695, %v2358_v37  ;;  %5571 = vmatprep.mubr.f32.mxu1 %v4925_v43 }
 0x3f7   : > { %v13767_v17 = vpop.eup %10656  ;;  %v3763_v41 = vadd.f32 1.0, %v10655_v36  ;;  %v1552_v48 = vpop.f32.mrb[96].mxu0  ;;  %v448_v37 = vld [vmem:[%s11298_s9 + $0x730] sm:$0xff] }
 0x3f8   : > { %v13772_v30 = vpop.eup %10658  ;;  %10678 = vpow2.f32 %v6678_v34  ;;  %v1553_v46 = vadd.f32 %v13498_v38, %v1552_v48  ;;  %v8564_v3 = vpop.f32.mrb[97].mxu0  ;;  %8725 = vmatmul.mubr.f32.gmra.mrb[204].mxu0 %v448_v37  ;;  %v2368_v37 = vadd.f32 %v13498_v38, %v13640_v18 }
 0x3f9   : > { %15592 = vst [vmem:[#allocation79_spill] sm:$0xff] %v13772_v30  ;;  %v9086_v36 = vpop.f32.mrb[203].mxu1  ;;  %v10661_v16 = vpop.eup %10660  ;;  %10680 = vrcp.f32 %v3763_v41  ;;  %v4924_v41 = vld [vmem:[%s15395_s3 + $0x770] sm:$0x1]  ;;  %8727 = vmatprep.mubr.msk.f32.mxu0 %vm11185_vm0, %v15544_v53 }
 0x3fa   : > { %v13783_v57 = vpop.f32.mrb[204].mxu1  ;;  %v10663_v34 = vpop.eup %10662  ;;  %v6679_v48 = vmul.f32 -1.442695, %v1553_v46  ;;  %v3924_v0 = vadd.f32 1.0, %v10661_v16  ;;  %10682 = vpow2.f32 %v6839_v5  ;;  %v2363_v36 = vadd.f32 %v13498_v38, %v13629_v8  ;;  %5572 = vmatmul.mubr.f32.gmra.mrb[84].mxu1 %v4924_v41 }
 0x3fb   : > { %v9089_v3 = vpop.f32.mrb[205].mxu1  ;;  %v13785_v26 = vpop.eup %10664  ;;  %v3764_v50 = vadd.f32 1.0, %v10663_v34  ;;  %10684 = vpow2.f32 %v6840_v2  ;;  %v449_v2 = vld [vmem:[%s11298_s9 + $0x738] sm:$0xff]  ;;  %5641 = vmatprep.mubr.f32.mxu1 %v4697_v62  ;;  %v450_v62 = vld [vmem:[%s11298_s9 + $0x740] sm:$0xff] }
 0x3fc   : > { %v1557_v14 = vpop.f32.mrb[98].mxu0  ;;  %v10667_v10 = vpop.eup %10666  ;;  %10686 = vpow2.f32 %v6679_v48  ;;  %v6841_v42 = vmul.f32 -1.442695, %v2363_v36  ;;  %8728 = vmatmul.mubr.f32.gmra.mrb[206].mxu0 %v449_v2  ;;  %v6842_v2 = vmul.f32 -1.442695, %v2368_v37  ;;  %v451_v37 = vld [vmem:[%s11298_s9 + $0x748] sm:$0xff] }
 0x3fd   : > { %v1558_v16 = vadd.f32 %v13498_v38, %v1557_v14  ;;  %v8567_v5 = vpop.f32.mrb[99].mxu0  ;;  %v13796_v46 = vpop.f32.mrb[206].mxu1  ;;  %10688 = vrcp.f32 %v3764_v50  ;;  %v3925_v34 = vadd.f32 1.0, %v10667_v10  ;;  %8730 = vmatprep.mubr.msk.f32.mxu0 %vm11185_vm0, %v15544_v53 }
 0x3fe   : > { %v10669_v43 = vpop.eup %10668  ;;  %v9092_v8 = vpop.f32.mrb[207].mxu1  ;;  %10690 = vrcp.f32 %v3924_v0 }
 0x3ff   : > { %v10671_v3 = vpop.eup %10670  ;;  %v6680_v48 = vmul.f32 -1.442695, %v1558_v16  ;;  %v3926_v14 = vadd.f32 1.0, %v10669_v43  ;;  %v13803_v5 = vpop.f32.mrb[208].mxu1  ;;  %10692 = vrcp.f32 %v3925_v34 }
 0x400   : > { %v13805_v54 = vpop.eup %10672  ;;  %v3765_v50 = vadd.f32 1.0, %v10671_v3  ;;  %v1562_v44 = vpop.f32.mrb[100].mxu0  ;;  %8731 = vmatmul.mubr.f32.gmra.mrb[208].mxu0 %v450_v62 }
 0x401   : > { %v13807_v10 = vpop.eup %10674  ;;  %10694 = vpow2.f32 %v6680_v48  ;;  %v1563_v41 = vadd.f32 %v13498_v38, %v1562_v44  ;;  %v8570_v0 = vpop.f32.mrb[101].mxu0  ;;  %8733 = vmatprep.mubr.msk.f32.mxu0 %vm11185_vm0, %v15544_v53 }
 0x402   : > { %15593 = vst [vmem:[#allocation80_spill] sm:$0xff] %v13807_v10  ;;  %v9095_v16 = vpop.f32.mrb[209].mxu1  ;;  %v13812_v43 = vpop.eup %10676  ;;  %10696 = vrcp.f32 %v3765_v50  ;;  %v2373_v50 = vadd.f32 %v13498_v38, %v13651_v22  ;;  %v2378_v22 = vadd.f32 %v13498_v38, %v13660_v7 }
 0x403   : > { %15594 = vst [vmem:[#allocation81_spill] sm:$0xff] %v13812_v43  ;;  %v13817_v34 = vpop.f32.mrb[210].mxu1  ;;  %v10679_v8 = vpop.eup %10678  ;;  %v6681_v44 = vmul.f32 -1.442695, %v1563_v41  ;;  %10698 = vrcp.f32 %v3926_v14 }
 0x404   : > { %v9098_v3 = vpop.f32.mrb[211].mxu1  ;;  %v13821_v48 = vpop.eup %10680  ;;  %v3766_v0 = vadd.f32 1.0, %v10679_v8  ;;  %10700 = vpow2.f32 %v6841_v42  ;;  %8734 = vmatmul.mubr.f32.gmra.mrb[210].mxu0 %v451_v37  ;;  %v6844_v37 = vmul.f32 -1.442695, %v2378_v22 }
 0x405   : > { %v1567_v16 = vpop.f32.mrb[102].mxu0  ;;  %v10683_v18 = vpop.eup %10682  ;;  %10702 = vpow2.f32 %v6681_v44  ;;  %8736 = vmatprep.mubr.msk.f32.mxu0 %vm11185_vm0, %v15544_v53 }
 0x406   : > { %v1568_v13 = vadd.f32 %v13498_v38, %v1567_v16  ;;  %v8573_v11 = vpop.f32.mrb[103].mxu0  ;;  %v13826_v36 = vpop.f32.mrb[212].mxu1  ;;  %10704 = vrcp.f32 %v3766_v0  ;;  %v3927_v41 = vadd.f32 1.0, %v10683_v18  ;;  %v6843_v16 = vmul.f32 -1.442695, %v2373_v50  ;;  %v452_v50 = vld [vmem:[%s11298_s9 + $0x750] sm:$0xff] }
 0x407   : > { %v10685_v14 = vpop.eup %10684  ;;  %v9101_v8 = vpop.f32.mrb[213].mxu1  ;;  %10706 = vpow2.f32 %v6842_v2  ;;  %v2383_v18 = vadd.f32 %v13498_v38, %v13675_v32 }
 0x408   : > { %v10687_v42 = vpop.eup %10686  ;;  %v6682_v3 = vmul.f32 -1.442695, %v1568_v13  ;;  %v3928_v30 = vadd.f32 1.0, %v10685_v14  ;;  %v13833_v44 = vpop.f32.mrb[214].mxu1  ;;  %10708 = vrcp.f32 %v3927_v41  ;;  %8737 = vmatmul.mubr.f32.gmra.mrb[212].mxu0 %v452_v50 }
 0x409   : > { %v13835_v11 = vpop.eup %10688  ;;  %v3767_v62 = vadd.f32 1.0, %v10687_v42  ;;  %v1572_v0 = vpop.f32.mrb[104].mxu0  ;;  %8739 = vmatprep.mubr.msk.f32.mxu0 %vm11185_vm0, %v15544_v53 }
 0x40a   : > { %v13839_v8 = vpop.eup %10690  ;;  %10710 = vpow2.f32 %v6682_v3  ;;  %v1573_v13 = vadd.f32 %v13498_v38, %v1572_v0  ;;  %v8576_v2 = vpop.f32.mrb[105].mxu0 }
 0x40b   : > { %15595 = vst [vmem:[#allocation82_spill] sm:$0xff] %v13839_v8  ;;  %v9104_v14 = vpop.f32.mrb[215].mxu1  ;;  %v13844_v10 = vpop.eup %10692  ;;  %10712 = vrcp.f32 %v3767_v62  ;;  %v6845_v62 = vmul.f32 -1.442695, %v2383_v18 }
 0x40c   : > { %15596 = vst [vmem:[#allocation83_spill] sm:$0xff] %v13844_v10  ;;  %v13849_v41 = vpop.f32.mrb[216].mxu1  ;;  %v10695_v42 = vpop.eup %10694  ;;  %v6683_v38 = vmul.f32 -1.442695, %v1573_v13  ;;  %10714 = vrcp.f32 %v3928_v30 }
 0x40d   : > { %v9107_v3 = vpop.f32.mrb[217].mxu1  ;;  %v13853_v0 = vpop.eup %10696  ;;  %v3768_v2 = vadd.f32 1.0, %v10695_v42  ;;  %10716 = vpow2.f32 %v6843_v16  ;;  %v453_v16 = vld [vmem:[%s11298_s9 + $0x758] sm:$0xff] }
 0x40e   : > { %v1577_v14 = vpop.f32.mrb[106].mxu0  ;;  %v13855_v7 = vpop.eup %10698  ;;  %10718 = vpow2.f32 %v6683_v38  ;;  %8740 = vmatmul.mubr.f32.gmra.mrb[214].mxu0 %v453_v16 }
 0x40f   : > { %15597 = vst [vmem:[#allocation84_spill] sm:$0xff] %v13855_v7  ;;  %v1578_v13 = vadd.f32 %v13860_v47, %v1577_v14  ;;  %v8579_v30 = vpop.f32.mrb[107].mxu0  ;;  %v13863_v22 = vpop.f32.mrb[218].mxu1  ;;  %10720 = vrcp.f32 %v3768_v2  ;;  %v2388_v14 = vadd.f32 %v13860_v47, %v13684_v12  ;;  %8742 = vmatprep.mubr.msk.f32.mxu0 %vm11185_vm0, %v15544_v53 }
 0x410   : > { %v10701_v3 = vpop.eup %10700  ;;  %v9110_v18 = vpop.f32.mrb[219].mxu1  ;;  %10722 = vpow2.f32 %v6844_v37 }
 0x411   : > { %v10703_v38 = vpop.eup %10702  ;;  %v6684_v32 = vmul.f32 -1.442695, %v1578_v13  ;;  %v3929_v43 = vadd.f32 1.0, %v10701_v3  ;;  %v13872_v50 = vpop.f32.mrb[220].mxu1  ;;  %10724 = vpow2.f32 %v6845_v62  ;;  %v2393_v18 = vadd.f32 %v13860_v47, %v13695_v4  ;;  %v454_v62 = vld [vmem:[%s11298_s9 + $0x760] sm:$0xff] }
 0x412   : > { %v13874_v30 = vpop.eup %10704  ;;  %v3769_v2 = vadd.f32 1.0, %v10703_v38  ;;  %v1582_v8 = vpop.f32.mrb[108].mxu0  ;;  %8743 = vmatmul.mubr.f32.gmra.mrb[216].mxu0 %v454_v62 }
 0x413   : > { %v10707_v23 = vpop.eup %10706  ;;  %10726 = vpow2.f32 %v6684_v32  ;;  %v1583_v13 = vadd.f32 %v13860_v47, %v1582_v8  ;;  %v8582_v3 = vpop.f32.mrb[109].mxu0  ;;  %v6846_v8 = vmul.f32 -1.442695, %v2388_v14  ;;  %8745 = vmatprep.mubr.msk.f32.mxu0 %vm11185_vm0, %v15544_v53 }
 0x414   : > { %v9113_v37 = vpop.f32.mrb[221].mxu1  ;;  %v13881_v42 = vpop.eup %10708  ;;  %10728 = vrcp.f32 %v3769_v2  ;;  %v3930_v38 = vadd.f32 1.0, %v10707_v23 }
 0x415   : > { %15598 = vst [vmem:[#allocation85_spill] sm:$0xff] %v13881_v42  ;;  %v13886_v10 = vpop.f32.mrb[222].mxu1  ;;  %v10711_v4 = vpop.eup %10710  ;;  %v6685_v32 = vmul.f32 -1.442695, %v1583_v13  ;;  %10730 = vrcp.f32 %v3929_v43  ;;  %v6847_v37 = vmul.f32 -1.442695, %v2393_v18 }
 0x416   : > { %v9116_v16 = vpop.f32.mrb[223].mxu1  ;;  %v10713_v3 = vpop.eup %10712  ;;  %v3770_v7 = vadd.f32 1.0, %v10711_v4  ;;  %10732 = vrcp.f32 %v3930_v38  ;;  %v455_v43 = vld [vmem:[%s11298_s9 + $0x768] sm:$0xff] }
 0x417   : > { %v1587_v12 = vpop.f32.mrb[110].mxu0  ;;  %v13888_v9 = vpop.eup %10714  ;;  %10734 = vpow2.f32 %v6685_v32  ;;  %8746 = vmatmul.mubr.f32.gmra.mrb[218].mxu0 %v455_v43 }
 0x418   : > { %15599 = vst [vmem:[#allocation86_spill] sm:$0xff] %v13888_v9  ;;  %v1588_v2 = vadd.f32 %v13860_v47, %v1587_v12  ;;  %v8585_v39 = vpop.f32.mrb[111].mxu0  ;;  %v13891_v23 = vpop.f32.mrb[224].mxu1  ;;  %10736 = vrcp.f32 %v3770_v7  ;;  %v2398_v7 = vadd.f32 %v13860_v47, %v13706_v29  ;;  %8748 = vmatprep.mubr.msk.f32.mxu0 %vm11185_vm0, %v15544_v53 }
 0x419   : > { %v10717_v21 = vpop.eup %10716  ;;  %v9119_v14 = vpop.f32.mrb[225].mxu1  ;;  %10738 = vpow2.f32 %v6846_v8  ;;  %v456_v8 = vld [vmem:[%s11298_s9 + $0x770] sm:$0xff] }
 0x41a   : > { %v10719_v18 = vpop.eup %10718  ;;  %v6686_v38 = vmul.f32 -1.442695, %v1588_v2  ;;  %v3931_v4 = vadd.f32 1.0, %v10717_v21  ;;  %v13898_v32 = vpop.f32.mrb[226].mxu1  ;;  %10740 = vpow2.f32 %v6847_v37 }
 0x41b   : > { %v10721_v39 = vpop.eup %10720  ;;  %v3771_v12 = vadd.f32 1.0, %v10719_v18  ;;  %v1592_v62 = vpop.f32.mrb[112].mxu0  ;;  %8749 = vmatmul.mubr.f32.gmra.mrb[220].mxu0 %v456_v8 }
 0x41c   : > { %v10723_v16 = vpop.eup %10722  ;;  %10742 = vpow2.f32 %v6686_v38  ;;  %v1593_v14 = vadd.f32 %v13860_v47, %v1592_v62  ;;  %v8588_v27 = vpop.f32.mrb[113].mxu0  ;;  %v9372_v13 = vpack.c.bf16 %v10721_v39, %v10713_v3  ;;  %v6848_v62 = vmul.f32 -1.442695, %v2398_v7  ;;  %8751 = vmatprep.mubr.msk.f32.mxu0 %vm11185_vm0, %v15544_v53 }
 0x41d   : > { %v9122_v2 = vpop.f32.mrb[227].mxu1  ;;  %v10725_v21 = vpop.eup %10724  ;;  %10744 = vrcp.f32 %v3771_v12  ;;  %v3932_v18 = vadd.f32 1.0, %v10723_v16  ;;  %v2403_v27 = vadd.f32 %v13860_v47, %v13719_v6  ;;  %v15600_v12 = vpack.c.bf16 %v13591_v15, %v13564_v51 }
 0x41e   : > { %v13906_v42 = vpop.f32.mrb[228].mxu1  ;;  %v10727_v37 = vpop.eup %10726  ;;  %v6687_v9 = vmul.f32 -1.442695, %v1593_v14  ;;  %9373 = vmatprep.subr.bf16.mxu1 %v9372_v13  ;;  %10746 = vrcp.f32 %v3931_v4  ;;  %v3933_v29 = vadd.f32 1.0, %v10725_v21  ;;  %v457_v2 = vld [vmem:[%s11298_s9 + $0x778] sm:$0xff] }
 0x41f   : > { %v9125_v43 = vpop.f32.mrb[229].mxu1  ;;  %v10729_v3 = vpop.eup %10728  ;;  %v3772_v38 = vadd.f32 1.0, %v10727_v37  ;;  %9375 = vmatpush3.bf16.msra.mxu1 %v15600_v12  ;;  %10748 = vrcp.f32 %v3932_v18  ;;  %v6849_v7 = vmul.f32 -1.442695, %v2403_v27  ;;  %8752 = vmatmul.mubr.f32.gmra.mrb[222].mxu0 %v457_v2  ;;  %v2413_v2 = vadd.f32 %v13860_v47, %v13741_v58 }
 0x420   : > { %v1597_v39 = vpop.f32.mrb[114].mxu0  ;;  %v13913_v16 = vpop.eup %10730  ;;  %10750 = vpow2.f32 %v6687_v9  ;;  %8754 = vmatprep.mubr.msk.f32.mxu0 %vm11185_vm0, %v15544_v53 }
 0x421   : > { %15601 = vst [vmem:[#allocation87_spill] sm:$0xff] %v13913_v16  ;;  %v1598_v13 = vadd.f32 %v13860_v47, %v1597_v39  ;;  %v8591_v4 = vpop.f32.mrb[115].mxu0  ;;  %v13916_v14 = vpop.f32.mrb[230].mxu1  ;;  %10752 = vrcp.f32 %v3772_v38  ;;  %v2408_v38 = vadd.f32 %v13860_v47, %v13728_v35 }
 0x422   : > { %15602 = vst [vmem:[#allocation88_spill] sm:$0xff] %v13916_v14  ;;  %v13918_v6 = vpop.eup %10732  ;;  %v9128_v51 = vpop.f32.mrb[231].mxu1  ;;  %10754 = vrcp.f32 %v3933_v29 }
 0x423   : > { %15603 = vst [vmem:[#allocation89_spill] sm:$0xff] %v13918_v6  ;;  %v10735_v15 = vpop.eup %10734  ;;  %v6688_v21 = vmul.f32 -1.442695, %v1598_v13  ;;  %v13923_v18 = vpop.f32.mrb[232].mxu1  ;;  %10756 = vpow2.f32 %v6848_v62  ;;  %v458_v51 = vld [vmem:[%s11298_s9 + $0x780] sm:$0xff] }
 0x424   : > { %v10737_v8 = vpop.eup %10736  ;;  %v3773_v37 = vadd.f32 1.0, %v10735_v15  ;;  %v1602_v43 = vpop.f32.mrb[116].mxu0  ;;  %8755 = vmatmul.mubr.f32.gmra.mrb[224].mxu0 %v458_v51  ;;  %v460_v51 = vld [vmem:[%s11298_s9 + $0x790] sm:$0xff] }
 0x425   : > { %v10739_v39 = vpop.eup %10738  ;;  %10758 = vpow2.f32 %v6688_v21  ;;  %v1603_v12 = vadd.f32 %v13860_v47, %v1602_v43  ;;  %v8594_v13 = vpop.f32.mrb[117].mxu0  ;;  %v9376_v29 = vpack.c.bf16 %v10737_v8, %v10729_v3  ;;  %8757 = vmatprep.mubr.msk.f32.mxu0 %vm11185_vm0, %v15544_v53 }
 0x426   : > { %v13930_v27 = vpop.f32.mrb[233].mxu1  ;;  %v10741_v4 = vpop.eup %10740  ;;  %10760 = vrcp.f32 %v3773_v37  ;;  %v3934_v15 = vadd.f32 1.0, %v10739_v39  ;;  %v15604_v13 = vpack.c.bf16 %v13633_v31, %v13611_v20  ;;  %v6850_v39 = vmul.f32 -1.442695, %v2408_v38  ;;  %v459_v31 = vld [vmem:[%s11298_s9 + $0x788] sm:$0xff] }
 0x427   : > { %v13935_v62 = vpop.f32.mrb[234].mxu1  ;;  %v10743_v9 = vpop.eup %10742  ;;  %v6689_v35 = vmul.f32 -1.442695, %v1603_v12  ;;  %9377 = vmatprep.subr.bf16.mxu1 %v9376_v29  ;;  %v3935_v21 = vadd.f32 1.0, %v10741_v4  ;;  %10762 = vpow2.f32 %v6849_v7  ;;  %v2418_v12 = vadd.f32 %v13860_v47, %v13756_v28 }
 0x428   : > { %v13939_v3 = vpop.f32.mrb[235].mxu1  ;;  %v10745_v8 = vpop.eup %10744  ;;  %v3774_v37 = vadd.f32 1.0, %v10743_v9  ;;  %9379 = vmatpush3.bf16.msra.mxu1 %v15604_v13  ;;  %10764 = vrcp.f32 %v3934_v15  ;;  %v6851_v15 = vmul.f32 -1.442695, %v2413_v2  ;;  %8758 = vmatmul.mubr.f32.gmra.mrb[226].mxu0 %v459_v31 }
 0x429   : > { %v1607_v43 = vpop.f32.mrb[118].mxu0  ;;  %v13946_v29 = vpop.eup %10746  ;;  %10766 = vpow2.f32 %v6689_v35  ;;  %8760 = vmatprep.mubr.msk.f32.mxu0 %vm11185_vm0, %v15544_v53 }
 0x42a   : > { %15605 = vst [vmem:[#allocation90_spill] sm:$0xff] %v13946_v29  ;;  %v1608_v58 = vadd.f32 %v13860_v47, %v1607_v43  ;;  %v8597_v7 = vpop.f32.mrb[119].mxu0  ;;  %v13949_v4 = vpop.f32.mrb[236].mxu1  ;;  %10768 = vrcp.f32 %v3774_v37  ;;  %v6852_v37 = vmul.f32 -1.442695, %v2418_v12 }
 0x42b   : > { %v13951_v9 = vpop.eup %10748  ;;  %v13956_v20 = vpop.f32.mrb[237].mxu1  ;;  %10770 = vrcp.f32 %v3935_v21 }
 0x42c   : > { %15606 = vst [vmem:[#allocation91_spill] sm:$0xff] %v13951_v9  ;;  %v10751_v38 = vpop.eup %10750  ;;  %v6690_v28 = vmul.f32 -1.442695, %v1608_v58  ;;  %v13958_v35 = vpop.f32.mrb[238].mxu1  ;;  %10772 = vpow2.f32 %v6850_v39  ;;  %8761 = vmatmul.mubr.f32.gmra.mrb[228].mxu0 %v460_v51 }
 0x42d   : > { %v10753_v43 = vpop.eup %10752  ;;  %v3775_v13 = vadd.f32 1.0, %v10751_v38  ;;  %v1612_v7 = vpop.f32.mrb[120].mxu0  ;;  %8763 = vmatprep.mubr.msk.f32.mxu0 %vm11185_vm0, %v15544_v53 }
 0x42e   : > { %v13962_v14 = vpop.eup %10754  ;;  %10774 = vpow2.f32 %v6690_v28  ;;  %v1613_v16 = vadd.f32 %v13860_v47, %v1612_v7  ;;  %v8600_v6 = vpop.f32.mrb[121].mxu0  ;;  %v9380_v21 = vpack.c.bf16 %v10753_v43, %v10745_v8  ;;  %v2423_v28 = vadd.f32 %v13860_v47, %v13763_v55 }
 0x42f   : > { %15607 = vst [vmem:[#allocation92_spill] sm:$0xff] %v13962_v14  ;;  %v7305_v2 = vpop.f32.mrb[239].mxu1  ;;  %v10757_v58 = vpop.eup %10756  ;;  %10776 = vrcp.f32 %v3775_v13  ;;  %v15608_v13 = vpack.c.bf16 %v13679_v19, %v13653_v1  ;;  %v461_v19 = vld [vmem:[%s11298_s9 + $0x798] sm:$0xff] }
 0x430   : > { %v13968_v29 = vpop.f32.mrb[240].mxu1  ;;  %v10759_v38 = vpop.eup %10758  ;;  %v6691_v39 = vmul.f32 -1.442695, %v1613_v16  ;;  %9381 = vmatprep.subr.bf16.mxu1 %v9380_v21  ;;  %v3936_v12 = vadd.f32 1.0, %v10757_v58  ;;  %10778 = vpow2.f32 %v6851_v15  ;;  %v2428_v16 = vadd.f32 %v13860_v47, %v13783_v57  ;;  %8764 = vmatmul.mubr.f32.gmra.mrb[230].mxu0 %v461_v19 }
 0x431   : > { %v13972_v6 = vpop.f32.mrb[241].mxu1  ;;  %v10761_v8 = vpop.eup %10760  ;;  %v3776_v31 = vadd.f32 1.0, %v10759_v38  ;;  %9383 = vmatpush3.bf16.msra.mxu1 %v15608_v13  ;;  %10780 = vpow2.f32 %v6852_v37  ;;  %v13989_v57 = vadd.f32 %v13930_v27, %v13923_v18  ;;  %v13993_v37 = vadd.f32 %v13939_v3, %v13935_v62  ;;  %8766 = vmatprep.mubr.msk.f32.mxu0 %vm11185_vm0, %v15544_v53 }
 0x432   : > { %v1617_v43 = vpop.f32.mrb[122].mxu0  ;;  %v13979_v7 = vpop.f32.mrb[242].mxu1  ;;  %10782 = vpow2.f32 %v6691_v39  ;;  %v6854_v27 = vmul.f32 -1.442695, %v2428_v16  ;;  %v14011_v16 = vadd.f32 %v13956_v20, %v13949_v4  ;;  %v15611_v4 = vpack.c.bf16 %v13723_v52, %v13697_v40  ;;  %v463_v52 = vld [vmem:[%s11298_s9 + $0x7a8] sm:$0xff] }
 0x433   : > { %v10763_v15 = vpop.eup %10762  ;;  %v1618_v55 = vadd.f32 %v13860_v47, %v1617_v43  ;;  %v8603_v21 = vpop.f32.mrb[123].mxu0  ;;  %10784 = vrcp.f32 %v3776_v31  ;;  %v6853_v43 = vmul.f32 -1.442695, %v2423_v28  ;;  %v2433_v20 = vadd.f32 %v13860_v47, %v13796_v46 }
 0x434   : > { %v7311_v58 = vpop.f32.mrb[243].mxu1  ;;  %v13982_v9 = vpop.eup %10764  ;;  %v3937_v1 = vadd.f32 1.0, %v10763_v15  ;;  %10786 = vrcp.f32 %v3936_v12 }
 0x435   : > { %15609 = vst [vmem:[#allocation93_spill] sm:$0xff] %v13982_v9  ;;  %v13995_v38 = vpop.f32.mrb[244].mxu1  ;;  %v10767_v51 = vpop.eup %10766  ;;  %v6692_v39 = vmul.f32 -1.442695, %v1618_v55  ;;  %v14036_v46 = vadd.f32 %v7311_v58, %v13979_v7 }
 0x436   : > { %v13997_v31 = vpop.f32.mrb[245].mxu1  ;;  %v10769_v15 = vpop.eup %10768  ;;  %v3777_v21 = vadd.f32 1.0, %v10767_v51  ;;  %10788 = vrcp.f32 %v3937_v1  ;;  %v462_v51 = vld [vmem:[%s11298_s9 + $0x7a0] sm:$0xff]  ;;  %v14014_v1 = vadd.f32 %v7305_v2, %v13958_v35 }
 0x437   : > { %v1622_v18 = vpop.f32.mrb[124].mxu0  ;;  %v14001_v45 = vpop.f32.mrb[246].mxu1  ;;  %10790 = vpow2.f32 %v6692_v39  ;;  %v9384_v28 = vpack.c.bf16 %v10769_v15, %v10761_v8  ;;  %8767 = vmatmul.mubr.f32.gmra.mrb[232].mxu0 %v462_v51 }
 0x438   : > { %v14003_v62 = vpop.eup %10770  ;;  %v1623_v3 = vadd.f32 %v13860_v47, %v1622_v18  ;;  %v8606_v12 = vpop.f32.mrb[125].mxu0  ;;  %10792 = vrcp.f32 %v3777_v21  ;;  %8769 = vmatprep.mubr.msk.f32.mxu0 %vm11185_vm0, %v15544_v53 }
 0x439   : > { %15610 = vst [vmem:[#allocation94_spill] sm:$0xff] %v14003_v62  ;;  %v7317_v55 = vpop.f32.mrb[247].mxu1  ;;  %v10773_v24 = vpop.eup %10772  ;;  %9385 = vmatprep.subr.bf16.mxu1 %v9384_v28  ;;  %10794 = vpow2.f32 %v6853_v43 }
 0x43a   : > { %v14016_v39 = vpop.f32.mrb[248].mxu1  ;;  %v10775_v18 = vpop.eup %10774  ;;  %v6693_v12 = vmul.f32 -1.442695, %v1623_v3  ;;  %v3938_v8 = vadd.f32 1.0, %v10773_v24  ;;  %9387 = vmatpush3.bf16.msra.mxu1 %v15611_v4  ;;  %10796 = vpow2.f32 %v6854_v27  ;;  %v14033_v27 = vadd.f32 %v13972_v6, %v13968_v29 }
 0x43b   : > { %v14018_v19 = vpop.f32.mrb[249].mxu1  ;;  %v10777_v15 = vpop.eup %10776  ;;  %v3778_v21 = vadd.f32 1.0, %v10775_v18  ;;  %v6855_v29 = vmul.f32 -1.442695, %v2433_v20  ;;  %8770 = vmatmul.mubr.f32.gmra.mrb[234].mxu0 %v463_v52  ;;  %v14056_v20 = vadd.f32 %v13997_v31, %v13995_v38  ;;  %v2443_v31 = vadd.f32 %v13860_v47, %v13817_v34 }
 0x43c   : > { %v1627_v13 = vpop.f32.mrb[126].mxu0  ;;  %v14025_v35 = vpop.f32.mrb[250].mxu1  ;;  %10798 = vpow2.f32 %v6693_v12  ;;  %8772 = vmatprep.mubr.msk.f32.mxu0 %vm11185_vm0, %v15544_v53 }
 0x43d   : > { %v10779_v2 = vpop.eup %10778  ;;  %v1628_v24 = vadd.f32 %v13860_v47, %v1627_v13  ;;  %v8609_v43 = vpop.f32.mrb[127].mxu0  ;;  %10800 = vrcp.f32 %v3778_v21  ;;  %v2438_v21 = vadd.f32 %v13860_v47, %v13803_v5 }
 0x43e   : > { %v7323_v3 = vpop.f32.mrb[251].mxu1  ;;  %v10781_v28 = vpop.eup %10780  ;;  %v3939_v40 = vadd.f32 1.0, %v10779_v2  ;;  %10802 = vrcp.f32 %v3938_v8 }
 0x43f   : > { %v14038_v18 = vpop.f32.mrb[252].mxu1  ;;  %v10783_v13 = vpop.eup %10782  ;;  %v6694_v12 = vmul.f32 -1.442695, %v1628_v24  ;;  %v3940_v51 = vadd.f32 1.0, %v10781_v28  ;;  %v14083_v34 = vadd.f32 %v7323_v3, %v14025_v35 }
 0x440   : > { %v14042_v4 = vpop.f32.mrb[253].mxu1  ;;  %v10785_v43 = vpop.eup %10784  ;;  %v3779_v2 = vadd.f32 1.0, %v10783_v13  ;;  %10804 = vrcp.f32 %v3939_v40  ;;  %v464_v13 = vld [vmem:[%s11298_s9 + $0x7b0] sm:$0xff]  ;;  %v14059_v40 = vadd.f32 %v7317_v55, %v14001_v45  ;;  %v15613_v45 = vpack.c.bf16 %v13767_v17, %v13745_v63  ;;  %v465_v17 = vld [vmem:[%s11298_s9 + $0x7b8] sm:$0xff] }
 0x441   : > { %v1632_v14 = vpop.f32.mrb[128].mxu0  ;;  %v14044_v6 = vpop.f32.mrb[254].mxu1  ;;  %10806 = vpow2.f32 %v6694_v12  ;;  %v9388_v24 = vpack.c.bf16 %v10785_v43, %v10777_v15  ;;  %v6856_v43 = vmul.f32 -1.442695, %v2438_v21  ;;  %8773 = vmatmul.mubr.f32.gmra.mrb[236].mxu0 %v464_v13 }
 0x442   : > { %v14046_v7 = vpop.eup %10786  ;;  %v1633_v58 = vadd.f32 %v13860_v47, %v1632_v14  ;;  %v8612_v8 = vpop.f32.mrb[129].mxu0  ;;  %10808 = vrcp.f32 %v3779_v2  ;;  %8775 = vmatprep.mubr.msk.f32.mxu0 %vm11185_vm0, %v15544_v53 }
 0x443   : > { %15612 = vst [vmem:[#allocation95_spill] sm:$0xff] %v14046_v7  ;;  %v7361_v28 = vpop.f32.mrb[255].mxu1  ;;  %v14049_v5 = vpop.eup %10788  ;;  %9389 = vmatprep.subr.bf16.mxu1 %v9388_v24  ;;  %10810 = vrcp.f32 %v3940_v51 }
 0x444   : > { %v14061_v12 = vpop.f32.mrb[0].mxu1  ;;  %v10791_v15 = vpop.eup %10790  ;;  %v6695_v52 = vmul.f32 -1.442695, %v1633_v58  ;;  %9391 = vmatpush3.bf16.msra.mxu1 %v15613_v45  ;;  %10812 = vpow2.f32 %v6855_v29  ;;  %v14080_v29 = vadd.f32 %v14018_v19, %v14016_v39  ;;  %v6857_v39 = vmul.f32 -1.442695, %v2443_v31  ;;  %v466_v31 = vld [vmem:[%s11298_s9 + $0x7c0] sm:$0xff] }
 0x445   : > { %v14065_v2 = vpop.f32.mrb[1].mxu1  ;;  %v10793_v8 = vpop.eup %10792  ;;  %v3780_v9 = vadd.f32 1.0, %v10791_v15  ;;  %v2453_v19 = vadd.f32 %v13860_v47, %v13833_v44  ;;  %8776 = vmatmul.mubr.f32.gmra.mrb[238].mxu0 %v465_v17  ;;  %v14105_v44 = vadd.f32 %v14042_v4, %v14038_v18  ;;  %v15614_v18 = vpack.c.bf16 %v13805_v54, %v13785_v26 }
 0x446   : > { %v1637_v38 = vpop.f32.mrb[130].mxu0  ;;  %v14072_v55 = vpop.f32.mrb[2].mxu1  ;;  %10814 = vpow2.f32 %v6695_v52  ;;  %8778 = vmatprep.mubr.msk.f32.mxu0 %vm11185_vm0, %v15544_v53  ;;  %v7365_v26 = vadd.f32 %v14065_v2, %v14061_v12 }
 0x447   : > { %v10795_v58 = vpop.eup %10794  ;;  %v1638_v51 = vadd.f32 %v13860_v47, %v1637_v38  ;;  %v8615_v21 = vpop.f32.mrb[131].mxu0  ;;  %10816 = vrcp.f32 %v3780_v9  ;;  %v2448_v9 = vadd.f32 %v13860_v47, %v13826_v36  ;;  %v6859_v4 = vmul.f32 -1.442695, %v2453_v19 }
 0x448   : > { %v7367_v24 = vpop.f32.mrb[3].mxu1  ;;  %v10797_v14 = vpop.eup %10796  ;;  %v3941_v63 = vadd.f32 1.0, %v10795_v58  ;;  %10818 = vpow2.f32 %v6856_v43  ;;  %v14139_v12 = vadd.f32 %v7365_v26, %v13993_v37 }
 0x449   : > { %v14085_v15 = vpop.f32.mrb[4].mxu1  ;;  %v10799_v52 = vpop.eup %10798  ;;  %v6696_v38 = vmul.f32 -1.442695, %v1638_v51  ;;  %v3942_v13 = vadd.f32 1.0, %v10797_v14  ;;  %8779 = vmatmul.mubr.f32.gmra.mrb[240].mxu0 %v466_v31 }
 0x44a   : > { %v14089_v45 = vpop.f32.mrb[5].mxu1  ;;  %v10801_v21 = vpop.eup %10800  ;;  %v3781_v58 = vadd.f32 1.0, %v10799_v52  ;;  %10820 = vrcp.f32 %v3941_v63  ;;  %v7362_v63 = vadd.f32 %v7361_v28, %v14044_v6 }
 0x44b   : > { %v1642_v62 = vpop.f32.mrb[132].mxu0  ;;  %v14093_v35 = vpop.f32.mrb[6].mxu1  ;;  %10822 = vpow2.f32 %v6696_v38  ;;  %v9392_v36 = vpack.c.bf16 %v10801_v21, %v10793_v8  ;;  %v6858_v38 = vmul.f32 -1.442695, %v2448_v9  ;;  %v7371_v37 = vadd.f32 %v14089_v45, %v14085_v15 }
 0x44c   : > { %v14095_v3 = vpop.eup %10802  ;;  %v1643_v14 = vadd.f32 %v13860_v47, %v1642_v62  ;;  %v8618_v43 = vpop.f32.mrb[133].mxu0  ;;  %10824 = vrcp.f32 %v3781_v58  ;;  %v14118_v6 = vadd.f32 %v7362_v63, %v13989_v57  ;;  %v7368_v57 = vadd.f32 %v7367_v24, %v14072_v55 }
 0x44d   : > { %v7373_v51 = vpop.f32.mrb[7].mxu1  ;;  %v14098_v7 = vpop.eup %10804  ;;  %9393 = vmatprep.subr.bf16.mxu1 %v9392_v36  ;;  %10826 = vrcp.f32 %v3942_v13  ;;  %v2458_v36 = vadd.f32 %v13860_v47, %v13849_v41  ;;  %v2463_v41 = vadd.f32 %v13860_v47, %v13863_v22  ;;  %v15615_v15 = vpack.c.bf16 %v13835_v11, %v13821_v48 }
 0x44e   : > { %v14108_v52 = vpop.f32.mrb[8].mxu1  ;;  %v10807_v8 = vpop.eup %10806  ;;  %v6697_v17 = vmul.f32 -1.442695, %v1643_v14  ;;  %9395 = vmatpush3.bf16.msra.mxu1 %v15614_v18  ;;  %10828 = vpow2.f32 %v6857_v39  ;;  %v14142_v2 = vadd.f32 %v7368_v57, %v14011_v16  ;;  %v7374_v16 = vadd.f32 %v7373_v51, %v14093_v35 }
 0x44f   : > { %v14112_v21 = vpop.f32.mrb[9].mxu1  ;;  %v10809_v58 = vpop.eup %10808  ;;  %v3782_v43 = vadd.f32 1.0, %v10807_v8  ;;  %v14162_v45 = vadd.f32 %v7371_v37, %v14014_v1 }
 0x450   : > { %v1647_v53 = vpop.f32.mrb[134].mxu0  ;;  %v14120_v28 = vpop.f32.mrb[10].mxu1  ;;  %10830 = vpow2.f32 %v6697_v17  ;;  %v14165_v35 = vadd.f32 %v7374_v16, %v14033_v27  ;;  %v7377_v48 = vadd.f32 %v14112_v21, %v14108_v52 }
 0x451   : > { %v14122_v14 = vpop.eup %10810  ;;  %v1648_v13 = vadd.f32 %v13860_v47, %v1647_v53  ;;  %v8621_v9 = vpop.f32.mrb[135].mxu0  ;;  %10832 = vrcp.f32 %v3782_v43 }
 0x452   : > { %v7379_v8 = vpop.f32.mrb[11].mxu1  ;;  %v10813_v54 = vpop.eup %10812  ;;  %10834 = vpow2.f32 %v6858_v38  ;;  %v14182_v52 = vadd.f32 %v7377_v48, %v14036_v46 }
 0x453   : > { %v14130_v39 = vpop.f32.mrb[12].mxu1  ;;  %v10815_v63 = vpop.eup %10814  ;;  %v6698_v53 = vmul.f32 -1.442695, %v1648_v13  ;;  %v3943_v17 = vadd.f32 1.0, %v10813_v54  ;;  %10836 = vpow2.f32 %v6859_v4  ;;  %v6860_v54 = vmul.f32 -1.442695, %v2458_v36 }
 0x454   : > { %v14136_v31 = vpop.f32.mrb[13].mxu1  ;;  %v10817_v43 = vpop.eup %10816  ;;  %v3783_v18 = vadd.f32 1.0, %v10815_v63  ;;  %v7380_v11 = vadd.f32 %v7379_v8, %v14120_v28 }
 0x455   : > { %v1652_v9 = vpop.f32.mrb[136].mxu0  ;;  %v14144_v55 = vpop.f32.mrb[14].mxu1  ;;  %10838 = vpow2.f32 %v6698_v53  ;;  %v9396_v22 = vpack.c.bf16 %v10817_v43, %v10809_v58  ;;  %v6861_v53 = vmul.f32 -1.442695, %v2463_v41  ;;  %v2468_v58 = vadd.f32 %v13860_v47, %v13872_v50 }
 0x456   : > { %v10819_v24 = vpop.eup %10818  ;;  %v1653_v38 = vadd.f32 %v13860_v47, %v1652_v9  ;;  %v8624_v13 = vpop.f32.mrb[137].mxu0  ;;  %10840 = vrcp.f32 %v3783_v18  ;;  %v14185_v21 = vadd.f32 %v7380_v11, %v14056_v20  ;;  %v7383_v20 = vadd.f32 %v14136_v31, %v14130_v39 }
 0x457   : > { %v7385_v19 = vpop.f32.mrb[15].mxu1  ;;  %v14147_v62 = vpop.eup %10820  ;;  %v3944_v4 = vadd.f32 1.0, %v10819_v24  ;;  %9397 = vmatprep.subr.bf16.mxu1 %v9396_v22  ;;  %10842 = vrcp.f32 %v3943_v17  ;;  %v6862_v37 = vmul.f32 -1.442695, %v2468_v58  ;;  %v15616_v39 = vpack.c.bf16 %v13874_v30, %v13853_v0  ;;  %v4720_v30 = vld [vmem:[%s15395_s3 + $0x110] sm:$0xff] }
 0x458   : > { %v14152_v26 = vpop.f32.mrb[16].mxu1  ;;  %v10823_v57 = vpop.eup %10822  ;;  %v6699_v63 = vmul.f32 -1.442695, %v1653_v38  ;;  %9399 = vmatpush3.bf16.msra.mxu1 %v15615_v15  ;;  %v2473_v15 = vadd.f32 %v13860_v47, %v13886_v10  ;;  %v2478_v10 = vadd.f32 %v13860_v47, %v13891_v23  ;;  %v14212_v31 = vadd.f32 %v7383_v20, %v14059_v40 }
 0x459   : > { %v14156_v36 = vpop.f32.mrb[17].mxu1  ;;  %v10825_v43 = vpop.eup %10824  ;;  %v3784_v18 = vadd.f32 1.0, %v10823_v57  ;;  %10844 = vrcp.f32 %v3944_v4 }
 0x45a   : > { %v1657_v9 = vpop.f32.mrb[138].mxu0  ;;  %v14167_v51 = vpop.f32.mrb[18].mxu1  ;;  %10846 = vpow2.f32 %v6699_v63  ;;  %v6863_v40 = vmul.f32 -1.442695, %v2473_v15  ;;  %v14234_v20 = vmul.f32 -1.442695, %v2478_v10 }
 0x45b   : > { %v14169_v17 = vpop.eup %10826  ;;  %v1658_v50 = vadd.f32 %v13860_v47, %v1657_v9  ;;  %v8627_v41 = vpop.f32.mrb[139].mxu0  ;;  %10848 = vrcp.f32 %v3784_v18 }
 0x45c   : > { %v7391_v24 = vpop.f32.mrb[19].mxu1  ;;  %v10829_v38 = vpop.eup %10828  ;;  %10850 = vpow2.f32 %v6860_v54  ;;  %v7386_v41 = vadd.f32 %v7385_v19, %v14144_v55  ;;  %v4696_v19 = vld [vmem:[%s15395_s3 + $0x50] sm:$0xff] }
 0x45d   : > { %v14175_v1 = vpop.f32.mrb[20].mxu1  ;;  %v10831_v13 = vpop.eup %10830  ;;  %v6700_v22 = vmul.f32 -1.442695, %v1658_v50  ;;  %v3945_v4 = vadd.f32 1.0, %v10829_v38  ;;  %10852 = vpow2.f32 %v6861_v53 }
 0x45e   : > { %v14179_v16 = vpop.f32.mrb[21].mxu1  ;;  %v10833_v57 = vpop.eup %10832  ;;  %v3785_v63 = vadd.f32 1.0, %v10831_v13  ;;  %v14215_v23 = vadd.f32 %v7386_v41, %v14080_v29  ;;  %v7389_v29 = vadd.f32 %v14156_v36, %v14152_v26  ;;  %v4719_v26 = vld [vmem:[%s15395_s3 + $0x108] sm:$0xff] }
 0x45f   : > { %v1662_v18 = vpop.f32.mrb[140].mxu0  ;;  %v14187_v28 = vpop.f32.mrb[22].mxu1  ;;  %10854 = vpow2.f32 %v6700_v22  ;;  %v9400_v58 = vpack.c.bf16 %v10833_v57, %v10825_v43 }
 0x460   : > { %v10835_v8 = vpop.eup %10834  ;;  %v1663_v9 = vadd.f32 %v13860_v47, %v1662_v18  ;;  %v8630_v54 = vpop.f32.mrb[141].mxu0  ;;  %10856 = vrcp.f32 %v3785_v63  ;;  %v14246_v36 = vadd.f32 %v7389_v29, %v14083_v34 }
 0x461   : > { %v14192_v50 = vpop.f32.mrb[23].mxu1  ;;  %v10837_v53 = vpop.eup %10836  ;;  %v3946_v46 = vadd.f32 1.0, %v10835_v8  ;;  %9401 = vmatprep.subr.bf16.mxu1 %v9400_v58  ;;  %10858 = vrcp.f32 %v3945_v4  ;;  %v7392_v54 = vadd.f32 %v7391_v24, %v14167_v51 }
 0x462   : > { %v14197_v38 = vpop.f32.mrb[24].mxu1  ;;  %v10839_v48 = vpop.eup %10838  ;;  %v6701_v11 = vmul.f32 -1.442695, %v1663_v9  ;;  %v3947_v43 = vadd.f32 1.0, %v10837_v53  ;;  %9403 = vmatpush3.bf16.msra.mxu1 %v15616_v39  ;;  %v4743_v39 = vld [vmem:[%s15395_s3 + $0x1c8] sm:$0xff] }
 0x463   : > { %v14201_v13 = vpop.f32.mrb[25].mxu1  ;;  %v14203_v22 = vpop.eup %10840  ;;  %v3786_v57 = vadd.f32 1.0, %v10839_v48  ;;  %10860 = vrcp.f32 %v3946_v46  ;;  %v14249_v51 = vadd.f32 %v7392_v54, %v14105_v44 }
 0x464   : > { %v1667_v63 = vpop.f32.mrb[142].mxu0  ;;  %v14217_v55 = vpop.f32.mrb[26].mxu1  ;;  %10862 = vpow2.f32 %v6701_v11 }
 0x465   : > { %v14219_v4 = vpop.eup %10842  ;;  %v1668_v18 = vadd.f32 %v13860_v47, %v1667_v63  ;;  %v8633_v0 = vpop.f32.mrb[143].mxu0  ;;  %10864 = vrcp.f32 %v3786_v57  ;;  %5642 = vmatmul.mubr.f32.vlgmr.msra.gmra.mrb[86].mxu1 %v4696_v19 }
 0x466   : > { %15617 = vst [vmem:[#allocation96_spill] sm:$0xff] %v14219_v4  ;;  %v14225_v8 = vpop.f32.mrb[27].mxu1  ;;  %v14227_v9 = vpop.eup %10844  ;;  %10866 = vrcp.f32 %v3947_v43  ;;  %5646 = vmatprep.mubr.f32.mxu1 %v4720_v30  ;;  %v7427_v0 = vadd.f32 %v14179_v16, %v14175_v1  ;;  %v7430_v30 = vadd.f32 %v14192_v50, %v14187_v28  ;;  %v4742_v1 = vld [vmem:[%s15395_s3 + $0x1c0] sm:$0xff] }
 0x467   : > { %v14232_v58 = vpop.f32.mrb[28].mxu1  ;;  %v10847_v53 = vpop.eup %10846  ;;  %v6702_v46 = vmul.f32 -1.442695, %v1668_v18  ;;  %10868 = vpow2.f32 %v6862_v37  ;;  %v2483_v37 = vadd.f32 %v13860_v47, %v13898_v32  ;;  %v2488_v32 = vadd.f32 %v13860_v47, %v13906_v42  ;;  %v14289_v42 = vld [vmem:[%s15394_s2] ss:$0 sm:$0xff] }
 0x468   : > { %v14236_v41 = vpop.f32.mrb[29].mxu1  ;;  %v14240_v11 = vpop.eup %10848  ;;  %v3787_v15 = vadd.f32 1.0, %v10847_v53  ;;  %v14277_v16 = vadd.f32 %v7427_v0, %v14118_v6  ;;  %v14280_v28 = vadd.f32 %v7430_v30, %v14139_v12  ;;  %v4766_v6 = vld [vmem:[%s15395_s3 + $0x280] sm:$0xff] }
 0x469   : > { %v1672_v57 = vpop.f32.mrb[144].mxu0  ;;  %v14251_v24 = vpop.f32.mrb[30].mxu1  ;;  %10870 = vpow2.f32 %v6702_v46  ;;  %5647 = vmatmul.mubr.f32.gmra.mrb[88].mxu1 %v4719_v26 }
 0x46a   : > { %v10851_v43 = vpop.eup %10850  ;;  %v1673_v10 = vadd.f32 %v13860_v47, %v1672_v57  ;;  %v8636_v63 = vpop.f32.mrb[145].mxu0  ;;  %10872 = vrcp.f32 %v3787_v15  ;;  %5651 = vmatprep.mubr.f32.mxu1 %v4743_v39  ;;  %v6865_v39 = vmul.f32 -1.442695, %v2483_v37 }
 0x46b   : > { %v7441_v19 = vpop.f32.mrb[31].mxu1  ;;  %v10853_v44 = vpop.eup %10852  ;;  %v3948_v18 = vadd.f32 1.0, %v10851_v43  ;;  %10874 = vpow2.f32 %v6863_v40 }
 0x46c   : > { %v14265_v29 = vpop.f32.mrb[32].mxu1  ;;  %v10855_v54 = vpop.eup %10854  ;;  %v6703_v53 = vmul.f32 -1.442695, %v1673_v10  ;;  %v3949_v46 = vadd.f32 1.0, %v10853_v44  ;;  %v7433_v44 = vadd.f32 %v14201_v13, %v14197_v38  ;;  %v4765_v38 = vld [vmem:[%s15395_s3 + $0x278] sm:$0xff] }
 0x46d   : > { %v14269_v57 = vpop.f32.mrb[33].mxu1  ;;  %v14271_v15 = vpop.eup %10856  ;;  %v3788_v43 = vadd.f32 1.0, %v10855_v54  ;;  %10876 = vrcp.f32 %v3948_v18  ;;  %v7436_v18 = vadd.f32 %v14225_v8, %v14217_v55  ;;  %5652 = vmatmul.mubr.f32.gmra.mrb[90].mxu1 %v4742_v1 }
 0x46e   : > { %v1677_v63 = vpop.f32.mrb[146].mxu0  ;;  %v14282_v50 = vpop.f32.mrb[34].mxu1  ;;  %10878 = vpow2.f32 %v6703_v53  ;;  %v6866_v53 = vmul.f32 -1.442695, %v2488_v32  ;;  %5656 = vmatprep.mubr.f32.mxu1 %v4766_v6  ;;  %v14314_v13 = vadd.f32 %v7433_v44, %v14142_v2  ;;  %v7442_v44 = vadd.f32 %v7441_v19, %v14251_v24 }
 0x46f   : > { %v14284_v47 = vpop.eup %10858  ;;  %v1678_v40 = vadd.f32 %v14289_v42, %v1677_v63  ;;  %v8639_v26 = vpop.f32.mrb[147].mxu0  ;;  %10880 = vrcp.f32 %v3788_v43  ;;  %v14317_v55 = vadd.f32 %v7436_v18, %v14162_v45  ;;  %v7439_v45 = vadd.f32 %v14236_v41, %v14232_v58  ;;  %v4788_v58 = vld [vmem:[%s15395_s3 + $0x330] sm:$0xff] }
 0x470   : > { %15618 = vst [vmem:[#allocation97_spill] sm:$0xff] %v14284_v47  ;;  %v7447_v10 = vpop.f32.mrb[35].mxu1  ;;  %v14295_v12 = vpop.eup %10860  ;;  %10882 = vrcp.f32 %v3949_v46  ;;  %v14345_v24 = vadd.f32 %v7442_v44, %v14182_v52 }
 0x471   : > { %15619 = vst [vmem:[#allocation98_spill] sm:$0xff] %v14295_v12  ;;  %v14301_v0 = vpop.f32.mrb[36].mxu1  ;;  %v10863_v30 = vpop.eup %10862  ;;  %v6704_v54 = vmul.f32 -1.442695, %v1678_v40  ;;  %10884 = vpow2.f32 %v14234_v20  ;;  %v4789_v40 = vld [vmem:[%s15395_s3 + $0x338] sm:$0xff]  ;;  %5657 = vmatmul.mubr.f32.gmra.mrb[92].mxu1 %v4765_v38  ;;  %v14342_v41 = vadd.f32 %v7439_v45, %v14165_v35  ;;  %v7445_v35 = vadd.f32 %v14269_v57, %v14265_v29  ;;  %v4811_v29 = vld [vmem:[%s15395_s3 + $0x3e8] sm:$0xff] }
 0x472   : > { %v14303_v63 = vpop.f32.mrb[37].mxu1  ;;  %v14307_v43 = vpop.eup %10864  ;;  %v3789_v37 = vadd.f32 1.0, %v10863_v30  ;;  %5661 = vmatprep.mubr.f32.mxu1 %v4789_v40  ;;  %v7448_v52 = vadd.f32 %v7447_v10, %v14282_v50 }
 0x473   : > { %v1682_v48 = vpop.f32.mrb[148].mxu0  ;;  %v14319_v8 = vpop.f32.mrb[38].mxu1  ;;  %10886 = vpow2.f32 %v6704_v54  ;;  %v14366_v57 = vadd.f32 %v7445_v35, %v14185_v21 }
 0x474   : > { %v14321_v46 = vpop.eup %10866  ;;  %v1683_v32 = vadd.f32 %v14289_v42, %v1682_v48  ;;  %v8642_v1 = vpop.f32.mrb[149].mxu0  ;;  %10888 = vrcp.f32 %v3789_v37  ;;  %v14369_v50 = vadd.f32 %v7448_v52, %v14212_v31  ;;  %v7451_v31 = vadd.f32 %v14303_v63, %v14301_v0  ;;  %v4834_v0 = vld [vmem:[%s15395_s3 + $0x4a0] sm:$0xff] }
 0x475   : > { %15620 = vst [vmem:[#allocation99_spill] sm:$0xff] %v14321_v46  ;;  %v7453_v2 = vpop.f32.mrb[39].mxu1  ;;  %v10869_v6 = vpop.eup %10868  ;;  %10890 = vpow2.f32 %v6865_v39  ;;  %5662 = vmatmul.mubr.f32.gmra.mrb[94].mxu1 %v4788_v58 }
 0x476   : > { %v14332_v18 = vpop.f32.mrb[40].mxu1  ;;  %v10871_v30 = vpop.eup %10870  ;;  %v6705_v48 = vmul.f32 -1.442695, %v1683_v32  ;;  %v3950_v54 = vadd.f32 1.0, %v10869_v6  ;;  %10892 = vpow2.f32 %v6866_v53  ;;  %v4812_v32 = vld [vmem:[%s15395_s3 + $0x3f0] sm:$0xff]  ;;  %v7454_v52 = vadd.f32 %v7453_v2, %v14319_v8 }
 0x477   : > { %v14334_v1 = vpop.f32.mrb[41].mxu1  ;;  %v14336_v26 = vpop.eup %10872  ;;  %v3790_v27 = vadd.f32 1.0, %v10871_v30  ;;  %5666 = vmatprep.mubr.f32.mxu1 %v4812_v32  ;;  %v14394_v63 = vadd.f32 %v7451_v31, %v14215_v23 }
 0x478   : > { %v1687_v20 = vpop.f32.mrb[150].mxu0  ;;  %v7490_v19 = vpop.f32.mrb[42].mxu1  ;;  %10894 = vpow2.f32 %v6705_v48  ;;  %v14397_v8 = vadd.f32 %v7454_v52, %v14246_v36  ;;  %v7457_v23 = vadd.f32 %v14334_v1, %v14332_v18  ;;  %v4857_v18 = vld [vmem:[%s15395_s3 + $0x558] sm:$0xff] }
 0x479   : > { %v10875_v39 = vpop.eup %10874  ;;  %v1688_v37 = vadd.f32 %v14289_v42, %v1687_v20  ;;  %v8645_v38 = vpop.f32.mrb[151].mxu0  ;;  %10896 = vrcp.f32 %v3790_v27  ;;  %5667 = vmatmul.mubr.f32.gmra.mrb[96].mxu1 %v4811_v29 }
 0x47a   : > { %v7491_v40 = vpop.f32.mrb[43].mxu1  ;;  %v14351_v6 = vpop.eup %10876  ;;  %v3951_v53 = vadd.f32 1.0, %v10875_v39  ;;  %10898 = vrcp.f32 %v3950_v54 }
 0x47b   : > { %15621 = vst [vmem:[#allocation100_spill] sm:$0xff] %v14351_v6  ;;  %v14356_v45 = vpop.f32.mrb[44].mxu1  ;;  %v10879_v44 = vpop.eup %10878  ;;  %v6706_v30 = vmul.f32 -1.442695, %v1688_v37  ;;  %v4835_v37 = vld [vmem:[%s15395_s3 + $0x4a8] sm:$0xff] }
 0x47c   : > { %v7494_v20 = vpop.f32.mrb[45].mxu1  ;;  %v14360_v38 = vpop.eup %10880  ;;  %v3791_v34 = vadd.f32 1.0, %v10879_v44  ;;  %5671 = vmatprep.mubr.f32.mxu1 %v4835_v37  ;;  %v4858_v37 = vld [vmem:[%s15395_s3 + $0x560] sm:$0xff] }
 0x47d   : > { %v1692_v27 = vpop.f32.mrb[152].mxu0  ;;  %v14371_v10 = vpop.f32.mrb[46].mxu1  ;;  %10900 = vpow2.f32 %v6706_v30  ;;  %5672 = vmatmul.mubr.f32.gmra.mrb[98].mxu1 %v4834_v0  ;;  %v7495_v1 = vadd.f32 %v7494_v20, %v14356_v45 }
 0x47e   : > { %v14373_v54 = vpop.eup %10882  ;;  %v1693_v58 = vadd.f32 %v14289_v42, %v1692_v27  ;;  %v8648_v39 = vpop.f32.mrb[153].mxu0  ;;  %10902 = vrcp.f32 %v3951_v53  ;;  %5676 = vmatprep.mubr.f32.mxu1 %v4858_v37 }
 0x47f   : > { %15622 = vst [vmem:[#allocation101_spill] sm:$0xff] %v14373_v54  ;;  %v7497_v21 = vpop.f32.mrb[47].mxu1  ;;  %v10885_v35 = vpop.eup %10884  ;;  %10904 = vrcp.f32 %v3791_v34  ;;  %v7492_v34 = vadd.f32 %v7491_v40, %v7490_v19 }
 0x480   : > { %v14384_v44 = vpop.f32.mrb[48].mxu1  ;;  %v10887_v30 = vpop.eup %10886  ;;  %v6707_v27 = vmul.f32 -1.442695, %v1693_v58  ;;  %v3952_v39 = vadd.f32 1.0, %v10885_v35  ;;  %v7498_v45 = vadd.f32 %v7497_v21, %v14371_v10 }
 0x481   : > { %v14386_v48 = vpop.f32.mrb[49].mxu1  ;;  %v14388_v46 = vpop.eup %10888  ;;  %v3792_v32 = vadd.f32 1.0, %v10887_v30  ;;  %v14406_v36 = vadd.f32 %v7492_v34, %v14277_v16  ;;  %v14418_v16 = vadd.f32 %v7457_v23, %v14249_v51  ;;  %v14430_v51 = vadd.f32 %v7495_v1, %v14280_v28  ;;  %5677 = vmatmul.mubr.f32.gmra.mrb[100].mxu1 %v4857_v18  ;;  %v4880_v28 = vld [vmem:[%s15395_s3 + $0x610] sm:$0xff] }
 0x482   : > { %v1697_v6 = vpop.f32.mrb[154].mxu0  ;;  %v7502_v2 = vpop.f32.mrb[50].mxu1  ;;  %10906 = vpow2.f32 %v6707_v27  ;;  %v14443_v10 = vadd.f32 %v7498_v45, %v14314_v13 }
 0x483   : > { %v10891_v53 = vpop.eup %10890  ;;  %v1698_v29 = vadd.f32 %v14289_v42, %v1697_v6  ;;  %v8651_v58 = vpop.f32.mrb[155].mxu0  ;;  %10908 = vrcp.f32 %v3792_v32 }
 0x484   : > { %v7503_v35 = vpop.f32.mrb[51].mxu1  ;;  %v10893_v30 = vpop.eup %10892  ;;  %v3953_v47 = vadd.f32 1.0, %v10891_v53  ;;  %10910 = vrcp.f32 %v3952_v39 }
 0x485   : > { %v14408_v19 = vpop.f32.mrb[52].mxu1  ;;  %v10895_v40 = vpop.eup %10894  ;;  %v6708_v31 = vmul.f32 -1.442695, %v1698_v29  ;;  %v3954_v6 = vadd.f32 1.0, %v10893_v30  ;;  %v4881_v29 = vld [vmem:[%s15395_s3 + $0x618] sm:$0xff] }
 0x486   : > { %v14410_v52 = vpop.f32.mrb[53].mxu1  ;;  %v14412_v27 = vpop.eup %10896  ;;  %v3793_v58 = vadd.f32 1.0, %v10895_v40  ;;  %10912 = vrcp.f32 %v3953_v47  ;;  %5681 = vmatprep.mubr.f32.mxu1 %v4881_v29  ;;  %v7501_v29 = vadd.f32 %v14386_v48, %v14384_v44 }
 0x487   : > { %v1702_v32 = vpop.f32.mrb[156].mxu0  ;;  %v7508_v0 = vpop.f32.mrb[54].mxu1  ;;  %10914 = vpow2.f32 %v6708_v31  ;;  %5682 = vmatmul.mubr.f32.gmra.mrb[102].mxu1 %v4880_v28 }
 0x488   : > { %v14421_v39 = vpop.eup %10898  ;;  %v1703_v34 = vadd.f32 %v14289_v42, %v1702_v32  ;;  %v8654_v53 = vpop.f32.mrb[157].mxu0  ;;  %10916 = vrcp.f32 %v3954_v6 }
 0x489   : > { %15623 = vst [vmem:[#allocation102_spill] sm:$0xff] %v14421_v39  ;;  %v7509_v47 = vpop.f32.mrb[55].mxu1  ;;  %v10901_v23 = vpop.eup %10900  ;;  %10918 = vrcp.f32 %v3793_v58  ;;  %v4904_v58 = vld [vmem:[%s15395_s3 + $0x6d0] sm:$0xff] }
 0x48a   : > { %v14433_v20 = vpop.f32.mrb[56].mxu1  ;;  %v6709_v40 = vmul.f32 -1.442695, %v1703_v34  ;;  %v14437_v32 = vpop.eup %10902  ;;  %v3794_v53 = vadd.f32 1.0, %v10901_v23  ;;  %v7504_v23 = vadd.f32 %v7503_v35, %v7502_v2  ;;  %5686 = vmatprep.mubr.f32.mxu1 %v4904_v58  ;;  %v4926_v58 = vld [vmem:[%s15395_s3 + $0x780] sm:$0x1] }
 0x48b   : > { %v7512_v31 = vpop.f32.mrb[57].mxu1  ;;  %v1707_v37 = vpop.f32.mrb[158].mxu0 }
 0x48c   : > { %v7514_v21 = vpop.f32.mrb[58].mxu1  ;;  %v14445_v1 = vpop.eup %10904  ;;  %10920 = vpow2.f32 %v6709_v40  ;;  %v1708_v6 = vadd.f32 %v14289_v42, %v1707_v37  ;;  %v14462_v48 = vadd.f32 %v7504_v23, %v14342_v41  ;;  %v7507_v41 = vadd.f32 %v14410_v52, %v14408_v19 }
 0x48d   : > { %v8657_v18 = vpop.f32.mrb[159].mxu0  ;;  %v7515_v34 = vpop.f32.mrb[59].mxu1  ;;  %10922 = vrcp.f32 %v3794_v53  ;;  %v14459_v53 = vadd.f32 %v7501_v29, %v14317_v55  ;;  %v7510_v29 = vadd.f32 %v7509_v47, %v7508_v0 }
 0x48e   : > { %v7517_v30 = vpop.f32.mrb[60].mxu1  ;;  %v10907_v13 = vpop.eup %10906  ;;  %v6710_v45 = vmul.f32 -1.442695, %v1708_v6  ;;  %v4903_v18 = vld [vmem:[%s15395_s3 + $0x6c8] sm:$0xff]  ;;  %v14482_v4 = vadd.f32 %v7507_v41, %v14345_v24  ;;  %v7516_v24 = vadd.f32 %v7515_v34, %v7514_v21 }
 0x48f   : > { %v7518_v54 = vpop.f32.mrb[61].mxu1  ;;  %v14453_v39 = vpop.eup %10908  ;;  %v3795_v40 = vadd.f32 1.0, %v10907_v13  ;;  %v4927_v6 = vld [vmem:[%s15395_s3 + $0x788] sm:$0x1]  ;;  %5687 = vmatmul.mubr.f32.gmra.mrb[104].mxu1 %v4903_v18  ;;  %v14485_v19 = vadd.f32 %v7510_v29, %v14366_v57 }
 0x490   : > { %v1712_v37 = vpop.f32.mrb[160].mxu0  ;;  %v7520_v44 = vpop.f32.mrb[62].mxu1  ;;  %10924 = vpow2.f32 %v6710_v45  ;;  %5691 = vmatprep.mubr.f32.mxu1 %v4927_v6  ;;  %v7519_v34 = vadd.f32 %v7518_v54, %v7517_v30 }
 0x491   : > { %v14464_v2 = vpop.eup %10910  ;;  %v1713_v35 = vadd.f32 %v14289_v42, %v1712_v37  ;;  %v8660_v28 = vpop.f32.mrb[161].mxu0  ;;  %10926 = vrcp.f32 %v3795_v40  ;;  %v4699_v40 = vld [vmem:[%s15395_s3 + $0x68] sm:$0xff] }
 0x492   : > { %v7521_v13 = vpop.f32.mrb[63].mxu1  ;;  %v14472_v55 = vpop.eup %10912 }
 0x493   : > { %v10915_v45 = vpop.eup %10914  ;;  %v6711_v37 = vmul.f32 -1.442695, %v1713_v35  ;;  %v1717_v12 = vpop.f32.mrb[162].mxu0  ;;  %v7513_v35 = vadd.f32 %v7512_v31, %v14433_v20  ;;  %5692 = vmatmul.mubr.f32.gmra.mrb[106].mxu1 %v4926_v58  ;;  %v7522_v58 = vadd.f32 %v7521_v13, %v7520_v44 }
 0x494   : > { %v3796_v28 = vadd.f32 1.0, %v10915_v45  ;;  %v14487_v52 = vpop.eup %10916  ;;  %v1718_v0 = vadd.f32 %v14289_v42, %v1717_v12  ;;  %v8663_v47 = vpop.f32.mrb[163].mxu0  ;;  %5761 = vmatprep.mubr.f32.mxu1 %v4699_v40 }
 0x495   : > { %10928 = vpow2.f32 %v6711_v37  ;;  %v14493_v18 = vpop.eup %10918  ;;  %v1722_v45 = vpop.f32.mrb[164].mxu0  ;;  %v14501_v37 = vadd.f32 %v7513_v35, %v14369_v50  ;;  %v14504_v47 = vadd.f32 %v7516_v24, %v14394_v63  ;;  %v14510_v50 = vadd.f32 %v7519_v34, %v14397_v8 }
 0x496   : > { %10930 = vrcp.f32 %v3796_v28  ;;  %v10921_v6 = vpop.eup %10920  ;;  %v6712_v41 = vmul.f32 -1.442695, %v1718_v0  ;;  %v1723_v20 = vadd.f32 %v14289_v42, %v1722_v45  ;;  %v8666_v31 = vpop.f32.mrb[165].mxu0  ;;  %v14513_v63 = vadd.f32 %v7522_v58, %v14418_v16 }
 0x497   : > { %v14498_v29 = vpop.eup %10922  ;;  %v3797_v12 = vadd.f32 1.0, %v10921_v6  ;;  %v1727_v40 = vpop.f32.mrb[166].mxu0 }
 0x498   : > { %10932 = vpow2.f32 %v6712_v41  ;;  %v9426_v21 = vpack.c.bf16 %v14498_v29, %v14493_v18  ;;  %v6713_v0 = vmul.f32 -1.442695, %v1723_v20  ;;  %v1728_v35 = vadd.f32 %v14289_v42, %v1727_v40  ;;  %v8669_v24 = vpop.f32.mrb[167].mxu0 }
 0x499   : > { %10934 = vrcp.f32 %v3797_v12  ;;  %v1732_v12 = vpop.f32.mrb[168].mxu0 }
 0x49a   : > { %v10925_v28 = vpop.eup %10924  ;;  %10936 = vpow2.f32 %v6713_v0  ;;  %v6714_v30 = vmul.f32 -1.442695, %v1728_v35  ;;  %v1733_v8 = vadd.f32 %v14289_v42, %v1732_v12  ;;  %v8672_v45 = vpop.f32.mrb[169].mxu0 }
 0x49b   : > { %v3798_v6 = vadd.f32 1.0, %v10925_v28  ;;  %v14516_v41 = vpop.eup %10926  ;;  %v1737_v58 = vpop.f32.mrb[170].mxu0 }
 0x49c   : > { %v6715_v31 = vmul.f32 -1.442695, %v1733_v8  ;;  %v1738_v28 = vadd.f32 %v14289_v42, %v1737_v58  ;;  %v8675_v0 = vpop.f32.mrb[171].mxu0 }
 0x49d   : > { %10938 = vrcp.f32 %v3798_v6 }
 0x49e   : > { %10940 = vpow2.f32 %v6714_v30  ;;  %v6716_v35 = vmul.f32 -1.442695, %v1738_v28  ;;  %v1742_v30 = vpop.f32.mrb[172].mxu0 }
 0x49f   : > { %v10929_v54 = vpop.eup %10928  ;;  %v1743_v12 = vadd.f32 %v14289_v42, %v1742_v30  ;;  %v8678_v8 = vpop.f32.mrb[173].mxu0 }
 0x4a0   : > { %v14518_v44 = vpop.eup %10930  ;;  %v3799_v13 = vadd.f32 1.0, %v10929_v54  ;;  %v1747_v58 = vpop.f32.mrb[174].mxu0 }
 0x4a1   : > { %v8681_v28 = vpop.f32.mrb[175].mxu0 }
 0x4a2   : > { %v10933_v20 = vpop.eup %10932  ;;  %10942 = vrcp.f32 %v3799_v13  ;;  %v1752_v30 = vpop.f32.mrb[176].mxu0 }
 0x4a3   : > { %v3800_v34 = vadd.f32 1.0, %v10933_v20  ;;  %10944 = vpow2.f32 %v6715_v31  ;;  %v14524_v6 = vpop.eup %10934  ;;  %v6717_v20 = vmul.f32 -1.442695, %v1743_v12  ;;  %v1753_v8 = vadd.f32 %v14289_v42, %v1752_v30  ;;  %v8684_v13 = vpop.f32.mrb[177].mxu0 }
 0x4a4   : > { %v10937_v40 = vpop.eup %10936 }
 0x4a5   : > { %10946 = vrcp.f32 %v3800_v34  ;;  %v3801_v54 = vadd.f32 1.0, %v10937_v40  ;;  %v1748_v34 = vadd.f32 %v14289_v42, %v1747_v58  ;;  %v15624_v58 = vpack.c.bf16 %v14240_v11, %v14203_v22 }
 0x4a6   : > { %10948 = vpow2.f32 %v6716_v35 }
 0x4a7   : > { %v14526_v24 = vpop.eup %10938  ;;  %10950 = vrcp.f32 %v3801_v54  ;;  %v6718_v57 = vmul.f32 -1.442695, %v1748_v34  ;;  %v6719_v54 = vmul.f32 -1.442695, %v1753_v8 }
 0x4a8   : > { %v10941_v45 = vpop.eup %10940  ;;  %10952 = vpow2.f32 %v6717_v20  ;;  %v1757_v20 = vpop.f32.mrb[178].mxu0 }
 0x4a9   : > { %v3802_v31 = vadd.f32 1.0, %v10941_v45  ;;  %v8687_v34 = vpop.f32.mrb[179].mxu0 }
 0x4ab   : > { %10954 = vrcp.f32 %v3802_v31  ;;  %v1758_v31 = vadd.f32 %v14289_v42, %v1757_v20 }
 0x4ac   : > { %v10943_v0 = vpop.eup %10942  ;;  %10956 = vpow2.f32 %v6718_v57 }
 0x4ad   : > { %v10945_v40 = vpop.eup %10944 }
 0x4ae   : > { %v3803_v23 = vadd.f32 1.0, %v10945_v40  ;;  %v6720_v40 = vmul.f32 -1.442695, %v1758_v31 }
 0x4af   : > { %v10947_v35 = vpop.eup %10946 }
 0x4b0   : > { %v9404_v16 = vpack.c.bf16 %v10947_v35, %v10943_v0  ;;  %v10949_v12 = vpop.eup %10948  ;;  %10958 = vrcp.f32 %v3803_v23  ;;  %v1762_v35 = vpop.f32.mrb[180].mxu0 }
 0x4b1   : > { %v3804_v45 = vadd.f32 1.0, %v10949_v12  ;;  %10960 = vpow2.f32 %v6719_v54  ;;  %v10951_v28 = vpop.eup %10950  ;;  %v1763_v23 = vadd.f32 %v14289_v42, %v1762_v35  ;;  %v15625_v54 = vpack.c.bf16 %v14307_v43, %v14271_v15 }
 0x4b2   : > { %9405 = vmatprep.subr.bf16.mxu1 %v9404_v16  ;;  %v10953_v57 = vpop.eup %10952  ;;  %v8690_v16 = vpop.f32.mrb[181].mxu0 }
 0x4b3   : > { %9407 = vmatpush3.bf16.msra.mxu1 %v15624_v58  ;;  %10962 = vrcp.f32 %v3804_v45  ;;  %v3805_v0 = vadd.f32 1.0, %v10953_v57  ;;  %v6721_v12 = vmul.f32 -1.442695, %v1763_v23  ;;  %v1767_v11 = vpop.f32.mrb[182].mxu0  ;;  %v7555_v23 = vpop.f32.mrb[64].mxu1 }
 0x4b4   : > { %10964 = vpow2.f32 %v6720_v40  ;;  %v1768_v45 = vadd.f32 %v14289_v42, %v1767_v11  ;;  %v8693_v20 = vpop.f32.mrb[183].mxu0  ;;  %v7556_v43 = vpop.f32.mrb[65].mxu1 }
 0x4b5   : > { %v10955_v13 = vpop.eup %10954  ;;  %10966 = vrcp.f32 %v3805_v0  ;;  %v1772_v40 = vpop.f32.mrb[184].mxu0 }
 0x4b6   : > { %v9408_v30 = vpack.c.bf16 %v10955_v13, %v10951_v28  ;;  %v10957_v8 = vpop.eup %10956  ;;  %10968 = vpow2.f32 %v6721_v12  ;;  %v6722_v34 = vmul.f32 -1.442695, %v1768_v45  ;;  %v1773_v13 = vadd.f32 %v14289_v42, %v1772_v40  ;;  %v8696_v0 = vpop.f32.mrb[185].mxu0 }
 0x4b7   : > { %v3806_v22 = vadd.f32 1.0, %v10957_v8  ;;  %v1777_v8 = vpop.f32.mrb[186].mxu0  ;;  %v15626_v12 = vpack.c.bf16 %v14360_v38, %v14336_v26 }
 0x4b8   : > { %9409 = vmatprep.subr.bf16.mxu1 %v9408_v30  ;;  %v6723_v15 = vmul.f32 -1.442695, %v1773_v13  ;;  %v1778_v11 = vadd.f32 %v14289_v42, %v1777_v8 }
 0x4b9   : > { %9411 = vmatpush3.bf16.msra.mxu1 %v15625_v54  ;;  %10970 = vrcp.f32 %v3806_v22  ;;  %v7557_v22 = vadd.f32 %v7556_v43, %v7555_v23  ;;  %v8699_v54 = vpop.f32.mrb[187].mxu0 }
 0x4ba   : > { %v10959_v58 = vpop.eup %10958  ;;  %10972 = vpow2.f32 %v6722_v34  ;;  %v6724_v34 = vmul.f32 -1.442695, %v1778_v11  ;;  %v1782_v13 = vpop.f32.mrb[188].mxu0 }
 0x4bb   : > { %v10961_v31 = vpop.eup %10960  ;;  %v14548_v20 = vadd.f32 %v7557_v22, %v14406_v36  ;;  %v1783_v26 = vadd.f32 %v14289_v42, %v1782_v13  ;;  %v8702_v38 = vpop.f32.mrb[189].mxu0 }
 0x4bc   : > { %v3807_v28 = vadd.f32 1.0, %v10961_v31  ;;  %v1787_v8 = vpop.f32.mrb[190].mxu0 }
 0x4bd   : > { %v10963_v57 = vpop.eup %10962  ;;  %v6725_v36 = vmul.f32 -1.442695, %v1783_v26  ;;  %v1788_v11 = vadd.f32 %v14289_v42, %v1787_v8  ;;  %v8705_v54 = vpop.f32.mrb[191].mxu0 }
 0x4be   : > { %v9412_v35 = vpack.c.bf16 %v10963_v57, %v10959_v58  ;;  %v10965_v16 = vpop.eup %10964  ;;  %10974 = vrcp.f32 %v3807_v28  ;;  %v7558_v58 = vpop.f32.mrb[66].mxu1 }
 0x4bf   : > { %v3808_v30 = vadd.f32 1.0, %v10965_v16  ;;  %10976 = vpow2.f32 %v6723_v15  ;;  %v10967_v45 = vpop.eup %10966  ;;  %v7559_v57 = vpop.f32.mrb[67].mxu1 }
 0x4c0   : > { %9413 = vmatprep.subr.bf16.mxu1 %v9412_v35  ;;  %v10969_v31 = vpop.eup %10968  ;;  %v7560_v0 = vadd.f32 %v7559_v57, %v7558_v58  ;;  %v7561_v16 = vpop.f32.mrb[68].mxu1 }
 0x4c1   : > { %9415 = vmatpush3.bf16.msra.mxu1 %v15626_v12  ;;  %10978 = vrcp.f32 %v3808_v30  ;;  %v3809_v40 = vadd.f32 1.0, %v10969_v31  ;;  %v7562_v43 = vpop.f32.mrb[69].mxu1  ;;  %v15627_v12 = vpack.c.bf16 %v14412_v27, %v14388_v46  ;;  %v1792_v13 = vpop.f32.mrb[192].mxu0 }
 0x4c2   : > { %10980 = vpow2.f32 %v6724_v34  ;;  %v14552_v23 = vadd.f32 %v7560_v0, %v14430_v51  ;;  %v7563_v22 = vadd.f32 %v7562_v43, %v7561_v16  ;;  %v7564_v58 = vpop.f32.mrb[70].mxu1  ;;  %v6726_v34 = vmul.f32 -1.442695, %v1788_v11  ;;  %v8708_v27 = vpop.f32.mrb[193].mxu0 }
 0x4c3   : > { %v10971_v28 = vpop.eup %10970  ;;  %10982 = vrcp.f32 %v3809_v40  ;;  %v7565_v57 = vpop.f32.mrb[71].mxu1  ;;  %v1793_v46 = vadd.f32 %v14289_v42, %v1792_v13 }
 0x4c4   : > { %v9416_v35 = vpack.c.bf16 %v10971_v28, %v10967_v45  ;;  %v10973_v15 = vpop.eup %10972  ;;  %10984 = vpow2.f32 %v6725_v36  ;;  %v14559_v51 = vadd.f32 %v7563_v22, %v14443_v10  ;;  %v7566_v0 = vadd.f32 %v7565_v57, %v7564_v58  ;;  %v1797_v43 = vpop.f32.mrb[194].mxu0 }
 0x4c5   : > { %v3810_v30 = vadd.f32 1.0, %v10973_v15  ;;  %v6727_v10 = vmul.f32 -1.442695, %v1793_v46  ;;  %v8711_v22 = vpop.f32.mrb[195].mxu0 }
 0x4c6   : > { %9417 = vmatprep.subr.bf16.mxu1 %v9416_v35  ;;  %v14563_v38 = vadd.f32 %v7566_v0, %v14459_v53  ;;  %v7567_v35 = vpop.f32.mrb[72].mxu1 }
 0x4c7   : > { %9419 = vmatpush3.bf16.msra.mxu1 %v15627_v12  ;;  %10986 = vrcp.f32 %v3810_v30  ;;  %v7568_v15 = vpop.f32.mrb[73].mxu1  ;;  %v15628_v30 = vpack.c.bf16 %v14453_v39, %v14445_v1  ;;  %v1798_v12 = vadd.f32 %v14289_v42, %v1797_v43 }
 0x4c8   : > { %v10975_v45 = vpop.eup %10974  ;;  %10988 = vpow2.f32 %v6726_v34  ;;  %v7569_v8 = vadd.f32 %v7568_v15, %v7567_v35  ;;  %v7570_v54 = vpop.f32.mrb[74].mxu1 }
 0x4c9   : > { %v10977_v31 = vpop.eup %10976  ;;  %v6728_v58 = vmul.f32 -1.442695, %v1798_v12 }
 0x4ca   : > { %v3811_v40 = vadd.f32 1.0, %v10977_v31  ;;  %v14570_v53 = vadd.f32 %v7569_v8, %v14462_v48  ;;  %v7571_v31 = vpop.f32.mrb[75].mxu1 }
 0x4cb   : > { %v10979_v28 = vpop.eup %10978  ;;  %v7573_v46 = vpop.f32.mrb[76].mxu1 }
 0x4cc   : > { %v9420_v26 = vpack.c.bf16 %v10979_v28, %v10975_v45  ;;  %v10981_v16 = vpop.eup %10980  ;;  %10990 = vrcp.f32 %v3811_v40  ;;  %v1802_v28 = vpop.f32.mrb[196].mxu0  ;;  %v7572_v40 = vadd.f32 %v7571_v31, %v7570_v54 }
 0x4cd   : > { %v3812_v36 = vadd.f32 1.0, %v10981_v16  ;;  %10992 = vpow2.f32 %v6727_v10  ;;  %v10983_v11 = vpop.eup %10982  ;;  %v1803_v39 = vadd.f32 %v14289_v42, %v1802_v28  ;;  %v8714_v1 = vpop.f32.mrb[197].mxu0 }
 0x4ce   : > { %9421 = vmatprep.subr.bf16.mxu1 %v9420_v26  ;;  %v10985_v45 = vpop.eup %10984  ;;  %v14574_v0 = vadd.f32 %v7572_v40, %v14482_v4  ;;  %v7574_v26 = vpop.f32.mrb[77].mxu1  ;;  %v15629_v1 = vpack.c.bf16 %v14518_v44, %v14516_v41 }
 0x4cf   : > { %9423 = vmatpush3.bf16.msra.mxu1 %v15628_v30  ;;  %10994 = vrcp.f32 %v3812_v36  ;;  %v3813_v57 = vadd.f32 1.0, %v10985_v45  ;;  %v6729_v48 = vmul.f32 -1.442695, %v1803_v39  ;;  %v1807_v16 = vpop.f32.mrb[198].mxu0  ;;  %v7575_v10 = vadd.f32 %v7574_v26, %v7573_v46  ;;  %v7576_v30 = vpop.f32.mrb[78].mxu1 }
 0x4d0   : > { %10996 = vpow2.f32 %v6728_v58  ;;  %v1808_v15 = vadd.f32 %v14289_v42, %v1807_v16  ;;  %v8717_v36 = vpop.f32.mrb[199].mxu0  ;;  %v7577_v22 = vpop.f32.mrb[79].mxu1 }
 0x4d1   : > { %v10987_v34 = vpop.eup %10986  ;;  %10998 = vrcp.f32 %v3813_v57  ;;  %v14581_v4 = vadd.f32 %v7575_v10, %v14485_v19  ;;  %v1812_v45 = vpop.f32.mrb[200].mxu0  ;;  %v7578_v58 = vadd.f32 %v7577_v22, %v7576_v30 }
 0x4d2   : > { %v9424_v13 = vpack.c.bf16 %v10987_v34, %v10983_v11  ;;  %v10989_v27 = vpop.eup %10988  ;;  %11000 = vpow2.f32 %v6729_v48  ;;  %v6730_v12 = vmul.f32 -1.442695, %v1808_v15  ;;  %v1813_v18 = vadd.f32 %v14289_v42, %v1812_v45  ;;  %v8720_v29 = vpop.f32.mrb[201].mxu0 }
 0x4d3   : > { %v3814_v35 = vadd.f32 1.0, %v10989_v27  ;;  %v14585_v31 = vadd.f32 %v7578_v58, %v14501_v37  ;;  %v7579_v34 = vpop.f32.mrb[80].mxu1  ;;  %v1817_v39 = vpop.f32.mrb[202].mxu0  ;;  %v4698_v29 = vld [vmem:[%s15395_s3 + $0x60] sm:$0xff] }
 0x4d4   : > { %9425 = vmatprep.subr.bf16.mxu1 %v9424_v13  ;;  %v6731_v19 = vmul.f32 -1.442695, %v1813_v18  ;;  %v7580_v28 = vpop.f32.mrb[81].mxu1  ;;  %v1818_v46 = vadd.f32 %v14289_v42, %v1817_v39  ;;  %v8723_v27 = vpop.f32.mrb[203].mxu0  ;;  %v15630_v18 = vpack.c.bf16 %v14526_v24, %v14524_v6 }
 0x4d5   : > { %9427 = vmatpush3.bf16.msra.mxu1 %v9426_v21  ;;  %11002 = vrcp.f32 %v3814_v35  ;;  %v7581_v13 = vadd.f32 %v7580_v28, %v7579_v34  ;;  %v7582_v26 = vpop.f32.mrb[82].mxu1 }
 0x4d6   : > { %v10991_v43 = vpop.eup %10990  ;;  %11004 = vpow2.f32 %v6730_v12  ;;  %v6732_v16 = vmul.f32 -1.442695, %v1818_v46  ;;  %v7583_v10 = vpop.f32.mrb[83].mxu1 }
 0x4d7   : > { %v10993_v8 = vpop.eup %10992  ;;  %v14592_v37 = vadd.f32 %v7581_v13, %v14504_v47  ;;  %v7584_v30 = vadd.f32 %v7583_v10, %v7582_v26  ;;  %v7585_v22 = vpop.f32.mrb[84].mxu1  ;;  %v4721_v13 = vld [vmem:[%s15395_s3 + $0x118] sm:$0xff] }
 0x4d8   : > { %v3815_v54 = vadd.f32 1.0, %v10993_v8 }
 0x4d9   : > { %v10995_v11 = vpop.eup %10994  ;;  %v14596_v12 = vadd.f32 %v7584_v30, %v14510_v50  ;;  %v4768_v30 = vld [vmem:[%s15395_s3 + $0x290] sm:$0xff] }
 0x4da   : > { %v9428_v21 = vpack.c.bf16 %v10995_v11, %v10991_v43  ;;  %v10997_v57 = vpop.eup %10996  ;;  %11006 = vrcp.f32 %v3815_v54  ;;  %v1822_v43 = vpop.f32.mrb[204].mxu0 }
 0x4db   : > { %v3816_v40 = vadd.f32 1.0, %v10997_v57  ;;  %11008 = vpow2.f32 %v6731_v19  ;;  %v10999_v48 = vpop.eup %10998  ;;  %v1823_v41 = vadd.f32 %v14289_v42, %v1822_v43  ;;  %v8726_v44 = vpop.f32.mrb[205].mxu0  ;;  %v4722_v57 = vld [vmem:[%s15395_s3 + $0x120] sm:$0xff] }
 0x4dc   : > { %9429 = vmatprep.subr.bf16.mxu1 %v9428_v21  ;;  %v11001_v35 = vpop.eup %11000  ;;  %v7586_v54 = vpop.f32.mrb[85].mxu1 }
 0x4dd   : > { %9431 = vmatpush3.bf16.msra.mxu1 %v15629_v1  ;;  %11010 = vrcp.f32 %v3816_v40  ;;  %v3817_v36 = vadd.f32 1.0, %v11001_v35  ;;  %v6733_v47 = vmul.f32 -1.442695, %v1823_v41  ;;  %v1827_v58 = vpop.f32.mrb[206].mxu0  ;;  %v7587_v21 = vadd.f32 %v7586_v54, %v7585_v22  ;;  %v14641_v54 = vld [vmem:[%s15394_s2] ss:$0 sm:$0xff] }
 0x4de   : > { %11012 = vpow2.f32 %v6732_v16  ;;  %v1828_v50 = vadd.f32 %v14289_v42, %v1827_v58  ;;  %v8729_v34 = vpop.f32.mrb[207].mxu0 }
 0x4df   : > { %v11003_v15 = vpop.eup %11002  ;;  %11014 = vrcp.f32 %v3817_v36  ;;  %v14611_v28 = vadd.f32 %v7587_v21, %v14513_v63  ;;  %v1832_v1 = vpop.f32.mrb[208].mxu0  ;;  %v4745_v63 = vld [vmem:[%s15395_s3 + $0x1d8] sm:$0xff] }
 0x4e0   : > { %v9432_v8 = vpack.c.bf16 %v11003_v15, %v10999_v48  ;;  %v11005_v11 = vpop.eup %11004  ;;  %11016 = vpow2.f32 %v6733_v47  ;;  %v6734_v24 = vmul.f32 -1.442695, %v1828_v50  ;;  %v1833_v46 = vadd.f32 %v14289_v42, %v1832_v1  ;;  %v8732_v27 = vpop.f32.mrb[209].mxu0  ;;  %v4744_v15 = vld [vmem:[%s15395_s3 + $0x1d0] sm:$0xff]  ;;  %v4814_v1 = vld [vmem:[%s15395_s3 + $0x400] sm:$0xff] }
 0x4e1   : > { %v3818_v45 = vadd.f32 1.0, %v11005_v11  ;;  %v1837_v10 = vpop.f32.mrb[210].mxu0 }
 0x4e2   : > { %9433 = vmatprep.subr.bf16.mxu1 %v9432_v8  ;;  %v6735_v35 = vmul.f32 -1.442695, %v1833_v46  ;;  %v1838_v36 = vadd.f32 %v14289_v42, %v1837_v10  ;;  %v8735_v43 = vpop.f32.mrb[211].mxu0  ;;  %v4767_v42 = vld [vmem:[%s15395_s3 + $0x288] sm:$0xff] }
 0x4e3   : > { %9435 = vmatpush3.bf16.msra.mxu1 %v15630_v18  ;;  %11018 = vrcp.f32 %v3818_v45  ;;  %v1842_v47 = vpop.f32.mrb[212].mxu0  ;;  %v4791_v18 = vld [vmem:[%s15395_s3 + $0x348] sm:$0xff] }
 0x4e4   : > { %v14608_v19 = vpop.eup %11006  ;;  %11020 = vpow2.f32 %v6734_v24  ;;  %v6736_v8 = vmul.f32 -1.442695, %v1838_v36  ;;  %v1843_v45 = vadd.f32 %v14641_v54, %v1842_v47  ;;  %v8738_v58 = vpop.f32.mrb[213].mxu0  ;;  %v4837_v36 = vld [vmem:[%s15395_s3 + $0x4b8] sm:$0xff]  ;;  %v4836_v47 = vld [vmem:[%s15395_s3 + $0x4b0] sm:$0xff] }
 0x4e5   : > { %v11009_v6 = vpop.eup %11008  ;;  %v4860_v58 = vld [vmem:[%s15395_s3 + $0x570] sm:$0xff] }
 0x4e6   : > { %5762 = vmatmul.mubr.f32.vlgmr.msra.gmra.mrb[108].mxu1 %v4698_v29  ;;  %v3819_v39 = vadd.f32 1.0, %v11009_v6  ;;  %v6737_v50 = vmul.f32 -1.442695, %v1843_v45  ;;  %v4790_v6 = vld [vmem:[%s15395_s3 + $0x340] sm:$0xff] }
 0x4e7   : > { %v14613_v40 = vpop.eup %11010  ;;  %5766 = vmatprep.mubr.f32.mxu1 %v4722_v57  ;;  %v1847_v57 = vpop.f32.mrb[214].mxu0 }
 0x4e8   : > { %v9438_v48 = vpack.c.bf16 %v14613_v40, %v14608_v19  ;;  %v11013_v26 = vpop.eup %11012  ;;  %11022 = vrcp.f32 %v3819_v39  ;;  %v1848_v24 = vadd.f32 %v14641_v54, %v1847_v57  ;;  %v8741_v39 = vpop.f32.mrb[215].mxu0 }
 0x4e9   : > { %v3820_v16 = vadd.f32 1.0, %v11013_v26  ;;  %11024 = vpow2.f32 %v6735_v35  ;;  %v14631_v41 = vpop.eup %11014  ;;  %v1852_v35 = vpop.f32.mrb[216].mxu0 }
 0x4ea   : > { %5767 = vmatmul.mubr.f32.gmra.mrb[110].mxu1 %v4721_v13  ;;  %v11017_v44 = vpop.eup %11016  ;;  %v6738_v27 = vmul.f32 -1.442695, %v1848_v24  ;;  %v1853_v10 = vadd.f32 %v14641_v54, %v1852_v35  ;;  %v4859_v24 = vld [vmem:[%s15395_s3 + $0x568] sm:$0xff] }
 0x4eb   : > { %5771 = vmatprep.mubr.f32.mxu1 %v4745_v63  ;;  %11026 = vrcp.f32 %v3820_v16  ;;  %v3821_v11 = vadd.f32 1.0, %v11017_v44  ;;  %v4813_v16 = vld [vmem:[%s15395_s3 + $0x3f8] sm:$0xff] }
 0x4ec   : > { %11028 = vpow2.f32 %v6736_v8  ;;  %v6739_v44 = vmul.f32 -1.442695, %v1853_v10 }
 0x4ed   : > { %v14633_v22 = vpop.eup %11018  ;;  %11030 = vrcp.f32 %v3821_v11 }
 0x4ee   : > { %5772 = vmatmul.mubr.f32.gmra.mrb[112].mxu1 %v4744_v15  ;;  %v9442_v29 = vpack.c.bf16 %v14633_v22, %v14631_v41  ;;  %v11021_v21 = vpop.eup %11020  ;;  %11032 = vpow2.f32 %v6737_v50  ;;  %v8744_v15 = vpop.f32.mrb[217].mxu0 }
 0x4ef   : > { %5776 = vmatprep.mubr.f32.mxu1 %v4768_v30  ;;  %v3822_v34 = vadd.f32 1.0, %v11021_v21  ;;  %v1857_v11 = vpop.f32.mrb[218].mxu0  ;;  %v4882_v15 = vld [vmem:[%s15395_s3 + $0x620] sm:$0xff] }
 0x4f0   : > { %v8747_v45 = vpop.f32.mrb[219].mxu0 }
 0x4f1   : > { %11034 = vrcp.f32 %v3822_v34 }
 0x4f2   : > { %5777 = vmatmul.mubr.f32.gmra.mrb[114].mxu1 %v4767_v42  ;;  %v14656_v13 = vpop.eup %11022  ;;  %11036 = vpow2.f32 %v6738_v27  ;;  %v1858_v42 = vadd.f32 %v14641_v54, %v1857_v11 }
 0x4f3   : > { %5781 = vmatprep.mubr.f32.mxu1 %v4791_v18  ;;  %v11025_v46 = vpop.eup %11024 }
 0x4f4   : > { %v3823_v26 = vadd.f32 1.0, %v11025_v46  ;;  %v6740_v50 = vmul.f32 -1.442695, %v1858_v42  ;;  %v4883_v46 = vld [vmem:[%s15395_s3 + $0x628] sm:$0xff] }
 0x4f5   : > { %v14658_v63 = vpop.eup %11026 }
 0x4f6   : > { %5782 = vmatmul.mubr.f32.gmra.mrb[116].mxu1 %v4790_v6  ;;  %v11029_v30 = vpop.eup %11028  ;;  %11038 = vrcp.f32 %v3823_v26  ;;  %v1862_v6 = vpop.f32.mrb[220].mxu0 }
 0x4f7   : > { %5786 = vmatprep.mubr.f32.mxu1 %v4814_v1  ;;  %v3824_v8 = vadd.f32 1.0, %v11029_v30  ;;  %11040 = vpow2.f32 %v6739_v44  ;;  %v14676_v18 = vpop.eup %11030  ;;  %v1863_v39 = vadd.f32 %v14641_v54, %v1862_v6  ;;  %v8750_v1 = vpop.f32.mrb[221].mxu0  ;;  %v4906_v44 = vld [vmem:[%s15395_s3 + $0x6e0] sm:$0xff]  ;;  %v4929_v6 = vld [vmem:[%s15395_s3 + $0x798] sm:$0x1] }
 0x4f8   : > { %v11033_v21 = vpop.eup %11032  ;;  %v1867_v10 = vpop.f32.mrb[222].mxu0 }
 0x4f9   : > { %11042 = vrcp.f32 %v3824_v8  ;;  %v3825_v57 = vadd.f32 1.0, %v11033_v21  ;;  %v6741_v35 = vmul.f32 -1.442695, %v1863_v39  ;;  %v8753_v30 = vpop.f32.mrb[223].mxu0  ;;  %v4905_v21 = vld [vmem:[%s15395_s3 + $0x6d8] sm:$0xff] }
 0x4fa   : > { %5787 = vmatmul.mubr.f32.gmra.mrb[118].mxu1 %v4813_v16  ;;  %11044 = vpow2.f32 %v6740_v50 }
 0x4fb   : > { %5791 = vmatprep.mubr.f32.mxu1 %v4837_v36  ;;  %v14678_v34 = vpop.eup %11034  ;;  %11046 = vrcp.f32 %v3825_v57  ;;  %v1868_v36 = vadd.f32 %v14641_v54, %v1867_v10 }
 0x4fc   : > { %v11037_v26 = vpop.eup %11036  ;;  %11048 = vpow2.f32 %v6741_v35  ;;  %v4928_v35 = vld [vmem:[%s15395_s3 + $0x790] sm:$0x1] }
 0x4fd   : > { %v3826_v16 = vadd.f32 1.0, %v11037_v26 }
 0x4fe   : > { %5792 = vmatmul.mubr.f32.gmra.mrb[120].mxu1 %v4836_v47  ;;  %v6742_v47 = vmul.f32 -1.442695, %v1868_v36 }
 0x4ff   : > { %5796 = vmatprep.mubr.f32.mxu1 %v4860_v58  ;;  %11050 = vrcp.f32 %v3826_v16  ;;  %v1872_v58 = vpop.f32.mrb[224].mxu0 }
 0x500   : > { %v14696_v8 = vpop.eup %11038  ;;  %11052 = vpow2.f32 %v6742_v47  ;;  %v1873_v50 = vadd.f32 %v14641_v54, %v1872_v58  ;;  %v8756_v57 = vpop.f32.mrb[225].mxu0 }
 0x501   : > { %v11041_v11 = vpop.eup %11040  ;;  %v1877_v26 = vpop.f32.mrb[226].mxu0 }
 0x502   : > { %5797 = vmatmul.mubr.f32.gmra.mrb[122].mxu1 %v4859_v24  ;;  %v3827_v45 = vadd.f32 1.0, %v11041_v11  ;;  %v6743_v1 = vmul.f32 -1.442695, %v1873_v50  ;;  %v1878_v16 = vadd.f32 %v14641_v54, %v1877_v26  ;;  %v8759_v10 = vpop.f32.mrb[227].mxu0 }
 0x503   : > { %5801 = vmatprep.mubr.f32.mxu1 %v4883_v46  ;;  %v14698_v42 = vpop.eup %11042 }
 0x504   : > { %v11045_v39 = vpop.eup %11044  ;;  %11054 = vrcp.f32 %v3827_v45  ;;  %v1882_v45 = vpop.f32.mrb[228].mxu0 }
 0x505   : > { %v3828_v46 = vadd.f32 1.0, %v11045_v39  ;;  %11056 = vpow2.f32 %v6743_v1  ;;  %v14716_v36 = vpop.eup %11046  ;;  %v1883_v58 = vadd.f32 %v14641_v54, %v1882_v45 }
 0x506   : > { %5802 = vmatmul.mubr.f32.gmra.mrb[124].mxu1 %v4882_v15  ;;  %v4701_v15 = vld [vmem:[%s15395_s3 + $0x78] sm:$0xff]  ;;  %v11049_v30 = vpop.eup %11048 }
 0x507   : > { %5806 = vmatprep.mubr.f32.mxu1 %v4906_v44  ;;  %11058 = vrcp.f32 %v3828_v46  ;;  %v6744_v44 = vmul.f32 -1.442695, %v1878_v16  ;;  %v3829_v47 = vadd.f32 1.0, %v11049_v30 }
 0x509   : > { %v14718_v11 = vpop.eup %11050  ;;  %11060 = vpow2.f32 %v6744_v44 }
 0x50a   : > { %5807 = vmatmul.mubr.f32.gmra.mrb[126].mxu1 %v4905_v21  ;;  %v8762_v21 = vpop.f32.mrb[229].mxu0  ;;  %v11053_v57 = vpop.eup %11052  ;;  %11062 = vrcp.f32 %v3829_v47 }
 0x50b   : > { %5811 = vmatprep.mubr.f32.mxu1 %v4929_v6  ;;  %v6745_v6 = vmul.f32 -1.442695, %v1883_v58  ;;  %v3830_v39 = vadd.f32 1.0, %v11053_v57  ;;  %v1887_v1 = vpop.f32.mrb[230].mxu0 }
 0x50c   : > { %v1888_v46 = vadd.f32 %v14641_v54, %v1887_v1  ;;  %v8765_v26 = vpop.f32.mrb[231].mxu0 }
 0x50d   : > { %11064 = vpow2.f32 %v6745_v6  ;;  %v1892_v44 = vpop.f32.mrb[232].mxu0 }
 0x50e   : > { %5812 = vmatmul.mubr.f32.gmra.mrb[128].mxu1 %v4928_v35  ;;  %v14724_v35 = vpop.eup %11054  ;;  %11066 = vrcp.f32 %v3830_v39  ;;  %v6746_v10 = vmul.f32 -1.442695, %v1888_v46  ;;  %v1893_v45 = vadd.f32 %v14641_v54, %v1892_v44  ;;  %v8768_v58 = vpop.f32.mrb[233].mxu0  ;;  %v1918_v44 = vadd.f32 %v14641_v54, %v12479_v59 }
 0x50f   : > { %5881 = vmatprep.mubr.f32.mxu1 %v4701_v15  ;;  %v11057_v16 = vpop.eup %11056  ;;  %v1897_v1 = vpop.f32.mrb[234].mxu0 }
 0x510   : > { %v3831_v30 = vadd.f32 1.0, %v11057_v16  ;;  %11068 = vpow2.f32 %v6746_v10  ;;  %v6747_v57 = vmul.f32 -1.442695, %v1893_v45  ;;  %v1898_v39 = vadd.f32 %v14641_v54, %v1897_v1  ;;  %v8771_v46 = vpop.f32.mrb[235].mxu0 }
 0x511   : > { %v14726_v15 = vpop.eup %11058  ;;  %v6752_v46 = vmul.f32 -1.442695, %v1918_v44 }
 0x512   : > { %11070 = vrcp.f32 %v3831_v30  ;;  %v6748_v10 = vmul.f32 -1.442695, %v1898_v39 }
 0x513   : > { %v11061_v21 = vpop.eup %11060  ;;  %11072 = vpow2.f32 %v6747_v57 }
 0x514   : > { %v3832_v6 = vadd.f32 1.0, %v11061_v21  ;;  %v14732_v26 = vpop.eup %11062  ;;  %v1902_v47 = vpop.f32.mrb[236].mxu0 }
 0x515   : > { %v1903_v30 = vadd.f32 %v14641_v54, %v1902_v47  ;;  %v8774_v45 = vpop.f32.mrb[237].mxu0 }
 0x516   : > { %11074 = vrcp.f32 %v3832_v6 }
 0x517   : > { %v11065_v16 = vpop.eup %11064  ;;  %11076 = vpow2.f32 %v6748_v10  ;;  %v6749_v1 = vmul.f32 -1.442695, %v1903_v30 }
 0x518   : > { %v14734_v50 = vpop.eup %11066  ;;  %v3833_v58 = vadd.f32 1.0, %v11065_v16  ;;  %v1907_v39 = vpop.f32.mrb[238].mxu0 }
 0x519   : > { %v1908_v24 = vadd.f32 %v14641_v54, %v1907_v39  ;;  %v8777_v27 = vpop.f32.mrb[239].mxu0 }
 0x51a   : > { %v11069_v57 = vpop.eup %11068  ;;  %11078 = vrcp.f32 %v3833_v58 }
 0x51b   : > { %v3834_v6 = vadd.f32 1.0, %v11069_v57  ;;  %11080 = vpow2.f32 %v6749_v1  ;;  %v6750_v10 = vmul.f32 -1.442695, %v1908_v24 }
 0x51c   : > { %v11071_v59 = vpop.eup %11070  ;;  %v1912_v45 = vpop.f32.mrb[240].mxu0 }
 0x51d   : > { %11082 = vrcp.f32 %v3834_v6  ;;  %v11073_v16 = vpop.eup %11072  ;;  %v1913_v21 = vadd.f32 %v14641_v54, %v1912_v45  ;;  %v8780_v30 = vpop.f32.mrb[241].mxu0 }
 0x51e   : > { %11084 = vpow2.f32 %v6752_v46  ;;  %v3835_v47 = vadd.f32 1.0, %v11073_v16 }
 0x51f   : > { %11086 = vpow2.f32 %v6750_v10  ;;  %v6751_v57 = vmul.f32 -1.442695, %v1913_v21 }
 0x520   : > { %v11075_v43 = vpop.eup %11074  ;;  %11088 = vrcp.f32 %v3835_v47 }
 0x521   : > { %v9436_v44 = vpack.c.bf16 %v11075_v43, %v11071_v59  ;;  %v11077_v58 = vpop.eup %11076  ;;  %11090 = vpow2.f32 %v6751_v57 }
 0x522   : > { %v3836_v1 = vadd.f32 1.0, %v11077_v58  ;;  %v15631_v58 = vpack.c.bf16 %v14658_v63, %v14656_v13  ;;  %v15632_v13 = vpack.c.bf16 %v14678_v34, %v14676_v18 }
 0x523   : > { %9437 = vmatprep.subr.bf16.mxu1 %v9436_v44 }
 0x524   : > { %9439 = vmatpush3.bf16.msra.mxu1 %v9438_v48  ;;  %v11079_v27 = vpop.eup %11078  ;;  %11092 = vrcp.f32 %v3836_v1 }
 0x525   : > { %v11081_v24 = vpop.eup %11080 }
 0x526   : > { %v3837_v6 = vadd.f32 1.0, %v11081_v24 }
 0x527   : > { %v11083_v46 = vpop.eup %11082 }
 0x528   : > { %v9440_v39 = vpack.c.bf16 %v11083_v46, %v11079_v27  ;;  %v11085_v16 = vpop.eup %11084  ;;  %11094 = vrcp.f32 %v3837_v6 }
 0x529   : > { %v11087_v10 = vpop.eup %11086  ;;  %v3840_v21 = vadd.f32 1.0, %v11085_v16 }
 0x52a   : > { %9441 = vmatprep.subr.bf16.mxu1 %v9440_v39  ;;  %v3838_v43 = vadd.f32 1.0, %v11087_v10  ;;  %v11089_v59 = vpop.eup %11088 }
 0x52b   : > { %9443 = vmatpush3.bf16.msra.mxu1 %v9442_v29  ;;  %v11091_v19 = vpop.eup %11090 }
 0x52c   : > { %11096 = vrcp.f32 %v3838_v43  ;;  %v3839_v48 = vadd.f32 1.0, %v11091_v19 }
 0x52d   : > { %11098 = vrcp.f32 %v3840_v21 }
 0x52e   : > { %v11093_v40 = vpop.eup %11092  ;;  %11100 = vrcp.f32 %v3839_v48 }
 0x52f   : > { %v9444_v47 = vpack.c.bf16 %v11093_v40, %v11089_v59  ;;  %v15634_v40 = vpack.c.bf16 %v12677_v61, %v12668_v25 }
 0x531   : > { %9445 = vmatprep.subr.bf16.mxu1 %v9444_v47 }
 0x532   : > { %9447 = vmatpush3.bf16.msra.mxu1 %v15631_v58  ;;  %v11095_v29 = vpop.eup %11094 }
 0x536   : > { %v11097_v1 = vpop.eup %11096 }
 0x537   : > { %v9448_v24 = vpack.c.bf16 %v11097_v1, %v11095_v29  ;;  %v11099_v39 = vpop.eup %11098  ;;  %v15644_v29 = vld [vmem:[#allocation5_spill] sm:$0xff]  ;;  %v4723_v1 = vld [vmem:[%s15395_s3 + $0x128] sm:$0xff] }
 0x538   : > { %v7620_v45 = vpop.f32.mrb[86].mxu1  ;;  %v11101_v10 = vpop.eup %11100 }
 0x539   : > { %v7621_v30 = vpop.f32.mrb[87].mxu1  ;;  %9449 = vmatprep.subr.bf16.mxu1 %v9448_v24  ;;  %v15647_v24 = vld [vmem:[#allocation23_spill] sm:$0xff] }
 0x53a   : > { %v7622_v44 = vadd.f32 %v7621_v30, %v7620_v45  ;;  %9451 = vmatpush3.bf16.msra.mxu1 %v15632_v13  ;;  %v15636_v45 = vpack.c.bf16 %v12699_v33, %v12685_v56  ;;  %v15638_v30 = vpack.c.bf16 %v12724_v49, %v12717_v60  ;;  %v4724_v60 = vld [vmem:[%s15395_s3 + $0x130] sm:$0xff]  ;;  %v15649_v13 = vld [vmem:[#allocation8_spill] sm:$0xff] }
 0x53c   : > { %v14753_v41 = vadd.f32 %v7622_v44, %v14548_v20  ;;  %v7623_v22 = vpop.f32.mrb[88].mxu1  ;;  %v9452_v20 = vpack.c.bf16 %v11099_v39, %v11101_v10  ;;  %v4700_v44 = vld [vmem:[%s15395_s3 + $0x70] sm:$0xff] }
 0x53d   : > { %v7624_v57 = vpop.f32.mrb[89].mxu1 }
 0x53e   : > { %v7625_v27 = vadd.f32 %v7624_v57, %v7623_v22  ;;  %9453 = vmatprep.subr.bf16.mxu1 %v9452_v20  ;;  %v15650_v20 = vld [vmem:[#allocation7_spill] sm:$0xff] }
 0x540   : > { %v14756_v46 = vadd.f32 %v7625_v27, %v14552_v23  ;;  %v7626_v6 = vpop.f32.mrb[90].mxu1  ;;  %v15633_v23 = vpack.c.bf16 %v14698_v42, %v14696_v8  ;;  %v15646_v27 = vld [vmem:[#allocation24_spill] sm:$0xff] }
 0x541   : > { %v7627_v16 = vpop.f32.mrb[91].mxu1 }
 0x542   : > { %v7628_v43 = vadd.f32 %v7627_v16, %v7626_v6  ;;  %9455 = vmatpush3.bf16.msra.mxu1 %v15633_v23  ;;  %v15648_v6 = vpack.c.bf16 %v15646_v27, %v15647_v24  ;;  %v15653_v23 = vld [vmem:[#allocation25_spill] sm:$0xff]  ;;  %v4815_v27 = vld [vmem:[%s15395_s3 + $0x408] sm:$0xff]  ;;  %v15670_v24 = vld [vmem:[#allocation32_spill] sm:$0xff] }
 0x543   : > { %9457 = vmatprep.subr.bf16.mxu1 %v15634_v40 }
 0x544   : > { %v14762_v63 = vadd.f32 %v7628_v43, %v14559_v51  ;;  %v7629_v21 = vpop.f32.mrb[92].mxu1  ;;  %v15635_v51 = vpack.c.bf16 %v14718_v11, %v14716_v36 }
 0x545   : > { %v7630_v59 = vpop.f32.mrb[93].mxu1 }
 0x546   : > { %v7631_v19 = vadd.f32 %v7630_v59, %v7629_v21  ;;  %9459 = vmatpush3.bf16.msra.mxu1 %v15635_v51  ;;  %v15651_v21 = vpack.c.bf16 %v15649_v13, %v15650_v20  ;;  %v4746_v59 = vld [vmem:[%s15395_s3 + $0x1e0] sm:$0xff]  ;;  %v15676_v20 = vld [vmem:[#allocation34_spill] sm:$0xff] }
 0x547   : > { %9461 = vmatprep.subr.bf16.mxu1 %v15636_v45  ;;  %v15655_v45 = vld [vmem:[#allocation10_spill] sm:$0xff]  ;;  %v4838_v13 = vld [vmem:[%s15395_s3 + $0x4c0] sm:$0xff] }
 0x548   : > { %v14771_v48 = vadd.f32 %v7631_v19, %v14563_v38  ;;  %v7632_v18 = vpop.f32.mrb[94].mxu1  ;;  %v15637_v38 = vpack.c.bf16 %v14726_v15, %v14724_v35  ;;  %v15640_v35 = vld [vmem:[#allocation22_spill] sm:$0xff]  ;;  %v15641_v15 = vld [vmem:[#allocation21_spill] sm:$0xff] }
 0x549   : > { %v7633_v34 = vpop.f32.mrb[95].mxu1  ;;  %v15642_v58 = vpack.c.bf16 %v15640_v35, %v15641_v15  ;;  %v15652_v19 = vld [vmem:[#allocation26_spill] sm:$0xff]  ;;  %v15661_v35 = vld [vmem:[#allocation12_spill] sm:$0xff]  ;;  %v15662_v15 = vld [vmem:[#allocation11_spill] sm:$0xff] }
 0x54a   : > { %v7634_v47 = vadd.f32 %v7633_v34, %v7632_v18  ;;  %9463 = vmatpush3.bf16.msra.mxu1 %v15637_v38  ;;  %v15654_v40 = vpack.c.bf16 %v15652_v19, %v15653_v23  ;;  %v15658_v38 = vld [vmem:[#allocation28_spill] sm:$0xff]  ;;  %v4862_v19 = vld [vmem:[%s15395_s3 + $0x580] sm:$0xff]  ;;  %v15679_v23 = vld [vmem:[#allocation18_spill] sm:$0xff] }
 0x54b   : > { %9465 = vmatprep.subr.bf16.mxu1 %v15638_v30  ;;  %v15659_v30 = vld [vmem:[#allocation27_spill] sm:$0xff] }
 0x54c   : > { %v14780_v8 = vadd.f32 %v7634_v47, %v14570_v53  ;;  %v7635_v42 = vpop.f32.mrb[96].mxu1  ;;  %v15639_v53 = vpack.c.bf16 %v14734_v50, %v14732_v26  ;;  %v15643_v26 = vld [vmem:[#allocation6_spill] sm:$0xff] }
 0x54d   : > { %v7636_v25 = vpop.f32.mrb[97].mxu1  ;;  %v15645_v57 = vpack.c.bf16 %v15643_v26, %v15644_v29  ;;  %v15667_v29 = vld [vmem:[#allocation14_spill] sm:$0xff] }
 0x54e   : > { %v7637_v61 = vadd.f32 %v7636_v25, %v7635_v42  ;;  %9467 = vmatpush3.bf16.msra.mxu1 %v15639_v53  ;;  %v15656_v42 = vld [vmem:[#allocation9_spill] sm:$0xff] }
 0x54f   : > { %9469 = vmatprep.subr.bf16.mxu1 %v15642_v58  ;;  %v15657_v25 = vpack.c.bf16 %v15655_v45, %v15656_v42  ;;  %v15663_v58 = vpack.c.bf16 %v15661_v35, %v15662_v15  ;;  %v4885_v42 = vld [vmem:[%s15395_s3 + $0x638] sm:$0xff]  ;;  %v4931_v35 = vld [vmem:[%s15395_s3 + $0x7a8] sm:$0x1]  ;;  %v4930_v15 = vld [vmem:[%s15395_s3 + $0x7a0] sm:$0x1] }
 0x550   : > { %v14789_v36 = vadd.f32 %v7637_v61, %v14574_v0  ;;  %v7638_v11 = vpop.f32.mrb[98].mxu1  ;;  %v4769_v61 = vld [vmem:[%s15395_s3 + $0x298] sm:$0xff] }
 0x551   : > { %v7639_v56 = vpop.f32.mrb[99].mxu1  ;;  %5882 = vmatmul.mubr.f32.vlgmr.msra.gmra.mrb[130].mxu1 %v4700_v44 }
 0x552   : > { %v7640_v33 = vadd.f32 %v7639_v56, %v7638_v11  ;;  %9471 = vmatpush3.bf16.msra.mxu1 %v15645_v57  ;;  %5886 = vmatprep.mubr.f32.mxu1 %v4724_v60  ;;  %v15660_v11 = vpack.c.bf16 %v15658_v38, %v15659_v30  ;;  %v4792_v60 = vld [vmem:[%s15395_s3 + $0x350] sm:$0xff]  ;;  %v15668_v57 = vld [vmem:[#allocation13_spill] sm:$0xff] }
 0x553   : > { %9473 = vmatprep.subr.bf16.mxu1 %v15648_v6  ;;  %v15671_v6 = vld [vmem:[#allocation31_spill] sm:$0xff] }
 0x554   : > { %v14804_v49 = vadd.f32 %v7640_v33, %v14581_v4  ;;  %v7641_v0 = vpop.f32.mrb[100].mxu1  ;;  %v4747_v4 = vld [vmem:[%s15395_s3 + $0x1e8] sm:$0xff]  ;;  %v4884_v30 = vld [vmem:[%s15395_s3 + $0x630] sm:$0xff] }
 0x555   : > { %v7642_v22 = vpop.f32.mrb[101].mxu1  ;;  %5887 = vmatmul.mubr.f32.gmra.mrb[132].mxu1 %v4723_v1  ;;  %v15669_v1 = vpack.c.bf16 %v15667_v29, %v15668_v57  ;;  %v4725_v29 = vld [vmem:[%s15395_s3 + $0x138] sm:$0xff] }
 0x556   : > { %v7643_v50 = vadd.f32 %v7642_v22, %v7641_v0  ;;  %9475 = vmatpush3.bf16.msra.mxu1 %v15651_v21  ;;  %5891 = vmatprep.mubr.f32.mxu1 %v4747_v4  ;;  %v15664_v0 = vld [vmem:[#allocation30_spill] sm:$0xff]  ;;  %v15665_v22 = vld [vmem:[#allocation29_spill] sm:$0xff]  ;;  %v15672_v4 = vpack.c.bf16 %v15670_v24, %v15671_v6  ;;  %v15694_v57 = vld [vmem:[#allocation56_spill] sm:$0xff] }
 0x557   : > { %9477 = vmatprep.subr.bf16.mxu1 %v15654_v40  ;;  %v15677_v21 = vld [vmem:[#allocation33_spill] sm:$0xff]  ;;  %v4749_v24 = vld [vmem:[%s15395_s3 + $0x1f8] sm:$0xff] }
 0x558   : > { %v14819_v39 = vadd.f32 %v7643_v50, %v14585_v31  ;;  %v4770_v31 = vld [vmem:[%s15395_s3 + $0x2a0] sm:$0xff]  ;;  %v15666_v50 = vpack.c.bf16 %v15664_v0, %v15665_v22  ;;  %v15691_v22 = vld [vmem:[#allocation38_spill] sm:$0xff]  ;;  %v15697_v6 = vld [vmem:[#allocation40_spill] sm:$0xff] }
 0x559   : > { %5892 = vmatmul.mubr.f32.gmra.mrb[134].mxu1 %v4746_v59  ;;  %v15678_v59 = vpack.c.bf16 %v15676_v20, %v15677_v21  ;;  %v15680_v40 = vld [vmem:[#allocation17_spill] sm:$0xff]  ;;  %v4772_v20 = vld [vmem:[%s15395_s3 + $0x2b0] sm:$0xff]  ;;  %v15703_v21 = vld [vmem:[#allocation42_spill] sm:$0xff] }
 0x55a   : > { %v7644_v16 = vpop.f32.mrb[102].mxu1  ;;  %9479 = vmatpush3.bf16.msra.mxu1 %v15657_v25  ;;  %5896 = vmatprep.mubr.f32.mxu1 %v4770_v31  ;;  %v15681_v31 = vpack.c.bf16 %v15679_v23, %v15680_v40  ;;  %v15685_v25 = vld [vmem:[#allocation20_spill] sm:$0xff]  ;;  %v4726_v0 = vld [vmem:[%s15395_s3 + $0x140] sm:$0xff]  ;;  %v4771_v23 = vld [vmem:[%s15395_s3 + $0x2a8] sm:$0xff] }
 0x55b   : > { %v7645_v10 = vpop.f32.mrb[103].mxu1  ;;  %9481 = vmatprep.subr.bf16.mxu1 %v15660_v11  ;;  %v15688_v11 = vld [vmem:[#allocation54_spill] sm:$0xff]  ;;  %v15706_v40 = vld [vmem:[#allocation60_spill] sm:$0xff] }
 0x55c   : > { %v7646_v43 = vadd.f32 %v7645_v10, %v7644_v16  ;;  %v4839_v16 = vld [vmem:[%s15395_s3 + $0x4c8] sm:$0xff]  ;;  %v15674_v10 = vld [vmem:[#allocation15_spill] sm:$0xff] }
 0x55d   : > { %5897 = vmatmul.mubr.f32.gmra.mrb[136].mxu1 %v4769_v61  ;;  %v15686_v61 = vld [vmem:[#allocation19_spill] sm:$0xff] }
 0x55e   : > { %v14834_v18 = vadd.f32 %v7646_v43, %v14592_v37  ;;  %v4793_v37 = vld [vmem:[%s15395_s3 + $0x358] sm:$0xff]  ;;  %9483 = vmatpush3.bf16.msra.mxu1 %v15663_v58  ;;  %v15687_v38 = vpack.c.bf16 %v15685_v25, %v15686_v61  ;;  %v4703_v58 = vld [vmem:[%s15395_s3 + $0x88] sm:$0xff]  ;;  %v4794_v25 = vld [vmem:[%s15395_s3 + $0x360] sm:$0xff] }
 0x55f   : > { %5901 = vmatprep.mubr.f32.mxu1 %v4793_v37  ;;  %9485 = vmatprep.subr.bf16.mxu1 %v15666_v50  ;;  %v15689_v37 = vld [vmem:[#allocation53_spill] sm:$0xff]  ;;  %v15712_v61 = vld [vmem:[#allocation62_spill] sm:$0xff] }
 0x560   : > { %v15692_v50 = vld [vmem:[#allocation37_spill] sm:$0xff] }
 0x561   : > { %5902 = vmatmul.mubr.f32.gmra.mrb[138].mxu1 %v4792_v60  ;;  %v4702_v60 = vld [vmem:[%s15395_s3 + $0x80] sm:$0xff] }
 0x562   : > { %v7647_v34 = vpop.f32.mrb[104].mxu1  ;;  %9487 = vmatpush3.bf16.msra.mxu1 %v15669_v1  ;;  %v15695_v1 = vld [vmem:[#allocation55_spill] sm:$0xff] }
 0x563   : > { %v7648_v47 = vpop.f32.mrb[105].mxu1  ;;  %9489 = vmatprep.subr.bf16.mxu1 %v15672_v4  ;;  %v15698_v4 = vld [vmem:[#allocation39_spill] sm:$0xff] }
 0x564   : > { %v7649_v51 = vadd.f32 %v7648_v47, %v7647_v34  ;;  %v4861_v34 = vld [vmem:[%s15395_s3 + $0x578] sm:$0xff] }
 0x565   : > { %v15682_v47 = vld [vmem:[#allocation36_spill] sm:$0xff] }
 0x566   : > { %v14849_v56 = vadd.f32 %v7649_v51, %v14596_v12  ;;  %v7650_v33 = vpop.f32.mrb[106].mxu1  ;;  %v4816_v12 = vld [vmem:[%s15395_s3 + $0x410] sm:$0xff] }
 0x567   : > { %v7651_v53 = vpop.f32.mrb[107].mxu1  ;;  %5906 = vmatprep.mubr.f32.mxu1 %v4816_v12  ;;  %v15683_v51 = vld [vmem:[#allocation35_spill] sm:$0xff]  ;;  %v15693_v12 = vpack.c.bf16 %v15691_v22, %v15692_v50 }
 0x568   : > { %v7652_v44 = vadd.f32 %v7651_v53, %v7650_v33  ;;  %5907 = vmatmul.mubr.f32.gmra.mrb[140].mxu1 %v4815_v27  ;;  %v15684_v45 = vpack.c.bf16 %v15682_v47, %v15683_v51  ;;  %v15690_v33 = vpack.c.bf16 %v15688_v11, %v15689_v37  ;;  %v4908_v53 = vld [vmem:[%s15395_s3 + $0x6f0] sm:$0xff]  ;;  %v15696_v27 = vpack.c.bf16 %v15694_v57, %v15695_v1  ;;  %v4795_v47 = vld [vmem:[%s15395_s3 + $0x368] sm:$0xff]  ;;  %v15709_v51 = vld [vmem:[#allocation44_spill] sm:$0xff] }
 0x569   : > { %5911 = vmatprep.mubr.f32.mxu1 %v4839_v16  ;;  %v15699_v16 = vpack.c.bf16 %v15697_v6, %v15698_v4  ;;  %v4818_v11 = vld [vmem:[%s15395_s3 + $0x420] sm:$0xff]  ;;  %v15715_v37 = vld [vmem:[#allocation46_spill] sm:$0xff]  ;;  %v15722_v22 = vld [vmem:[#allocation47_spill] sm:$0xff] }
 0x56a   : > { %v14864_v26 = vadd.f32 %v7652_v44, %v14611_v28  ;;  %v15673_v28 = vld [vmem:[#allocation16_spill] sm:$0xff]  ;;  %v4907_v44 = vld [vmem:[%s15395_s3 + $0x6e8] sm:$0xff]  ;;  %v15725_v57 = vld [vmem:[#allocation65_spill] sm:$0xff] }
 0x56b   : > { %v15675_v43 = vpack.c.bf16 %v15673_v28, %v15674_v10  ;;  %v4748_v28 = vld [vmem:[%s15395_s3 + $0x1f0] sm:$0xff]  ;;  %v15700_v10 = vld [vmem:[#allocation58_spill] sm:$0xff]  ;;  %v15728_v6 = vld [vmem:[#allocation49_spill] sm:$0xff] }
 0x56c   : > { %5912 = vmatmul.mubr.f32.gmra.mrb[142].mxu1 %v4838_v13 }
 0x56d   : > { %9491 = vmatpush3.bf16.msra.mxu1 %v15675_v43  ;;  %5916 = vmatprep.mubr.f32.mxu1 %v4862_v19  ;;  %v15701_v43 = vld [vmem:[#allocation57_spill] sm:$0xff] }
 0x56e   : > { %9493 = vmatprep.subr.bf16.mxu1 %v15678_v59  ;;  %v15702_v13 = vpack.c.bf16 %v15700_v10, %v15701_v43  ;;  %v15704_v59 = vld [vmem:[#allocation41_spill] sm:$0xff]  ;;  %v15731_v10 = vld [vmem:[#allocation67_spill] sm:$0xff] }
 0x56f   : > { %v15705_v19 = vpack.c.bf16 %v15703_v21, %v15704_v59  ;;  %v15734_v21 = vld [vmem:[#allocation51_spill] sm:$0xff] }
 0x570   : > { %5917 = vmatmul.mubr.f32.gmra.mrb[144].mxu1 %v4861_v34 }
 0x571   : > { %9495 = vmatpush3.bf16.msra.mxu1 %v15681_v31  ;;  %5921 = vmatprep.mubr.f32.mxu1 %v4885_v42  ;;  %v15707_v31 = vld [vmem:[#allocation59_spill] sm:$0xff] }
 0x572   : > { %9497 = vmatprep.subr.bf16.mxu1 %v15684_v45  ;;  %v15708_v34 = vpack.c.bf16 %v15706_v40, %v15707_v31  ;;  %v15710_v45 = vld [vmem:[#allocation43_spill] sm:$0xff]  ;;  %v15737_v40 = vld [vmem:[#allocation85_spill] sm:$0xff] }
 0x573   : > { %v15711_v42 = vpack.c.bf16 %v15709_v51, %v15710_v45  ;;  %v4933_v51 = vld [vmem:[%s15395_s3 + $0x7b8] sm:$0x1]  ;;  %v4932_v45 = vld [vmem:[%s15395_s3 + $0x7b0] sm:$0x1] }
 0x574   : > { %5922 = vmatmul.mubr.f32.gmra.mrb[146].mxu1 %v4884_v30 }
 0x575   : > { %9499 = vmatpush3.bf16.msra.mxu1 %v15687_v38  ;;  %5926 = vmatprep.mubr.f32.mxu1 %v4908_v53  ;;  %v15713_v38 = vld [vmem:[#allocation61_spill] sm:$0xff] }
 0x576   : > { %9501 = vmatprep.subr.bf16.mxu1 %v15690_v33  ;;  %v15714_v30 = vpack.c.bf16 %v15712_v61, %v15713_v38  ;;  %v15716_v33 = vld [vmem:[#allocation45_spill] sm:$0xff]  ;;  %v4728_v61 = vld [vmem:[%s15395_s3 + $0x150] sm:$0xff]  ;;  %v15739_v38 = vld [vmem:[#allocation70_spill] sm:$0xff] }
 0x577   : > { %v15717_v53 = vpack.c.bf16 %v15715_v37, %v15716_v33  ;;  %v4727_v37 = vld [vmem:[%s15395_s3 + $0x148] sm:$0xff]  ;;  %v15742_v33 = vld [vmem:[#allocation89_spill] sm:$0xff] }
 0x578   : > { %5927 = vmatmul.mubr.f32.gmra.mrb[148].mxu1 %v4907_v44  ;;  %v4817_v44 = vld [vmem:[%s15395_s3 + $0x418] sm:$0xff] }
 0x579   : > { %5931 = vmatprep.mubr.f32.mxu1 %v4931_v35  ;;  %v15718_v35 = vld [vmem:[#allocation64_spill] sm:$0xff] }
 0x57c   : > { %5932 = vmatmul.mubr.f32.gmra.mrb[150].mxu1 %v4930_v15  ;;  %v15719_v15 = vld [vmem:[#allocation63_spill] sm:$0xff] }
 0x57d   : > { %6001 = vmatprep.mubr.f32.mxu1 %v4703_v58  ;;  %v15720_v58 = vpack.c.bf16 %v15718_v35, %v15719_v15  ;;  %v4751_v35 = vld [vmem:[%s15395_s3 + $0x208] sm:$0xff]  ;;  %v15745_v15 = vld [vmem:[#allocation72_spill] sm:$0xff] }
 0x580   : > { %6002 = vmatmul.mubr.f32.vlgmr.msra.gmra.mrb[152].mxu1 %v4702_v60  ;;  %v4841_v60 = vld [vmem:[%s15395_s3 + $0x4d8] sm:$0xff] }
 0x581   : > { %9503 = vmatpush3.bf16.msra.mxu1 %v15693_v12  ;;  %6006 = vmatprep.mubr.f32.mxu1 %v4726_v0  ;;  %v15721_v0 = vld [vmem:[#allocation48_spill] sm:$0xff]  ;;  %v4840_v12 = vld [vmem:[%s15395_s3 + $0x4d0] sm:$0xff] }
 0x582   : > { %9505 = vmatprep.subr.bf16.mxu1 %v15696_v27  ;;  %v15723_v50 = vpack.c.bf16 %v15721_v0, %v15722_v22  ;;  %v4864_v27 = vld [vmem:[%s15395_s3 + $0x590] sm:$0xff]  ;;  %v4750_v0 = vld [vmem:[%s15395_s3 + $0x200] sm:$0xff] }
 0x583   : > { %v15748_v22 = vld [vmem:[#allocation91_spill] sm:$0xff] }
 0x584   : > { %6007 = vmatmul.mubr.f32.gmra.mrb[154].mxu1 %v4725_v29  ;;  %v15724_v29 = vld [vmem:[#allocation66_spill] sm:$0xff] }
 0x585   : > { %9507 = vmatpush3.bf16.msra.mxu1 %v15699_v16  ;;  %6011 = vmatprep.mubr.f32.mxu1 %v4749_v24  ;;  %v15726_v1 = vpack.c.bf16 %v15724_v29, %v15725_v57  ;;  %v15727_v24 = vld [vmem:[#allocation50_spill] sm:$0xff]  ;;  %v4774_v29 = vld [vmem:[%s15395_s3 + $0x2c0] sm:$0xff] }
 0x586   : > { %9509 = vmatprep.subr.bf16.mxu1 %v15702_v13  ;;  %v15729_v4 = vpack.c.bf16 %v15727_v24, %v15728_v6  ;;  %v4863_v16 = vld [vmem:[%s15395_s3 + $0x588] sm:$0xff]  ;;  %v4773_v24 = vld [vmem:[%s15395_s3 + $0x2b8] sm:$0xff]  ;;  %v15754_v6 = vld [vmem:[#allocation93_spill] sm:$0xff] }
 0x587   : > { %v4887_v13 = vld [vmem:[%s15395_s3 + $0x648] sm:$0xff] }
 0x588   : > { %6012 = vmatmul.mubr.f32.gmra.mrb[156].mxu1 %v4748_v28  ;;  %v15730_v28 = vld [vmem:[#allocation68_spill] sm:$0xff]  ;;  %v15751_v57 = vld [vmem:[#allocation74_spill] sm:$0xff] }
 0x589   : > { %9511 = vmatpush3.bf16.msra.mxu1 %v15705_v19  ;;  %6016 = vmatprep.mubr.f32.mxu1 %v4772_v20  ;;  %v15732_v43 = vpack.c.bf16 %v15730_v28, %v15731_v10  ;;  %v15733_v20 = vld [vmem:[#allocation52_spill] sm:$0xff]  ;;  %v4886_v19 = vld [vmem:[%s15395_s3 + $0x640] sm:$0xff] }
 0x58a   : > { %9513 = vmatprep.subr.bf16.mxu1 %v15708_v34  ;;  %v15735_v59 = vpack.c.bf16 %v15733_v20, %v15734_v21  ;;  %v4910_v34 = vld [vmem:[%s15395_s3 + $0x700] sm:$0xff]  ;;  %v4797_v28 = vld [vmem:[%s15395_s3 + $0x378] sm:$0xff]  ;;  %v15758_v21 = vld [vmem:[#allocation75_spill] sm:$0xff] }
 0x58b   : > { %v15757_v20 = vld [vmem:[#allocation76_spill] sm:$0xff] }
 0x58c   : > { %6017 = vmatmul.mubr.f32.gmra.mrb[158].mxu1 %v4771_v23  ;;  %v15736_v23 = vld [vmem:[#allocation86_spill] sm:$0xff] }
 0x58d   : > { %9515 = vmatpush3.bf16.msra.mxu1 %v15711_v42  ;;  %6021 = vmatprep.mubr.f32.mxu1 %v4795_v47  ;;  %v15738_v31 = vpack.c.bf16 %v15736_v23, %v15737_v40  ;;  %v4909_v47 = vld [vmem:[%s15395_s3 + $0x6f8] sm:$0xff]  ;;  %v15760_v23 = vld [vmem:[#allocation95_spill] sm:$0xff]  ;;  %v15761_v40 = vld [vmem:[#allocation94_spill] sm:$0xff] }
 0x58e   : > { %9517 = vmatprep.subr.bf16.mxu1 %v15714_v30  ;;  %v4705_v42 = vld [vmem:[%s15395_s3 + $0x98] sm:$0xff]  ;;  %v15740_v30 = vld [vmem:[#allocation69_spill] sm:$0xff] }
 0x590   : > { %6022 = vmatmul.mubr.f32.gmra.mrb[160].mxu1 %v4794_v25  ;;  %v4704_v25 = vld [vmem:[%s15395_s3 + $0x90] sm:$0xff] }
 0x591   : > { %9519 = vmatpush3.bf16.msra.mxu1 %v15717_v53  ;;  %6026 = vmatprep.mubr.f32.mxu1 %v4818_v11  ;;  %v15741_v11 = vpack.c.bf16 %v15739_v38, %v15740_v30  ;;  %v15743_v53 = vld [vmem:[#allocation87_spill] sm:$0xff]  ;;  %v4819_v30 = vld [vmem:[%s15395_s3 + $0x428] sm:$0xff] }
 0x592   : > { %9521 = vmatprep.subr.bf16.mxu1 %v15720_v58  ;;  %v15746_v58 = vld [vmem:[#allocation71_spill] sm:$0xff] }
 0x594   : > { %6027 = vmatmul.mubr.f32.gmra.mrb[162].mxu1 %v4817_v44  ;;  %v15744_v44 = vpack.c.bf16 %v15742_v33, %v15743_v53 }
 0x595   : > { %9523 = vmatpush3.bf16.msra.mxu1 %v15723_v50  ;;  %6031 = vmatprep.mubr.f32.mxu1 %v4841_v60  ;;  %v15747_v60 = vpack.c.bf16 %v15745_v15, %v15746_v58  ;;  %v15749_v50 = vld [vmem:[#allocation90_spill] sm:$0xff]  ;;  %v15768_v15 = vld [vmem:[#allocation79_spill] sm:$0xff] }
 0x596   : > { %9525 = vmatprep.subr.bf16.mxu1 %v15726_v1  ;;  %v15752_v1 = vld [vmem:[#allocation73_spill] sm:$0xff] }
 0x598   : > { %6032 = vmatmul.mubr.f32.gmra.mrb[164].mxu1 %v4840_v12  ;;  %v15750_v12 = vpack.c.bf16 %v15748_v22, %v15749_v50 }
 0x599   : > { %9527 = vmatpush3.bf16.msra.mxu1 %v15729_v4  ;;  %6036 = vmatprep.mubr.f32.mxu1 %v4864_v27  ;;  %v15753_v27 = vpack.c.bf16 %v15751_v57, %v15752_v1  ;;  %v15755_v4 = vld [vmem:[#allocation92_spill] sm:$0xff] }
 0x59a   : > { %9529 = vmatprep.subr.bf16.mxu1 %v15732_v43 }
 0x59c   : > { %6037 = vmatmul.mubr.f32.gmra.mrb[166].mxu1 %v4863_v16  ;;  %v15756_v16 = vpack.c.bf16 %v15754_v6, %v15755_v4  ;;  %v15775_v4 = vld [vmem:[#allocation84_spill] sm:$0xff] }
 0x59d   : > { %9531 = vmatpush3.bf16.msra.mxu1 %v15735_v59  ;;  %6041 = vmatprep.mubr.f32.mxu1 %v4887_v13  ;;  %v15759_v59 = vpack.c.bf16 %v15757_v20, %v15758_v21  ;;  %v15779_v20 = vld [vmem:[#allocation88_spill] sm:$0xff] }
 0x59e   : > { %9533 = vmatprep.subr.bf16.mxu1 %v15738_v31  ;;  %v15762_v31 = vpack.c.bf16 %v15760_v23, %v15761_v40  ;;  %v2493_v21 = vadd.f32 %v14641_v54, %v15779_v20  ;;  %v4935_v23 = vld [vmem:[%s15395_s3 + $0x7c8] sm:$0x1]  ;;  %v4934_v54 = vld [vmem:[%s15395_s3 + $0x7c0] sm:$0x1]  ;;  %v4845_v20 = vld [vmem:[%s15395_s3 + $0x4f8] sm:$0xff] }
 0x5a0   : > { %6042 = vmatmul.mubr.f32.gmra.mrb[168].mxu1 %v4886_v19  ;;  %v4796_v19 = vld [vmem:[%s15395_s3 + $0x370] sm:$0xff] }
 0x5a1   : > { %6046 = vmatprep.mubr.f32.mxu1 %v4910_v34  ;;  %v4820_v34 = vld [vmem:[%s15395_s3 + $0x430] sm:$0xff] }
 0x5a4   : > { %6047 = vmatmul.mubr.f32.gmra.mrb[170].mxu1 %v4909_v47 }
 0x5a5   : > { %6051 = vmatprep.mubr.f32.mxu1 %v4933_v51 }
 0x5a8   : > { %6052 = vmatmul.mubr.f32.gmra.mrb[172].mxu1 %v4932_v45 }
 0x5a9   : > { %6121 = vmatprep.mubr.f32.mxu1 %v4705_v42 }
 0x5ac   : > { %6122 = vmatmul.mubr.f32.vlgmr.msra.gmra.mrb[174].mxu1 %v4704_v25  ;;  %v15763_v25 = vld [vmem:[#allocation78_spill] sm:$0xff] }
 0x5ad   : > { %9535 = vmatpush3.bf16.msra.mxu1 %v15741_v11  ;;  %6126 = vmatprep.mubr.f32.mxu1 %v4728_v61  ;;  %v15764_v61 = vld [vmem:[#allocation77_spill] sm:$0xff]  ;;  %v15766_v11 = vpack.c.bf16 %v14095_v3, %v14049_v5  ;;  %v15770_v3 = vpack.c.bf16 %v14122_v14, %v14098_v7  ;;  %v4865_v7 = vld [vmem:[%s15395_s3 + $0x598] sm:$0xff]  ;;  %v15774_v14 = vpack.c.bf16 %v14169_v17, %v14147_v62  ;;  %v4888_v62 = vld [vmem:[%s15395_s3 + $0x650] sm:$0xff] }
 0x5ae   : > { %9537 = vmatprep.subr.bf16.mxu1 %v15744_v44  ;;  %v15765_v38 = vpack.c.bf16 %v15763_v25, %v15764_v61  ;;  %v4842_v5 = vld [vmem:[%s15395_s3 + $0x4e0] sm:$0xff]  ;;  %v4912_v17 = vld [vmem:[%s15395_s3 + $0x710] sm:$0xff] }
 0x5b0   : > { %6127 = vmatmul.mubr.f32.gmra.mrb[176].mxu1 %v4727_v37 }
 0x5b1   : > { %9539 = vmatpush3.bf16.msra.mxu1 %v15747_v60  ;;  %6131 = vmatprep.mubr.f32.mxu1 %v4751_v35  ;;  %v15767_v35 = vld [vmem:[#allocation80_spill] sm:$0xff] }
 0x5b2   : > { %9541 = vmatprep.subr.bf16.mxu1 %v15750_v12  ;;  %v15769_v58 = vpack.c.bf16 %v15767_v35, %v15768_v15  ;;  %v15771_v12 = vld [vmem:[#allocation82_spill] sm:$0xff]  ;;  %v4729_v35 = vld [vmem:[%s15395_s3 + $0x158] sm:$0xff] }
 0x5b4   : > { %6132 = vmatmul.mubr.f32.gmra.mrb[178].mxu1 %v4750_v0 }
 0x5b5   : > { %9543 = vmatpush3.bf16.msra.mxu1 %v15753_v27  ;;  %6136 = vmatprep.mubr.f32.mxu1 %v4774_v29  ;;  %v15772_v29 = vld [vmem:[#allocation81_spill] sm:$0xff] }
 0x5b6   : > { %9545 = vmatprep.subr.bf16.mxu1 %v15756_v16  ;;  %v15773_v57 = vpack.c.bf16 %v15771_v12, %v15772_v29  ;;  %v15776_v16 = vld [vmem:[#allocation83_spill] sm:$0xff] }
 0x5b8   : > { %6137 = vmatmul.mubr.f32.gmra.mrb[180].mxu1 %v4773_v24 }
 0x5b9   : > { %v7685_v10 = vpop.f32.mrb[108].mxu1  ;;  %9547 = vmatpush3.bf16.msra.mxu1 %v15759_v59  ;;  %6141 = vmatprep.mubr.f32.mxu1 %v4797_v28  ;;  %v15777_v28 = vpack.c.bf16 %v15775_v4, %v15776_v16  ;;  %v15788_v16 = vld [vmem:[#allocation102_spill] sm:$0xff] }
 0x5ba   : > { %v7686_v43 = vpop.f32.mrb[109].mxu1  ;;  %9549 = vmatprep.subr.bf16.mxu1 %v15762_v31 }
 0x5bb   : > { %v7687_v13 = vadd.f32 %v7686_v43, %v7685_v10  ;;  %v15778_v10 = vmov 0.0|0.0  }
 0x5bc   : > { %6142 = vmatmul.mubr.f32.gmra.mrb[182].mxu1 %v4796_v19  ;;  %v4911_v19 = vld [vmem:[%s15395_s3 + $0x708] sm:$0xff] }
 0x5bd   : > { %v15095_v47 = vadd.f32 %v7687_v13, %v14753_v41  ;;  %v7688_v51 = vpop.f32.mrb[110].mxu1  ;;  %9551 = vmatpush3.bf16.msra.mxu1 %v15765_v38  ;;  %6146 = vmatprep.mubr.f32.mxu1 %v4820_v34  ;;  %v4843_v41 = vld [vmem:[%s15395_s3 + $0x4e8] sm:$0xff]  ;;  %v6867_v34 = vmul.f32 -1.442695, %v2493_v21  ;;  %v4706_v38 = vld [vmem:[%s15395_s3 + $0xa0] sm:$0xff]  ;;  %v15792_v21 = vpack.c.bf16 %v14487_v52, %v14472_v55 }
 0x5be   : > { %v7689_v45 = vpop.f32.mrb[111].mxu1  ;;  %9553 = vmatprep.subr.bf16.mxu1 %v15766_v11  ;;  %v4867_v55 = vld [vmem:[%s15395_s3 + $0x5a8] sm:$0xff] }
 0x5bf   : > { %v7690_v42 = vadd.f32 %v7689_v45, %v7688_v51  ;;  %v4707_v45 = vld [vmem:[%s15395_s3 + $0xa8] sm:$0xff]  ;;  %11102 = vpow2.f32 %v6867_v34  ;;  %v4936_v34 = vld [vmem:[%s15395_s3 + $0x7d0] sm:$0x1] }
 0x5c0   : > { %6147 = vmatmul.mubr.f32.gmra.mrb[184].mxu1 %v4819_v30  ;;  %v4730_v30 = vld [vmem:[%s15395_s3 + $0x160] sm:$0xff]  ;;  %v4891_v52 = vld [vmem:[%s15395_s3 + $0x668] sm:$0xff] }
 0x5c1   : > { %v15110_v37 = vadd.f32 %v7690_v42, %v14756_v46  ;;  %v7691_v33 = vpop.f32.mrb[112].mxu1  ;;  %9555 = vmatpush3.bf16.msra.mxu1 %v15769_v58  ;;  %6151 = vmatprep.mubr.f32.mxu1 %v4843_v41  ;;  %v4866_v46 = vld [vmem:[%s15395_s3 + $0x5a0] sm:$0xff] }
 0x5c2   : > { %v7692_v53 = vpop.f32.mrb[113].mxu1  ;;  %9557 = vmatprep.subr.bf16.mxu1 %v15770_v3 }
 0x5c3   : > { %v7693_v44 = vadd.f32 %v7692_v53, %v7691_v33  ;;  %v15780_v53 = vld [vmem:[#allocation96_spill] sm:$0xff] }
 0x5c4   : > { %6152 = vmatmul.mubr.f32.gmra.mrb[186].mxu1 %v4842_v5 }
 0x5c5   : > { %v15125_v60 = vadd.f32 %v7693_v44, %v14762_v63  ;;  %v7694_v0 = vpop.f32.mrb[114].mxu1  ;;  %9559 = vmatpush3.bf16.msra.mxu1 %v15773_v57  ;;  %6156 = vmatprep.mubr.f32.mxu1 %v4866_v46  ;;  %v4889_v63 = vld [vmem:[%s15395_s3 + $0x658] sm:$0xff]  ;;  %v15781_v44 = vpack.c.bf16 %v14227_v9, %v15780_v53  ;;  %v15782_v9 = vld [vmem:[#allocation98_spill] sm:$0xff]  ;;  %v15783_v46 = vld [vmem:[#allocation97_spill] sm:$0xff] }
 0x5c6   : > { %v7695_v22 = vpop.f32.mrb[115].mxu1  ;;  %9561 = vmatprep.subr.bf16.mxu1 %v15774_v14  ;;  %v15785_v14 = vld [vmem:[#allocation100_spill] sm:$0xff] }
 0x5c7   : > { %v7696_v50 = vadd.f32 %v7695_v22, %v7694_v0  ;;  %v15784_v0 = vpack.c.bf16 %v15782_v9, %v15783_v46  ;;  %v4752_v22 = vld [vmem:[%s15395_s3 + $0x210] sm:$0xff] }
 0x5c8   : > { %6157 = vmatmul.mubr.f32.gmra.mrb[188].mxu1 %v4865_v7 }
 0x5c9   : > { %v15140_v1 = vadd.f32 %v7696_v50, %v14771_v48  ;;  %v7697_v27 = vpop.f32.mrb[116].mxu1  ;;  %9563 = vmatpush3.bf16.msra.mxu1 %v15777_v28  ;;  %6161 = vmatprep.mubr.f32.mxu1 %v4889_v63  ;;  %v11103_v50 = vpop.eup %11102  ;;  %v15786_v63 = vld [vmem:[#allocation99_spill] sm:$0xff]  ;;  %v15789_v28 = vld [vmem:[#allocation101_spill] sm:$0xff] }
 0x5ca   : > { %v7698_v24 = vpop.f32.mrb[117].mxu1  ;;  %9564 = vmatprep.subr.bf16.mxu1 %v15778_v10 }
 0x5cb   : > { %v7699_v6 = vadd.f32 %v7698_v24, %v7697_v27  ;;  %v15787_v27 = vpack.c.bf16 %v15785_v14, %v15786_v63  ;;  %v4775_v24 = vld [vmem:[%s15395_s3 + $0x2c8] sm:$0xff] }
 0x5cc   : > { %6162 = vmatmul.mubr.f32.gmra.mrb[190].mxu1 %v4888_v62  ;;  %v15790_v62 = vpack.c.bf16 %v15788_v16, %v15789_v28 }
 0x5cd   : > { %v15153_v48 = vadd.f32 %v7699_v6, %v14780_v8  ;;  %v7700_v43 = vpop.f32.mrb[118].mxu1  ;;  %6166 = vmatprep.mubr.f32.mxu1 %v4912_v17  ;;  %v3955_v6 = vadd.f32 1.0, %v11103_v50  ;;  %v4798_v17 = vld [vmem:[%s15395_s3 + $0x380] sm:$0xff] }
 0x5ce   : > { %v7701_v13 = vpop.f32.mrb[119].mxu1 }
 0x5cf   : > { %v7702_v59 = vadd.f32 %v7701_v13, %v7700_v43  ;;  %11104 = vrcp.f32 %v3955_v6  ;;  %v4822_v43 = vld [vmem:[%s15395_s3 + $0x440] sm:$0xff]  ;;  %v4821_v13 = vld [vmem:[%s15395_s3 + $0x438] sm:$0xff] }
 0x5d0   : > { %6167 = vmatmul.mubr.f32.gmra.mrb[192].mxu1 %v4911_v19  ;;  %v4890_v19 = vld [vmem:[%s15395_s3 + $0x660] sm:$0xff] }
 0x5d1   : > { %v15164_v40 = vadd.f32 %v7702_v59, %v14789_v36  ;;  %v7703_v8 = vpop.f32.mrb[120].mxu1  ;;  %6171 = vmatprep.mubr.f32.mxu1 %v4935_v23  ;;  %v4914_v23 = vld [vmem:[%s15395_s3 + $0x720] sm:$0xff] }
 0x5d2   : > { %v7704_v31 = vpop.f32.mrb[121].mxu1 }
 0x5d3   : > { %v7705_v51 = vadd.f32 %v7704_v31, %v7703_v8  ;;  %v4913_v8 = vld [vmem:[%s15395_s3 + $0x718] sm:$0xff] }
 0x5d4   : > { %6172 = vmatmul.mubr.f32.gmra.mrb[194].mxu1 %v4934_v54  ;;  %v4937_v31 = vld [vmem:[%s15395_s3 + $0x7d8] sm:$0x1]  ;;  %v4731_v54 = vld [vmem:[%s15395_s3 + $0x168] sm:$0xff] }
 0x5d5   : > { %v15173_v42 = vadd.f32 %v7705_v51, %v14804_v49  ;;  %v7706_v25 = vpop.f32.mrb[122].mxu1  ;;  %6241 = vmatprep.mubr.f32.mxu1 %v4707_v45  ;;  %v4708_v51 = vld [vmem:[%s15395_s3 + $0xb0] sm:$0xff]  ;;  %v4754_v45 = vld [vmem:[%s15395_s3 + $0x220] sm:$0xff] }
 0x5d6   : > { %v7707_v36 = vpop.f32.mrb[123].mxu1 }
 0x5d7   : > { %v7708_v61 = vadd.f32 %v7707_v36, %v7706_v25  ;;  %v4777_v25 = vld [vmem:[%s15395_s3 + $0x2d8] sm:$0xff]  ;;  %v4800_v36 = vld [vmem:[%s15395_s3 + $0x390] sm:$0xff] }
 0x5d8   : > { %6242 = vmatmul.mubr.f32.vlgmr.msra.gmra.mrb[196].mxu1 %v4706_v38  ;;  %v4846_v38 = vld [vmem:[%s15395_s3 + $0x500] sm:$0xff] }
 0x5d9   : > { %v15182_v11 = vadd.f32 %v7708_v61, %v14819_v39  ;;  %v7709_v41 = vpop.f32.mrb[124].mxu1  ;;  %9566 = vmatpush3.bf16.msra.mxu1 %v15781_v44  ;;  %6246 = vmatprep.mubr.f32.mxu1 %v4730_v30  ;;  %v4753_v39 = vld [vmem:[%s15395_s3 + $0x218] sm:$0xff]  ;;  %v11105_v59 = vpop.eup %11104  ;;  %v4823_v61 = vld [vmem:[%s15395_s3 + $0x448] sm:$0xff] }
 0x5da   : > { %v7710_v49 = vpop.f32.mrb[125].mxu1  ;;  %9567 = vmatprep.subr.bf16.mxu1 %v15778_v10  ;;  %v4869_v30 = vld [vmem:[%s15395_s3 + $0x5b8] sm:$0xff] }
 0x5db   : > { %v7711_v33 = vadd.f32 %v7710_v49, %v7709_v41  ;;  %v4892_v41 = vld [vmem:[%s15395_s3 + $0x670] sm:$0xff]  ;;  %v4915_v49 = vld [vmem:[%s15395_s3 + $0x728] sm:$0xff] }
 0x5dc   : > { %6247 = vmatmul.mubr.f32.gmra.mrb[198].mxu1 %v4729_v35  ;;  %v4938_v35 = vld [vmem:[%s15395_s3 + $0x7e0] sm:$0x1] }
 0x5dd   : > { %v15195_v15 = vadd.f32 %v7711_v33, %v14834_v18  ;;  %v7712_v58 = vpop.f32.mrb[126].mxu1  ;;  %9569 = vmatpush3.bf16.msra.mxu1 %v15784_v0  ;;  %6251 = vmatprep.mubr.f32.mxu1 %v4753_v39  ;;  %v4776_v18 = vld [vmem:[%s15395_s3 + $0x2d0] sm:$0xff] }
 0x5de   : > { %v7713_v5 = vpop.f32.mrb[127].mxu1  ;;  %9570 = vmatprep.subr.bf16.mxu1 %v15778_v10 }
 0x5df   : > { %v7714_v3 = vadd.f32 %v7713_v5, %v7712_v58 }
 0x5e0   : > { %6252 = vmatmul.mubr.f32.gmra.mrb[200].mxu1 %v4752_v22 }
 0x5e1   : > { %v15208_v12 = vadd.f32 %v7714_v3, %v14849_v56  ;;  %v7715_v29 = vpop.f32.mrb[128].mxu1  ;;  %9572 = vmatpush3.bf16.msra.mxu1 %v15787_v27  ;;  %6256 = vmatprep.mubr.f32.mxu1 %v4776_v18  ;;  %v4799_v56 = vld [vmem:[%s15395_s3 + $0x388] sm:$0xff] }
 0x5e2   : > { %v7716_v57 = vpop.f32.mrb[129].mxu1  ;;  %9573 = vmatprep.subr.bf16.mxu1 %v15778_v10 }
 0x5e3   : > { %v7717_v7 = vadd.f32 %v7716_v57, %v7715_v29 }
 0x5e4   : > { %6257 = vmatmul.mubr.f32.gmra.mrb[202].mxu1 %v4775_v24 }
 0x5e5   : > { %v15221_v4 = vadd.f32 %v7717_v7, %v14864_v26  ;;  %9575 = vmatpush3.bf16.msra.mxu1 %v15790_v62  ;;  %6261 = vmatprep.mubr.f32.mxu1 %v4799_v56  ;;  %v15791_v26 = vpack.c.bf16 %v14464_v2, %v14437_v32  ;;  %v4844_v32 = vld [vmem:[%s15395_s3 + $0x4f0] sm:$0xff]  ;;  %v15793_v2 = vmov 0.0  }
 0x5e6   : > { %9576 = vmatprep.subr.bf16.mxu1 %v15778_v10 }
 0x5e8   : > { %6262 = vmatmul.mubr.f32.gmra.mrb[204].mxu1 %v4798_v17 }
 0x5e9   : > { %9578 = vmatpush3.bf16.msra.mxu1 %v15791_v26  ;;  %6266 = vmatprep.mubr.f32.mxu1 %v4822_v43 }
 0x5ea   : > { %9579 = vmatprep.subr.bf16.mxu1 %v15778_v10  ;;  %v4868_v10 = vld [vmem:[%s15395_s3 + $0x5b0] sm:$0xff] }
 0x5ec   : > { %6267 = vmatmul.mubr.f32.gmra.mrb[206].mxu1 %v4821_v13 }
 0x5ed   : > { %9581 = vmatpush3.bf16.msra.mxu1 %v15792_v21  ;;  %6271 = vmatprep.mubr.f32.mxu1 %v4845_v20 }
 0x5ee   : > { %9153 = vmatprep.subr.mxu1 %v15793_v2 }
 0x5f0   : > { %6272 = vmatmul.mubr.f32.gmra.mrb[208].mxu1 %v4844_v32 }
 0x5f1   : > { %9154 = vmatpush3.msk.msra.mxu1 %vm4973_vm1, %v11105_v59  ;;  %6276 = vmatprep.mubr.f32.mxu1 %v4868_v10 }
 0x5f4   : > { %6277 = vmatmul.mubr.f32.gmra.mrb[210].mxu1 %v4867_v55 }
 0x5f5   : > { %6281 = vmatprep.mubr.f32.mxu1 %v4891_v52 }
 0x5f8   : > { %6282 = vmatmul.mubr.f32.gmra.mrb[212].mxu1 %v4890_v19 }
 0x5f9   : > { %6286 = vmatprep.mubr.f32.mxu1 %v4914_v23 }
 0x5fc   : > { %6287 = vmatmul.mubr.f32.gmra.mrb[214].mxu1 %v4913_v8 }
 0x5fd   : > { %6291 = vmatprep.mubr.f32.mxu1 %v4937_v31 }
 0x600   : > { %6292 = vmatmul.mubr.f32.gmra.mrb[216].mxu1 %v4936_v34 }
 0x601   : > { %9155 = vmatprep.mubr.msk.f32.mxu1 %vm11185_vm0, %v15793_v2 }
 0x604   : > { %9156 = vmatmul.mubr.msk.f32.vlgmr.msra.gmra.mrb[218].mxu1 %vm4939_vm2, %v4708_v51 }
 0x605   : > { %9158 = vmatprep.mubr.msk.f32.mxu1 %vm11185_vm0, %v15793_v2 }
 0x608   : > { %9159 = vmatmul.mubr.msk.f32.gmra.mrb[220].mxu1 %vm4939_vm2, %v4731_v54 }
 0x609   : > { %9161 = vmatprep.mubr.msk.f32.mxu1 %vm11185_vm0, %v15793_v2 }
 0x60c   : > { %9162 = vmatmul.mubr.msk.f32.gmra.mrb[222].mxu1 %vm4939_vm2, %v4754_v45 }
 0x60d   : > { %9164 = vmatprep.mubr.msk.f32.mxu1 %vm11185_vm0, %v15793_v2 }
 0x610   : > { %9165 = vmatmul.mubr.msk.f32.gmra.mrb[224].mxu1 %vm4939_vm2, %v4777_v25 }
 0x611   : > { %9167 = vmatprep.mubr.msk.f32.mxu1 %vm11185_vm0, %v15793_v2 }
 0x614   : > { %9168 = vmatmul.mubr.msk.f32.gmra.mrb[226].mxu1 %vm4939_vm2, %v4800_v36 }
 0x615   : > { %9170 = vmatprep.mubr.msk.f32.mxu1 %vm11185_vm0, %v15793_v2 }
 0x618   : > { %9171 = vmatmul.mubr.msk.f32.gmra.mrb[228].mxu1 %vm4939_vm2, %v4823_v61 }
 0x619   : > { %9173 = vmatprep.mubr.msk.f32.mxu1 %vm11185_vm0, %v15793_v2 }
 0x61c   : > { %9174 = vmatmul.mubr.msk.f32.gmra.mrb[230].mxu1 %vm4939_vm2, %v4846_v38 }
 0x61d   : > { %9176 = vmatprep.mubr.msk.f32.mxu1 %vm11185_vm0, %v15793_v2 }
 0x620   : > { %9177 = vmatmul.mubr.msk.f32.gmra.mrb[232].mxu1 %vm4939_vm2, %v4869_v30 }
 0x621   : > { %9179 = vmatprep.mubr.msk.f32.mxu1 %vm11185_vm0, %v15793_v2 }
 0x624   : > { %9180 = vmatmul.mubr.msk.f32.gmra.mrb[234].mxu1 %vm4939_vm2, %v4892_v41  ;;  %v7750_v33 = vpop.f32.mrb[130].mxu1 }
 0x625   : > { %9182 = vmatprep.mubr.msk.f32.mxu1 %vm11185_vm0, %v15793_v2  ;;  %v7751_v53 = vpop.f32.mrb[131].mxu1 }
 0x626   : > { %v7752_v44 = vadd.f32 %v7751_v53, %v7750_v33 }
 0x628   : > { %9183 = vmatmul.mubr.msk.f32.gmra.mrb[236].mxu1 %vm4939_vm2, %v4915_v49  ;;  %v5884_v39 = vadd.f32 %v7752_v44, %v15095_v47  ;;  %v7753_v58 = vpop.f32.mrb[132].mxu1 }
 0x629   : > { %9185 = vmatprep.mubr.msk.f32.mxu1 %vm11185_vm0, %v15793_v2  ;;  %v7754_v5 = vpop.f32.mrb[133].mxu1 }
 0x62a   : > { %v7755_v3 = vadd.f32 %v7754_v5, %v7753_v58 }
 0x62c   : > { %9186 = vmatmul.mubr.msk.f32.gmra.mrb[238].mxu1 %vm4939_vm2, %v4938_v35  ;;  %v5889_v9 = vadd.f32 %v7755_v3, %v15110_v37  ;;  %v7756_v46 = vpop.f32.mrb[134].mxu1 }
 0x62d   : > { %v7757_v0 = vpop.f32.mrb[135].mxu1 }
 0x62e   : > { %v7758_v22 = vadd.f32 %v7757_v0, %v7756_v46 }
 0x630   : > { %v5894_v18 = vadd.f32 %v7758_v22, %v15125_v60  ;;  %v7759_v50 = vpop.f32.mrb[136].mxu1 }
 0x631   : > { %v7760_v29 = vpop.f32.mrb[137].mxu1 }
 0x632   : > { %v7761_v57 = vadd.f32 %v7760_v29, %v7759_v50 }
 0x634   : > { %v5899_v7 = vadd.f32 %v7761_v57, %v15140_v1  ;;  %v7762_v14 = vpop.f32.mrb[138].mxu1 }
 0x635   : > { %v7763_v63 = vpop.f32.mrb[139].mxu1 }
 0x636   : > { %v7764_v47 = vadd.f32 %v7763_v63, %v7762_v14 }
 0x638   : > { %v5904_v27 = vadd.f32 %v7764_v47, %v15153_v48 }
 0x63b   : > { %v7765_v24 = vpop.f32.mrb[140].mxu1 }
 0x63c   : > { %v7766_v6 = vpop.f32.mrb[141].mxu1 }
 0x63d   : > { %v7767_v56 = vadd.f32 %v7766_v6, %v7765_v24 }
 0x63f   : > { %v5909_v37 = vadd.f32 %v7767_v56, %v15164_v40  ;;  %v7768_v16 = vpop.f32.mrb[142].mxu1 }
 0x640   : > { %v7769_v28 = vpop.f32.mrb[143].mxu1 }
 0x641   : > { %v7770_v62 = vadd.f32 %v7769_v28, %v7768_v16 }
 0x643   : > { %v5914_v60 = vadd.f32 %v7770_v62, %v15173_v42  ;;  %v7771_v17 = vpop.f32.mrb[144].mxu1 }
 0x644   : > { %v7772_v43 = vpop.f32.mrb[145].mxu1 }
 0x645   : > { %v7773_v26 = vadd.f32 %v7772_v43, %v7771_v17 }
 0x647   : > { %v5919_v1 = vadd.f32 %v7773_v26, %v15182_v11  ;;  %v7774_v13 = vpop.f32.mrb[146].mxu1 }
 0x648   : > { %v7775_v20 = vpop.f32.mrb[147].mxu1 }
 0x649   : > { %v7776_v21 = vadd.f32 %v7775_v20, %v7774_v13 }
 0x64b   : > { %v5924_v48 = vadd.f32 %v7776_v21, %v15195_v15  ;;  %v7777_v32 = vpop.f32.mrb[148].mxu1 }
 0x64c   : > { %v7778_v2 = vpop.f32.mrb[149].mxu1 }
 0x64d   : > { %v7779_v10 = vadd.f32 %v7778_v2, %v7777_v32 }
 0x64f   : > { %v5929_v40 = vadd.f32 %v7779_v10, %v15208_v12  ;;  %v7780_v59 = vpop.f32.mrb[150].mxu1 }
 0x650   : > { %v7781_v55 = vpop.f32.mrb[151].mxu1 }
 0x651   : > { %v7782_v52 = vadd.f32 %v7781_v55, %v7780_v59 }
 0x653   : > { %v5934_v42 = vadd.f32 %v7782_v52, %v15221_v4  ;;  %v7815_v19 = vpop.f32.mrb[152].mxu1 }
 0x654   : > { %v7816_v23 = vpop.f32.mrb[153].mxu1 }
 0x655   : > { %v7817_v8 = vadd.f32 %v7816_v23, %v7815_v19 }
 0x657   : > { %v6004_v31 = vadd.f32 %v7817_v8, %v5884_v39  ;;  %v7818_v11 = vpop.f32.mrb[154].mxu1 }
 0x658   : > { %v7819_v34 = vpop.f32.mrb[155].mxu1 }
 0x659   : > { %v7820_v51 = vadd.f32 %v7819_v34, %v7818_v11 }
 0x65b   : > { %v6009_v54 = vadd.f32 %v7820_v51, %v5889_v9  ;;  %v7821_v45 = vpop.f32.mrb[156].mxu1 }
 0x65c   : > { %v7822_v15 = vpop.f32.mrb[157].mxu1 }
 0x65d   : > { %v7823_v25 = vadd.f32 %v7822_v15, %v7821_v45 }
 0x65f   : > { %v6014_v36 = vadd.f32 %v7823_v25, %v5894_v18  ;;  %v7824_v61 = vpop.f32.mrb[158].mxu1 }
 0x660   : > { %v7825_v38 = vpop.f32.mrb[159].mxu1 }
 0x661   : > { %v7826_v12 = vadd.f32 %v7825_v38, %v7824_v61 }
 0x663   : > { %v6019_v30 = vadd.f32 %v7826_v12, %v5899_v7  ;;  %v7827_v41 = vpop.f32.mrb[160].mxu1 }
 0x664   : > { %v7828_v49 = vpop.f32.mrb[161].mxu1 }
 0x665   : > { %v7829_v33 = vadd.f32 %v7828_v49, %v7827_v41 }
 0x667   : > { %v6024_v4 = vadd.f32 %v7829_v33, %v5904_v27  ;;  %v7830_v53 = vpop.f32.mrb[162].mxu1 }
 0x668   : > { %v7831_v44 = vpop.f32.mrb[163].mxu1 }
 0x669   : > { %v7832_v35 = vadd.f32 %v7831_v44, %v7830_v53 }
 0x66b   : > { %v6029_v39 = vadd.f32 %v7832_v35, %v5909_v37  ;;  %v7833_v58 = vpop.f32.mrb[164].mxu1 }
 0x66c   : > { %v7834_v5 = vpop.f32.mrb[165].mxu1 }
 0x66d   : > { %v7835_v3 = vadd.f32 %v7834_v5, %v7833_v58 }
 0x66f   : > { %v6034_v9 = vadd.f32 %v7835_v3, %v5914_v60  ;;  %v7836_v46 = vpop.f32.mrb[166].mxu1 }
 0x670   : > { %v7837_v0 = vpop.f32.mrb[167].mxu1 }
 0x671   : > { %v7838_v22 = vadd.f32 %v7837_v0, %v7836_v46 }
 0x673   : > { %v6039_v18 = vadd.f32 %v7838_v22, %v5919_v1  ;;  %v7839_v50 = vpop.f32.mrb[168].mxu1 }
 0x674   : > { %v7840_v29 = vpop.f32.mrb[169].mxu1 }
 0x675   : > { %v7841_v57 = vadd.f32 %v7840_v29, %v7839_v50 }
 0x677   : > { %v6044_v7 = vadd.f32 %v7841_v57, %v5924_v48  ;;  %v7842_v14 = vpop.f32.mrb[170].mxu1 }
 0x678   : > { %v7843_v63 = vpop.f32.mrb[171].mxu1 }
 0x679   : > { %v7844_v47 = vadd.f32 %v7843_v63, %v7842_v14 }
 0x67b   : > { %v6049_v27 = vadd.f32 %v7844_v47, %v5929_v40  ;;  %v7845_v24 = vpop.f32.mrb[172].mxu1 }
 0x67c   : > { %v7846_v6 = vpop.f32.mrb[173].mxu1 }
 0x67d   : > { %v7847_v56 = vadd.f32 %v7846_v6, %v7845_v24 }
 0x67f   : > { %v6054_v37 = vadd.f32 %v7847_v56, %v5934_v42  ;;  %v7880_v16 = vpop.f32.mrb[174].mxu1 }
 0x680   : > { %v7881_v28 = vpop.f32.mrb[175].mxu1 }
 0x681   : > { %v7882_v62 = vadd.f32 %v7881_v28, %v7880_v16 }
 0x683   : > { %v6124_v60 = vadd.f32 %v7882_v62, %v6004_v31  ;;  %v7883_v17 = vpop.f32.mrb[176].mxu1 }
 0x684   : > { %v7884_v43 = vpop.f32.mrb[177].mxu1 }
 0x685   : > { %v7885_v26 = vadd.f32 %v7884_v43, %v7883_v17 }
 0x687   : > { %v6129_v1 = vadd.f32 %v7885_v26, %v6009_v54  ;;  %v7886_v13 = vpop.f32.mrb[178].mxu1 }
 0x688   : > { %v7887_v20 = vpop.f32.mrb[179].mxu1 }
 0x689   : > { %v7888_v21 = vadd.f32 %v7887_v20, %v7886_v13 }
 0x68b   : > { %v6134_v48 = vadd.f32 %v7888_v21, %v6014_v36  ;;  %v7889_v32 = vpop.f32.mrb[180].mxu1 }
 0x68c   : > { %v7890_v2 = vpop.f32.mrb[181].mxu1 }
 0x68d   : > { %v7891_v10 = vadd.f32 %v7890_v2, %v7889_v32 }
 0x68f   : > { %v6139_v40 = vadd.f32 %v7891_v10, %v6019_v30  ;;  %v7892_v59 = vpop.f32.mrb[182].mxu1 }
 0x690   : > { %v7893_v55 = vpop.f32.mrb[183].mxu1 }
 0x691   : > { %v7894_v52 = vadd.f32 %v7893_v55, %v7892_v59 }
 0x693   : > { %v6144_v42 = vadd.f32 %v7894_v52, %v6024_v4  ;;  %v7895_v19 = vpop.f32.mrb[184].mxu1 }
 0x694   : > { %v7896_v23 = vpop.f32.mrb[185].mxu1 }
 0x695   : > { %v7897_v8 = vadd.f32 %v7896_v23, %v7895_v19 }
 0x697   : > { %v6149_v31 = vadd.f32 %v7897_v8, %v6029_v39  ;;  %v7898_v11 = vpop.f32.mrb[186].mxu1 }
 0x698   : > { %v7899_v34 = vpop.f32.mrb[187].mxu1 }
 0x699   : > { %v7900_v51 = vadd.f32 %v7899_v34, %v7898_v11 }
 0x69b   : > { %v6154_v54 = vadd.f32 %v7900_v51, %v6034_v9  ;;  %v7901_v45 = vpop.f32.mrb[188].mxu1 }
 0x69c   : > { %v7902_v15 = vpop.f32.mrb[189].mxu1 }
 0x69d   : > { %v7903_v25 = vadd.f32 %v7902_v15, %v7901_v45 }
 0x69f   : > { %v6159_v36 = vadd.f32 %v7903_v25, %v6039_v18  ;;  %v7904_v61 = vpop.f32.mrb[190].mxu1 }
 0x6a0   : > { %v7905_v38 = vpop.f32.mrb[191].mxu1 }
 0x6a1   : > { %v7906_v12 = vadd.f32 %v7905_v38, %v7904_v61 }
 0x6a3   : > { %v6164_v30 = vadd.f32 %v7906_v12, %v6044_v7  ;;  %v7907_v41 = vpop.f32.mrb[192].mxu1 }
 0x6a4   : > { %v7908_v49 = vpop.f32.mrb[193].mxu1 }
 0x6a5   : > { %v7909_v33 = vadd.f32 %v7908_v49, %v7907_v41 }
 0x6a7   : > { %v6169_v4 = vadd.f32 %v7909_v33, %v6049_v27  ;;  %v7910_v53 = vpop.f32.mrb[194].mxu1 }
 0x6a8   : > { %v7911_v44 = vpop.f32.mrb[195].mxu1 }
 0x6a9   : > { %v7912_v35 = vadd.f32 %v7911_v44, %v7910_v53 }
 0x6ab   : > { %v6174_v39 = vadd.f32 %v7912_v35, %v6054_v37  ;;  %v7945_v58 = vpop.f32.mrb[196].mxu1 }
 0x6ac   : > { %v7946_v5 = vpop.f32.mrb[197].mxu1 }
 0x6ad   : > { %v7947_v3 = vadd.f32 %v7946_v5, %v7945_v58 }
 0x6af   : > { %v7948_v9 = vpop.f32.mrb[198].mxu1  ;;  %v6244_v46 = vadd.f32 %v7947_v3, %v6124_v60 }
 0x6b0   : > { %v7949_v0 = vpop.f32.mrb[199].mxu1 }
 0x6b1   : > { %v7950_v22 = vadd.f32 %v7949_v0, %v7948_v9 }
 0x6b3   : > { %v7951_v18 = vpop.f32.mrb[200].mxu1  ;;  %v6249_v50 = vadd.f32 %v7950_v22, %v6129_v1 }
 0x6b4   : > { %v7952_v29 = vpop.f32.mrb[201].mxu1 }
 0x6b5   : > { %v7953_v57 = vadd.f32 %v7952_v29, %v7951_v18 }
 0x6b7   : > { %v7954_v7 = vpop.f32.mrb[202].mxu1  ;;  %v6254_v14 = vadd.f32 %v7953_v57, %v6134_v48 }
 0x6b8   : > { %v7955_v63 = vpop.f32.mrb[203].mxu1 }
 0x6b9   : > { %v7956_v47 = vadd.f32 %v7955_v63, %v7954_v7 }
 0x6bb   : > { %v7957_v27 = vpop.f32.mrb[204].mxu1  ;;  %v6259_v24 = vadd.f32 %v7956_v47, %v6139_v40 }
 0x6bc   : > { %v7958_v6 = vpop.f32.mrb[205].mxu1 }
 0x6bd   : > { %v7959_v56 = vadd.f32 %v7958_v6, %v7957_v27 }
 0x6bf   : > { %v7960_v37 = vpop.f32.mrb[206].mxu1  ;;  %v6264_v16 = vadd.f32 %v7959_v56, %v6144_v42 }
 0x6c0   : > { %v7961_v28 = vpop.f32.mrb[207].mxu1 }
 0x6c1   : > { %v7962_v62 = vadd.f32 %v7961_v28, %v7960_v37 }
 0x6c3   : > { %v7963_v60 = vpop.f32.mrb[208].mxu1  ;;  %v6269_v17 = vadd.f32 %v7962_v62, %v6149_v31 }
 0x6c4   : > { %v7964_v43 = vpop.f32.mrb[209].mxu1 }
 0x6c5   : > { %v7965_v26 = vadd.f32 %v7964_v43, %v7963_v60 }
 0x6c7   : > { %v7966_v1 = vpop.f32.mrb[210].mxu1  ;;  %v6274_v13 = vadd.f32 %v7965_v26, %v6154_v54 }
 0x6c8   : > { %v7967_v20 = vpop.f32.mrb[211].mxu1 }
 0x6c9   : > { %v7968_v21 = vadd.f32 %v7967_v20, %v7966_v1 }
 0x6cb   : > { %v7969_v48 = vpop.f32.mrb[212].mxu1  ;;  %v6279_v32 = vadd.f32 %v7968_v21, %v6159_v36 }
 0x6cc   : > { %v7970_v2 = vpop.f32.mrb[213].mxu1 }
 0x6cd   : > { %v7971_v10 = vadd.f32 %v7970_v2, %v7969_v48 }
 0x6cf   : > { %v7972_v40 = vpop.f32.mrb[214].mxu1  ;;  %v6284_v59 = vadd.f32 %v7971_v10, %v6164_v30 }
 0x6d0   : > { %v7973_v55 = vpop.f32.mrb[215].mxu1 }
 0x6d1   : > { %v7974_v52 = vadd.f32 %v7973_v55, %v7972_v40 }
 0x6d3   : > { %v7975_v42 = vpop.f32.mrb[216].mxu1  ;;  %v6289_v19 = vadd.f32 %v7974_v52, %v6169_v4 }
 0x6d4   : > { %v7976_v23 = vpop.f32.mrb[217].mxu1 }
 0x6d5   : > { %v7977_v8 = vadd.f32 %v7976_v23, %v7975_v42 }
 0x6d7   : > { %v6363_v31 = vpop.f32.mrb[218].mxu1  ;;  %v6294_v11 = vadd.f32 %v7977_v8, %v6174_v39 }
 0x6d8   : > { %v6364_v34 = vadd.f32 %v6363_v31, %v6244_v46  ;;  %v9157_v51 = vpop.f32.mrb[219].mxu1 }
 0x6da   : > { %6417 = vst.msk [vmem:[%s15356_s11] sm:$0xff] %vm4939_vm2, %v6364_v34 }
 0x6db   : > { %v6368_v54 = vpop.f32.mrb[220].mxu1 }
 0x6dc   : > { %v6369_v45 = vadd.f32 %v6368_v54, %v6249_v50  ;;  %v9160_v15 = vpop.f32.mrb[221].mxu1 }
 0x6de   : > { %6418 = vst.msk [vmem:[%s15356_s11 + $0x8] sm:$0xff] %vm4939_vm2, %v6369_v45 }
 0x6df   : > { %v6373_v25 = vpop.f32.mrb[222].mxu1 }
 0x6e0   : > { %v6374_v36 = vadd.f32 %v6373_v25, %v6254_v14  ;;  %v9163_v61 = vpop.f32.mrb[223].mxu1 }
 0x6e2   : > { %6419 = vst.msk [vmem:[%s15356_s11 + $0x10] sm:$0xff] %vm4939_vm2, %v6374_v36 }
 0x6e3   : > { %v6378_v38 = vpop.f32.mrb[224].mxu1 }
 0x6e4   : > { %v6379_v12 = vadd.f32 %v6378_v38, %v6259_v24  ;;  %v9166_v30 = vpop.f32.mrb[225].mxu1 }
 0x6e6   : > { %6420 = vst.msk [vmem:[%s15356_s11 + $0x18] sm:$0xff] %vm4939_vm2, %v6379_v12 }
 0x6e7   : > { %v6383_v41 = vpop.f32.mrb[226].mxu1 }
 0x6e8   : > { %v6384_v49 = vadd.f32 %v6383_v41, %v6264_v16  ;;  %v9169_v33 = vpop.f32.mrb[227].mxu1 }
 0x6ea   : > { %6421 = vst.msk [vmem:[%s15356_s11 + $0x20] sm:$0xff] %vm4939_vm2, %v6384_v49 }
 0x6eb   : > { %v6388_v4 = vpop.f32.mrb[228].mxu1 }
 0x6ec   : > { %v6389_v53 = vadd.f32 %v6388_v4, %v6269_v17  ;;  %v9172_v44 = vpop.f32.mrb[229].mxu1 }
 0x6ee   : > { %6422 = vst.msk [vmem:[%s15356_s11 + $0x28] sm:$0xff] %vm4939_vm2, %v6389_v53 }
 0x6ef   : > { %v6393_v35 = vpop.f32.mrb[230].mxu1 }
 0x6f0   : > { %v6394_v39 = vadd.f32 %v6393_v35, %v6274_v13  ;;  %v9175_v58 = vpop.f32.mrb[231].mxu1 }
 0x6f2   : > { %6423 = vst.msk [vmem:[%s15356_s11 + $0x30] sm:$0xff] %vm4939_vm2, %v6394_v39 }
 0x6f3   : > { %v6398_v5 = vpop.f32.mrb[232].mxu1 }
 0x6f4   : > { %v6399_v3 = vadd.f32 %v6398_v5, %v6279_v32  ;;  %v9178_v9 = vpop.f32.mrb[233].mxu1 }
 0x6f6   : > { %6424 = vst.msk [vmem:[%s15356_s11 + $0x38] sm:$0xff] %vm4939_vm2, %v6399_v3 }
 0x6f7   : > { %v6403_v46 = vpop.f32.mrb[234].mxu1 }
 0x6f8   : > { %v6404_v0 = vadd.f32 %v6403_v46, %v6284_v59  ;;  %v9181_v22 = vpop.f32.mrb[235].mxu1 }
 0x6fa   : > { %6425 = vst.msk [vmem:[%s15356_s11 + $0x40] sm:$0xff] %vm4939_vm2, %v6404_v0 }
 0x6fb   : > { %v6408_v18 = vpop.f32.mrb[236].mxu1 }
 0x6fc   : > { %v6409_v50 = vadd.f32 %v6408_v18, %v6289_v19  ;;  %v9184_v29 = vpop.f32.mrb[237].mxu1 }
 0x6fe   : > { %6426 = vst.msk [vmem:[%s15356_s11 + $0x48] sm:$0xff] %vm4939_vm2, %v6409_v50 }
 0x6ff   : > { %v6413_v57 = vpop.f32.mrb[238].mxu1 }
 0x700   : > { %v6414_v7 = vadd.f32 %v6413_v57, %v6294_v11  ;;  %v9187_v14 = vpop.f32.mrb[239].mxu1 }
 0x702   : > { %6428 = vst.msk [vmem:[%s15356_s11 + $0x50] sm:$0x1] %vm6427_vm3, %v6414_v7 }
 0x703 PF: > { %p14_p8 = scmp.ge.s32.totalorder %s11234_s20, 4   ;;  %s15794_s15 = smov %s11171_s16 }
 0x704   : > { %s15795_s16 = smov %s11175_s17  ;;  %s15796_s17 = smov %s11244_s23 }
 0x705   : > { %s15797_s18 = smov %s11234_s20  ;;  %16 = sbr.rel (!%p14_p8) target bundleno = 3 (0x3), region = 76 }
 0x70c   :  { %6450 = vsyncpa [#allocation3], 1 }
 0x70d   :  { %6452 = vsyncpa [#allocation3 + $0x1], 1 }

// kernel: localnet_forward.4
= control target key start
LH: loop header
LB: loop body
LE: loop exit
PB: predicated region body
PF: predicated region fallthrough
CT: control target
= control target key end

     0   :  { %s3684_s12 = smov 0   ;;  %s3686_s13 = smov 0   ;;  %s4613_s0 = inlined_call_operand.vmem [shape: bf16[2,8192], index: 0, kind: input, shape index: {}]   ;;  %s4614_s1 = inlined_call_operand.vmem [shape: bf16[8192,1024], index: 1, kind: input, shape index: {}]   ;;  %s4615_s2 = inlined_call_operand.vmem [shape: f32[1,1024], index: 2, kind: input, shape index: {}]   ;;  %s4616_s3 = inlined_call_operand.vmem [shape: f32[2,1024], index: 3, kind: output, shape index: {}]  }
   0x1   :  { %s3688_s14 = smov 0   ;;  %s3690_s15 = smov 0  }
   0x2   :  { %s3692_s16 = smov 0   ;;  %s3694_s17 = smov 0  }
   0x3   :  { %s3696_s18 = smov 0  }
   0x4 LB: > { %s22_s19 = sadd.s32 1, %s3651_s16  ;;  %s25_s20 = sadd.s32 1, %s3655_s17  ;;  %s3659_s18 = sphi %s3696_s18, %s13_s18   ;;  %s3655_s17 = sphi %s3694_s17, %s4622_s17   ;;  %s3651_s16 = sphi %s3692_s16, %s4621_s16   ;;  %s3647_s15 = sphi %s3690_s15, %s4620_s15   ;;  %s3643_s14 = sphi %s3688_s14, %s4619_s14   ;;  %s3639_s13 = sphi %s3686_s13, %s4618_s13   ;;  %s3635_s12 = sphi %s3684_s12, %s4617_s12  }
   0x5   : > { %p23_p0 = scmp.ge.s32.totalorder %s22_s19, 8  ;;  %p67_p1 = scmp.ne.s32.totalorder %s3639_s13, %s3635_s12 }
   0x6   : > { %p68_p2 = scmp.eq.s32.totalorder %s3659_s18, 0  ;;  %s60_s24 = sadd.s32 1, %s3639_s13 }
   0x7   : > { %s4624_s19 = smov (%p23_p0, %s22_s19), 0  ;;  %s4626_s20 = smov (!%p23_p0, %s25_s20), %s3655_s17 }
   0x8   : > { %p69_p3 = por %p68_p2, %p67_p1  ;;  %p27_p4 = scmp.ge.s32.totalorder %s4626_s20, 2 }
   0x9   : > { %s55_s21 = ssub.s32 %s3651_s16, %s4624_s19  ;;  %p2859_p6 = scmp.ge.s32.totalorder %s3659_s18, 16 }
   0xa   : > { %s4628_s20 = smov (%p27_p4, %s4626_s20), 0 }
   0xb   : > { %s56_s22 = ssub.s32 %s3655_s17, %s4628_s20  ;;  %145 = sbr.rel (%p2859_p6) target bundleno = 153 (0x99), region = 16 }
   0xc   : > { %s57_s23 = sor.u32 %s56_s22, %s55_s21 }
   0xd   : > { %p58_p5 = scmp.eq.s32.totalorder %s57_s23, 0 }
   0xf   : > { %s3735_s25 = scalar_select %p58_p5, %s3639_s13, %s60_s24  }
  0x12   : > { %156 = sbr.rel (!%p69_p3) target bundleno = 153 (0x99), region = 24  ;;  %s158_s26 = sand.u32 (%p69_p3), 1, %s3639_s13  }
  0x13   : > { %s2862_s27 = sshll.u32 (%p69_p3), %s3655_s17, 2  ;;  %s2860_s28 = sshll.u32 (%p69_p3), %s158_s26, 11 }
  0x14   : > { %s3132_s29 = sshll.u32 (%p69_p3), %s3651_s16, 10  ;;  %s3749_s8 = scalar_lea.vmem (%p69_p3), [#allocation2], %s2860_s28 }
  0x15   : > { %s164_s30 = sadd.s32 (%p69_p3), %s3132_s29, %s2862_s27 }
  0x16   : > { %s2864_s4 = sshll.u32 (%p69_p3), %s164_s30, 2 }
  0x17   : > { %s3744_s7 = scalar_lea.vmem (%p69_p3), %s4614_s1, %s2864_s4 }
  0x18   : > { %v179_v0 = vld [vmem:[%s3744_s7] sm:$0xff] (%p69_p3)  ;;  %v181_v1 = vld [vmem:[%s3744_s7 + $0x8] sm:$0xff] (%p69_p3) }
  0x19   : > { %v183_v2 = vld [vmem:[%s3744_s7 + $0x20] sm:$0xff]  ;;  %180 = vst [vmem:[%s3749_s8] sm:$0xff] %v179_v0  ;;  %182 = vst [vmem:[%s3749_s8 + $0x8] sm:$0xff] %v181_v1  ;;  %v185_v3 = vld [vmem:[%s3744_s7 + $0x28] sm:$0xff] }
  0x1a   : > { %184 = vst [vmem:[%s3749_s8 + $0x10] sm:$0xff] %v183_v2  ;;  %v187_v4 = vld [vmem:[%s3744_s7 + $0x40] sm:$0xff]  ;;  %v189_v5 = vld [vmem:[%s3744_s7 + $0x48] sm:$0xff]  ;;  %186 = vst [vmem:[%s3749_s8 + $0x18] sm:$0xff] %v185_v3 }
  0x1b   : > { %188 = vst [vmem:[%s3749_s8 + $0x20] sm:$0xff] %v187_v4  ;;  %190 = vst [vmem:[%s3749_s8 + $0x28] sm:$0xff] %v189_v5  ;;  %v191_v6 = vld [vmem:[%s3744_s7 + $0x60] sm:$0xff]  ;;  %v193_v7 = vld [vmem:[%s3744_s7 + $0x68] sm:$0xff] }
  0x1c   : > { %v195_v8 = vld [vmem:[%s3744_s7 + $0x80] sm:$0xff]  ;;  %192 = vst [vmem:[%s3749_s8 + $0x30] sm:$0xff] %v191_v6  ;;  %194 = vst [vmem:[%s3749_s8 + $0x38] sm:$0xff] %v193_v7  ;;  %v197_v9 = vld [vmem:[%s3744_s7 + $0x88] sm:$0xff] }
  0x1d   : > { %196 = vst [vmem:[%s3749_s8 + $0x40] sm:$0xff] %v195_v8  ;;  %v199_v10 = vld [vmem:[%s3744_s7 + $0xa0] sm:$0xff]  ;;  %v201_v11 = vld [vmem:[%s3744_s7 + $0xa8] sm:$0xff]  ;;  %198 = vst [vmem:[%s3749_s8 + $0x48] sm:$0xff] %v197_v9 }
  0x1e   : > { %200 = vst [vmem:[%s3749_s8 + $0x50] sm:$0xff] %v199_v10  ;;  %202 = vst [vmem:[%s3749_s8 + $0x58] sm:$0xff] %v201_v11  ;;  %v203_v12 = vld [vmem:[%s3744_s7 + $0xc0] sm:$0xff]  ;;  %v205_v13 = vld [vmem:[%s3744_s7 + $0xc8] sm:$0xff] }
  0x1f   : > { %v207_v14 = vld [vmem:[%s3744_s7 + $0xe0] sm:$0xff]  ;;  %204 = vst [vmem:[%s3749_s8 + $0x60] sm:$0xff] %v203_v12  ;;  %206 = vst [vmem:[%s3749_s8 + $0x68] sm:$0xff] %v205_v13  ;;  %v209_v15 = vld [vmem:[%s3744_s7 + $0xe8] sm:$0xff] }
  0x20   : > { %208 = vst [vmem:[%s3749_s8 + $0x70] sm:$0xff] %v207_v14  ;;  %v211_v16 = vld [vmem:[%s3744_s7 + $0x100] sm:$0xff]  ;;  %v213_v17 = vld [vmem:[%s3744_s7 + $0x108] sm:$0xff]  ;;  %210 = vst [vmem:[%s3749_s8 + $0x78] sm:$0xff] %v209_v15 }
  0x21   : > { %212 = vst [vmem:[%s3749_s8 + $0x80] sm:$0xff] %v211_v16  ;;  %214 = vst [vmem:[%s3749_s8 + $0x88] sm:$0xff] %v213_v17  ;;  %v215_v18 = vld [vmem:[%s3744_s7 + $0x120] sm:$0xff]  ;;  %v217_v19 = vld [vmem:[%s3744_s7 + $0x128] sm:$0xff] }
  0x22   : > { %v219_v20 = vld [vmem:[%s3744_s7 + $0x140] sm:$0xff]  ;;  %216 = vst [vmem:[%s3749_s8 + $0x90] sm:$0xff] %v215_v18  ;;  %218 = vst [vmem:[%s3749_s8 + $0x98] sm:$0xff] %v217_v19  ;;  %v221_v21 = vld [vmem:[%s3744_s7 + $0x148] sm:$0xff] }
  0x23   : > { %220 = vst [vmem:[%s3749_s8 + $0xa0] sm:$0xff] %v219_v20  ;;  %v223_v22 = vld [vmem:[%s3744_s7 + $0x160] sm:$0xff]  ;;  %v225_v23 = vld [vmem:[%s3744_s7 + $0x168] sm:$0xff]  ;;  %222 = vst [vmem:[%s3749_s8 + $0xa8] sm:$0xff] %v221_v21 }
  0x24   : > { %224 = vst [vmem:[%s3749_s8 + $0xb0] sm:$0xff] %v223_v22  ;;  %226 = vst [vmem:[%s3749_s8 + $0xb8] sm:$0xff] %v225_v23  ;;  %v227_v24 = vld [vmem:[%s3744_s7 + $0x180] sm:$0xff]  ;;  %v229_v25 = vld [vmem:[%s3744_s7 + $0x188] sm:$0xff] }
  0x25   : > { %v231_v26 = vld [vmem:[%s3744_s7 + $0x1a0] sm:$0xff]  ;;  %228 = vst [vmem:[%s3749_s8 + $0xc0] sm:$0xff] %v227_v24  ;;  %230 = vst [vmem:[%s3749_s8 + $0xc8] sm:$0xff] %v229_v25  ;;  %v233_v27 = vld [vmem:[%s3744_s7 + $0x1a8] sm:$0xff] }
  0x26   : > { %232 = vst [vmem:[%s3749_s8 + $0xd0] sm:$0xff] %v231_v26  ;;  %v235_v28 = vld [vmem:[%s3744_s7 + $0x1c0] sm:$0xff]  ;;  %v237_v29 = vld [vmem:[%s3744_s7 + $0x1c8] sm:$0xff]  ;;  %234 = vst [vmem:[%s3749_s8 + $0xd8] sm:$0xff] %v233_v27 }
  0x27   : > { %236 = vst [vmem:[%s3749_s8 + $0xe0] sm:$0xff] %v235_v28  ;;  %238 = vst [vmem:[%s3749_s8 + $0xe8] sm:$0xff] %v237_v29  ;;  %v239_v30 = vld [vmem:[%s3744_s7 + $0x1e0] sm:$0xff]  ;;  %v241_v31 = vld [vmem:[%s3744_s7 + $0x1e8] sm:$0xff] }
  0x28   : > { %v243_v32 = vld [vmem:[%s3744_s7 + $0x200] sm:$0xff]  ;;  %240 = vst [vmem:[%s3749_s8 + $0xf0] sm:$0xff] %v239_v30  ;;  %242 = vst [vmem:[%s3749_s8 + $0xf8] sm:$0xff] %v241_v31  ;;  %v245_v33 = vld [vmem:[%s3744_s7 + $0x208] sm:$0xff] }
  0x29   : > { %244 = vst [vmem:[%s3749_s8 + $0x100] sm:$0xff] %v243_v32  ;;  %v247_v34 = vld [vmem:[%s3744_s7 + $0x220] sm:$0xff]  ;;  %v249_v35 = vld [vmem:[%s3744_s7 + $0x228] sm:$0xff]  ;;  %246 = vst [vmem:[%s3749_s8 + $0x108] sm:$0xff] %v245_v33 }
  0x2a   : > { %248 = vst [vmem:[%s3749_s8 + $0x110] sm:$0xff] %v247_v34  ;;  %250 = vst [vmem:[%s3749_s8 + $0x118] sm:$0xff] %v249_v35  ;;  %v251_v36 = vld [vmem:[%s3744_s7 + $0x240] sm:$0xff]  ;;  %v253_v37 = vld [vmem:[%s3744_s7 + $0x248] sm:$0xff] }
  0x2b   : > { %v255_v38 = vld [vmem:[%s3744_s7 + $0x260] sm:$0xff]  ;;  %252 = vst [vmem:[%s3749_s8 + $0x120] sm:$0xff] %v251_v36  ;;  %254 = vst [vmem:[%s3749_s8 + $0x128] sm:$0xff] %v253_v37  ;;  %v257_v39 = vld [vmem:[%s3744_s7 + $0x268] sm:$0xff] }
  0x2c   : > { %256 = vst [vmem:[%s3749_s8 + $0x130] sm:$0xff] %v255_v38  ;;  %v259_v40 = vld [vmem:[%s3744_s7 + $0x280] sm:$0xff]  ;;  %v261_v41 = vld [vmem:[%s3744_s7 + $0x288] sm:$0xff]  ;;  %258 = vst [vmem:[%s3749_s8 + $0x138] sm:$0xff] %v257_v39 }
  0x2d   : > { %260 = vst [vmem:[%s3749_s8 + $0x140] sm:$0xff] %v259_v40  ;;  %262 = vst [vmem:[%s3749_s8 + $0x148] sm:$0xff] %v261_v41  ;;  %v263_v42 = vld [vmem:[%s3744_s7 + $0x2a0] sm:$0xff]  ;;  %v265_v43 = vld [vmem:[%s3744_s7 + $0x2a8] sm:$0xff] }
  0x2e   : > { %v267_v44 = vld [vmem:[%s3744_s7 + $0x2c0] sm:$0xff]  ;;  %264 = vst [vmem:[%s3749_s8 + $0x150] sm:$0xff] %v263_v42  ;;  %266 = vst [vmem:[%s3749_s8 + $0x158] sm:$0xff] %v265_v43  ;;  %v269_v45 = vld [vmem:[%s3744_s7 + $0x2c8] sm:$0xff] }
  0x2f   : > { %268 = vst [vmem:[%s3749_s8 + $0x160] sm:$0xff] %v267_v44  ;;  %v271_v46 = vld [vmem:[%s3744_s7 + $0x2e0] sm:$0xff]  ;;  %v273_v47 = vld [vmem:[%s3744_s7 + $0x2e8] sm:$0xff]  ;;  %270 = vst [vmem:[%s3749_s8 + $0x168] sm:$0xff] %v269_v45 }
  0x30   : > { %272 = vst [vmem:[%s3749_s8 + $0x170] sm:$0xff] %v271_v46  ;;  %274 = vst [vmem:[%s3749_s8 + $0x178] sm:$0xff] %v273_v47  ;;  %v275_v48 = vld [vmem:[%s3744_s7 + $0x300] sm:$0xff]  ;;  %v277_v49 = vld [vmem:[%s3744_s7 + $0x308] sm:$0xff] }
  0x31   : > { %v279_v50 = vld [vmem:[%s3744_s7 + $0x320] sm:$0xff]  ;;  %276 = vst [vmem:[%s3749_s8 + $0x180] sm:$0xff] %v275_v48  ;;  %278 = vst [vmem:[%s3749_s8 + $0x188] sm:$0xff] %v277_v49  ;;  %v281_v51 = vld [vmem:[%s3744_s7 + $0x328] sm:$0xff] }
  0x32   : > { %280 = vst [vmem:[%s3749_s8 + $0x190] sm:$0xff] %v279_v50  ;;  %v283_v52 = vld [vmem:[%s3744_s7 + $0x340] sm:$0xff]  ;;  %v285_v53 = vld [vmem:[%s3744_s7 + $0x348] sm:$0xff]  ;;  %282 = vst [vmem:[%s3749_s8 + $0x198] sm:$0xff] %v281_v51 }
  0x33   : > { %284 = vst [vmem:[%s3749_s8 + $0x1a0] sm:$0xff] %v283_v52  ;;  %286 = vst [vmem:[%s3749_s8 + $0x1a8] sm:$0xff] %v285_v53  ;;  %v287_v54 = vld [vmem:[%s3744_s7 + $0x360] sm:$0xff]  ;;  %v289_v55 = vld [vmem:[%s3744_s7 + $0x368] sm:$0xff] }
  0x34   : > { %v291_v56 = vld [vmem:[%s3744_s7 + $0x380] sm:$0xff]  ;;  %288 = vst [vmem:[%s3749_s8 + $0x1b0] sm:$0xff] %v287_v54  ;;  %290 = vst [vmem:[%s3749_s8 + $0x1b8] sm:$0xff] %v289_v55  ;;  %v293_v57 = vld [vmem:[%s3744_s7 + $0x388] sm:$0xff] }
  0x35   : > { %292 = vst [vmem:[%s3749_s8 + $0x1c0] sm:$0xff] %v291_v56  ;;  %v295_v58 = vld [vmem:[%s3744_s7 + $0x3a0] sm:$0xff]  ;;  %v297_v59 = vld [vmem:[%s3744_s7 + $0x3a8] sm:$0xff]  ;;  %294 = vst [vmem:[%s3749_s8 + $0x1c8] sm:$0xff] %v293_v57 }
  0x36   : > { %296 = vst [vmem:[%s3749_s8 + $0x1d0] sm:$0xff] %v295_v58  ;;  %298 = vst [vmem:[%s3749_s8 + $0x1d8] sm:$0xff] %v297_v59  ;;  %v299_v60 = vld [vmem:[%s3744_s7 + $0x3c0] sm:$0xff]  ;;  %v301_v61 = vld [vmem:[%s3744_s7 + $0x3c8] sm:$0xff] }
  0x37   : > { %v303_v62 = vld [vmem:[%s3744_s7 + $0x3e0] sm:$0xff]  ;;  %300 = vst [vmem:[%s3749_s8 + $0x1e0] sm:$0xff] %v299_v60  ;;  %302 = vst [vmem:[%s3749_s8 + $0x1e8] sm:$0xff] %v301_v61  ;;  %v305_v63 = vld [vmem:[%s3744_s7 + $0x3e8] sm:$0xff] }
  0x38   : > { %304 = vst [vmem:[%s3749_s8 + $0x1f0] sm:$0xff] %v303_v62  ;;  %v307_v0 = vld [vmem:[%s3744_s7 + $0x400] sm:$0xff]  ;;  %v309_v1 = vld [vmem:[%s3744_s7 + $0x408] sm:$0xff]  ;;  %306 = vst [vmem:[%s3749_s8 + $0x1f8] sm:$0xff] %v305_v63 }
  0x39   : > { %308 = vst [vmem:[%s3749_s8 + $0x200] sm:$0xff] %v307_v0  ;;  %310 = vst [vmem:[%s3749_s8 + $0x208] sm:$0xff] %v309_v1  ;;  %v311_v2 = vld [vmem:[%s3744_s7 + $0x420] sm:$0xff]  ;;  %v313_v3 = vld [vmem:[%s3744_s7 + $0x428] sm:$0xff] }
  0x3a   : > { %v315_v4 = vld [vmem:[%s3744_s7 + $0x440] sm:$0xff]  ;;  %312 = vst [vmem:[%s3749_s8 + $0x210] sm:$0xff] %v311_v2  ;;  %314 = vst [vmem:[%s3749_s8 + $0x218] sm:$0xff] %v313_v3  ;;  %v317_v5 = vld [vmem:[%s3744_s7 + $0x448] sm:$0xff] }
  0x3b   : > { %316 = vst [vmem:[%s3749_s8 + $0x220] sm:$0xff] %v315_v4  ;;  %v319_v6 = vld [vmem:[%s3744_s7 + $0x460] sm:$0xff]  ;;  %v321_v7 = vld [vmem:[%s3744_s7 + $0x468] sm:$0xff]  ;;  %318 = vst [vmem:[%s3749_s8 + $0x228] sm:$0xff] %v317_v5 }
  0x3c   : > { %320 = vst [vmem:[%s3749_s8 + $0x230] sm:$0xff] %v319_v6  ;;  %322 = vst [vmem:[%s3749_s8 + $0x238] sm:$0xff] %v321_v7  ;;  %v323_v8 = vld [vmem:[%s3744_s7 + $0x480] sm:$0xff]  ;;  %v325_v9 = vld [vmem:[%s3744_s7 + $0x488] sm:$0xff] }
  0x3d   : > { %v327_v10 = vld [vmem:[%s3744_s7 + $0x4a0] sm:$0xff]  ;;  %324 = vst [vmem:[%s3749_s8 + $0x240] sm:$0xff] %v323_v8  ;;  %326 = vst [vmem:[%s3749_s8 + $0x248] sm:$0xff] %v325_v9  ;;  %v329_v11 = vld [vmem:[%s3744_s7 + $0x4a8] sm:$0xff] }
  0x3e   : > { %328 = vst [vmem:[%s3749_s8 + $0x250] sm:$0xff] %v327_v10  ;;  %v331_v12 = vld [vmem:[%s3744_s7 + $0x4c0] sm:$0xff]  ;;  %v333_v13 = vld [vmem:[%s3744_s7 + $0x4c8] sm:$0xff]  ;;  %330 = vst [vmem:[%s3749_s8 + $0x258] sm:$0xff] %v329_v11 }
  0x3f   : > { %332 = vst [vmem:[%s3749_s8 + $0x260] sm:$0xff] %v331_v12  ;;  %334 = vst [vmem:[%s3749_s8 + $0x268] sm:$0xff] %v333_v13  ;;  %v335_v14 = vld [vmem:[%s3744_s7 + $0x4e0] sm:$0xff]  ;;  %v337_v15 = vld [vmem:[%s3744_s7 + $0x4e8] sm:$0xff] }
  0x40   : > { %v339_v16 = vld [vmem:[%s3744_s7 + $0x500] sm:$0xff]  ;;  %336 = vst [vmem:[%s3749_s8 + $0x270] sm:$0xff] %v335_v14  ;;  %338 = vst [vmem:[%s3749_s8 + $0x278] sm:$0xff] %v337_v15  ;;  %v341_v17 = vld [vmem:[%s3744_s7 + $0x508] sm:$0xff] }
  0x41   : > { %340 = vst [vmem:[%s3749_s8 + $0x280] sm:$0xff] %v339_v16  ;;  %v343_v18 = vld [vmem:[%s3744_s7 + $0x520] sm:$0xff]  ;;  %v345_v19 = vld [vmem:[%s3744_s7 + $0x528] sm:$0xff]  ;;  %342 = vst [vmem:[%s3749_s8 + $0x288] sm:$0xff] %v341_v17 }
  0x42   : > { %344 = vst [vmem:[%s3749_s8 + $0x290] sm:$0xff] %v343_v18  ;;  %346 = vst [vmem:[%s3749_s8 + $0x298] sm:$0xff] %v345_v19  ;;  %v347_v20 = vld [vmem:[%s3744_s7 + $0x540] sm:$0xff]  ;;  %v349_v21 = vld [vmem:[%s3744_s7 + $0x548] sm:$0xff] }
  0x43   : > { %v351_v22 = vld [vmem:[%s3744_s7 + $0x560] sm:$0xff]  ;;  %348 = vst [vmem:[%s3749_s8 + $0x2a0] sm:$0xff] %v347_v20  ;;  %350 = vst [vmem:[%s3749_s8 + $0x2a8] sm:$0xff] %v349_v21  ;;  %v353_v23 = vld [vmem:[%s3744_s7 + $0x568] sm:$0xff] }
  0x44   : > { %352 = vst [vmem:[%s3749_s8 + $0x2b0] sm:$0xff] %v351_v22  ;;  %v355_v24 = vld [vmem:[%s3744_s7 + $0x580] sm:$0xff]  ;;  %v357_v25 = vld [vmem:[%s3744_s7 + $0x588] sm:$0xff]  ;;  %354 = vst [vmem:[%s3749_s8 + $0x2b8] sm:$0xff] %v353_v23 }
  0x45   : > { %356 = vst [vmem:[%s3749_s8 + $0x2c0] sm:$0xff] %v355_v24  ;;  %358 = vst [vmem:[%s3749_s8 + $0x2c8] sm:$0xff] %v357_v25  ;;  %v359_v26 = vld [vmem:[%s3744_s7 + $0x5a0] sm:$0xff]  ;;  %v361_v27 = vld [vmem:[%s3744_s7 + $0x5a8] sm:$0xff] }
  0x46   : > { %v363_v28 = vld [vmem:[%s3744_s7 + $0x5c0] sm:$0xff]  ;;  %360 = vst [vmem:[%s3749_s8 + $0x2d0] sm:$0xff] %v359_v26  ;;  %362 = vst [vmem:[%s3749_s8 + $0x2d8] sm:$0xff] %v361_v27  ;;  %v365_v29 = vld [vmem:[%s3744_s7 + $0x5c8] sm:$0xff] }
  0x47   : > { %364 = vst [vmem:[%s3749_s8 + $0x2e0] sm:$0xff] %v363_v28  ;;  %v367_v30 = vld [vmem:[%s3744_s7 + $0x5e0] sm:$0xff]  ;;  %v369_v31 = vld [vmem:[%s3744_s7 + $0x5e8] sm:$0xff]  ;;  %366 = vst [vmem:[%s3749_s8 + $0x2e8] sm:$0xff] %v365_v29 }
  0x48   : > { %368 = vst [vmem:[%s3749_s8 + $0x2f0] sm:$0xff] %v367_v30  ;;  %370 = vst [vmem:[%s3749_s8 + $0x2f8] sm:$0xff] %v369_v31  ;;  %v371_v32 = vld [vmem:[%s3744_s7 + $0x600] sm:$0xff]  ;;  %v373_v33 = vld [vmem:[%s3744_s7 + $0x608] sm:$0xff] }
  0x49   : > { %v375_v34 = vld [vmem:[%s3744_s7 + $0x620] sm:$0xff]  ;;  %372 = vst [vmem:[%s3749_s8 + $0x300] sm:$0xff] %v371_v32  ;;  %374 = vst [vmem:[%s3749_s8 + $0x308] sm:$0xff] %v373_v33  ;;  %v377_v35 = vld [vmem:[%s3744_s7 + $0x628] sm:$0xff] }
  0x4a   : > { %376 = vst [vmem:[%s3749_s8 + $0x310] sm:$0xff] %v375_v34  ;;  %v379_v36 = vld [vmem:[%s3744_s7 + $0x640] sm:$0xff]  ;;  %v381_v37 = vld [vmem:[%s3744_s7 + $0x648] sm:$0xff]  ;;  %378 = vst [vmem:[%s3749_s8 + $0x318] sm:$0xff] %v377_v35 }
  0x4b   : > { %380 = vst [vmem:[%s3749_s8 + $0x320] sm:$0xff] %v379_v36  ;;  %382 = vst [vmem:[%s3749_s8 + $0x328] sm:$0xff] %v381_v37  ;;  %v383_v38 = vld [vmem:[%s3744_s7 + $0x660] sm:$0xff]  ;;  %v385_v39 = vld [vmem:[%s3744_s7 + $0x668] sm:$0xff] }
  0x4c   : > { %v387_v40 = vld [vmem:[%s3744_s7 + $0x680] sm:$0xff]  ;;  %384 = vst [vmem:[%s3749_s8 + $0x330] sm:$0xff] %v383_v38  ;;  %386 = vst [vmem:[%s3749_s8 + $0x338] sm:$0xff] %v385_v39  ;;  %v389_v41 = vld [vmem:[%s3744_s7 + $0x688] sm:$0xff] }
  0x4d   : > { %388 = vst [vmem:[%s3749_s8 + $0x340] sm:$0xff] %v387_v40  ;;  %v391_v42 = vld [vmem:[%s3744_s7 + $0x6a0] sm:$0xff]  ;;  %v393_v43 = vld [vmem:[%s3744_s7 + $0x6a8] sm:$0xff]  ;;  %390 = vst [vmem:[%s3749_s8 + $0x348] sm:$0xff] %v389_v41 }
  0x4e   : > { %392 = vst [vmem:[%s3749_s8 + $0x350] sm:$0xff] %v391_v42  ;;  %394 = vst [vmem:[%s3749_s8 + $0x358] sm:$0xff] %v393_v43  ;;  %v395_v44 = vld [vmem:[%s3744_s7 + $0x6c0] sm:$0xff]  ;;  %v397_v45 = vld [vmem:[%s3744_s7 + $0x6c8] sm:$0xff] }
  0x4f   : > { %v399_v46 = vld [vmem:[%s3744_s7 + $0x6e0] sm:$0xff]  ;;  %396 = vst [vmem:[%s3749_s8 + $0x360] sm:$0xff] %v395_v44  ;;  %398 = vst [vmem:[%s3749_s8 + $0x368] sm:$0xff] %v397_v45  ;;  %v401_v47 = vld [vmem:[%s3744_s7 + $0x6e8] sm:$0xff] }
  0x50   : > { %400 = vst [vmem:[%s3749_s8 + $0x370] sm:$0xff] %v399_v46  ;;  %v403_v48 = vld [vmem:[%s3744_s7 + $0x700] sm:$0xff]  ;;  %v405_v49 = vld [vmem:[%s3744_s7 + $0x708] sm:$0xff]  ;;  %402 = vst [vmem:[%s3749_s8 + $0x378] sm:$0xff] %v401_v47 }
  0x51   : > { %404 = vst [vmem:[%s3749_s8 + $0x380] sm:$0xff] %v403_v48  ;;  %406 = vst [vmem:[%s3749_s8 + $0x388] sm:$0xff] %v405_v49  ;;  %v407_v50 = vld [vmem:[%s3744_s7 + $0x720] sm:$0xff]  ;;  %v409_v51 = vld [vmem:[%s3744_s7 + $0x728] sm:$0xff] }
  0x52   : > { %v411_v52 = vld [vmem:[%s3744_s7 + $0x740] sm:$0xff]  ;;  %408 = vst [vmem:[%s3749_s8 + $0x390] sm:$0xff] %v407_v50  ;;  %410 = vst [vmem:[%s3749_s8 + $0x398] sm:$0xff] %v409_v51  ;;  %v413_v53 = vld [vmem:[%s3744_s7 + $0x748] sm:$0xff] }
  0x53   : > { %412 = vst [vmem:[%s3749_s8 + $0x3a0] sm:$0xff] %v411_v52  ;;  %v415_v54 = vld [vmem:[%s3744_s7 + $0x760] sm:$0xff]  ;;  %v417_v55 = vld [vmem:[%s3744_s7 + $0x768] sm:$0xff]  ;;  %414 = vst [vmem:[%s3749_s8 + $0x3a8] sm:$0xff] %v413_v53 }
  0x54   : > { %416 = vst [vmem:[%s3749_s8 + $0x3b0] sm:$0xff] %v415_v54  ;;  %418 = vst [vmem:[%s3749_s8 + $0x3b8] sm:$0xff] %v417_v55  ;;  %v419_v56 = vld [vmem:[%s3744_s7 + $0x780] sm:$0xff]  ;;  %v421_v57 = vld [vmem:[%s3744_s7 + $0x788] sm:$0xff] }
  0x55   : > { %v423_v58 = vld [vmem:[%s3744_s7 + $0x7a0] sm:$0xff]  ;;  %420 = vst [vmem:[%s3749_s8 + $0x3c0] sm:$0xff] %v419_v56  ;;  %422 = vst [vmem:[%s3749_s8 + $0x3c8] sm:$0xff] %v421_v57  ;;  %v425_v59 = vld [vmem:[%s3744_s7 + $0x7a8] sm:$0xff] }
  0x56   : > { %424 = vst [vmem:[%s3749_s8 + $0x3d0] sm:$0xff] %v423_v58  ;;  %v427_v60 = vld [vmem:[%s3744_s7 + $0x7c0] sm:$0xff]  ;;  %v429_v61 = vld [vmem:[%s3744_s7 + $0x7c8] sm:$0xff]  ;;  %426 = vst [vmem:[%s3749_s8 + $0x3d8] sm:$0xff] %v425_v59 }
  0x57   : > { %428 = vst [vmem:[%s3749_s8 + $0x3e0] sm:$0xff] %v427_v60  ;;  %430 = vst [vmem:[%s3749_s8 + $0x3e8] sm:$0xff] %v429_v61  ;;  %v431_v62 = vld [vmem:[%s3744_s7 + $0x7e0] sm:$0xff]  ;;  %v433_v63 = vld [vmem:[%s3744_s7 + $0x7e8] sm:$0xff] }
  0x58   : > { %v435_v0 = vld [vmem:[%s3744_s7 + $0x800] sm:$0xff]  ;;  %432 = vst [vmem:[%s3749_s8 + $0x3f0] sm:$0xff] %v431_v62  ;;  %434 = vst [vmem:[%s3749_s8 + $0x3f8] sm:$0xff] %v433_v63  ;;  %v437_v1 = vld [vmem:[%s3744_s7 + $0x808] sm:$0xff] }
  0x59   : > { %436 = vst [vmem:[%s3749_s8 + $0x400] sm:$0xff] %v435_v0  ;;  %v439_v2 = vld [vmem:[%s3744_s7 + $0x820] sm:$0xff]  ;;  %v441_v3 = vld [vmem:[%s3744_s7 + $0x828] sm:$0xff]  ;;  %438 = vst [vmem:[%s3749_s8 + $0x408] sm:$0xff] %v437_v1 }
  0x5a   : > { %440 = vst [vmem:[%s3749_s8 + $0x410] sm:$0xff] %v439_v2  ;;  %442 = vst [vmem:[%s3749_s8 + $0x418] sm:$0xff] %v441_v3  ;;  %v443_v4 = vld [vmem:[%s3744_s7 + $0x840] sm:$0xff]  ;;  %v445_v5 = vld [vmem:[%s3744_s7 + $0x848] sm:$0xff] }
  0x5b   : > { %v447_v6 = vld [vmem:[%s3744_s7 + $0x860] sm:$0xff]  ;;  %444 = vst [vmem:[%s3749_s8 + $0x420] sm:$0xff] %v443_v4  ;;  %446 = vst [vmem:[%s3749_s8 + $0x428] sm:$0xff] %v445_v5  ;;  %v449_v7 = vld [vmem:[%s3744_s7 + $0x868] sm:$0xff] }
  0x5c   : > { %448 = vst [vmem:[%s3749_s8 + $0x430] sm:$0xff] %v447_v6  ;;  %v451_v8 = vld [vmem:[%s3744_s7 + $0x880] sm:$0xff]  ;;  %v453_v9 = vld [vmem:[%s3744_s7 + $0x888] sm:$0xff]  ;;  %450 = vst [vmem:[%s3749_s8 + $0x438] sm:$0xff] %v449_v7 }
  0x5d   : > { %452 = vst [vmem:[%s3749_s8 + $0x440] sm:$0xff] %v451_v8  ;;  %454 = vst [vmem:[%s3749_s8 + $0x448] sm:$0xff] %v453_v9  ;;  %v455_v10 = vld [vmem:[%s3744_s7 + $0x8a0] sm:$0xff]  ;;  %v457_v11 = vld [vmem:[%s3744_s7 + $0x8a8] sm:$0xff] }
  0x5e   : > { %v459_v12 = vld [vmem:[%s3744_s7 + $0x8c0] sm:$0xff]  ;;  %456 = vst [vmem:[%s3749_s8 + $0x450] sm:$0xff] %v455_v10  ;;  %458 = vst [vmem:[%s3749_s8 + $0x458] sm:$0xff] %v457_v11  ;;  %v461_v13 = vld [vmem:[%s3744_s7 + $0x8c8] sm:$0xff] }
  0x5f   : > { %460 = vst [vmem:[%s3749_s8 + $0x460] sm:$0xff] %v459_v12  ;;  %v463_v14 = vld [vmem:[%s3744_s7 + $0x8e0] sm:$0xff]  ;;  %v465_v15 = vld [vmem:[%s3744_s7 + $0x8e8] sm:$0xff]  ;;  %462 = vst [vmem:[%s3749_s8 + $0x468] sm:$0xff] %v461_v13 }
  0x60   : > { %464 = vst [vmem:[%s3749_s8 + $0x470] sm:$0xff] %v463_v14  ;;  %466 = vst [vmem:[%s3749_s8 + $0x478] sm:$0xff] %v465_v15  ;;  %v467_v16 = vld [vmem:[%s3744_s7 + $0x900] sm:$0xff]  ;;  %v469_v17 = vld [vmem:[%s3744_s7 + $0x908] sm:$0xff] }
  0x61   : > { %v471_v18 = vld [vmem:[%s3744_s7 + $0x920] sm:$0xff]  ;;  %468 = vst [vmem:[%s3749_s8 + $0x480] sm:$0xff] %v467_v16  ;;  %470 = vst [vmem:[%s3749_s8 + $0x488] sm:$0xff] %v469_v17  ;;  %v473_v19 = vld [vmem:[%s3744_s7 + $0x928] sm:$0xff] }
  0x62   : > { %472 = vst [vmem:[%s3749_s8 + $0x490] sm:$0xff] %v471_v18  ;;  %v475_v20 = vld [vmem:[%s3744_s7 + $0x940] sm:$0xff]  ;;  %v477_v21 = vld [vmem:[%s3744_s7 + $0x948] sm:$0xff]  ;;  %474 = vst [vmem:[%s3749_s8 + $0x498] sm:$0xff] %v473_v19 }
  0x63   : > { %476 = vst [vmem:[%s3749_s8 + $0x4a0] sm:$0xff] %v475_v20  ;;  %478 = vst [vmem:[%s3749_s8 + $0x4a8] sm:$0xff] %v477_v21  ;;  %v479_v22 = vld [vmem:[%s3744_s7 + $0x960] sm:$0xff]  ;;  %v481_v23 = vld [vmem:[%s3744_s7 + $0x968] sm:$0xff] }
  0x64   : > { %v483_v24 = vld [vmem:[%s3744_s7 + $0x980] sm:$0xff]  ;;  %480 = vst [vmem:[%s3749_s8 + $0x4b0] sm:$0xff] %v479_v22  ;;  %482 = vst [vmem:[%s3749_s8 + $0x4b8] sm:$0xff] %v481_v23  ;;  %v485_v25 = vld [vmem:[%s3744_s7 + $0x988] sm:$0xff] }
  0x65   : > { %484 = vst [vmem:[%s3749_s8 + $0x4c0] sm:$0xff] %v483_v24  ;;  %v487_v26 = vld [vmem:[%s3744_s7 + $0x9a0] sm:$0xff]  ;;  %v489_v27 = vld [vmem:[%s3744_s7 + $0x9a8] sm:$0xff]  ;;  %486 = vst [vmem:[%s3749_s8 + $0x4c8] sm:$0xff] %v485_v25 }
  0x66   : > { %488 = vst [vmem:[%s3749_s8 + $0x4d0] sm:$0xff] %v487_v26  ;;  %490 = vst [vmem:[%s3749_s8 + $0x4d8] sm:$0xff] %v489_v27  ;;  %v491_v28 = vld [vmem:[%s3744_s7 + $0x9c0] sm:$0xff]  ;;  %v493_v29 = vld [vmem:[%s3744_s7 + $0x9c8] sm:$0xff] }
  0x67   : > { %v495_v30 = vld [vmem:[%s3744_s7 + $0x9e0] sm:$0xff]  ;;  %492 = vst [vmem:[%s3749_s8 + $0x4e0] sm:$0xff] %v491_v28  ;;  %494 = vst [vmem:[%s3749_s8 + $0x4e8] sm:$0xff] %v493_v29  ;;  %v497_v31 = vld [vmem:[%s3744_s7 + $0x9e8] sm:$0xff] }
  0x68   : > { %496 = vst [vmem:[%s3749_s8 + $0x4f0] sm:$0xff] %v495_v30  ;;  %v499_v32 = vld [vmem:[%s3744_s7 + $0xa00] sm:$0xff]  ;;  %v501_v33 = vld [vmem:[%s3744_s7 + $0xa08] sm:$0xff]  ;;  %498 = vst [vmem:[%s3749_s8 + $0x4f8] sm:$0xff] %v497_v31 }
  0x69   : > { %500 = vst [vmem:[%s3749_s8 + $0x500] sm:$0xff] %v499_v32  ;;  %502 = vst [vmem:[%s3749_s8 + $0x508] sm:$0xff] %v501_v33  ;;  %v503_v34 = vld [vmem:[%s3744_s7 + $0xa20] sm:$0xff]  ;;  %v505_v35 = vld [vmem:[%s3744_s7 + $0xa28] sm:$0xff] }
  0x6a   : > { %v507_v36 = vld [vmem:[%s3744_s7 + $0xa40] sm:$0xff]  ;;  %504 = vst [vmem:[%s3749_s8 + $0x510] sm:$0xff] %v503_v34  ;;  %506 = vst [vmem:[%s3749_s8 + $0x518] sm:$0xff] %v505_v35  ;;  %v509_v37 = vld [vmem:[%s3744_s7 + $0xa48] sm:$0xff] }
  0x6b   : > { %508 = vst [vmem:[%s3749_s8 + $0x520] sm:$0xff] %v507_v36  ;;  %v511_v38 = vld [vmem:[%s3744_s7 + $0xa60] sm:$0xff]  ;;  %v513_v39 = vld [vmem:[%s3744_s7 + $0xa68] sm:$0xff]  ;;  %510 = vst [vmem:[%s3749_s8 + $0x528] sm:$0xff] %v509_v37 }
  0x6c   : > { %512 = vst [vmem:[%s3749_s8 + $0x530] sm:$0xff] %v511_v38  ;;  %514 = vst [vmem:[%s3749_s8 + $0x538] sm:$0xff] %v513_v39  ;;  %v515_v40 = vld [vmem:[%s3744_s7 + $0xa80] sm:$0xff]  ;;  %v517_v41 = vld [vmem:[%s3744_s7 + $0xa88] sm:$0xff] }
  0x6d   : > { %v519_v42 = vld [vmem:[%s3744_s7 + $0xaa0] sm:$0xff]  ;;  %516 = vst [vmem:[%s3749_s8 + $0x540] sm:$0xff] %v515_v40  ;;  %518 = vst [vmem:[%s3749_s8 + $0x548] sm:$0xff] %v517_v41  ;;  %v521_v43 = vld [vmem:[%s3744_s7 + $0xaa8] sm:$0xff] }
  0x6e   : > { %520 = vst [vmem:[%s3749_s8 + $0x550] sm:$0xff] %v519_v42  ;;  %v523_v44 = vld [vmem:[%s3744_s7 + $0xac0] sm:$0xff]  ;;  %v525_v45 = vld [vmem:[%s3744_s7 + $0xac8] sm:$0xff]  ;;  %522 = vst [vmem:[%s3749_s8 + $0x558] sm:$0xff] %v521_v43 }
  0x6f   : > { %524 = vst [vmem:[%s3749_s8 + $0x560] sm:$0xff] %v523_v44  ;;  %526 = vst [vmem:[%s3749_s8 + $0x568] sm:$0xff] %v525_v45  ;;  %v527_v46 = vld [vmem:[%s3744_s7 + $0xae0] sm:$0xff]  ;;  %v529_v47 = vld [vmem:[%s3744_s7 + $0xae8] sm:$0xff] }
  0x70   : > { %v531_v48 = vld [vmem:[%s3744_s7 + $0xb00] sm:$0xff]  ;;  %528 = vst [vmem:[%s3749_s8 + $0x570] sm:$0xff] %v527_v46  ;;  %530 = vst [vmem:[%s3749_s8 + $0x578] sm:$0xff] %v529_v47  ;;  %v533_v49 = vld [vmem:[%s3744_s7 + $0xb08] sm:$0xff] }
  0x71   : > { %532 = vst [vmem:[%s3749_s8 + $0x580] sm:$0xff] %v531_v48  ;;  %v535_v50 = vld [vmem:[%s3744_s7 + $0xb20] sm:$0xff]  ;;  %v537_v51 = vld [vmem:[%s3744_s7 + $0xb28] sm:$0xff]  ;;  %534 = vst [vmem:[%s3749_s8 + $0x588] sm:$0xff] %v533_v49 }
  0x72   : > { %536 = vst [vmem:[%s3749_s8 + $0x590] sm:$0xff] %v535_v50  ;;  %538 = vst [vmem:[%s3749_s8 + $0x598] sm:$0xff] %v537_v51  ;;  %v539_v52 = vld [vmem:[%s3744_s7 + $0xb40] sm:$0xff]  ;;  %v541_v53 = vld [vmem:[%s3744_s7 + $0xb48] sm:$0xff] }
  0x73   : > { %v543_v54 = vld [vmem:[%s3744_s7 + $0xb60] sm:$0xff]  ;;  %540 = vst [vmem:[%s3749_s8 + $0x5a0] sm:$0xff] %v539_v52  ;;  %542 = vst [vmem:[%s3749_s8 + $0x5a8] sm:$0xff] %v541_v53  ;;  %v545_v55 = vld [vmem:[%s3744_s7 + $0xb68] sm:$0xff] }
  0x74   : > { %544 = vst [vmem:[%s3749_s8 + $0x5b0] sm:$0xff] %v543_v54  ;;  %v547_v56 = vld [vmem:[%s3744_s7 + $0xb80] sm:$0xff]  ;;  %v549_v57 = vld [vmem:[%s3744_s7 + $0xb88] sm:$0xff]  ;;  %546 = vst [vmem:[%s3749_s8 + $0x5b8] sm:$0xff] %v545_v55 }
  0x75   : > { %548 = vst [vmem:[%s3749_s8 + $0x5c0] sm:$0xff] %v547_v56  ;;  %550 = vst [vmem:[%s3749_s8 + $0x5c8] sm:$0xff] %v549_v57  ;;  %v551_v58 = vld [vmem:[%s3744_s7 + $0xba0] sm:$0xff]  ;;  %v553_v59 = vld [vmem:[%s3744_s7 + $0xba8] sm:$0xff] }
  0x76   : > { %v555_v60 = vld [vmem:[%s3744_s7 + $0xbc0] sm:$0xff]  ;;  %552 = vst [vmem:[%s3749_s8 + $0x5d0] sm:$0xff] %v551_v58  ;;  %554 = vst [vmem:[%s3749_s8 + $0x5d8] sm:$0xff] %v553_v59  ;;  %v557_v61 = vld [vmem:[%s3744_s7 + $0xbc8] sm:$0xff] }
  0x77   : > { %556 = vst [vmem:[%s3749_s8 + $0x5e0] sm:$0xff] %v555_v60  ;;  %v559_v62 = vld [vmem:[%s3744_s7 + $0xbe0] sm:$0xff]  ;;  %v561_v63 = vld [vmem:[%s3744_s7 + $0xbe8] sm:$0xff]  ;;  %558 = vst [vmem:[%s3749_s8 + $0x5e8] sm:$0xff] %v557_v61 }
  0x78   : > { %560 = vst [vmem:[%s3749_s8 + $0x5f0] sm:$0xff] %v559_v62  ;;  %562 = vst [vmem:[%s3749_s8 + $0x5f8] sm:$0xff] %v561_v63  ;;  %v563_v0 = vld [vmem:[%s3744_s7 + $0xc00] sm:$0xff]  ;;  %v565_v1 = vld [vmem:[%s3744_s7 + $0xc08] sm:$0xff] }
  0x79   : > { %v567_v2 = vld [vmem:[%s3744_s7 + $0xc20] sm:$0xff]  ;;  %564 = vst [vmem:[%s3749_s8 + $0x600] sm:$0xff] %v563_v0  ;;  %566 = vst [vmem:[%s3749_s8 + $0x608] sm:$0xff] %v565_v1  ;;  %v569_v3 = vld [vmem:[%s3744_s7 + $0xc28] sm:$0xff] }
  0x7a   : > { %568 = vst [vmem:[%s3749_s8 + $0x610] sm:$0xff] %v567_v2  ;;  %v571_v4 = vld [vmem:[%s3744_s7 + $0xc40] sm:$0xff]  ;;  %v573_v5 = vld [vmem:[%s3744_s7 + $0xc48] sm:$0xff]  ;;  %570 = vst [vmem:[%s3749_s8 + $0x618] sm:$0xff] %v569_v3 }
  0x7b   : > { %572 = vst [vmem:[%s3749_s8 + $0x620] sm:$0xff] %v571_v4  ;;  %574 = vst [vmem:[%s3749_s8 + $0x628] sm:$0xff] %v573_v5  ;;  %v575_v6 = vld [vmem:[%s3744_s7 + $0xc60] sm:$0xff]  ;;  %v577_v7 = vld [vmem:[%s3744_s7 + $0xc68] sm:$0xff] }
  0x7c   : > { %v579_v8 = vld [vmem:[%s3744_s7 + $0xc80] sm:$0xff]  ;;  %576 = vst [vmem:[%s3749_s8 + $0x630] sm:$0xff] %v575_v6  ;;  %578 = vst [vmem:[%s3749_s8 + $0x638] sm:$0xff] %v577_v7  ;;  %v581_v9 = vld [vmem:[%s3744_s7 + $0xc88] sm:$0xff] }
  0x7d   : > { %580 = vst [vmem:[%s3749_s8 + $0x640] sm:$0xff] %v579_v8  ;;  %v583_v10 = vld [vmem:[%s3744_s7 + $0xca0] sm:$0xff]  ;;  %v585_v11 = vld [vmem:[%s3744_s7 + $0xca8] sm:$0xff]  ;;  %582 = vst [vmem:[%s3749_s8 + $0x648] sm:$0xff] %v581_v9 }
  0x7e   : > { %584 = vst [vmem:[%s3749_s8 + $0x650] sm:$0xff] %v583_v10  ;;  %586 = vst [vmem:[%s3749_s8 + $0x658] sm:$0xff] %v585_v11  ;;  %v587_v12 = vld [vmem:[%s3744_s7 + $0xcc0] sm:$0xff]  ;;  %v589_v13 = vld [vmem:[%s3744_s7 + $0xcc8] sm:$0xff] }
  0x7f   : > { %v591_v14 = vld [vmem:[%s3744_s7 + $0xce0] sm:$0xff]  ;;  %588 = vst [vmem:[%s3749_s8 + $0x660] sm:$0xff] %v587_v12  ;;  %590 = vst [vmem:[%s3749_s8 + $0x668] sm:$0xff] %v589_v13  ;;  %v593_v15 = vld [vmem:[%s3744_s7 + $0xce8] sm:$0xff] }
  0x80   : > { %592 = vst [vmem:[%s3749_s8 + $0x670] sm:$0xff] %v591_v14  ;;  %v595_v16 = vld [vmem:[%s3744_s7 + $0xd00] sm:$0xff]  ;;  %v597_v17 = vld [vmem:[%s3744_s7 + $0xd08] sm:$0xff]  ;;  %594 = vst [vmem:[%s3749_s8 + $0x678] sm:$0xff] %v593_v15 }
  0x81   : > { %596 = vst [vmem:[%s3749_s8 + $0x680] sm:$0xff] %v595_v16  ;;  %598 = vst [vmem:[%s3749_s8 + $0x688] sm:$0xff] %v597_v17  ;;  %v599_v18 = vld [vmem:[%s3744_s7 + $0xd20] sm:$0xff]  ;;  %v601_v19 = vld [vmem:[%s3744_s7 + $0xd28] sm:$0xff] }
  0x82   : > { %v603_v20 = vld [vmem:[%s3744_s7 + $0xd40] sm:$0xff]  ;;  %600 = vst [vmem:[%s3749_s8 + $0x690] sm:$0xff] %v599_v18  ;;  %602 = vst [vmem:[%s3749_s8 + $0x698] sm:$0xff] %v601_v19  ;;  %v605_v21 = vld [vmem:[%s3744_s7 + $0xd48] sm:$0xff] }
  0x83   : > { %604 = vst [vmem:[%s3749_s8 + $0x6a0] sm:$0xff] %v603_v20  ;;  %v607_v22 = vld [vmem:[%s3744_s7 + $0xd60] sm:$0xff]  ;;  %v609_v23 = vld [vmem:[%s3744_s7 + $0xd68] sm:$0xff]  ;;  %606 = vst [vmem:[%s3749_s8 + $0x6a8] sm:$0xff] %v605_v21 }
  0x84   : > { %608 = vst [vmem:[%s3749_s8 + $0x6b0] sm:$0xff] %v607_v22  ;;  %610 = vst [vmem:[%s3749_s8 + $0x6b8] sm:$0xff] %v609_v23  ;;  %v611_v24 = vld [vmem:[%s3744_s7 + $0xd80] sm:$0xff]  ;;  %v613_v25 = vld [vmem:[%s3744_s7 + $0xd88] sm:$0xff] }
  0x85   : > { %v615_v26 = vld [vmem:[%s3744_s7 + $0xda0] sm:$0xff]  ;;  %612 = vst [vmem:[%s3749_s8 + $0x6c0] sm:$0xff] %v611_v24  ;;  %614 = vst [vmem:[%s3749_s8 + $0x6c8] sm:$0xff] %v613_v25  ;;  %v617_v27 = vld [vmem:[%s3744_s7 + $0xda8] sm:$0xff] }
  0x86   : > { %616 = vst [vmem:[%s3749_s8 + $0x6d0] sm:$0xff] %v615_v26  ;;  %v619_v28 = vld [vmem:[%s3744_s7 + $0xdc0] sm:$0xff]  ;;  %v621_v29 = vld [vmem:[%s3744_s7 + $0xdc8] sm:$0xff]  ;;  %618 = vst [vmem:[%s3749_s8 + $0x6d8] sm:$0xff] %v617_v27 }
  0x87   : > { %620 = vst [vmem:[%s3749_s8 + $0x6e0] sm:$0xff] %v619_v28  ;;  %622 = vst [vmem:[%s3749_s8 + $0x6e8] sm:$0xff] %v621_v29  ;;  %v623_v30 = vld [vmem:[%s3744_s7 + $0xde0] sm:$0xff]  ;;  %v625_v31 = vld [vmem:[%s3744_s7 + $0xde8] sm:$0xff] }
  0x88   : > { %v627_v32 = vld [vmem:[%s3744_s7 + $0xe00] sm:$0xff]  ;;  %624 = vst [vmem:[%s3749_s8 + $0x6f0] sm:$0xff] %v623_v30  ;;  %626 = vst [vmem:[%s3749_s8 + $0x6f8] sm:$0xff] %v625_v31  ;;  %v629_v33 = vld [vmem:[%s3744_s7 + $0xe08] sm:$0xff] }
  0x89   : > { %628 = vst [vmem:[%s3749_s8 + $0x700] sm:$0xff] %v627_v32  ;;  %v631_v34 = vld [vmem:[%s3744_s7 + $0xe20] sm:$0xff]  ;;  %v633_v35 = vld [vmem:[%s3744_s7 + $0xe28] sm:$0xff]  ;;  %630 = vst [vmem:[%s3749_s8 + $0x708] sm:$0xff] %v629_v33 }
  0x8a   : > { %632 = vst [vmem:[%s3749_s8 + $0x710] sm:$0xff] %v631_v34  ;;  %634 = vst [vmem:[%s3749_s8 + $0x718] sm:$0xff] %v633_v35  ;;  %v635_v36 = vld [vmem:[%s3744_s7 + $0xe40] sm:$0xff]  ;;  %v637_v37 = vld [vmem:[%s3744_s7 + $0xe48] sm:$0xff] }
  0x8b   : > { %v639_v38 = vld [vmem:[%s3744_s7 + $0xe60] sm:$0xff]  ;;  %636 = vst [vmem:[%s3749_s8 + $0x720] sm:$0xff] %v635_v36  ;;  %638 = vst [vmem:[%s3749_s8 + $0x728] sm:$0xff] %v637_v37  ;;  %v641_v39 = vld [vmem:[%s3744_s7 + $0xe68] sm:$0xff] }
  0x8c   : > { %640 = vst [vmem:[%s3749_s8 + $0x730] sm:$0xff] %v639_v38  ;;  %v643_v40 = vld [vmem:[%s3744_s7 + $0xe80] sm:$0xff]  ;;  %v645_v41 = vld [vmem:[%s3744_s7 + $0xe88] sm:$0xff]  ;;  %642 = vst [vmem:[%s3749_s8 + $0x738] sm:$0xff] %v641_v39 }
  0x8d   : > { %644 = vst [vmem:[%s3749_s8 + $0x740] sm:$0xff] %v643_v40  ;;  %646 = vst [vmem:[%s3749_s8 + $0x748] sm:$0xff] %v645_v41  ;;  %v647_v42 = vld [vmem:[%s3744_s7 + $0xea0] sm:$0xff]  ;;  %v649_v43 = vld [vmem:[%s3744_s7 + $0xea8] sm:$0xff] }
  0x8e   : > { %v651_v44 = vld [vmem:[%s3744_s7 + $0xec0] sm:$0xff]  ;;  %648 = vst [vmem:[%s3749_s8 + $0x750] sm:$0xff] %v647_v42  ;;  %650 = vst [vmem:[%s3749_s8 + $0x758] sm:$0xff] %v649_v43  ;;  %v653_v45 = vld [vmem:[%s3744_s7 + $0xec8] sm:$0xff] }
  0x8f   : > { %652 = vst [vmem:[%s3749_s8 + $0x760] sm:$0xff] %v651_v44  ;;  %v655_v46 = vld [vmem:[%s3744_s7 + $0xee0] sm:$0xff]  ;;  %v657_v47 = vld [vmem:[%s3744_s7 + $0xee8] sm:$0xff]  ;;  %654 = vst [vmem:[%s3749_s8 + $0x768] sm:$0xff] %v653_v45 }
  0x90   : > { %656 = vst [vmem:[%s3749_s8 + $0x770] sm:$0xff] %v655_v46  ;;  %658 = vst [vmem:[%s3749_s8 + $0x778] sm:$0xff] %v657_v47  ;;  %v659_v48 = vld [vmem:[%s3744_s7 + $0xf00] sm:$0xff]  ;;  %v661_v49 = vld [vmem:[%s3744_s7 + $0xf08] sm:$0xff] }
  0x91   : > { %v663_v50 = vld [vmem:[%s3744_s7 + $0xf20] sm:$0xff]  ;;  %660 = vst [vmem:[%s3749_s8 + $0x780] sm:$0xff] %v659_v48  ;;  %662 = vst [vmem:[%s3749_s8 + $0x788] sm:$0xff] %v661_v49  ;;  %v665_v51 = vld [vmem:[%s3744_s7 + $0xf28] sm:$0xff] }
  0x92   : > { %664 = vst [vmem:[%s3749_s8 + $0x790] sm:$0xff] %v663_v50  ;;  %v667_v52 = vld [vmem:[%s3744_s7 + $0xf40] sm:$0xff]  ;;  %v669_v53 = vld [vmem:[%s3744_s7 + $0xf48] sm:$0xff]  ;;  %666 = vst [vmem:[%s3749_s8 + $0x798] sm:$0xff] %v665_v51 }
  0x93   : > { %668 = vst [vmem:[%s3749_s8 + $0x7a0] sm:$0xff] %v667_v52  ;;  %670 = vst [vmem:[%s3749_s8 + $0x7a8] sm:$0xff] %v669_v53  ;;  %v671_v54 = vld [vmem:[%s3744_s7 + $0xf60] sm:$0xff]  ;;  %v673_v55 = vld [vmem:[%s3744_s7 + $0xf68] sm:$0xff] }
  0x94   : > { %v675_v56 = vld [vmem:[%s3744_s7 + $0xf80] sm:$0xff]  ;;  %672 = vst [vmem:[%s3749_s8 + $0x7b0] sm:$0xff] %v671_v54  ;;  %674 = vst [vmem:[%s3749_s8 + $0x7b8] sm:$0xff] %v673_v55  ;;  %v677_v57 = vld [vmem:[%s3744_s7 + $0xf88] sm:$0xff] }
  0x95   : > { %676 = vst [vmem:[%s3749_s8 + $0x7c0] sm:$0xff] %v675_v56  ;;  %v679_v58 = vld [vmem:[%s3744_s7 + $0xfa0] sm:$0xff]  ;;  %v681_v59 = vld [vmem:[%s3744_s7 + $0xfa8] sm:$0xff]  ;;  %678 = vst [vmem:[%s3749_s8 + $0x7c8] sm:$0xff] %v677_v57 }
  0x96   : > { %680 = vst [vmem:[%s3749_s8 + $0x7d0] sm:$0xff] %v679_v58  ;;  %682 = vst [vmem:[%s3749_s8 + $0x7d8] sm:$0xff] %v681_v59  ;;  %v683_v60 = vld [vmem:[%s3744_s7 + $0xfc0] sm:$0xff]  ;;  %v685_v61 = vld [vmem:[%s3744_s7 + $0xfc8] sm:$0xff] }
  0x97   : > { %v687_v62 = vld [vmem:[%s3744_s7 + $0xfe0] sm:$0xff]  ;;  %684 = vst [vmem:[%s3749_s8 + $0x7e0] sm:$0xff] %v683_v60  ;;  %686 = vst [vmem:[%s3749_s8 + $0x7e8] sm:$0xff] %v685_v61  ;;  %v689_v63 = vld [vmem:[%s3744_s7 + $0xfe8] sm:$0xff] }
  0x98   : > { %688 = vst [vmem:[%s3749_s8 + $0x7f0] sm:$0xff] %v687_v62  ;;  %690 = vst [vmem:[%s3749_s8 + $0x7f8] sm:$0xff] %v689_v63 }
  0x99 PF: > { %p2865_p7 = scmp.ge.s32.totalorder %s3659_s18, 1  ;;  %p703_p8 = scmp.lt.s32.totalorder %s3659_s18, 17 }
  0x9b   : > { %p704_p9 = pnand %p2865_p7, %p703_p8 }
  0x9c   : > { %s710_s9 = sand.u32 (!%p704_p9), 1, %s3635_s12   ;;  %s2867_s10 = sshll.u32 (!%p704_p9), %s3643_s14, 3 }
  0x9d   : > { %707 = sbr.rel (%p704_p9) target bundleno = 688 (0x2b0), region = 51  ;;  %s2866_s11 = sshll.u32 (!%p704_p9), %s710_s9, 11 }
  0x9e   : > { %p742_p10 = scmp.lt.s32.totalorder (!%p704_p9), %s2867_s10, 63  ;;  %s2868_s21 = sshll.u32 (!%p704_p9), %s3647_s15, 2 }
  0x9f   : > { %p749_p11 = scmp.lt.s32.totalorder (!%p704_p9), %s2868_s21, 7  ;;  %s4283_s4 = scalar_lea.vmem (!%p704_p9), [#allocation2], %s2866_s11 }
  0xa0   : > { %p2871_p12 = scmp.ne.s32.totalorder (!%p704_p9), %s3643_s14, 0 }
  0xa4   : > { %s4630_s10 = smov (!%p742_p10, %s2867_s10), 63  ;;  %s4632_s21 = smov (!%p749_p11, %s2868_s21), 7 }
  0xa5   : > { %s744_s24 = scalar_lea.vmem %s4613_s0, %s4630_s10  ;;  %s751_s12 = scalar_lea.vmem %s4615_s2, %s4632_s21  ;;  %v3661_v0 = vmov (!%p2871_p12), 0.0  }
  0xa6   : > { %s2870_s28 = sshll.u32 %s4632_s21, 1  ;;  %762 = sbr.rel (%p2871_p12) target bundleno = 173 (0xad), region = 59 }
  0xa7   : > { %s4281_s15 = scalar_lea.vmem %s4616_s3, %s2870_s28 }
  0xa8   : > { %763 = vst [vmem:[%s4281_s15] sm:$0xff] (!%p2871_p12), %v3661_v0 }
  0xad PF: > { %v3216_v1 = vld [vmem:[%s4283_s4 + $0x4] ss:$16 sps:$4 sm:$0xff]   ;;  %v3218_v2 = vld [vmem:[%s4283_s4 + $0xc] ss:$16 sps:$4 sm:$0xff]   ;;  %v3220_v3 = vld [vmem:[%s4283_s4] ss:$16 sps:$4 sm:$0xff]   ;;  %v1027_v39 = vlaneseq }
  0xae   : > { %2360 = vmatprep.subr.bf16.mxu0 %v3216_v1  ;;  %v3221_v4 = vld [vmem:[%s4283_s4 + $0x8] ss:$16 sps:$4 sm:$0xff]   ;;  %2524 = vmatprep.subr.bf16.mxu1 %v3218_v2  ;;  %v3222_v5 = vld [vmem:[%s4283_s4 + $0x24] ss:$16 sps:$4 sm:$0xff]   ;;  %v3224_v6 = vld [vmem:[%s4283_s4 + $0x2c] ss:$16 sps:$4 sm:$0xff]  }
  0xaf   : > { %2361 = vmatpush1.bf16.msra.mxu0 %v3220_v3  ;;  %2525 = vmatpush1.bf16.msra.mxu1 %v3221_v4  ;;  %v3226_v7 = vld [vmem:[%s4283_s4 + $0x20] ss:$16 sps:$4 sm:$0xff]   ;;  %v3227_v8 = vld [vmem:[%s4283_s4 + $0x28] ss:$16 sps:$4 sm:$0xff]   ;;  %v3228_v9 = vld [vmem:[%s4283_s4 + $0x44] ss:$16 sps:$4 sm:$0xff]  }
  0xb0   : > { %2362 = vmatprep.subr.bf16.mxu0 %v3222_v5  ;;  %2526 = vmatprep.subr.bf16.mxu1 %v3224_v6  ;;  %v3230_v10 = vld [vmem:[%s4283_s4 + $0x4c] ss:$16 sps:$4 sm:$0xff]   ;;  %v3232_v11 = vld [vmem:[%s4283_s4 + $0x40] ss:$16 sps:$4 sm:$0xff]   ;;  %v3233_v12 = vld [vmem:[%s4283_s4 + $0x48] ss:$16 sps:$4 sm:$0xff]  }
  0xb1   : > { %v3234_v13 = vld [vmem:[%s4283_s4 + $0x64] ss:$16 sps:$4 sm:$0xff]   ;;  %v3236_v14 = vld [vmem:[%s4283_s4 + $0x6c] ss:$16 sps:$4 sm:$0xff]   ;;  %v3238_v15 = vld [vmem:[%s4283_s4 + $0x60] ss:$16 sps:$4 sm:$0xff]  }
  0xb2   : > { %v3239_v16 = vld [vmem:[%s4283_s4 + $0x68] ss:$16 sps:$4 sm:$0xff]   ;;  %v3240_v17 = vld [vmem:[%s4283_s4 + $0x84] ss:$16 sps:$4 sm:$0xff]   ;;  %v3242_v18 = vld [vmem:[%s4283_s4 + $0x8c] ss:$16 sps:$4 sm:$0xff]  }
  0xb3   : > { %2363 = vmatpush1.bf16.msra.mxu0 %v3226_v7  ;;  %2527 = vmatpush1.bf16.msra.mxu1 %v3227_v8  ;;  %v3244_v19 = vld [vmem:[%s4283_s4 + $0x80] ss:$16 sps:$4 sm:$0xff]   ;;  %v3245_v20 = vld [vmem:[%s4283_s4 + $0x88] ss:$16 sps:$4 sm:$0xff]   ;;  %v3246_v21 = vld [vmem:[%s4283_s4 + $0xa4] ss:$16 sps:$4 sm:$0xff]  }
  0xb4   : > { %2364 = vmatprep.subr.bf16.mxu0 %v3228_v9  ;;  %2528 = vmatprep.subr.bf16.mxu1 %v3230_v10  ;;  %v3248_v22 = vld [vmem:[%s4283_s4 + $0xac] ss:$16 sps:$4 sm:$0xff]   ;;  %v3250_v23 = vld [vmem:[%s4283_s4 + $0xa0] ss:$16 sps:$4 sm:$0xff]   ;;  %v3251_v24 = vld [vmem:[%s4283_s4 + $0xa8] ss:$16 sps:$4 sm:$0xff]  }
  0xb5   : > { %v3252_v25 = vld [vmem:[%s4283_s4 + $0xc4] ss:$16 sps:$4 sm:$0xff]   ;;  %v3254_v26 = vld [vmem:[%s4283_s4 + $0xcc] ss:$16 sps:$4 sm:$0xff]   ;;  %v3256_v27 = vld [vmem:[%s4283_s4 + $0xc0] ss:$16 sps:$4 sm:$0xff]  }
  0xb6   : > { %v3257_v28 = vld [vmem:[%s4283_s4 + $0xc8] ss:$16 sps:$4 sm:$0xff]   ;;  %v3258_v29 = vld [vmem:[%s4283_s4 + $0xe4] ss:$16 sps:$4 sm:$0xff]   ;;  %v3260_v30 = vld [vmem:[%s4283_s4 + $0xec] ss:$16 sps:$4 sm:$0xff]  }
  0xb7   : > { %2365 = vmatpush1.bf16.msra.mxu0 %v3232_v11  ;;  %2529 = vmatpush1.bf16.msra.mxu1 %v3233_v12  ;;  %v3262_v31 = vld [vmem:[%s4283_s4 + $0xe0] ss:$16 sps:$4 sm:$0xff]   ;;  %v3263_v32 = vld [vmem:[%s4283_s4 + $0xe8] ss:$16 sps:$4 sm:$0xff]   ;;  %v3264_v33 = vld [vmem:[%s4283_s4 + $0x104] ss:$16 sps:$4 sm:$0xff]  }
  0xb8   : > { %2366 = vmatprep.subr.bf16.mxu0 %v3234_v13  ;;  %2530 = vmatprep.subr.bf16.mxu1 %v3236_v14  ;;  %v3266_v34 = vld [vmem:[%s4283_s4 + $0x10c] ss:$16 sps:$4 sm:$0xff]   ;;  %v3268_v35 = vld [vmem:[%s4283_s4 + $0x100] ss:$16 sps:$4 sm:$0xff]   ;;  %v3269_v36 = vld [vmem:[%s4283_s4 + $0x108] ss:$16 sps:$4 sm:$0xff]  }
  0xb9   : > { %v3662_v37 = vmov 1966171168   ;;  %v3270_v40 = vld [vmem:[%s4283_s4 + $0x124] ss:$16 sps:$4 sm:$0xff]   ;;  %v3272_v41 = vld [vmem:[%s4283_s4 + $0x12c] ss:$16 sps:$4 sm:$0xff]  }
  0xba   : > { %v1025_v38 = vunpack.c.l.s4 %v3662_v37  ;;  %v3274_v42 = vld [vmem:[%s4283_s4 + $0x120] ss:$16 sps:$4 sm:$0xff]   ;;  %v4326_v44 = vshrl.u32 %v1027_v39, 7  ;;  %v3275_v45 = vld [vmem:[%s4283_s4 + $0x128] ss:$16 sps:$4 sm:$0xff]   ;;  %p3128_p13 = scmp.ne.s32.totalorder %s3643_s14, 7 }
  0xbb   : > { %2367 = vmatpush1.bf16.msra.mxu0 %v3238_v15  ;;  %2531 = vmatpush1.bf16.msra.mxu1 %v3239_v16  ;;  %v3276_v46 = vld [vmem:[%s4283_s4 + $0x144] ss:$16 sps:$4 sm:$0xff]   ;;  %v3278_v47 = vld [vmem:[%s4283_s4 + $0x14c] ss:$16 sps:$4 sm:$0xff]   ;;  %v3280_v48 = vld [vmem:[%s4283_s4 + $0x140] ss:$16 sps:$4 sm:$0xff]  }
  0xbc   : > { %2368 = vmatprep.subr.bf16.mxu0 %v3240_v17  ;;  %2532 = vmatprep.subr.bf16.mxu1 %v3242_v18  ;;  %v1026_v43 = vunpack.c.0.s8 %v1025_v38  ;;  %v3281_v49 = vld [vmem:[%s4283_s4 + $0x148] ss:$16 sps:$4 sm:$0xff]   ;;  %v3282_v51 = vld [vmem:[%s4283_s4 + $0x164] ss:$16 sps:$4 sm:$0xff]   ;;  %v3284_v52 = vld [vmem:[%s4283_s4 + $0x16c] ss:$16 sps:$4 sm:$0xff]  }
  0xbd   : > { %v765_v53 = vld [vmem:[%s744_s24] sm:$0xff]  ;;  %v3287_v56 = vld [vmem:[%s4283_s4 + $0x168] ss:$16 sps:$4 sm:$0xff]   ;;  %v3290_v58 = vld [vmem:[%s4283_s4 + $0x18c] ss:$16 sps:$4 sm:$0xff]  }
  0xbe   : > { %v4334_v50 = vsub.s32 %v1026_v43, %v4326_v44  ;;  %v3286_v54 = vld [vmem:[%s4283_s4 + $0x160] ss:$16 sps:$4 sm:$0xff]   ;;  %v3288_v57 = vld [vmem:[%s4283_s4 + $0x184] ss:$16 sps:$4 sm:$0xff]   ;;  %v3293_v62 = vld [vmem:[%s4283_s4 + $0x188] ss:$16 sps:$4 sm:$0xff]   ;;  %v1023_v10 = vcombine.high %v765_v53, %v765_v53 }
  0xbf   : > { %2369 = vmatpush1.bf16.msra.mxu0 %v3244_v19  ;;  %2533 = vmatpush1.bf16.msra.mxu1 %v3245_v20  ;;  %v3292_v60 = vld [vmem:[%s4283_s4 + $0x180] ss:$16 sps:$4 sm:$0xff]   ;;  %v3294_v63 = vld [vmem:[%s4283_s4 + $0x1a4] ss:$16 sps:$4 sm:$0xff]   ;;  %v3296_v0 = vld [vmem:[%s4283_s4 + $0x1ac] ss:$16 sps:$4 sm:$0xff]  }
  0xc0   : > { %2370 = vmatprep.subr.bf16.mxu0 %v3246_v21  ;;  %2534 = vmatprep.subr.bf16.mxu1 %v3248_v22  ;;  %v1030_v55 = vrot.slane %v765_v53, %v4334_v50  ;;  %v3298_v1 = vld [vmem:[%s4283_s4 + $0x1a0] ss:$16 sps:$4 sm:$0xff]   ;;  %v3299_v2 = vld [vmem:[%s4283_s4 + $0x1a8] ss:$16 sps:$4 sm:$0xff]   ;;  %v3300_v3 = vld [vmem:[%s4283_s4 + $0x1c4] ss:$16 sps:$4 sm:$0xff]   ;;  %v1037_v14 = vrot.slane %v1023_v10, %v4334_v50 }
  0xc1   : > { %v3302_v4 = vld [vmem:[%s4283_s4 + $0x1cc] ss:$16 sps:$4 sm:$0xff]   ;;  %v3304_v5 = vld [vmem:[%s4283_s4 + $0x1c0] ss:$16 sps:$4 sm:$0xff]   ;;  %v3305_v6 = vld [vmem:[%s4283_s4 + $0x1c8] ss:$16 sps:$4 sm:$0xff]  }
  0xc2   : > { %v1038_v59 = vcombine.high %v1030_v55, %v1030_v55  ;;  %v3306_v7 = vld [vmem:[%s4283_s4 + $0x1e4] ss:$16 sps:$4 sm:$0xff]   ;;  %v3308_v8 = vld [vmem:[%s4283_s4 + $0x1ec] ss:$16 sps:$4 sm:$0xff]   ;;  %v3310_v9 = vld [vmem:[%s4283_s4 + $0x1e0] ss:$16 sps:$4 sm:$0xff]   ;;  %v4368_v16 = vrot.slane %v1030_v55, %v4334_v50  ;;  %v1039_v17 = vcombine.high %v1037_v14, %v1037_v14  ;;  %v4377_v22 = vrot.slane %v1037_v14, %v4334_v50 }
  0xc3   : > { %2371 = vmatpush1.bf16.msra.mxu0 %v3250_v23  ;;  %2535 = vmatpush1.bf16.msra.mxu1 %v3251_v24  ;;  %v3311_v11 = vld [vmem:[%s4283_s4 + $0x1e8] ss:$16 sps:$4 sm:$0xff]   ;;  %v3314_v12 = vld [vmem:[%s4283_s4 + $0x204] ss:$16 sps:$4 sm:$0xff]   ;;  %v3317_v13 = vld [vmem:[%s4283_s4 + $0x20c] ss:$16 sps:$4 sm:$0xff]  }
  0xc4   : > { %2372 = vmatprep.subr.bf16.mxu0 %v3252_v25  ;;  %2536 = vmatprep.subr.bf16.mxu1 %v3254_v26  ;;  %v1060_v61 = vrot.slane %v1038_v59, %v4334_v50  ;;  %v3312_v15 = vld [vmem:[%s4283_s4 + $0x200] ss:$16 sps:$4 sm:$0xff]   ;;  %v3315_v18 = vld [vmem:[%s4283_s4 + $0x208] ss:$16 sps:$4 sm:$0xff]   ;;  %v3320_v19 = vld [vmem:[%s4283_s4 + $0x224] ss:$16 sps:$4 sm:$0xff]   ;;  %v4374_v21 = vrot.slane %v1039_v17, %v4334_v50 }
  0xc5   : > { %v3323_v20 = vld [vmem:[%s4283_s4 + $0x22c] ss:$16 sps:$4 sm:$0xff]   ;;  %v3318_v24 = vld [vmem:[%s4283_s4 + $0x220] ss:$16 sps:$4 sm:$0xff]   ;;  %v3321_v25 = vld [vmem:[%s4283_s4 + $0x228] ss:$16 sps:$4 sm:$0xff]  }
  0xc6   : > { %2392 = vmatprep.mubr.bf16.mxu0 %v1060_v61  ;;  %2556 = vmatprep.mubr.bf16.mxu1 %v1060_v61  ;;  %v1070_v23 = vcombine.high %v1060_v61, %v1060_v61  ;;  %v3326_v26 = vld [vmem:[%s4283_s4 + $0x244] ss:$16 sps:$4 sm:$0xff]   ;;  %v3339_v37 = vld [vmem:[%s4283_s4 + $0x288] ss:$16 sps:$4 sm:$0xff]   ;;  %v3347_v39 = vld [vmem:[%s4283_s4 + $0x2ac] ss:$16 sps:$4 sm:$0xff]  }
  0xc7   : > { %2373 = vmatpush1.bf16.msra.mxu0 %v3256_v27  ;;  %2537 = vmatpush1.bf16.msra.mxu1 %v3257_v28  ;;  %v3329_v27 = vld [vmem:[%s4283_s4 + $0x24c] ss:$16 sps:$4 sm:$0xff]   ;;  %v3324_v28 = vld [vmem:[%s4283_s4 + $0x240] ss:$16 sps:$4 sm:$0xff]   ;;  %v3344_v38 = vld [vmem:[%s4283_s4 + $0x2a4] ss:$16 sps:$4 sm:$0xff]  }
  0xc8   : > { %2374 = vmatprep.subr.bf16.mxu0 %v3258_v29  ;;  %2538 = vmatprep.subr.bf16.mxu1 %v3260_v30  ;;  %v3327_v29 = vld [vmem:[%s4283_s4 + $0x248] ss:$16 sps:$4 sm:$0xff]   ;;  %v3332_v30 = vld [vmem:[%s4283_s4 + $0x264] ss:$16 sps:$4 sm:$0xff]   ;;  %v3353_v43 = vld [vmem:[%s4283_s4 + $0x2cc] ss:$16 sps:$4 sm:$0xff]  }
  0xc9   : > { %v3357_v50 = vld [vmem:[%s4283_s4 + $0x2e8] ss:$16 sps:$4 sm:$0xff]   ;;  %v3360_v53 = vld [vmem:[%s4283_s4 + $0x300] ss:$16 sps:$4 sm:$0xff]   ;;  %v3368_v55 = vld [vmem:[%s4283_s4 + $0x324] ss:$16 sps:$4 sm:$0xff]  }
  0xca   : > { %v3374_v59 = vld [vmem:[%s4283_s4 + $0x344] ss:$16 sps:$4 sm:$0xff]   ;;  %v3372_v61 = vld [vmem:[%s4283_s4 + $0x340] ss:$16 sps:$4 sm:$0xff]   ;;  %v3393_v10 = vld [vmem:[%s4283_s4 + $0x3a8] ss:$16 sps:$4 sm:$0xff]  }
  0xcb   : > { %2375 = vmatpush1.bf16.msra.mxu0 %v3262_v31  ;;  %2539 = vmatpush1.bf16.msra.mxu1 %v3263_v32  ;;  %v3335_v31 = vld [vmem:[%s4283_s4 + $0x26c] ss:$16 sps:$4 sm:$0xff]   ;;  %v3330_v32 = vld [vmem:[%s4283_s4 + $0x260] ss:$16 sps:$4 sm:$0xff]   ;;  %v3399_v14 = vld [vmem:[%s4283_s4 + $0x3c8] ss:$16 sps:$4 sm:$0xff]  }
  0xcc   : > { %2376 = vmatprep.subr.bf16.mxu0 %v3264_v33  ;;  %2540 = vmatprep.subr.bf16.mxu1 %v3266_v34  ;;  %v3333_v33 = vld [vmem:[%s4283_s4 + $0x268] ss:$16 sps:$4 sm:$0xff]   ;;  %v3338_v34 = vld [vmem:[%s4283_s4 + $0x284] ss:$16 sps:$4 sm:$0xff]   ;;  %v3407_v17 = vld [vmem:[%s4283_s4 + $0x3ec] ss:$16 sps:$4 sm:$0xff]  }
  0xcf   : > { %2377 = vmatpush1.bf16.msra.mxu0 %v3268_v35  ;;  %2541 = vmatpush1.bf16.msra.mxu1 %v3269_v36  ;;  %v3341_v35 = vld [vmem:[%s4283_s4 + $0x28c] ss:$16 sps:$4 sm:$0xff]   ;;  %v3336_v36 = vld [vmem:[%s4283_s4 + $0x280] ss:$16 sps:$4 sm:$0xff]  }
  0xd0   : > { %2378 = vmatprep.subr.bf16.mxu0 %v3270_v40  ;;  %2542 = vmatprep.subr.bf16.mxu1 %v3272_v41  ;;  %v3342_v40 = vld [vmem:[%s4283_s4 + $0x2a0] ss:$16 sps:$4 sm:$0xff]   ;;  %v3345_v41 = vld [vmem:[%s4283_s4 + $0x2a8] ss:$16 sps:$4 sm:$0xff]  }
  0xd3   : > { %2379 = vmatpush1.bf16.msra.mxu0 %v3274_v42  ;;  %2543 = vmatpush1.bf16.msra.mxu1 %v3275_v45  ;;  %v3350_v42 = vld [vmem:[%s4283_s4 + $0x2c4] ss:$16 sps:$4 sm:$0xff]   ;;  %v3348_v45 = vld [vmem:[%s4283_s4 + $0x2c0] ss:$16 sps:$4 sm:$0xff]  }
  0xd4   : > { %2380 = vmatprep.subr.bf16.mxu0 %v3276_v46  ;;  %2544 = vmatprep.subr.bf16.mxu1 %v3278_v47  ;;  %v3351_v46 = vld [vmem:[%s4283_s4 + $0x2c8] ss:$16 sps:$4 sm:$0xff]   ;;  %v3356_v47 = vld [vmem:[%s4283_s4 + $0x2e4] ss:$16 sps:$4 sm:$0xff]  }
  0xd7   : > { %2381 = vmatpush1.bf16.msra.mxu0 %v3280_v48  ;;  %2545 = vmatpush1.bf16.msra.mxu1 %v3281_v49  ;;  %v3359_v48 = vld [vmem:[%s4283_s4 + $0x2ec] ss:$16 sps:$4 sm:$0xff]   ;;  %v3354_v49 = vld [vmem:[%s4283_s4 + $0x2e0] ss:$16 sps:$4 sm:$0xff]  }
  0xd8   : > { %2382 = vmatprep.subr.bf16.mxu0 %v3282_v51  ;;  %2546 = vmatprep.subr.bf16.mxu1 %v3284_v52  ;;  %v3362_v51 = vld [vmem:[%s4283_s4 + $0x304] ss:$16 sps:$4 sm:$0xff]   ;;  %v3365_v52 = vld [vmem:[%s4283_s4 + $0x30c] ss:$16 sps:$4 sm:$0xff]  }
  0xdb   : > { %2383 = vmatpush1.bf16.msra.mxu0 %v3286_v54  ;;  %2547 = vmatpush1.bf16.msra.mxu1 %v3287_v56  ;;  %v3363_v54 = vld [vmem:[%s4283_s4 + $0x308] ss:$16 sps:$4 sm:$0xff]   ;;  %v3371_v56 = vld [vmem:[%s4283_s4 + $0x32c] ss:$16 sps:$4 sm:$0xff]  }
  0xdc   : > { %2384 = vmatprep.subr.bf16.mxu0 %v3288_v57  ;;  %2548 = vmatprep.subr.bf16.mxu1 %v3290_v58  ;;  %v3366_v57 = vld [vmem:[%s4283_s4 + $0x320] ss:$16 sps:$4 sm:$0xff]   ;;  %v3369_v58 = vld [vmem:[%s4283_s4 + $0x328] ss:$16 sps:$4 sm:$0xff]  }
  0xdf   : > { %2385 = vmatpush1.bf16.msra.mxu0 %v3292_v60  ;;  %2549 = vmatpush1.bf16.msra.mxu1 %v3293_v62  ;;  %v3377_v60 = vld [vmem:[%s4283_s4 + $0x34c] ss:$16 sps:$4 sm:$0xff]   ;;  %v3375_v62 = vld [vmem:[%s4283_s4 + $0x348] ss:$16 sps:$4 sm:$0xff]  }
  0xe0   : > { %2386 = vmatprep.subr.bf16.mxu0 %v3294_v63  ;;  %2550 = vmatprep.subr.bf16.mxu1 %v3296_v0  ;;  %v3380_v63 = vld [vmem:[%s4283_s4 + $0x364] ss:$16 sps:$4 sm:$0xff]   ;;  %v3383_v0 = vld [vmem:[%s4283_s4 + $0x36c] ss:$16 sps:$4 sm:$0xff]  }
  0xe3   : > { %2387 = vmatpush1.bf16.msra.mxu0 %v3298_v1  ;;  %2551 = vmatpush1.bf16.msra.mxu1 %v3299_v2  ;;  %v3378_v1 = vld [vmem:[%s4283_s4 + $0x360] ss:$16 sps:$4 sm:$0xff]   ;;  %v3381_v2 = vld [vmem:[%s4283_s4 + $0x368] ss:$16 sps:$4 sm:$0xff]  }
  0xe4   : > { %2388 = vmatprep.subr.bf16.mxu0 %v3300_v3  ;;  %2552 = vmatprep.subr.bf16.mxu1 %v3302_v4  ;;  %v3386_v3 = vld [vmem:[%s4283_s4 + $0x384] ss:$16 sps:$4 sm:$0xff]   ;;  %v3389_v4 = vld [vmem:[%s4283_s4 + $0x38c] ss:$16 sps:$4 sm:$0xff]  }
  0xe7   : > { %2389 = vmatpush1.bf16.msra.mxu0 %v3304_v5  ;;  %2553 = vmatpush1.bf16.msra.mxu1 %v3305_v6  ;;  %v3384_v5 = vld [vmem:[%s4283_s4 + $0x380] ss:$16 sps:$4 sm:$0xff]   ;;  %v3387_v6 = vld [vmem:[%s4283_s4 + $0x388] ss:$16 sps:$4 sm:$0xff]  }
  0xe8   : > { %2390 = vmatprep.subr.bf16.mxu0 %v3306_v7  ;;  %2554 = vmatprep.subr.bf16.mxu1 %v3308_v8  ;;  %v3392_v7 = vld [vmem:[%s4283_s4 + $0x3a4] ss:$16 sps:$4 sm:$0xff]   ;;  %v3395_v8 = vld [vmem:[%s4283_s4 + $0x3ac] ss:$16 sps:$4 sm:$0xff]  }
  0xeb   : > { %2391 = vmatpush1.bf16.msra.mxu0 %v3310_v9  ;;  %2555 = vmatpush1.bf16.msra.mxu1 %v3311_v11  ;;  %v3390_v9 = vld [vmem:[%s4283_s4 + $0x3a0] ss:$16 sps:$4 sm:$0xff]   ;;  %v3398_v11 = vld [vmem:[%s4283_s4 + $0x3c4] ss:$16 sps:$4 sm:$0xff]  }
  0xec   : > { %2401 = vmatprep.subr.bf16.mxu0 %v3314_v12  ;;  %2565 = vmatprep.subr.bf16.mxu1 %v3317_v13  ;;  %v3401_v12 = vld [vmem:[%s4283_s4 + $0x3cc] ss:$16 sps:$4 sm:$0xff]   ;;  %v3396_v13 = vld [vmem:[%s4283_s4 + $0x3c0] ss:$16 sps:$4 sm:$0xff]  }
  0xee   : > { %2393 = vmatmul.mubr.bf16.vlgmr.msra.gmra.mrb[0].mxu0 %v4368_v16  ;;  %2557 = vmatmul.mubr.bf16.vlgmr.msra.gmra.mrb[0].mxu1 %v4368_v16 }
  0xef   : > { %2402 = vmatpush1.bf16.msra.mxu0 %v3312_v15  ;;  %2566 = vmatpush1.bf16.msra.mxu1 %v3315_v18  ;;  %v3404_v15 = vld [vmem:[%s4283_s4 + $0x3e4] ss:$16 sps:$4 sm:$0xff]   ;;  %v3402_v18 = vld [vmem:[%s4283_s4 + $0x3e0] ss:$16 sps:$4 sm:$0xff]  }
  0xf0   : > { %2403 = vmatprep.subr.bf16.mxu0 %v3320_v19  ;;  %2567 = vmatprep.subr.bf16.mxu1 %v3323_v20  ;;  %v3405_v19 = vld [vmem:[%s4283_s4 + $0x3e8] ss:$16 sps:$4 sm:$0xff]   ;;  %v3410_v20 = vld [vmem:[%s4283_s4 + $0x404] ss:$16 sps:$4 sm:$0xff]  }
  0xf1   : > { %2433 = vmatprep.mubr.bf16.mxu0 %v1070_v23  ;;  %2597 = vmatprep.mubr.bf16.mxu1 %v1070_v23  ;;  %v3413_v23 = vld [vmem:[%s4283_s4 + $0x40c] ss:$16 sps:$4 sm:$0xff]  }
  0xf3   : > { %2404 = vmatpush1.bf16.msra.mxu0 %v3318_v24  ;;  %2568 = vmatpush1.bf16.msra.mxu1 %v3321_v25  ;;  %v3408_v24 = vld [vmem:[%s4283_s4 + $0x400] ss:$16 sps:$4 sm:$0xff]   ;;  %v1068_v25 = vcombine.high %v4368_v16, %v4368_v16  ;;  %v3417_v16 = vld [vmem:[%s4283_s4 + $0x428] ss:$16 sps:$4 sm:$0xff]  }
  0xf4   : > { %2405 = vmatprep.subr.bf16.mxu0 %v3326_v26  ;;  %2569 = vmatprep.subr.bf16.mxu1 %v3329_v27  ;;  %v3411_v26 = vld [vmem:[%s4283_s4 + $0x408] ss:$16 sps:$4 sm:$0xff]   ;;  %v3416_v27 = vld [vmem:[%s4283_s4 + $0x424] ss:$16 sps:$4 sm:$0xff]  }
  0xf7   : > { %2406 = vmatpush1.bf16.msra.mxu0 %v3324_v28  ;;  %2570 = vmatpush1.bf16.msra.mxu1 %v3327_v29  ;;  %v3419_v28 = vld [vmem:[%s4283_s4 + $0x42c] ss:$16 sps:$4 sm:$0xff]   ;;  %v3414_v29 = vld [vmem:[%s4283_s4 + $0x420] ss:$16 sps:$4 sm:$0xff]  }
  0xf8   : > { %2407 = vmatprep.subr.bf16.mxu0 %v3332_v30  ;;  %2571 = vmatprep.subr.bf16.mxu1 %v3335_v31  ;;  %v3422_v30 = vld [vmem:[%s4283_s4 + $0x444] ss:$16 sps:$4 sm:$0xff]   ;;  %v3425_v31 = vld [vmem:[%s4283_s4 + $0x44c] ss:$16 sps:$4 sm:$0xff]  }
  0xfb   : > { %2408 = vmatpush1.bf16.msra.mxu0 %v3330_v32  ;;  %2572 = vmatpush1.bf16.msra.mxu1 %v3333_v33  ;;  %v3420_v32 = vld [vmem:[%s4283_s4 + $0x440] ss:$16 sps:$4 sm:$0xff]   ;;  %v3423_v33 = vld [vmem:[%s4283_s4 + $0x448] ss:$16 sps:$4 sm:$0xff]  }
  0xfc   : > { %2409 = vmatprep.subr.bf16.mxu0 %v3338_v34  ;;  %2573 = vmatprep.subr.bf16.mxu1 %v3341_v35  ;;  %v3428_v34 = vld [vmem:[%s4283_s4 + $0x464] ss:$16 sps:$4 sm:$0xff]   ;;  %v3431_v35 = vld [vmem:[%s4283_s4 + $0x46c] ss:$16 sps:$4 sm:$0xff]  }
  0xff   : > { %2410 = vmatpush1.bf16.msra.mxu0 %v3336_v36  ;;  %2574 = vmatpush1.bf16.msra.mxu1 %v3339_v37  ;;  %v3426_v36 = vld [vmem:[%s4283_s4 + $0x460] ss:$16 sps:$4 sm:$0xff]   ;;  %v3429_v37 = vld [vmem:[%s4283_s4 + $0x468] ss:$16 sps:$4 sm:$0xff]  }
 0x100   : > { %2411 = vmatprep.subr.bf16.mxu0 %v3344_v38  ;;  %2575 = vmatprep.subr.bf16.mxu1 %v3347_v39  ;;  %v3434_v38 = vld [vmem:[%s4283_s4 + $0x484] ss:$16 sps:$4 sm:$0xff]   ;;  %v3437_v39 = vld [vmem:[%s4283_s4 + $0x48c] ss:$16 sps:$4 sm:$0xff]  }
 0x103   : > { %2412 = vmatpush1.bf16.msra.mxu0 %v3342_v40  ;;  %2576 = vmatpush1.bf16.msra.mxu1 %v3345_v41  ;;  %v3432_v40 = vld [vmem:[%s4283_s4 + $0x480] ss:$16 sps:$4 sm:$0xff]   ;;  %v3435_v41 = vld [vmem:[%s4283_s4 + $0x488] ss:$16 sps:$4 sm:$0xff]  }
 0x104   : > { %2413 = vmatprep.subr.bf16.mxu0 %v3350_v42  ;;  %2577 = vmatprep.subr.bf16.mxu1 %v3353_v43  ;;  %v3440_v42 = vld [vmem:[%s4283_s4 + $0x4a4] ss:$16 sps:$4 sm:$0xff]   ;;  %v3443_v43 = vld [vmem:[%s4283_s4 + $0x4ac] ss:$16 sps:$4 sm:$0xff]  }
 0x107   : > { %2414 = vmatpush1.bf16.msra.mxu0 %v3348_v45  ;;  %2578 = vmatpush1.bf16.msra.mxu1 %v3351_v46  ;;  %v3438_v45 = vld [vmem:[%s4283_s4 + $0x4a0] ss:$16 sps:$4 sm:$0xff]   ;;  %v3441_v46 = vld [vmem:[%s4283_s4 + $0x4a8] ss:$16 sps:$4 sm:$0xff]  }
 0x108   : > { %2415 = vmatprep.subr.bf16.mxu0 %v3356_v47  ;;  %2579 = vmatprep.subr.bf16.mxu1 %v3359_v48  ;;  %v3446_v47 = vld [vmem:[%s4283_s4 + $0x4c4] ss:$16 sps:$4 sm:$0xff]   ;;  %v3449_v48 = vld [vmem:[%s4283_s4 + $0x4cc] ss:$16 sps:$4 sm:$0xff]  }
 0x10b   : > { %2416 = vmatpush1.bf16.msra.mxu0 %v3354_v49  ;;  %2580 = vmatpush1.bf16.msra.mxu1 %v3357_v50  ;;  %v3444_v49 = vld [vmem:[%s4283_s4 + $0x4c0] ss:$16 sps:$4 sm:$0xff]   ;;  %v3447_v50 = vld [vmem:[%s4283_s4 + $0x4c8] ss:$16 sps:$4 sm:$0xff]  }
 0x10c   : > { %2417 = vmatprep.subr.bf16.mxu0 %v3362_v51  ;;  %2581 = vmatprep.subr.bf16.mxu1 %v3365_v52  ;;  %v3452_v51 = vld [vmem:[%s4283_s4 + $0x4e4] ss:$16 sps:$4 sm:$0xff]   ;;  %v3455_v52 = vld [vmem:[%s4283_s4 + $0x4ec] ss:$16 sps:$4 sm:$0xff]  }
 0x10f   : > { %2418 = vmatpush1.bf16.msra.mxu0 %v3360_v53  ;;  %2582 = vmatpush1.bf16.msra.mxu1 %v3363_v54  ;;  %v3450_v53 = vld [vmem:[%s4283_s4 + $0x4e0] ss:$16 sps:$4 sm:$0xff]   ;;  %v3453_v54 = vld [vmem:[%s4283_s4 + $0x4e8] ss:$16 sps:$4 sm:$0xff]  }
 0x110   : > { %2419 = vmatprep.subr.bf16.mxu0 %v3368_v55  ;;  %2583 = vmatprep.subr.bf16.mxu1 %v3371_v56  ;;  %v3458_v55 = vld [vmem:[%s4283_s4 + $0x504] ss:$16 sps:$4 sm:$0xff]   ;;  %v3461_v56 = vld [vmem:[%s4283_s4 + $0x50c] ss:$16 sps:$4 sm:$0xff]  }
 0x113   : > { %2420 = vmatpush1.bf16.msra.mxu0 %v3366_v57  ;;  %2584 = vmatpush1.bf16.msra.mxu1 %v3369_v58  ;;  %v3456_v57 = vld [vmem:[%s4283_s4 + $0x500] ss:$16 sps:$4 sm:$0xff]   ;;  %v3459_v58 = vld [vmem:[%s4283_s4 + $0x508] ss:$16 sps:$4 sm:$0xff]  }
 0x114   : > { %2421 = vmatprep.subr.bf16.mxu0 %v3374_v59  ;;  %2585 = vmatprep.subr.bf16.mxu1 %v3377_v60  ;;  %v3464_v59 = vld [vmem:[%s4283_s4 + $0x524] ss:$16 sps:$4 sm:$0xff]   ;;  %v3467_v60 = vld [vmem:[%s4283_s4 + $0x52c] ss:$16 sps:$4 sm:$0xff]  }
 0x117   : > { %2422 = vmatpush1.bf16.msra.mxu0 %v3372_v61  ;;  %2586 = vmatpush1.bf16.msra.mxu1 %v3375_v62  ;;  %v3462_v61 = vld [vmem:[%s4283_s4 + $0x520] ss:$16 sps:$4 sm:$0xff]   ;;  %v3465_v62 = vld [vmem:[%s4283_s4 + $0x528] ss:$16 sps:$4 sm:$0xff]  }
 0x118   : > { %2423 = vmatprep.subr.bf16.mxu0 %v3380_v63  ;;  %2587 = vmatprep.subr.bf16.mxu1 %v3383_v0  ;;  %v3470_v63 = vld [vmem:[%s4283_s4 + $0x544] ss:$16 sps:$4 sm:$0xff]   ;;  %v3473_v0 = vld [vmem:[%s4283_s4 + $0x54c] ss:$16 sps:$4 sm:$0xff]  }
 0x11b   : > { %2424 = vmatpush1.bf16.msra.mxu0 %v3378_v1  ;;  %2588 = vmatpush1.bf16.msra.mxu1 %v3381_v2  ;;  %v3468_v1 = vld [vmem:[%s4283_s4 + $0x540] ss:$16 sps:$4 sm:$0xff]   ;;  %v3471_v2 = vld [vmem:[%s4283_s4 + $0x548] ss:$16 sps:$4 sm:$0xff]  }
 0x11c   : > { %2425 = vmatprep.subr.bf16.mxu0 %v3386_v3  ;;  %2589 = vmatprep.subr.bf16.mxu1 %v3389_v4  ;;  %v3476_v3 = vld [vmem:[%s4283_s4 + $0x564] ss:$16 sps:$4 sm:$0xff]   ;;  %v3479_v4 = vld [vmem:[%s4283_s4 + $0x56c] ss:$16 sps:$4 sm:$0xff]  }
 0x11f   : > { %2426 = vmatpush1.bf16.msra.mxu0 %v3384_v5  ;;  %2590 = vmatpush1.bf16.msra.mxu1 %v3387_v6  ;;  %v3474_v5 = vld [vmem:[%s4283_s4 + $0x560] ss:$16 sps:$4 sm:$0xff]   ;;  %v3477_v6 = vld [vmem:[%s4283_s4 + $0x568] ss:$16 sps:$4 sm:$0xff]  }
 0x120   : > { %2427 = vmatprep.subr.bf16.mxu0 %v3392_v7  ;;  %2591 = vmatprep.subr.bf16.mxu1 %v3395_v8  ;;  %v3482_v7 = vld [vmem:[%s4283_s4 + $0x584] ss:$16 sps:$4 sm:$0xff]   ;;  %v3485_v8 = vld [vmem:[%s4283_s4 + $0x58c] ss:$16 sps:$4 sm:$0xff]  }
 0x123   : > { %2428 = vmatpush1.bf16.msra.mxu0 %v3390_v9  ;;  %2592 = vmatpush1.bf16.msra.mxu1 %v3393_v10  ;;  %v3480_v9 = vld [vmem:[%s4283_s4 + $0x580] ss:$16 sps:$4 sm:$0xff]   ;;  %v3483_v10 = vld [vmem:[%s4283_s4 + $0x588] ss:$16 sps:$4 sm:$0xff]  }
 0x124   : > { %2429 = vmatprep.subr.bf16.mxu0 %v3398_v11  ;;  %2593 = vmatprep.subr.bf16.mxu1 %v3401_v12  ;;  %v3488_v11 = vld [vmem:[%s4283_s4 + $0x5a4] ss:$16 sps:$4 sm:$0xff]   ;;  %v3491_v12 = vld [vmem:[%s4283_s4 + $0x5ac] ss:$16 sps:$4 sm:$0xff]  }
 0x127   : > { %2430 = vmatpush1.bf16.msra.mxu0 %v3396_v13  ;;  %2594 = vmatpush1.bf16.msra.mxu1 %v3399_v14  ;;  %v3486_v13 = vld [vmem:[%s4283_s4 + $0x5a0] ss:$16 sps:$4 sm:$0xff]   ;;  %v3489_v14 = vld [vmem:[%s4283_s4 + $0x5a8] ss:$16 sps:$4 sm:$0xff]  }
 0x128   : > { %2431 = vmatprep.subr.bf16.mxu0 %v3404_v15  ;;  %2595 = vmatprep.subr.bf16.mxu1 %v3407_v17  ;;  %v3494_v15 = vld [vmem:[%s4283_s4 + $0x5c4] ss:$16 sps:$4 sm:$0xff]   ;;  %v3497_v17 = vld [vmem:[%s4283_s4 + $0x5cc] ss:$16 sps:$4 sm:$0xff]  }
 0x12b   : > { %2432 = vmatpush1.bf16.msra.mxu0 %v3402_v18  ;;  %2596 = vmatpush1.bf16.msra.mxu1 %v3405_v19  ;;  %v3492_v18 = vld [vmem:[%s4283_s4 + $0x5c0] ss:$16 sps:$4 sm:$0xff]   ;;  %v3495_v19 = vld [vmem:[%s4283_s4 + $0x5c8] ss:$16 sps:$4 sm:$0xff]  }
 0x12c   : > { %2442 = vmatprep.subr.bf16.mxu0 %v3410_v20  ;;  %2606 = vmatprep.subr.bf16.mxu1 %v3413_v23  ;;  %v3500_v20 = vld [vmem:[%s4283_s4 + $0x5e4] ss:$16 sps:$4 sm:$0xff]   ;;  %v3503_v23 = vld [vmem:[%s4283_s4 + $0x5ec] ss:$16 sps:$4 sm:$0xff]  }
 0x12e   : > { %2434 = vmatmul.mubr.bf16.vlgmr.msra.gmra.mrb[0].mxu0 %v1068_v25  ;;  %2598 = vmatmul.mubr.bf16.vlgmr.msra.gmra.mrb[0].mxu1 %v1068_v25  ;;  %v3501_v25 = vld [vmem:[%s4283_s4 + $0x5e8] ss:$16 sps:$4 sm:$0xff]  }
 0x12f   : > { %2443 = vmatpush1.bf16.msra.mxu0 %v3408_v24  ;;  %2607 = vmatpush1.bf16.msra.mxu1 %v3411_v26  ;;  %v3498_v24 = vld [vmem:[%s4283_s4 + $0x5e0] ss:$16 sps:$4 sm:$0xff]   ;;  %v3507_v26 = vld [vmem:[%s4283_s4 + $0x604] ss:$16 sps:$4 sm:$0xff]  }
 0x130   : > { %2444 = vmatprep.subr.bf16.mxu0 %v3416_v27  ;;  %2608 = vmatprep.subr.bf16.mxu1 %v3419_v28  ;;  %v3510_v27 = vld [vmem:[%s4283_s4 + $0x60c] ss:$16 sps:$4 sm:$0xff]   ;;  %v3505_v28 = vld [vmem:[%s4283_s4 + $0x600] ss:$16 sps:$4 sm:$0xff]  }
 0x131   : > { %2474 = vmatprep.mubr.bf16.mxu0 %v4374_v21  ;;  %2638 = vmatprep.mubr.bf16.mxu1 %v4374_v21 }
 0x133   : > { %2445 = vmatpush1.bf16.msra.mxu0 %v3414_v29  ;;  %2609 = vmatpush1.bf16.msra.mxu1 %v3417_v16  ;;  %v3508_v29 = vld [vmem:[%s4283_s4 + $0x608] ss:$16 sps:$4 sm:$0xff]   ;;  %v3513_v16 = vld [vmem:[%s4283_s4 + $0x624] ss:$16 sps:$4 sm:$0xff]  }
 0x134   : > { %2446 = vmatprep.subr.bf16.mxu0 %v3422_v30  ;;  %2610 = vmatprep.subr.bf16.mxu1 %v3425_v31  ;;  %v3516_v30 = vld [vmem:[%s4283_s4 + $0x62c] ss:$16 sps:$4 sm:$0xff]   ;;  %v1071_v31 = vcombine.high %v4374_v21, %v4374_v21  ;;  %v3517_v21 = vld [vmem:[%s4283_s4 + $0x640] ss:$16 sps:$4 sm:$0xff]  }
 0x137   : > { %2447 = vmatpush1.bf16.msra.mxu0 %v3420_v32  ;;  %2611 = vmatpush1.bf16.msra.mxu1 %v3423_v33  ;;  %v3511_v32 = vld [vmem:[%s4283_s4 + $0x620] ss:$16 sps:$4 sm:$0xff]   ;;  %v3514_v33 = vld [vmem:[%s4283_s4 + $0x628] ss:$16 sps:$4 sm:$0xff]  }
 0x138   : > { %2448 = vmatprep.subr.bf16.mxu0 %v3428_v34  ;;  %2612 = vmatprep.subr.bf16.mxu1 %v3431_v35  ;;  %v3519_v34 = vld [vmem:[%s4283_s4 + $0x644] ss:$16 sps:$4 sm:$0xff]   ;;  %v3522_v35 = vld [vmem:[%s4283_s4 + $0x64c] ss:$16 sps:$4 sm:$0xff]  }
 0x13b   : > { %2449 = vmatpush1.bf16.msra.mxu0 %v3426_v36  ;;  %2613 = vmatpush1.bf16.msra.mxu1 %v3429_v37  ;;  %v3520_v36 = vld [vmem:[%s4283_s4 + $0x648] ss:$16 sps:$4 sm:$0xff]   ;;  %v3525_v37 = vld [vmem:[%s4283_s4 + $0x664] ss:$16 sps:$4 sm:$0xff]  }
 0x13c   : > { %2450 = vmatprep.subr.bf16.mxu0 %v3434_v38  ;;  %2614 = vmatprep.subr.bf16.mxu1 %v3437_v39  ;;  %v3528_v38 = vld [vmem:[%s4283_s4 + $0x66c] ss:$16 sps:$4 sm:$0xff]   ;;  %v3523_v39 = vld [vmem:[%s4283_s4 + $0x660] ss:$16 sps:$4 sm:$0xff]  }
 0x13f   : > { %2451 = vmatpush1.bf16.msra.mxu0 %v3432_v40  ;;  %2615 = vmatpush1.bf16.msra.mxu1 %v3435_v41  ;;  %v3526_v40 = vld [vmem:[%s4283_s4 + $0x668] ss:$16 sps:$4 sm:$0xff]   ;;  %v3531_v41 = vld [vmem:[%s4283_s4 + $0x684] ss:$16 sps:$4 sm:$0xff]  }
 0x140   : > { %2452 = vmatprep.subr.bf16.mxu0 %v3440_v42  ;;  %2616 = vmatprep.subr.bf16.mxu1 %v3443_v43  ;;  %v3534_v42 = vld [vmem:[%s4283_s4 + $0x68c] ss:$16 sps:$4 sm:$0xff]   ;;  %v3529_v43 = vld [vmem:[%s4283_s4 + $0x680] ss:$16 sps:$4 sm:$0xff]  }
 0x143   : > { %2453 = vmatpush1.bf16.msra.mxu0 %v3438_v45  ;;  %2617 = vmatpush1.bf16.msra.mxu1 %v3441_v46  ;;  %v3532_v45 = vld [vmem:[%s4283_s4 + $0x688] ss:$16 sps:$4 sm:$0xff]   ;;  %v3537_v46 = vld [vmem:[%s4283_s4 + $0x6a4] ss:$16 sps:$4 sm:$0xff]  }
 0x144   : > { %2454 = vmatprep.subr.bf16.mxu0 %v3446_v47  ;;  %2618 = vmatprep.subr.bf16.mxu1 %v3449_v48  ;;  %v3540_v47 = vld [vmem:[%s4283_s4 + $0x6ac] ss:$16 sps:$4 sm:$0xff]   ;;  %v3535_v48 = vld [vmem:[%s4283_s4 + $0x6a0] ss:$16 sps:$4 sm:$0xff]  }
 0x147   : > { %2455 = vmatpush1.bf16.msra.mxu0 %v3444_v49  ;;  %2619 = vmatpush1.bf16.msra.mxu1 %v3447_v50  ;;  %v3538_v49 = vld [vmem:[%s4283_s4 + $0x6a8] ss:$16 sps:$4 sm:$0xff]   ;;  %v3543_v50 = vld [vmem:[%s4283_s4 + $0x6c4] ss:$16 sps:$4 sm:$0xff]  }
 0x148   : > { %2456 = vmatprep.subr.bf16.mxu0 %v3452_v51  ;;  %2620 = vmatprep.subr.bf16.mxu1 %v3455_v52  ;;  %v3546_v51 = vld [vmem:[%s4283_s4 + $0x6cc] ss:$16 sps:$4 sm:$0xff]   ;;  %v3541_v52 = vld [vmem:[%s4283_s4 + $0x6c0] ss:$16 sps:$4 sm:$0xff]  }
 0x14b   : > { %2457 = vmatpush1.bf16.msra.mxu0 %v3450_v53  ;;  %2621 = vmatpush1.bf16.msra.mxu1 %v3453_v54  ;;  %v3544_v53 = vld [vmem:[%s4283_s4 + $0x6c8] ss:$16 sps:$4 sm:$0xff]   ;;  %v3549_v54 = vld [vmem:[%s4283_s4 + $0x6e4] ss:$16 sps:$4 sm:$0xff]  }
 0x14c   : > { %2458 = vmatprep.subr.bf16.mxu0 %v3458_v55  ;;  %2622 = vmatprep.subr.bf16.mxu1 %v3461_v56  ;;  %v3552_v55 = vld [vmem:[%s4283_s4 + $0x6ec] ss:$16 sps:$4 sm:$0xff]   ;;  %v3547_v56 = vld [vmem:[%s4283_s4 + $0x6e0] ss:$16 sps:$4 sm:$0xff]  }
 0x14f   : > { %2459 = vmatpush1.bf16.msra.mxu0 %v3456_v57  ;;  %2623 = vmatpush1.bf16.msra.mxu1 %v3459_v58  ;;  %v3550_v57 = vld [vmem:[%s4283_s4 + $0x6e8] ss:$16 sps:$4 sm:$0xff]   ;;  %v3555_v58 = vld [vmem:[%s4283_s4 + $0x704] ss:$16 sps:$4 sm:$0xff]  }
 0x150   : > { %2460 = vmatprep.subr.bf16.mxu0 %v3464_v59  ;;  %2624 = vmatprep.subr.bf16.mxu1 %v3467_v60  ;;  %v3558_v59 = vld [vmem:[%s4283_s4 + $0x70c] ss:$16 sps:$4 sm:$0xff]   ;;  %v3553_v60 = vld [vmem:[%s4283_s4 + $0x700] ss:$16 sps:$4 sm:$0xff]  }
 0x153   : > { %2461 = vmatpush1.bf16.msra.mxu0 %v3462_v61  ;;  %2625 = vmatpush1.bf16.msra.mxu1 %v3465_v62  ;;  %v3556_v61 = vld [vmem:[%s4283_s4 + $0x708] ss:$16 sps:$4 sm:$0xff]   ;;  %v3561_v62 = vld [vmem:[%s4283_s4 + $0x724] ss:$16 sps:$4 sm:$0xff]  }
 0x154   : > { %2462 = vmatprep.subr.bf16.mxu0 %v3470_v63  ;;  %2626 = vmatprep.subr.bf16.mxu1 %v3473_v0  ;;  %v3564_v63 = vld [vmem:[%s4283_s4 + $0x72c] ss:$16 sps:$4 sm:$0xff]   ;;  %v3559_v0 = vld [vmem:[%s4283_s4 + $0x720] ss:$16 sps:$4 sm:$0xff]  }
 0x157   : > { %2463 = vmatpush1.bf16.msra.mxu0 %v3468_v1  ;;  %2627 = vmatpush1.bf16.msra.mxu1 %v3471_v2  ;;  %v3562_v1 = vld [vmem:[%s4283_s4 + $0x728] ss:$16 sps:$4 sm:$0xff]   ;;  %v3567_v2 = vld [vmem:[%s4283_s4 + $0x744] ss:$16 sps:$4 sm:$0xff]  }
 0x158   : > { %2464 = vmatprep.subr.bf16.mxu0 %v3476_v3  ;;  %2628 = vmatprep.subr.bf16.mxu1 %v3479_v4  ;;  %v3570_v3 = vld [vmem:[%s4283_s4 + $0x74c] ss:$16 sps:$4 sm:$0xff]   ;;  %v3565_v4 = vld [vmem:[%s4283_s4 + $0x740] ss:$16 sps:$4 sm:$0xff]  }
 0x15b   : > { %2465 = vmatpush1.bf16.msra.mxu0 %v3474_v5  ;;  %2629 = vmatpush1.bf16.msra.mxu1 %v3477_v6  ;;  %v3568_v5 = vld [vmem:[%s4283_s4 + $0x748] ss:$16 sps:$4 sm:$0xff]   ;;  %v3573_v6 = vld [vmem:[%s4283_s4 + $0x764] ss:$16 sps:$4 sm:$0xff]  }
 0x15c   : > { %2466 = vmatprep.subr.bf16.mxu0 %v3482_v7  ;;  %2630 = vmatprep.subr.bf16.mxu1 %v3485_v8  ;;  %v3576_v7 = vld [vmem:[%s4283_s4 + $0x76c] ss:$16 sps:$4 sm:$0xff]   ;;  %v3571_v8 = vld [vmem:[%s4283_s4 + $0x760] ss:$16 sps:$4 sm:$0xff]  }
 0x15f   : > { %2467 = vmatpush1.bf16.msra.mxu0 %v3480_v9  ;;  %2631 = vmatpush1.bf16.msra.mxu1 %v3483_v10  ;;  %v3574_v9 = vld [vmem:[%s4283_s4 + $0x768] ss:$16 sps:$4 sm:$0xff]   ;;  %v3579_v10 = vld [vmem:[%s4283_s4 + $0x784] ss:$16 sps:$4 sm:$0xff]  }
 0x160   : > { %2468 = vmatprep.subr.bf16.mxu0 %v3488_v11  ;;  %2632 = vmatprep.subr.bf16.mxu1 %v3491_v12  ;;  %v3582_v11 = vld [vmem:[%s4283_s4 + $0x78c] ss:$16 sps:$4 sm:$0xff]   ;;  %v3577_v12 = vld [vmem:[%s4283_s4 + $0x780] ss:$16 sps:$4 sm:$0xff]  }
 0x163   : > { %2469 = vmatpush1.bf16.msra.mxu0 %v3486_v13  ;;  %2633 = vmatpush1.bf16.msra.mxu1 %v3489_v14  ;;  %v3580_v13 = vld [vmem:[%s4283_s4 + $0x788] ss:$16 sps:$4 sm:$0xff]   ;;  %v3585_v14 = vld [vmem:[%s4283_s4 + $0x7a4] ss:$16 sps:$4 sm:$0xff]  }
 0x164   : > { %2470 = vmatprep.subr.bf16.mxu0 %v3494_v15  ;;  %2634 = vmatprep.subr.bf16.mxu1 %v3497_v17  ;;  %v3588_v15 = vld [vmem:[%s4283_s4 + $0x7ac] ss:$16 sps:$4 sm:$0xff]   ;;  %v3583_v17 = vld [vmem:[%s4283_s4 + $0x7a0] ss:$16 sps:$4 sm:$0xff]  }
 0x167   : > { %2471 = vmatpush1.bf16.msra.mxu0 %v3492_v18  ;;  %2635 = vmatpush1.bf16.msra.mxu1 %v3495_v19  ;;  %v3586_v18 = vld [vmem:[%s4283_s4 + $0x7a8] ss:$16 sps:$4 sm:$0xff]   ;;  %v3591_v19 = vld [vmem:[%s4283_s4 + $0x7c4] ss:$16 sps:$4 sm:$0xff]  }
 0x168   : > { %2472 = vmatprep.subr.bf16.mxu0 %v3500_v20  ;;  %2636 = vmatprep.subr.bf16.mxu1 %v3503_v23  ;;  %v3594_v20 = vld [vmem:[%s4283_s4 + $0x7cc] ss:$16 sps:$4 sm:$0xff]   ;;  %v3589_v23 = vld [vmem:[%s4283_s4 + $0x7c0] ss:$16 sps:$4 sm:$0xff]  }
 0x16b   : > { %2473 = vmatpush1.bf16.msra.mxu0 %v3498_v24  ;;  %2637 = vmatpush1.bf16.msra.mxu1 %v3501_v25  ;;  %v3592_v24 = vld [vmem:[%s4283_s4 + $0x7c8] ss:$16 sps:$4 sm:$0xff]   ;;  %v3597_v25 = vld [vmem:[%s4283_s4 + $0x7e4] ss:$16 sps:$4 sm:$0xff]  }
 0x16c   : > { %2483 = vmatprep.subr.bf16.mxu0 %v3507_v26  ;;  %2647 = vmatprep.subr.bf16.mxu1 %v3510_v27  ;;  %v3600_v26 = vld [vmem:[%s4283_s4 + $0x7ec] ss:$16 sps:$4 sm:$0xff]   ;;  %v3595_v27 = vld [vmem:[%s4283_s4 + $0x7e0] ss:$16 sps:$4 sm:$0xff]  }
 0x16e   : > { %2475 = vmatmul.mubr.bf16.vlgmr.msra.gmra.mrb[0].mxu0 %v4377_v22  ;;  %2639 = vmatmul.mubr.bf16.vlgmr.msra.gmra.mrb[0].mxu1 %v4377_v22 }
 0x16f   : > { %2484 = vmatpush1.bf16.msra.mxu0 %v3505_v28  ;;  %2648 = vmatpush1.bf16.msra.mxu1 %v3508_v29  ;;  %v3598_v28 = vld [vmem:[%s4283_s4 + $0x7e8] ss:$16 sps:$4 sm:$0xff]   ;;  %v1069_v29 = vcombine.high %v4377_v22, %v4377_v22 }
 0x170   : > { %2485 = vmatprep.subr.bf16.mxu0 %v3513_v16  ;;  %2649 = vmatprep.subr.bf16.mxu1 %v3516_v30  ;;  %v3663_v16 = vmov 1983009808  }
 0x171   : > { %2515 = vmatprep.mubr.bf16.mxu0 %v1071_v31  ;;  %2679 = vmatprep.mubr.bf16.mxu1 %v1071_v31  ;;  %v2695_v30 = vunpack.c.l.s4 %v3663_v16 }
 0x173   : > { %2486 = vmatpush1.bf16.msra.mxu0 %v3511_v32  ;;  %2650 = vmatpush1.bf16.msra.mxu1 %v3514_v33  ;;  %v2696_v31 = vunpack.c.0.s8 %v2695_v30 }
 0x174   : > { %2487 = vmatprep.subr.bf16.mxu0 %v3519_v34  ;;  %2651 = vmatprep.subr.bf16.mxu1 %v3522_v35 }
 0x175   : > { %v2699_v34 = vsub.s32 %v2696_v31, %v4326_v44 }
 0x177   : > { %2488 = vmatpush1.bf16.msra.mxu0 %v3517_v21  ;;  %2652 = vmatpush1.bf16.msra.mxu1 %v3520_v36 }
 0x178   : > { %2489 = vmatprep.subr.bf16.mxu0 %v3525_v37  ;;  %2653 = vmatprep.subr.bf16.mxu1 %v3528_v38 }
 0x17b   : > { %2490 = vmatpush1.bf16.msra.mxu0 %v3523_v39  ;;  %2654 = vmatpush1.bf16.msra.mxu1 %v3526_v40 }
 0x17c   : > { %2491 = vmatprep.subr.bf16.mxu0 %v3531_v41  ;;  %2655 = vmatprep.subr.bf16.mxu1 %v3534_v42 }
 0x17f   : > { %2492 = vmatpush1.bf16.msra.mxu0 %v3529_v43  ;;  %2656 = vmatpush1.bf16.msra.mxu1 %v3532_v45  ;;  %v764_v43 = vld [vmem:[%s4281_s15] sm:$0xff] }
 0x180   : > { %2493 = vmatprep.subr.bf16.mxu0 %v3537_v46  ;;  %2657 = vmatprep.subr.bf16.mxu1 %v3540_v47  ;;  %v2717_v47 = vld [vmem:[%s751_s12] sm:$0xf] (!%p3128_p13) }
 0x183   : > { %2494 = vmatpush1.bf16.msra.mxu0 %v3535_v48  ;;  %2658 = vmatpush1.bf16.msra.mxu1 %v3538_v49  ;;  %v2721_v48 = vsub.s32 (!%p3128_p13), 0, %v4326_v44  ;;  %v2725_v49 = vsub.s32 (!%p3128_p13), 1, %v4326_v44 }
 0x184   : > { %2495 = vmatprep.subr.bf16.mxu0 %v3543_v50  ;;  %2659 = vmatprep.subr.bf16.mxu1 %v3546_v51  ;;  %v2729_v50 = vsub.s32 (!%p3128_p13), 2, %v4326_v44  ;;  %v2733_v51 = vsub.s32 (!%p3128_p13), 3, %v4326_v44 }
 0x187   : > { %2496 = vmatpush1.bf16.msra.mxu0 %v3541_v52  ;;  %2660 = vmatpush1.bf16.msra.mxu1 %v3544_v53  ;;  %v2722_v52 = vrot.slane (!%p3128_p13), %v2717_v47, %v2721_v48  ;;  %v2726_v53 = vrot.slane (!%p3128_p13), %v2717_v47, %v2725_v49 }
 0x188   : > { %2497 = vmatprep.subr.bf16.mxu0 %v3549_v54  ;;  %2661 = vmatprep.subr.bf16.mxu1 %v3552_v55  ;;  %v2730_v54 = vrot.slane (!%p3128_p13), %v2717_v47, %v2729_v50  ;;  %v2734_v55 = vrot.slane (!%p3128_p13), %v2717_v47, %v2733_v51 }
 0x18b   : > { %2498 = vmatpush1.bf16.msra.mxu0 %v3547_v56  ;;  %2662 = vmatpush1.bf16.msra.mxu1 %v3550_v57  ;;  %v2735_v56 = vcombine.low (!%p3128_p13), %v2722_v52, %v2726_v53  ;;  %v2736_v57 = vcombine.low (!%p3128_p13), %v2730_v54, %v2734_v55 }
 0x18c   : > { %2499 = vmatprep.subr.bf16.mxu0 %v3555_v58  ;;  %2663 = vmatprep.subr.bf16.mxu1 %v3558_v59 }
 0x18d   : > { %v2743_v58 = vrot.slane (!%p3128_p13), %v2735_v56, %v2699_v34  ;;  %v2750_v59 = vrot.slane (!%p3128_p13), %v2736_v57, %v2699_v34 }
 0x18f   : > { %2500 = vmatpush1.bf16.msra.mxu0 %v3553_v60  ;;  %2664 = vmatpush1.bf16.msra.mxu1 %v3556_v61  ;;  %v2751_v61 = vcombine.low (!%p3128_p13), %v2743_v58, %v2750_v59 }
 0x190   : > { %2501 = vmatprep.subr.bf16.mxu0 %v3561_v62  ;;  %2665 = vmatprep.subr.bf16.mxu1 %v3564_v63 }
 0x193   : > { %2502 = vmatpush1.bf16.msra.mxu0 %v3559_v0  ;;  %2666 = vmatpush1.bf16.msra.mxu1 %v3562_v1 }
 0x194   : > { %2503 = vmatprep.subr.bf16.mxu0 %v3567_v2  ;;  %2667 = vmatprep.subr.bf16.mxu1 %v3570_v3 }
 0x197   : > { %2504 = vmatpush1.bf16.msra.mxu0 %v3565_v4  ;;  %2668 = vmatpush1.bf16.msra.mxu1 %v3568_v5 }
 0x198   : > { %2505 = vmatprep.subr.bf16.mxu0 %v3573_v6  ;;  %2669 = vmatprep.subr.bf16.mxu1 %v3576_v7 }
 0x19b   : > { %2506 = vmatpush1.bf16.msra.mxu0 %v3571_v8  ;;  %2670 = vmatpush1.bf16.msra.mxu1 %v3574_v9 }
 0x19c   : > { %2507 = vmatprep.subr.bf16.mxu0 %v3579_v10  ;;  %2671 = vmatprep.subr.bf16.mxu1 %v3582_v11 }
 0x19f   : > { %2508 = vmatpush1.bf16.msra.mxu0 %v3577_v12  ;;  %2672 = vmatpush1.bf16.msra.mxu1 %v3580_v13 }
 0x1a0   : > { %2509 = vmatprep.subr.bf16.mxu0 %v3585_v14  ;;  %2673 = vmatprep.subr.bf16.mxu1 %v3588_v15 }
 0x1a3   : > { %2510 = vmatpush1.bf16.msra.mxu0 %v3583_v17  ;;  %2674 = vmatpush1.bf16.msra.mxu1 %v3586_v18 }
 0x1a4   : > { %2511 = vmatprep.subr.bf16.mxu0 %v3591_v19  ;;  %2675 = vmatprep.subr.bf16.mxu1 %v3594_v20 }
 0x1a7   : > { %2512 = vmatpush1.bf16.msra.mxu0 %v3589_v23  ;;  %2676 = vmatpush1.bf16.msra.mxu1 %v3592_v24 }
 0x1a8   : > { %2513 = vmatprep.subr.bf16.mxu0 %v3597_v25  ;;  %2677 = vmatprep.subr.bf16.mxu1 %v3600_v26 }
 0x1ab   : > { %2514 = vmatpush1.bf16.msra.mxu0 %v3595_v27  ;;  %2678 = vmatpush1.bf16.msra.mxu1 %v3598_v28 }
 0x1ae   : > { %2516 = vmatmul.mubr.bf16.vlgmr.msra.gmra.mrb[0].mxu0 %v1069_v29  ;;  %2680 = vmatmul.mubr.bf16.vlgmr.msra.gmra.mrb[0].mxu1 %v1069_v29 }
 0x281   : > { %v2517_v32 = vpop.f32.mrb[0].mxu0  ;;  %v2681_v33 = vpop.f32.mrb[0].mxu1 }
 0x282   : > { %v2519_v35 = vpop.f32.mrb[1].mxu0  ;;  %v2683_v21 = vpop.f32.mrb[1].mxu1 }
 0x283   : > { %v2692_v36 = vcombine.low %v2517_v32, %v2519_v35  ;;  %v2693_v37 = vcombine.low %v2681_v33, %v2683_v21  ;;  %v2521_v38 = vpop.f32.mrb[2].mxu0  ;;  %v2685_v39 = vpop.f32.mrb[2].mxu1 }
 0x284   : > { %v2522_v22 = vpop.f32.mrb[3].mxu0  ;;  %v2686_v40 = vpop.f32.mrb[3].mxu1 }
 0x285   : > { %v2700_v41 = vrot.slane %v2692_v36, %v2699_v34  ;;  %v2707_v42 = vrot.slane %v2693_v37, %v2699_v34  ;;  %2715 = sbr.rel (%p3128_p13) target bundleno = 688 (0x2b0), region = 63 }
 0x287   : > { %v2708_v45 = vcombine.low %v2700_v41, %v2707_v42 }
 0x289   : > { %v2710_v46 = vadd.f32 %v2708_v45, %v764_v43 }
 0x28b   : > { %2711 = vst [vmem:[%s4281_s15] sm:$0xff] %v2710_v46 }
 0x292   : > { %v2716_v60 = vld [vmem:[%s4281_s15] sm:$0xff] }
 0x293   : > { %v2753_v62 = vadd.f32 %v2751_v61, %v2716_v60 }
 0x295   : > { %v3129_v63 = vmul.f32 -1.442695, %v2753_v62 }
 0x297   : > { %3601 = vpow2.f32 %v3129_v63 }
 0x2a1   : > { %v3602_v0 = vpop.eup %3601 }
 0x2a2   : > { %v2757_v1 = vadd.f32 1.0, %v3602_v0 }
 0x2a4   : > { %3603 = vrcp.f32 %v2757_v1 }
 0x2ae   : > { %v3604_v2 = vpop.eup %3603 }
 0x2af   : > { %2760 = vst [vmem:[%s4281_s15] sm:$0xff] %v3604_v2 }
 0x2b0 PF: > { %s13_s18 = sadd.s32 1, %s3659_s18   ;;  %s4617_s12 = smov %s3639_s13 }
 0x2b1   : > { %p10_p0 = scmp.ge.s32.totalorder %s13_s18, 18   ;;  %s4618_s13 = smov %s3735_s25 }
 0x2b2   : > { %s4619_s14 = smov %s3651_s16  ;;  %s4620_s15 = smov %s3655_s17 }
 0x2b3   : > { %s4621_s16 = smov %s4624_s19  ;;  %s4622_s17 = smov %s4628_s20 }
 0x2b4   :  { %12 = sbr.rel (!%p10_p0) target bundleno = 4 (0x4), region = 104 }

// kernel: localnet_forward.5
= control target key start
LH: loop header
LB: loop body
LE: loop exit
PB: predicated region body
PF: predicated region fallthrough
CT: control target
= control target key end

     0   :  { %s177_s0 = inlined_call_operand.vmem [shape: f32[2,1024], index: 0, kind: input, shape index: {}]   ;;  %s178_s1 = inlined_call_operand.hbm [shape: f32[2,1024], index: 1, kind: output, shape index: {}]  }
   0x1   :  { %v9_v0 = vld [vmem:[%s177_s0] sm:$0xff]  ;;  %v10_v1 = vld [vmem:[%s177_s0 + $0x8] sm:$0xff] }
   0x2   :  { %v11_v2 = vmul.f32 1.442695, %v9_v0  ;;  %v13_v3 = vmul.f32 1.442695, %v10_v1 }
   0x3   :  { %6 = vsyncpa [#allocation3], 0  ;;  %v138_v4 = vmov 1983009808   ;;  %v21_v6 = vlaneseq  ;;  %vm59_vm0 = vcmask 1041408   ;;  %s140_s0 = smov [#allocation2]  }
   0x4   :  { %v19_v5 = vunpack.c.l.s4 %v138_v4  ;;  %108 = vpow2.f32 %v11_v2  ;;  %v139_v37 = vmov 269488144   ;;  %s97_s10 = sshll.u32 %s140_s0, 4  ;;  %s98_s10 = int_to_ptr.vmem [resolvable:$true] %s97_s10 }
   0x5   :  { %110 = vpow2.f32 %v13_v3  ;;  %v22_v8 = vshrl.u32 %v21_v6, 7  ;;  %v79_v38 = vunpack.c.l.s4 %v139_v37  ;;  %s114_s11 = scalar_lea.vmem %s98_s10, 256  ;;  %p119_p1 = scmp.lt.s32.totalorder %s98_s10, %s98_s10 }
   0x6   :  { %v20_v7 = vunpack.c.0.s8 %v19_v5  ;;  %p115_p0 = scmp.ne.s32.totalorder %s98_s10, %s114_s11  ;;  %p120_p2 = scmp.lt.s32.totalorder %s114_s11, %s114_s11 }
   0x7   :  { %v80_v39 = vunpack.c.0.s8 %v79_v38 }
   0x8   :  { %v23_v9 = vsub.s32 %v20_v7, %v22_v8  ;;  %p121_p3 = por %p120_p2, %p119_p1 }
   0x9   :  { %v83_v40 = vsub.s32 %v80_v39, %v22_v8 }
   0xa   :  { %p122_p4 = pnand %p121_p3, %p115_p0 }
   0xe   :  { %v109_v10 = vpop.eup %108 }
   0xf   :  { %v111_v11 = vpop.eup %110  ;;  %v17_v12 = vcombine.high %v109_v10, %v109_v10  ;;  %v24_v13 = vrot.slane %v109_v10, %v23_v9 }
  0x10   :  { %v34_v14 = vcombine.high %v111_v11, %v111_v11  ;;  %v41_v17 = vrot.slane %v111_v11, %v23_v9 }
  0x11   :  { %v31_v15 = vrot.slane %v17_v12, %v23_v9  ;;  %v32_v16 = vcombine.high %v24_v13, %v24_v13  ;;  %v60_v18 = vsel %vm59_vm0, %v24_v13, 0.0 }
  0x12   :  { %v48_v23 = vrot.slane %v34_v14, %v23_v9  ;;  %v49_v24 = vcombine.high %v41_v17, %v41_v17  ;;  %v67_v27 = vsel %vm59_vm0, %v41_v17, 0.0 }
  0x13   :  { %v33_v19 = vcombine.high %v31_v15, %v31_v15  ;;  %v61_v20 = vsel %vm59_vm0, %v32_v16, 0.0  ;;  %v63_v21 = vsel %vm59_vm0, %v31_v15, 0.0 }
  0x14   :  { %v62_v22 = vadd.f32 %v61_v20, %v60_v18  ;;  %v50_v29 = vcombine.high %v48_v23, %v48_v23  ;;  %v69_v30 = vsel %vm59_vm0, %v49_v24, 0.0  ;;  %v71_v32 = vsel %vm59_vm0, %v48_v23, 0.0 }
  0x15   :  { %v65_v25 = vsel %vm59_vm0, %v33_v19, 0.0 }
  0x16   :  { %v64_v26 = vadd.f32 %v63_v21, %v62_v22  ;;  %v73_v34 = vsel %vm59_vm0, %v50_v29, 0.0 }
  0x18   :  { %v66_v28 = vadd.f32 %v65_v25, %v64_v26 }
  0x1a   :  { %v68_v31 = vadd.f32 %v67_v27, %v66_v28 }
  0x1c   :  { %v70_v33 = vadd.f32 %v69_v30, %v68_v31 }
  0x1e   :  { %v72_v35 = vadd.f32 %v71_v32, %v70_v33 }
  0x20   :  { %v74_v36 = vadd.f32 %v73_v34, %v72_v35 }
  0x22   :  { %75 = vadd.xlane.f32.xlu0 %v74_v36 }
  0xaf   :  { %v76_v41 = vpop.xlane.xlu0 %75 }
  0xb0   :  { %v84_v42 = vrot.slane %v76_v41, %v83_v40 }
  0xb2   :  { %112 = vrcp.f32 %v84_v42 }
  0xbc   :  { %v113_v43 = vpop.eup %112 }
  0xbd   :  { %v87_v44 = vmul.f32 %v113_v43, %v109_v10  ;;  %v88_v45 = vmul.f32 %v113_v43, %v111_v11 }
  0xbf   :  { %89 = vst [vmem:[#allocation2] sm:$0xff] %v87_v44  ;;  %90 = vst [vmem:[#allocation2 + $0x8] sm:$0xff] %v88_v45 }
  0xc0   :  { %125 = shalt.err (!%p122_p4)
}
  0xc1   :  { %s126_s14 = scalar_lea.hbm %s178_s1, 256 }
  0xc2   :  { %p127_p5 = scmp.ne.s32.totalorder %s178_s1, %s126_s14  ;;  %p130_p6 = scmp.lt.u32.totalorder %s126_s14, %s178_s1 }
  0xc4   :  { %p132_p7 = pnand %p130_p6, %p127_p5 }
  0xc6   :  { %135 = shalt.err (!%p132_p7)
}
  0xc7   :  { %100 = dma.vmem_to_hbm [thread:$0]  %s98_s10, 256, %s178_s1, [#allocation3]  }
  0xc8   :  { %136 = dma.done.wait [#allocation3], 256  }
  0xc9   :  { %137 = vsyncadd [#allocation3], 4294967040 }
  0xca   :  { %104 = vsyncpa [#allocation3], 1 }

</bundles_post_ra>
